<compile_context>
chip_gen: v7x
topology: tpu7x:2x2x1
jax: 0.10.0
libtpu: 0.0.40
codegen_flags: <defaults>
</compile_context>

<pallas_src>
import jax
import jax.numpy as jnp
from jax.experimental import pallas as pl
from jax.experimental.pallas import tpu as pltpu

C_IN = 512 + 768   # 1280
C_HID = 512
C_OUT = 1


def _local_disc_kernel(x_ref, w0_ref, b0_ref, w1_ref, b1_ref, w2_ref, b2_ref,
                       o_ref):
    # x_ref : (C_IN, tm)  f32   channels on sublanes, pixels on lanes
    # w0_ref: (C_HID, C_IN) bf16    w1_ref: (C_HID, C_HID) bf16
    # b0/b1 : (C_HID, 1) f32        w2_ref: (C_HID, 1) f32     b2_ref: (1, 1) f32
    x = x_ref[...].astype(jnp.bfloat16)

    # layer 0: (512,1280)@(1280,tm) on the MXU, f32 accumulation.
    h = jnp.dot(w0_ref[...], x, preferred_element_type=jnp.float32)
    h = jnp.maximum(h + b0_ref[...], 0.0).astype(jnp.bfloat16)      # ReLU(c0)

    # layer 1: (512,512)@(512,tm) on the MXU, f32 accumulation.
    h = jnp.dot(w1_ref[...], h, preferred_element_type=jnp.float32)
    h = jnp.maximum(h + b1_ref[...], 0.0)                           # ReLU(c1)

    # layer 2 (512 -> 1): VPU broadcast-multiply + cross-sublane reduce; keeps
    # the MXU free instead of spending full passes on a 1-wide output.
    o = jnp.sum(h * w2_ref[...], axis=0, keepdims=True) + b2_ref[...]
    o_ref[...] = o.astype(o_ref.dtype)                              # (1, tm)


def local_discriminator_pallas(x_nchw, params, *, tm=512):
    """x_nchw: (N, 1280, H, W) float32 -> (N, 1, H, W) float32."""
    w0, b0, w1, b1, w2, b2 = params
    N, C, H, W = x_nchw.shape
    assert C == C_IN
    HW = H * W

    # Pixel tile lives on the lane axis: multiple of 128, capped at what's needed.
    tm = max(128, min(tm, pl.cdiv(HW, 128) * 128))
    hw_pad = pl.cdiv(HW, tm) * tm

    x3 = x_nchw.reshape(N, C_IN, HW)                 # free reshape, no transpose
    if hw_pad != HW:
        x3 = jnp.pad(x3, ((0, 0), (0, 0), (0, hw_pad - HW)))

    # Conv weights (out, in, 1, 1) -> (out, in); matmul inputs cast once to bf16.
    w0m = w0.reshape(C_HID, C_IN).astype(jnp.bfloat16)
    w1m = w1.reshape(C_HID, C_HID).astype(jnp.bfloat16)
    w2c = w2.reshape(C_HID, 1).astype(jnp.float32)   # used on the VPU, keep f32
    b0c = b0.reshape(C_HID, 1).astype(jnp.float32)
    b1c = b1.reshape(C_HID, 1).astype(jnp.float32)
    b2c = b2.reshape(1, 1).astype(jnp.float32)

    grid = (N, hw_pad // tm)
    m_pixels = N * hw_pad
    cost = pl.CostEstimate(
        flops=2 * m_pixels * (C_IN * C_HID + C_HID * C_HID + C_HID),
        transcendentals=0,
        bytes_accessed=(x3.size * 4 + w0m.size * 2 + w1m.size * 2
                        + (3 * C_HID + 1) * 4 + m_pixels * 4))

    out3 = pl.pallas_call(
        _local_disc_kernel,
        out_shape=jax.ShapeDtypeStruct((N, C_OUT, hw_pad), jnp.float32),
        grid_spec=pltpu.PrefetchScalarGridSpec(
            num_scalar_prefetch=0,
            grid=grid,
            in_specs=[
                pl.BlockSpec((None, C_IN, tm), lambda n, j: (n, 0, j)),  # x tile
                pl.BlockSpec((C_HID, C_IN), lambda n, j: (0, 0)),        # w0
                pl.BlockSpec((C_HID, 1), lambda n, j: (0, 0)),           # b0
                pl.BlockSpec((C_HID, C_HID), lambda n, j: (0, 0)),       # w1
                pl.BlockSpec((C_HID, 1), lambda n, j: (0, 0)),           # b1
                pl.BlockSpec((C_HID, 1), lambda n, j: (0, 0)),           # w2 col
                pl.BlockSpec((1, 1), lambda n, j: (0, 0)),               # b2
            ],
            out_specs=pl.BlockSpec((None, C_OUT, tm), lambda n, j: (n, 0, j)),
        ),
        compiler_params=pltpu.CompilerParams(
            dimension_semantics=("parallel", "parallel")),
        cost_estimate=cost,
    )(x3, w0m, b0c, w1m, b1c, w2c, b2c)

    # (N, 1, HW_pad) -> drop padded pixels -> (N, 1, H, W); no transpose needed.
    return out3[:, :, :HW].reshape(N, C_OUT, H, W)


def init_params(key):
    """Deterministic synthetic init matching nn.Conv2d shapes."""
    ks = jax.random.split(key, 6)

    def u(k, shape, fan_in):
        bound = 1.0 / jnp.sqrt(fan_in)
        return jax.random.uniform(k, shape, jnp.float32, -bound, bound)

    w0 = u(ks[0], (C_HID, C_IN, 1, 1), C_IN)
    b0 = u(ks[1], (C_HID,), C_IN)
    w1 = u(ks[2], (C_HID, C_HID, 1, 1), C_HID)
    b1 = u(ks[3], (C_HID,), C_HID)
    w2 = u(ks[4], (C_OUT, C_HID, 1, 1), C_HID)
    b2 = u(ks[5], (C_OUT,), C_HID)
    return (w0, b0, w1, b1, w2, b2)


def reference_forward(x_nchw, params):
    """Pure-JAX f32 reference of the PyTorch forward (1x1 convs as matmuls)."""
    w0, b0, w1, b1, w2, b2 = params
    N, C, H, W = x_nchw.shape
    x2d = jnp.transpose(x_nchw, (0, 2, 3, 1)).reshape(-1, C)
    h = jax.nn.relu(x2d @ w0.reshape(C_HID, C_IN).T + b0)
    h = jax.nn.relu(h @ w1.reshape(C_HID, C_HID).T + b1)
    o = h @ w2.reshape(C_OUT, C_HID).T + b2
    return jnp.transpose(o.reshape(N, H, W, C_OUT), (0, 3, 1, 2))


if __name__ == "__main__":
    key = jax.random.PRNGKey(0)
    k_x, k_p = jax.random.split(key)

    # 2 * 32 * 32 = 2048 pixels -> grid (2, 2) at tm=512: exercises pipelining
    # and gives the "parallel" axes something to shard across TensorCores.
    N, H, W = 2, 32, 32
    x = jax.random.normal(k_x, (N, C_IN, H, W), jnp.float32)
    params = init_params(k_p)

    out = jax.block_until_ready(local_discriminator_pallas(x, params))

    ref = reference_forward(x, params)
    assert out.shape == (N, 1, H, W)
    max_err = float(jnp.max(jnp.abs(out - ref)))
    # bf16 matmul inputs with f32 accumulation: loosen tolerance vs f32 reference.
    assert jnp.allclose(out, ref, atol=5e-2, rtol=5e-2), f"max abs err {max_err}"

    print("KERNEL_OK")
</pallas_src>

<mosaic_0001>
module attributes {stable_mosaic.version = 11 : i64} {
  func.func @_local_disc_kernel(%arg0: i32, %arg1: i32, %arg2: memref<1x1280x512xf32, #tpu.memory_space<vmem>>, %arg3: memref<512x1280xbf16, #tpu.memory_space<vmem>>, %arg4: memref<512x1xf32, #tpu.memory_space<vmem>>, %arg5: memref<512x512xbf16, #tpu.memory_space<vmem>>, %arg6: memref<512x1xf32, #tpu.memory_space<vmem>>, %arg7: memref<512x1xf32, #tpu.memory_space<vmem>>, %arg8: memref<1x1xf32, #tpu.memory_space<vmem>>, %arg9: memref<1x1x512xf32, #tpu.memory_space<vmem>>) attributes {dimension_semantics = [#tpu.dimension_semantics<parallel>, #tpu.dimension_semantics<parallel>], iteration_bounds = array<i64: 2, 2>, scalar_prefetch = 0 : i64, scratch_operands = 0 : i64, tpu.core_type = #tpu.core_type<tc>, window_params = [{transform_indices = @transform_0, window_bounds = array<i64: 1, 1280, 512>}, {pipeline_mode = #tpu.pipeline_mode<synchronous>, transform_indices = @transform_1, window_bounds = array<i64: 512, 1280>}, {pipeline_mode = #tpu.pipeline_mode<synchronous>, transform_indices = @transform_2, window_bounds = array<i64: 512, 1>}, {pipeline_mode = #tpu.pipeline_mode<synchronous>, transform_indices = @transform_3, window_bounds = array<i64: 512, 512>}, {pipeline_mode = #tpu.pipeline_mode<synchronous>, transform_indices = @transform_4, window_bounds = array<i64: 512, 1>}, {pipeline_mode = #tpu.pipeline_mode<synchronous>, transform_indices = @transform_5, window_bounds = array<i64: 512, 1>}, {pipeline_mode = #tpu.pipeline_mode<synchronous>, transform_indices = @transform_6, window_bounds = array<i64: 1, 1>}, {transform_indices = @transform_7, window_bounds = array<i64: 1, 1, 512>}]} {
    %c0 = arith.constant 0 : index
    %c0_0 = arith.constant 0 : index
    %c0_1 = arith.constant 0 : index
    %0 = vector.load %arg2[%c0, %c0_0, %c0_1] : memref<1x1280x512xf32, #tpu.memory_space<vmem>>, vector<1x1280x512xf32>
    %1 = vector.shape_cast %0 : vector<1x1280x512xf32> to vector<1280x512xf32>
    %2 = arith.truncf %1 : vector<1280x512xf32> to vector<1280x512xbf16>
    %c0_2 = arith.constant 0 : index
    %c0_3 = arith.constant 0 : index
    %3 = vector.load %arg3[%c0_2, %c0_3] : memref<512x1280xbf16, #tpu.memory_space<vmem>>, vector<512x1280xbf16>
    %cst = arith.constant dense<0.000000e+00> : vector<512x512xf32>
    %4 = tpu.matmul %3, %2, %cst {dimension_numbers = #tpu.dot_dimension_numbers<[1], [0], [0], [1], [0, 0, 1, 1], [], []>} : vector<512x1280xbf16>, vector<1280x512xbf16>, vector<512x512xf32> -> vector<512x512xf32>
    %c0_4 = arith.constant 0 : index
    %c0_5 = arith.constant 0 : index
    %5 = vector.load %arg4[%c0_4, %c0_5] : memref<512x1xf32, #tpu.memory_space<vmem>>, vector<512x1xf32>
    %6 = vector.broadcast %5 : vector<512x1xf32> to vector<512x512xf32>
    %7 = arith.addf %4, %6 : vector<512x512xf32>
    %cst_6 = arith.constant 0.000000e+00 : f32
    %8 = vector.broadcast %cst_6 : f32 to vector<512x512xf32>
    %9 = arith.maximumf %7, %8 : vector<512x512xf32>
    %10 = arith.truncf %9 : vector<512x512xf32> to vector<512x512xbf16>
    %c0_7 = arith.constant 0 : index
    %c0_8 = arith.constant 0 : index
    %11 = vector.load %arg5[%c0_7, %c0_8] : memref<512x512xbf16, #tpu.memory_space<vmem>>, vector<512x512xbf16>
    %cst_9 = arith.constant dense<0.000000e+00> : vector<512x512xf32>
    %12 = tpu.matmul %11, %10, %cst_9 {dimension_numbers = #tpu.dot_dimension_numbers<[1], [0], [0], [1], [0, 0, 1, 1], [], []>} : vector<512x512xbf16>, vector<512x512xbf16>, vector<512x512xf32> -> vector<512x512xf32>
    %c0_10 = arith.constant 0 : index
    %c0_11 = arith.constant 0 : index
    %13 = vector.load %arg6[%c0_10, %c0_11] : memref<512x1xf32, #tpu.memory_space<vmem>>, vector<512x1xf32>
    %14 = vector.broadcast %13 : vector<512x1xf32> to vector<512x512xf32>
    %15 = arith.addf %12, %14 : vector<512x512xf32>
    %cst_12 = arith.constant 0.000000e+00 : f32
    %16 = vector.broadcast %cst_12 : f32 to vector<512x512xf32>
    %17 = arith.maximumf %15, %16 : vector<512x512xf32>
    %c0_13 = arith.constant 0 : index
    %c0_14 = arith.constant 0 : index
    %18 = vector.load %arg7[%c0_13, %c0_14] : memref<512x1xf32, #tpu.memory_space<vmem>>, vector<512x1xf32>
    %19 = vector.broadcast %18 : vector<512x1xf32> to vector<512x512xf32>
    %20 = arith.mulf %17, %19 : vector<512x512xf32>
    %cst_15 = arith.constant dense<0.000000e+00> : vector<512xf32>
    %21 = vector.multi_reduction <add>, %20, %cst_15 [0] : vector<512x512xf32> to vector<512xf32>
    %22 = vector.shape_cast %21 : vector<512xf32> to vector<1x512xf32>
    %c0_16 = arith.constant 0 : index
    %c0_17 = arith.constant 0 : index
    %23 = vector.load %arg8[%c0_16, %c0_17] : memref<1x1xf32, #tpu.memory_space<vmem>>, vector<1x1xf32>
    %24 = vector.broadcast %23 : vector<1x1xf32> to vector<1x512xf32>
    %25 = arith.addf %22, %24 : vector<1x512xf32>
    %c0_18 = arith.constant 0 : index
    %c0_19 = arith.constant 0 : index
    %c0_20 = arith.constant 0 : index
    %26 = vector.load %arg9[%c0_18, %c0_19, %c0_20] : memref<1x1x512xf32, #tpu.memory_space<vmem>>, vector<1x1x512xf32>
    %27 = vector.shape_cast %26 : vector<1x1x512xf32> to vector<1x512xf32>
    %28 = vector.shape_cast %25 : vector<1x512xf32> to vector<1x1x512xf32>
    tpu.vector_store %arg9[%c0_18, %c0_19, %c0_20], %28 {strides = array<i32>} : memref<1x1x512xf32, #tpu.memory_space<vmem>>, vector<1x1x512xf32>,
    return
  }
  func.func @transform_0(%arg0: i32, %arg1: i32) -> (i32, i32, i32) {
    %c0_i32 = arith.constant 0 : i32
    %c0_i32_0 = arith.constant 0 : i32
    return %arg0, %c0_i32, %arg1 : i32, i32, i32
  }
  func.func @transform_1(%arg0: i32, %arg1: i32) -> (i32, i32) {
    %c0_i32 = arith.constant 0 : i32
    %c0_i32_0 = arith.constant 0 : i32
    %c0_i32_1 = arith.constant 0 : i32
    return %c0_i32, %c0_i32_0 : i32, i32
  }
  func.func @transform_2(%arg0: i32, %arg1: i32) -> (i32, i32) {
    %c0_i32 = arith.constant 0 : i32
    %c0_i32_0 = arith.constant 0 : i32
    %c0_i32_1 = arith.constant 0 : i32
    return %c0_i32, %c0_i32_0 : i32, i32
  }
  func.func @transform_3(%arg0: i32, %arg1: i32) -> (i32, i32) {
    %c0_i32 = arith.constant 0 : i32
    %c0_i32_0 = arith.constant 0 : i32
    %c0_i32_1 = arith.constant 0 : i32
    return %c0_i32, %c0_i32_0 : i32, i32
  }
  func.func @transform_4(%arg0: i32, %arg1: i32) -> (i32, i32) {
    %c0_i32 = arith.constant 0 : i32
    %c0_i32_0 = arith.constant 0 : i32
    %c0_i32_1 = arith.constant 0 : i32
    return %c0_i32, %c0_i32_0 : i32, i32
  }
  func.func @transform_5(%arg0: i32, %arg1: i32) -> (i32, i32) {
    %c0_i32 = arith.constant 0 : i32
    %c0_i32_0 = arith.constant 0 : i32
    %c0_i32_1 = arith.constant 0 : i32
    return %c0_i32, %c0_i32_0 : i32, i32
  }
  func.func @transform_6(%arg0: i32, %arg1: i32) -> (i32, i32) {
    %c0_i32 = arith.constant 0 : i32
    %c0_i32_0 = arith.constant 0 : i32
    %c0_i32_1 = arith.constant 0 : i32
    return %c0_i32, %c0_i32_0 : i32, i32
  }
  func.func @transform_7(%arg0: i32, %arg1: i32) -> (i32, i32, i32) {
    %c0_i32 = arith.constant 0 : i32
    %c0_i32_0 = arith.constant 0 : i32
    return %arg0, %c0_i32, %arg1 : i32, i32, i32
  }
}

</mosaic_0001>

<bundles_post_ra>
// kernel: tpu_custom_call.1
= control target key start
LH: loop header
LB: loop body
LE: loop exit
PB: predicated region body
PF: predicated region fallthrough
CT: control target
= control target key end

     0   :  { %s16984_s0 = inlined_call_operand.hbm [shape: f32[2,1280,1024], index: 0, kind: input, shape index: {}]   ;;  %s16985_s1 = inlined_call_operand.hbm [shape: bf16[512,1280], index: 1, kind: input, shape index: {}]   ;;  %s16986_s2 = inlined_call_operand.vmem [shape: f32[512,1], index: 2, kind: input, shape index: {}]   ;;  %s16987_s3 = inlined_call_operand.hbm [shape: bf16[512,512], index: 3, kind: input, shape index: {}]   ;;  %s16988_s4 = inlined_call_operand.vmem [shape: f32[512,1], index: 4, kind: input, shape index: {}]   ;;  %s16989_s5 = inlined_call_operand.vmem [shape: f32[512,1], index: 5, kind: input, shape index: {}]   ;;  %s16990_s6 = inlined_call_operand.<no memory space> [shape: f32[1,1], index: 6, kind: input, shape index: {}]   ;;  %s16991_s7 = inlined_call_operand.hbm [shape: f32[2,1,1024], index: 7, kind: output, shape index: {}]  }
   0x1   :  { %17060 = sst [smem:[#allocation72_spill]] %s16985_s1  ;;  %v12_v0 = vstv %s16990_s6 }
   0x2   :  { %17061 = sst [smem:[#allocation73_spill]] %s16987_s3  ;;  %13 = vst [vmem:[#allocation2] sm:$0x1] %v12_v0 }
   0x3   :  { %17062 = sst [smem:[#allocation74_spill]] %s16991_s7 }
   0x4   :  { %14 = vsyncpa [#allocation4], 0 }
   0x5   :  { %16 = vsyncpa [#allocation4 + $0x1], 0 }
   0x6   :  { %17 = vsyncpa [#allocation7], 0 }
   0x7   :  { %18 = vsyncpa [#allocation5], 0 }
   0x8   :  { %20 = vsyncpa [#allocation5 + $0x1], 0  ;;  %s14722_s26 = smov 0   ;;  %s14724_s27 = smov 0  }
   0x9   :  { %s14726_s28 = smov 0   ;;  %s14728_s29 = smov 0  }
   0xa   :  { %s14730_s30 = smov 0   ;;  %s14732_s8 = smov 0  }
   0xb   :  { %s14734_s9 = smov 0   ;;  %s14736_s6 = smov 0  }
   0xc LB: > { %17063 = sst [smem:[#allocation13_spill]] %s14636_s26  ;;  %s11433_s10 = sadd.s32 4294967295, %s14664_s6   ;;  %s14664_s6 = sphi %s14736_s6, %s26_s6   ;;  %s14660_s9 = sphi %s14734_s9, %s17209_s9   ;;  %s14656_s8 = sphi %s14732_s8, %s17208_s8   ;;  %s14652_s30 = sphi %s14730_s30, %s17207_s30   ;;  %s14648_s29 = sphi %s14728_s29, %s17206_s29   ;;  %s14644_s28 = sphi %s14726_s28, %s17205_s28   ;;  %s14640_s27 = sphi %s14724_s27, %s17204_s27   ;;  %s14636_s26 = sphi %s14722_s26, %s17203_s26  }
   0xd   : > { %17064 = sst [smem:[#allocation14_spill]] %s14664_s6  ;;  %s11434_s11 = sadd.s32 4294967294, %s14664_s6  }
   0xe   : > { %p54_p0 = scmp.ne.s32.totalorder %s14644_s28, %s14640_s27  ;;  %p55_p1 = scmp.eq.s32.totalorder %s14664_s6, 0 }
   0xf   : > { %p60_p2 = scmp.ne.s32.totalorder %s14640_s27, %s14636_s26  ;;  %p14770_p3 = scmp.eq.s32.totalorder %s11433_s10, 0 }
  0x10   : > { %p212_p4 = scmp.eq.s32.totalorder %s11433_s10, 3  ;;  %p14774_p5 = por %p55_p1, %p54_p0 }
  0x11   : > { %s17065_s13 = scalar_select %p14770_p3, 1, 0 }
  0x12   : > { %p218_p6 = scmp.eq.s32.totalorder %s11434_s11, 3  ;;  %p14780_p7 = por %p14770_p3, %p60_p2 }
  0x13   : > { %p14784_p8 = por %p212_p4, %p54_p0  ;;  %p11435_p10 = scmp.ge.s32.totalorder %s14664_s6, 1 }
  0x14   : > { %s17067_s15 = scalar_select %p14780_p7, 1, 0 }
  0x15   : > { %s17068_s16 = scalar_select %p14784_p8, 1, 0 }
  0x16   : > { %p14788_p9 = por %p218_p6, %p60_p2  ;;  %p225_p11 = scmp.lt.s32.totalorder %s14664_s6, 5 }
  0x17   : > { %s14666_s19 = smov [#allocation6]   ;;  %p13723_p0 = scmp.lt.s32.totalorder %s14664_s6, 4 }
  0x18   : > { %s17069_s17 = scalar_select %p14788_p9, 1, 0 }
  0x19   : > { %p14794_p12 = pnand %p11435_p10, %p225_p11  ;;  %s237_s20 = sshll.u32 %s14666_s19, 4  ;;  %s14798_s20 = int_to_ptr.vmem [resolvable:$true] %s237_s20 }
  0x1a   : > { %17070 = sst [smem:[#allocation15_spill]] %s17069_s17  ;;  %s14667_s22 = smov [#allocation8]  }
  0x1b   : > { %p13706_p13 = pneg %p14794_p12  ;;  %s253_s23 = sshll.u32 %s14667_s22, 4  ;;  %s14815_s23 = int_to_ptr.vmem [resolvable:$true] %s253_s23 }
  0x1c   : > { %p14811_p2 = pnand %p13723_p0, %p14774_p5  ;;  %s17074_s1 = sld [smem:[#allocation72_spill]] }
  0x1d   : > { %p14805_p1 = pnand %p13706_p13, %p14770_p3 }
  0x1f   : > { %p14478_p6 = pneg %p14805_p1 }
  0x22   : > { %s14476_s11 = scalar_lea.hbm %s17074_s1, 40960 }
  0x23   : > { %p14477_p4 = scmp.ne.s32.totalorder %s17074_s1, %s14476_s11  ;;  %p14483_p5 = scmp.lt.u32.totalorder %s14476_s11, %s17074_s1 }
  0x25   : > { %p14479_p10 = pnand %p14478_p6, %p14477_p4 }
  0x27   : > { %p14480_p11 = pneg %p14479_p10 }
  0x29   : > { %p14485_p13 = pnand %p14483_p5, %p14480_p11 }
  0x2b   : > { %14488 = shalt.err (!%p14485_p13)
}
  0x2c   : > { %s14489_s25 = scalar_lea.vmem %s14798_s20, 40960  ;;  %p14497_p3 = scmp.lt.s32.totalorder %s14798_s20, %s14798_s20 }
  0x2d   : > { %p14490_p0 = scmp.ne.s32.totalorder %s14798_s20, %s14489_s25  ;;  %p14498_p4 = scmp.lt.s32.totalorder %s14489_s25, %s14489_s25 }
  0x2f   : > { %p14492_p9 = pnand %p14490_p0, %p14478_p6  ;;  %p14499_p10 = por %p14498_p4, %p14497_p3 }
  0x31   : > { %p14493_p8 = pneg %p14492_p9 }
  0x33   : > { %p14500_p7 = pnand %p14499_p10, %p14493_p8 }
  0x35   : > { %14503 = shalt.err (!%p14500_p7)
}
  0x36   : > { %s14668_s12 = smov 640   ;;  %s14669_s10 = smov 40  }
  0x37   : > { %13709 = dma.hbm_to_vmem [thread:$0]  (!%p14805_p1), %s17074_s1, 40960, %s14798_s20, [#allocation7], %s14668_s12, %s14668_s12, %s14669_s10  }
  0x38   : > { %s17075_s3 = sld [smem:[#allocation73_spill]] }
  0x3e   : > { %s14504_s17 = scalar_lea.hbm %s17075_s3, 16384 }
  0x3f   : > { %p14505_p3 = scmp.ne.s32.totalorder %s17075_s3, %s14504_s17  ;;  %p14511_p9 = scmp.lt.u32.totalorder %s14504_s17, %s17075_s3 }
  0x41   : > { %p14507_p7 = pnand %p14505_p3, %p14478_p6 }
  0x43   : > { %p14508_p8 = pneg %p14507_p7 }
  0x45   : > { %p14513_p11 = pnand %p14511_p9, %p14508_p8 }
  0x47   : > { %14516 = shalt.err (!%p14513_p11)
}
  0x48   : > { %s14517_s20 = scalar_lea.vmem %s14815_s23, 16384  ;;  %p14525_p4 = scmp.lt.s32.totalorder %s14815_s23, %s14815_s23 }
  0x49   : > { %p14518_p5 = scmp.ne.s32.totalorder %s14815_s23, %s14517_s20  ;;  %p14526_p10 = scmp.lt.s32.totalorder %s14517_s20, %s14517_s20 }
  0x4b   : > { %p14520_p13 = pnand %p14518_p5, %p14478_p6  ;;  %p14527_p3 = por %p14526_p10, %p14525_p4 }
  0x4d   : > { %p14521_p0 = pneg %p14520_p13 }
  0x4f   : > { %p14528_p7 = pnand %p14527_p3, %p14521_p0 }
  0x51   : > { %14531 = shalt.err (!%p14528_p7)
}
  0x52   : > { %s14670_s7 = smov 256   ;;  %s14671_s26 = smov 16  }
  0x53   : > { %13712 = dma.hbm_to_vmem [thread:$0]  (!%p14805_p1), %s17075_s3, 16384, %s14815_s23, [#allocation7], %s14670_s7, %s14670_s7, %s14671_s26  }
  0x54   : > { %s35_s12 = sadd.s32 1, %s14656_s8  ;;  %s38_s10 = sadd.s32 1, %s14660_s9 }
  0x55   : > { %p36_p6 = scmp.ge.s32.totalorder %s35_s12, 2  ;;  %s276_s11 = sand.u32 1, %s14644_s28  }
  0x56   : > { %s13691_s19 = smul.u32 5120, %s276_s11  ;;  %s11439_s22 = sshll.u32 %s14656_s8, 2 }
  0x57   : > { %s17211_s12 = smov (%p36_p6, %s35_s12), 0  ;;  %s17213_s10 = smov (!%p36_p6, %s38_s10), %s14660_s9 }
  0x58   : > { %17076 = sst [smem:[#allocation16_spill]] %s17211_s12  ;;  %s43_s14 = ssub.s32 %s14656_s8, %s17211_s12 }
  0x59   : > { %p40_p8 = scmp.ge.s32.totalorder %s17213_s10, 2  ;;  %s13692_s21 = smul.u32 1280, %s14660_s9 }
  0x5a   : > { %s280_s25 = scalar_lea.vmem [#allocation3], %s13691_s19  ;;  %s17077_s19 = sadd.s32 1, %s14644_s28 }
  0x5b   : > { %s289_s23 = sshll.u32 %s280_s25, 4  ;;  %s17215_s10 = smov (%p40_p8, %s17213_s10), 0  ;;  %s14881_s23 = int_to_ptr.vmem [resolvable:$true] %s289_s23 }
  0x5c   : > { %s286_s20 = sadd.s32 %s13692_s21, %s11439_s22  ;;  %s42_s7 = ssub.s32 %s14660_s9, %s17215_s10 }
  0x5d   : > { %s11440_s26 = sshll.u32 %s286_s20, 7  ;;  %s44_s6 = sor.u32 %s43_s14, %s42_s7 }
  0x5e   : > { %s14888_s3 = scalar_lea.hbm %s16984_s0, %s11440_s26  ;;  %p45_p1 = scmp.eq.s32.totalorder %s44_s6, 0 }
  0x5f   : > { %s14895_s12 = scalar_lea.sflag [#allocation4], %s276_s11  ;;  %s14532_s22 = scalar_lea.hbm %s14888_s3, 81920 }
  0x60   : > { %s14893_s25 = scalar_select %p45_p1, %s14644_s28, %s17077_s19  }
  0x61   : > { %p14533_p9 = scmp.ne.s32.totalorder %s14888_s3, %s14532_s22  ;;  %p14534_p11 = pneg %p14811_p2 }
  0x62   : > { %s14537_s21 = scalar_lea.hbm %s16984_s0, 327680  ;;  %p14538_p0 = scmp.lt.u32.totalorder %s14888_s3, %s16984_s0 }
  0x63   : > { %p14535_p5 = pnand %p14534_p11, %p14533_p9  ;;  %p14539_p4 = scmp.lt.u32.totalorder %s14537_s21, %s14532_s22 }
  0x64   : > { %p14541_p3 = scmp.lt.u32.totalorder %s14532_s22, %s14888_s3 }
  0x65   : > { %p14536_p13 = pneg %p14535_p5  ;;  %p14540_p10 = por %p14539_p4, %p14538_p0 }
  0x67   : > { %p14542_p7 = por %p14541_p3, %p14540_p10 }
  0x69   : > { %p14543_p6 = pnand %p14542_p7, %p14536_p13 }
  0x6b   : > { %14546 = shalt.err (!%p14543_p6)
}
  0x6c   : > { %s14547_s11 = scalar_lea.vmem %s14881_s23, 81920  ;;  %s14672_s26 = smov [#allocation3]  }
  0x6d   : > { %p14548_p8 = scmp.ne.s32.totalorder %s14881_s23, %s14547_s11  ;;  %s14552_s6 = sshll.u32 %s14672_s26, 4  ;;  %s14553_s6 = int_to_ptr.vmem [resolvable:$false] %s14552_s6 }
  0x6e   : > { %s14554_s17 = scalar_lea.vmem %s14553_s6, 163840  ;;  %p14555_p5 = scmp.lt.s32.totalorder %s14881_s23, %s14553_s6 }
  0x6f   : > { %p14550_p1 = pnand %p14548_p8, %p14534_p11  ;;  %p14556_p0 = scmp.lt.s32.totalorder %s14554_s17, %s14547_s11 }
  0x71   : > { %p14551_p9 = pneg %p14550_p1  ;;  %p14557_p4 = por %p14556_p0, %p14555_p5 }
  0x73   : > { %p14558_p10 = pnand %p14557_p4, %p14551_p9 }
  0x75   : > { %14561 = shalt.err (!%p14558_p10)
}
  0x76   : > { %s14673_s19 = smov 1024   ;;  %s14674_s22 = smov 512  }
  0x77   : > { %s14675_s1 = smov 32   ;;  %301 = sbr.rel (%p14794_p12) target bundleno = 2335 (0x91f), region = 48 }
  0x78   : > { %13716 = dma.hbm_to_vmem [thread:$0]  (!%p14811_p2), %s14888_s3, 81920, %s14881_s23, %s14895_s12, %s14673_s19, %s14674_s22, %s14675_s1  }
  0x7e   : > { %s14926_s14 = sand.u32 1, %s14640_s27   ;;  %p17078_p11 = scmp.ne.s32.totalorder %s17067_s15, 0 }
  0x7f   : > { %s13693_s21 = smul.u32 5120, %s14926_s14  ;;  %s304_s20 = scalar_lea.sflag [#allocation4], %s14926_s14 }
  0x81   : > { %s14930_s7 = scalar_lea.vmem [#allocation3], %s13693_s21 }
  0x82   : > { %14623 = dma.done.wait (%p17078_p11), %s304_s20, 81920  }
  0x83   : > { %14625 = vsyncadd (%p17078_p11), %s304_s20, 4294885376  ;;  %p17079_p2 = scmp.ne.s32.totalorder %s17065_s13, 0 }
  0x85   : > { %14627 = dma.done.wait (%p17079_p2), [#allocation7], 57344  }
  0x86   : > { %14629 = vsyncadd (%p17079_p2), [#allocation7], 4294909952  ;;  %v349_v1 = vld [vmem:[%s14930_s7 + $0x8] sm:$0xff]  ;;  %v351_v3 = vld [vmem:[%s14930_s7 + $0x18] sm:$0xff]  ;;  %s11444_s17 = sshll.u32 %s14926_s14, 2  ;;  %s11894_s19 = sshll.u32 %s14648_s29, 2 }
  0x87   : > { %v353_v2 = vld [vmem:[%s14930_s7 + $0x28] sm:$0xff]  ;;  %v355_v5 = vld [vmem:[%s14930_s7 + $0x38] sm:$0xff]  ;;  %v348_v6 = vld [vmem:[%s14930_s7] sm:$0xff]  ;;  %s11895_s22 = sshll.u32 %s14652_s30, 3  ;;  %s345_s20 = scalar_lea.vmem [#allocation9], %s11444_s17 }
  0x88   : > { %v989_v4 = vpack.c.bf16 %v353_v2, %v349_v1  ;;  %v352_v7 = vld [vmem:[%s14930_s7 + $0x20] sm:$0xff]  ;;  %v991_v8 = vpack.c.bf16 %v355_v5, %v351_v3  ;;  %v350_v10 = vld [vmem:[%s14930_s7 + $0x10] sm:$0xff]  ;;  %v357_v12 = vld [vmem:[%s14930_s7 + $0x48] sm:$0xff]  ;;  %s11323_s1 = sadd.s32 %s11895_s22, %s11894_s19  ;;  %s11327_s3 = sshll.u32 %s345_s20, 4  ;;  %s16932_s3 = int_to_ptr.vmem [resolvable:$true] %s11327_s3 }
  0x89   : > { %v988_v9 = vpack.c.bf16 %v352_v7, %v348_v6  ;;  %v354_v11 = vld [vmem:[%s14930_s7 + $0x30] sm:$0xff]  ;;  %v361_v14 = vld [vmem:[%s14930_s7 + $0x68] sm:$0xff]  ;;  %v359_v15 = vld [vmem:[%s14930_s7 + $0x58] sm:$0xff]  ;;  %s11896_s21 = sshll.u32 %s11323_s1, 4  ;;  %s17196_s18 = sld [smem:[#allocation74_spill]] }
  0x8a   : > { %3612 = vmatprep.subr.bf16.mxu0 %v989_v4  ;;  %v990_v13 = vpack.c.bf16 %v354_v11, %v350_v10  ;;  %v363_v16 = vld [vmem:[%s14930_s7 + $0x78] sm:$0xff]  ;;  %5377 = vmatprep.subr.bf16.mxu1 %v991_v8  ;;  %v993_v17 = vpack.c.bf16 %v361_v14, %v357_v12  ;;  %v356_v19 = vld [vmem:[%s14930_s7 + $0x40] sm:$0xff]  ;;  %v358_v21 = vld [vmem:[%s14930_s7 + $0x50] sm:$0xff]  ;;  %s11311_s29 = scalar_lea.sflag [#allocation5], %s14926_s14  ;;  %s14562_s30 = scalar_lea.vmem %s16932_s3, 64 }
  0x8b   : > { %3613 = vmatpush1.bf16.msra.mxu0 %v988_v9  ;;  %v995_v18 = vpack.c.bf16 %v363_v16, %v359_v15  ;;  %v360_v20 = vld [vmem:[%s14930_s7 + $0x60] sm:$0xff]  ;;  %v362_v23 = vld [vmem:[%s14930_s7 + $0x70] sm:$0xff]  ;;  %v365_v24 = vld [vmem:[%s14930_s7 + $0x88] sm:$0xff]  ;;  %p14563_p12 = scmp.ne.s32.totalorder %s16932_s3, %s14562_s30  ;;  %p17197_p13 = scmp.ne.s32.totalorder %s17068_s16, 0 }
  0x8c   : > { %5378 = vmatpush1.bf16.msra.mxu1 %v990_v13  ;;  %v992_v22 = vpack.c.bf16 %v360_v20, %v356_v19  ;;  %v369_v25 = vld [vmem:[%s14930_s7 + $0xa8] sm:$0xff]  ;;  %3614 = vmatprep.subr.bf16.mxu0 %v993_v17  ;;  %v994_v26 = vpack.c.bf16 %v362_v23, %v358_v21  ;;  %v367_v28 = vld [vmem:[%s14930_s7 + $0x98] sm:$0xff]  ;;  %v364_v30 = vld [vmem:[%s14930_s7 + $0x80] sm:$0xff]  ;;  %s14678_s24 = smov [#allocation9]  }
  0x8d   : > { %5379 = vmatprep.subr.bf16.mxu1 %v995_v18  ;;  %v997_v27 = vpack.c.bf16 %v369_v25, %v365_v24  ;;  %v371_v29 = vld [vmem:[%s14930_s7 + $0xb8] sm:$0xff]  ;;  %v368_v32 = vld [vmem:[%s14930_s7 + $0xa0] sm:$0xff]  ;;  %v366_v33 = vld [vmem:[%s14930_s7 + $0x90] sm:$0xff]  ;;  %p14564_p3 = pnand %p14563_p12, %p17197_p13  ;;  %s14566_s12 = sshll.u32 %s14678_s24, 4  ;;  %s14567_s12 = int_to_ptr.vmem [resolvable:$false] %s14566_s12 }
  0x8e   : > { %v999_v31 = vpack.c.bf16 %v371_v29, %v367_v28  ;;  %v370_v34 = vld [vmem:[%s14930_s7 + $0xb0] sm:$0xff]  ;;  %v996_v35 = vpack.c.bf16 %v368_v32, %v364_v30  ;;  %v373_v36 = vld [vmem:[%s14930_s7 + $0xc8] sm:$0xff]  ;;  %v375_v38 = vld [vmem:[%s14930_s7 + $0xd8] sm:$0xff]  ;;  %s14568_s23 = scalar_lea.vmem %s14567_s12, 128  ;;  %p14569_p6 = scmp.lt.s32.totalorder %s16932_s3, %s14567_s12 }
  0x8f   : > { %3615 = vmatpush1.bf16.msra.mxu0 %v992_v22  ;;  %v377_v37 = vld [vmem:[%s14930_s7 + $0xe8] sm:$0xff]  ;;  %v998_v39 = vpack.c.bf16 %v370_v34, %v366_v33  ;;  %v379_v41 = vld [vmem:[%s14930_s7 + $0xf8] sm:$0xff]  ;;  %v372_v42 = vld [vmem:[%s14930_s7 + $0xc0] sm:$0xff]  ;;  %p14565_p7 = pneg %p14564_p3  ;;  %p14570_p8 = scmp.lt.s32.totalorder %s14568_s23, %s14562_s30 }
  0x90   : > { %5380 = vmatpush1.bf16.msra.mxu1 %v994_v26  ;;  %3616 = vmatprep.subr.bf16.mxu0 %v997_v27  ;;  %v1001_v40 = vpack.c.bf16 %v377_v37, %v373_v36  ;;  %v376_v43 = vld [vmem:[%s14930_s7 + $0xe0] sm:$0xff]  ;;  %v1003_v44 = vpack.c.bf16 %v379_v41, %v375_v38  ;;  %v374_v45 = vld [vmem:[%s14930_s7 + $0xd0] sm:$0xff]  ;;  %v381_v47 = vld [vmem:[%s14930_s7 + $0x108] sm:$0xff] }
  0x91   : > { %5381 = vmatprep.subr.bf16.mxu1 %v999_v31  ;;  %v378_v46 = vld [vmem:[%s14930_s7 + $0xf0] sm:$0xff]  ;;  %v385_v48 = vld [vmem:[%s14930_s7 + $0x128] sm:$0xff]  ;;  %v383_v49 = vld [vmem:[%s14930_s7 + $0x118] sm:$0xff]  ;;  %v1000_v51 = vpack.c.bf16 %v376_v43, %v372_v42  ;;  %p14571_p1 = por %p14570_p8, %p14569_p6 }
  0x92   : > { %v387_v50 = vld [vmem:[%s14930_s7 + $0x138] sm:$0xff]  ;;  %v1002_v52 = vpack.c.bf16 %v378_v46, %v374_v45  ;;  %v1005_v53 = vpack.c.bf16 %v385_v48, %v381_v47  ;;  %v380_v54 = vld [vmem:[%s14930_s7 + $0x100] sm:$0xff]  ;;  %v382_v56 = vld [vmem:[%s14930_s7 + $0x110] sm:$0xff] }
  0x93   : > { %3617 = vmatpush1.bf16.msra.mxu0 %v996_v35  ;;  %v384_v55 = vld [vmem:[%s14930_s7 + $0x120] sm:$0xff]  ;;  %v1007_v57 = vpack.c.bf16 %v387_v50, %v383_v49  ;;  %v386_v58 = vld [vmem:[%s14930_s7 + $0x130] sm:$0xff]  ;;  %v389_v59 = vld [vmem:[%s14930_s7 + $0x148] sm:$0xff]  ;;  %p14572_p9 = pnand %p14571_p1, %p14565_p7 }
  0x94   : > { %5382 = vmatpush1.bf16.msra.mxu1 %v998_v39  ;;  %3618 = vmatprep.subr.bf16.mxu0 %v1001_v40  ;;  %v393_v60 = vld [vmem:[%s14930_s7 + $0x168] sm:$0xff]  ;;  %v391_v61 = vld [vmem:[%s14930_s7 + $0x158] sm:$0xff]  ;;  %v1004_v63 = vpack.c.bf16 %v384_v55, %v380_v54  ;;  %v1006_v0 = vpack.c.bf16 %v386_v58, %v382_v56  ;;  %v388_v2 = vld [vmem:[%s14930_s7 + $0x140] sm:$0xff] }
  0x95   : > { %5383 = vmatprep.subr.bf16.mxu1 %v1003_v44  ;;  %v395_v62 = vld [vmem:[%s14930_s7 + $0x178] sm:$0xff]  ;;  %v1009_v1 = vpack.c.bf16 %v393_v60, %v389_v59  ;;  %v392_v3 = vld [vmem:[%s14930_s7 + $0x160] sm:$0xff]  ;;  %v390_v4 = vld [vmem:[%s14930_s7 + $0x150] sm:$0xff] }
  0x96   : > { %v1011_v5 = vpack.c.bf16 %v395_v62, %v391_v61  ;;  %v394_v6 = vld [vmem:[%s14930_s7 + $0x170] sm:$0xff]  ;;  %v397_v7 = vld [vmem:[%s14930_s7 + $0x188] sm:$0xff]  ;;  %v399_v9 = vld [vmem:[%s14930_s7 + $0x198] sm:$0xff]  ;;  %v1008_v11 = vpack.c.bf16 %v392_v3, %v388_v2 }
  0x97   : > { %3619 = vmatpush1.bf16.msra.mxu0 %v1000_v51  ;;  %v401_v8 = vld [vmem:[%s14930_s7 + $0x1a8] sm:$0xff]  ;;  %v403_v10 = vld [vmem:[%s14930_s7 + $0x1b8] sm:$0xff]  ;;  %v1010_v12 = vpack.c.bf16 %v394_v6, %v390_v4  ;;  %v396_v14 = vld [vmem:[%s14930_s7 + $0x180] sm:$0xff] }
  0x98   : > { %5384 = vmatpush1.bf16.msra.mxu1 %v1002_v52  ;;  %3620 = vmatprep.subr.bf16.mxu0 %v1005_v53  ;;  %v1013_v13 = vpack.c.bf16 %v401_v8, %v397_v7  ;;  %v400_v15 = vld [vmem:[%s14930_s7 + $0x1a0] sm:$0xff]  ;;  %v398_v16 = vld [vmem:[%s14930_s7 + $0x190] sm:$0xff]  ;;  %v1015_v17 = vpack.c.bf16 %v403_v10, %v399_v9  ;;  %v405_v19 = vld [vmem:[%s14930_s7 + $0x1c8] sm:$0xff] }
  0x99   : > { %5385 = vmatprep.subr.bf16.mxu1 %v1007_v57  ;;  %v402_v18 = vld [vmem:[%s14930_s7 + $0x1b0] sm:$0xff]  ;;  %v409_v20 = vld [vmem:[%s14930_s7 + $0x1e8] sm:$0xff]  ;;  %v407_v21 = vld [vmem:[%s14930_s7 + $0x1d8] sm:$0xff]  ;;  %v1012_v23 = vpack.c.bf16 %v400_v15, %v396_v14 }
  0x9a   : > { %v411_v22 = vld [vmem:[%s14930_s7 + $0x1f8] sm:$0xff]  ;;  %v1014_v24 = vpack.c.bf16 %v402_v18, %v398_v16  ;;  %v1017_v25 = vpack.c.bf16 %v409_v20, %v405_v19  ;;  %v404_v26 = vld [vmem:[%s14930_s7 + $0x1c0] sm:$0xff]  ;;  %v406_v28 = vld [vmem:[%s14930_s7 + $0x1d0] sm:$0xff] }
  0x9b   : > { %3621 = vmatpush1.bf16.msra.mxu0 %v1004_v63  ;;  %v408_v27 = vld [vmem:[%s14930_s7 + $0x1e0] sm:$0xff]  ;;  %v1019_v29 = vpack.c.bf16 %v411_v22, %v407_v21  ;;  %v410_v30 = vld [vmem:[%s14930_s7 + $0x1f0] sm:$0xff]  ;;  %v413_v31 = vld [vmem:[%s14930_s7 + $0x208] sm:$0xff] }
  0x9c   : > { %5386 = vmatpush1.bf16.msra.mxu1 %v1006_v0  ;;  %3622 = vmatprep.subr.bf16.mxu0 %v1009_v1  ;;  %v417_v32 = vld [vmem:[%s14930_s7 + $0x228] sm:$0xff]  ;;  %v415_v33 = vld [vmem:[%s14930_s7 + $0x218] sm:$0xff]  ;;  %v1016_v35 = vpack.c.bf16 %v408_v27, %v404_v26  ;;  %v1018_v36 = vpack.c.bf16 %v410_v30, %v406_v28  ;;  %v412_v38 = vld [vmem:[%s14930_s7 + $0x200] sm:$0xff] }
  0x9d   : > { %5387 = vmatprep.subr.bf16.mxu1 %v1011_v5  ;;  %v419_v34 = vld [vmem:[%s14930_s7 + $0x238] sm:$0xff]  ;;  %v1021_v37 = vpack.c.bf16 %v417_v32, %v413_v31  ;;  %v416_v39 = vld [vmem:[%s14930_s7 + $0x220] sm:$0xff]  ;;  %v414_v40 = vld [vmem:[%s14930_s7 + $0x210] sm:$0xff] }
  0x9e   : > { %v1023_v41 = vpack.c.bf16 %v419_v34, %v415_v33  ;;  %v418_v42 = vld [vmem:[%s14930_s7 + $0x230] sm:$0xff]  ;;  %v421_v43 = vld [vmem:[%s14930_s7 + $0x248] sm:$0xff]  ;;  %v423_v45 = vld [vmem:[%s14930_s7 + $0x258] sm:$0xff]  ;;  %v1020_v47 = vpack.c.bf16 %v416_v39, %v412_v38 }
  0x9f   : > { %3623 = vmatpush1.bf16.msra.mxu0 %v1008_v11  ;;  %v425_v44 = vld [vmem:[%s14930_s7 + $0x268] sm:$0xff]  ;;  %v427_v46 = vld [vmem:[%s14930_s7 + $0x278] sm:$0xff]  ;;  %v1022_v48 = vpack.c.bf16 %v418_v42, %v414_v40  ;;  %v420_v50 = vld [vmem:[%s14930_s7 + $0x240] sm:$0xff] }
  0xa0   : > { %5388 = vmatpush1.bf16.msra.mxu1 %v1010_v12  ;;  %3624 = vmatprep.subr.bf16.mxu0 %v1013_v13  ;;  %v1025_v49 = vpack.c.bf16 %v425_v44, %v421_v43  ;;  %v424_v51 = vld [vmem:[%s14930_s7 + $0x260] sm:$0xff]  ;;  %v422_v52 = vld [vmem:[%s14930_s7 + $0x250] sm:$0xff]  ;;  %v1027_v53 = vpack.c.bf16 %v427_v46, %v423_v45  ;;  %v429_v55 = vld [vmem:[%s14930_s7 + $0x288] sm:$0xff] }
  0xa1   : > { %5389 = vmatprep.subr.bf16.mxu1 %v1015_v17  ;;  %v426_v54 = vld [vmem:[%s14930_s7 + $0x270] sm:$0xff]  ;;  %v433_v56 = vld [vmem:[%s14930_s7 + $0x2a8] sm:$0xff]  ;;  %v431_v57 = vld [vmem:[%s14930_s7 + $0x298] sm:$0xff]  ;;  %v1024_v59 = vpack.c.bf16 %v424_v51, %v420_v50 }
  0xa2   : > { %v435_v58 = vld [vmem:[%s14930_s7 + $0x2b8] sm:$0xff]  ;;  %v1026_v60 = vpack.c.bf16 %v426_v54, %v422_v52  ;;  %v1029_v61 = vpack.c.bf16 %v433_v56, %v429_v55  ;;  %v428_v62 = vld [vmem:[%s14930_s7 + $0x280] sm:$0xff]  ;;  %v430_v0 = vld [vmem:[%s14930_s7 + $0x290] sm:$0xff] }
  0xa3   : > { %3625 = vmatpush1.bf16.msra.mxu0 %v1012_v23  ;;  %v432_v63 = vld [vmem:[%s14930_s7 + $0x2a0] sm:$0xff]  ;;  %v1031_v1 = vpack.c.bf16 %v435_v58, %v431_v57  ;;  %v434_v2 = vld [vmem:[%s14930_s7 + $0x2b0] sm:$0xff]  ;;  %v437_v3 = vld [vmem:[%s14930_s7 + $0x2c8] sm:$0xff] }
  0xa4   : > { %5390 = vmatpush1.bf16.msra.mxu1 %v1014_v24  ;;  %3626 = vmatprep.subr.bf16.mxu0 %v1017_v25  ;;  %v441_v4 = vld [vmem:[%s14930_s7 + $0x2e8] sm:$0xff]  ;;  %v439_v5 = vld [vmem:[%s14930_s7 + $0x2d8] sm:$0xff]  ;;  %v1028_v7 = vpack.c.bf16 %v432_v63, %v428_v62  ;;  %v436_v8 = vld [vmem:[%s14930_s7 + $0x2c0] sm:$0xff]  ;;  %v1030_v11 = vpack.c.bf16 %v434_v2, %v430_v0 }
  0xa5   : > { %5391 = vmatprep.subr.bf16.mxu1 %v1019_v29  ;;  %v443_v6 = vld [vmem:[%s14930_s7 + $0x2f8] sm:$0xff]  ;;  %v440_v9 = vld [vmem:[%s14930_s7 + $0x2e0] sm:$0xff]  ;;  %v438_v10 = vld [vmem:[%s14930_s7 + $0x2d0] sm:$0xff]  ;;  %v1033_v12 = vpack.c.bf16 %v441_v4, %v437_v3 }
  0xa6   : > { %v442_v13 = vld [vmem:[%s14930_s7 + $0x2f0] sm:$0xff]  ;;  %v445_v14 = vld [vmem:[%s14930_s7 + $0x308] sm:$0xff]  ;;  %v1035_v16 = vpack.c.bf16 %v443_v6, %v439_v5  ;;  %v447_v17 = vld [vmem:[%s14930_s7 + $0x318] sm:$0xff]  ;;  %v1032_v22 = vpack.c.bf16 %v440_v9, %v436_v8 }
  0xa7   : > { %3627 = vmatpush1.bf16.msra.mxu0 %v1016_v35  ;;  %v449_v15 = vld [vmem:[%s14930_s7 + $0x328] sm:$0xff]  ;;  %v451_v18 = vld [vmem:[%s14930_s7 + $0x338] sm:$0xff]  ;;  %v444_v19 = vld [vmem:[%s14930_s7 + $0x300] sm:$0xff]  ;;  %v1034_v26 = vpack.c.bf16 %v442_v13, %v438_v10 }
  0xa8   : > { %5392 = vmatpush1.bf16.msra.mxu1 %v1018_v36  ;;  %3628 = vmatprep.subr.bf16.mxu0 %v1021_v37  ;;  %v448_v20 = vld [vmem:[%s14930_s7 + $0x320] sm:$0xff]  ;;  %v446_v23 = vld [vmem:[%s14930_s7 + $0x310] sm:$0xff]  ;;  %v453_v25 = vld [vmem:[%s14930_s7 + $0x348] sm:$0xff]  ;;  %v1037_v27 = vpack.c.bf16 %v449_v15, %v445_v14  ;;  %v1039_v29 = vpack.c.bf16 %v451_v18, %v447_v17 }
  0xa9   : > { %5393 = vmatprep.subr.bf16.mxu1 %v1023_v41  ;;  %v13806_v21 = vld [vmem:[#allocation6 + $0x4] ss:$40 sps:$4 sm:$0xff]   ;;  %v450_v24 = vld [vmem:[%s14930_s7 + $0x330] sm:$0xff]  ;;  %v455_v30 = vld [vmem:[%s14930_s7 + $0x358] sm:$0xff]  ;;  %v1036_v34 = vpack.c.bf16 %v448_v20, %v444_v19 }
  0xaa   : > { %v457_v28 = vld [vmem:[%s14930_s7 + $0x368] sm:$0xff]  ;;  %v459_v31 = vld [vmem:[%s14930_s7 + $0x378] sm:$0xff]  ;;  %3644 = vmatprep.mubr.bf16.mxu0 %v13806_v21  ;;  %v452_v32 = vld [vmem:[%s14930_s7 + $0x340] sm:$0xff]  ;;  %5409 = vmatprep.mubr.bf16.mxu1 %v13806_v21  ;;  %v1038_v38 = vpack.c.bf16 %v450_v24, %v446_v23 }
  0xab   : > { %3629 = vmatpush1.bf16.msra.mxu0 %v1020_v47  ;;  %v456_v33 = vld [vmem:[%s14930_s7 + $0x360] sm:$0xff]  ;;  %v454_v35 = vld [vmem:[%s14930_s7 + $0x350] sm:$0xff]  ;;  %v461_v37 = vld [vmem:[%s14930_s7 + $0x388] sm:$0xff]  ;;  %v1041_v39 = vpack.c.bf16 %v457_v28, %v453_v25  ;;  %v1043_v41 = vpack.c.bf16 %v459_v31, %v455_v30 }
  0xac   : > { %5394 = vmatpush1.bf16.msra.mxu1 %v1022_v48  ;;  %3630 = vmatprep.subr.bf16.mxu0 %v1025_v49  ;;  %v458_v36 = vld [vmem:[%s14930_s7 + $0x370] sm:$0xff]  ;;  %v465_v40 = vld [vmem:[%s14930_s7 + $0x3a8] sm:$0xff]  ;;  %v463_v42 = vld [vmem:[%s14930_s7 + $0x398] sm:$0xff]  ;;  %v1040_v46 = vpack.c.bf16 %v456_v33, %v452_v32 }
  0xad   : > { %5395 = vmatprep.subr.bf16.mxu1 %v1027_v53  ;;  %v467_v43 = vld [vmem:[%s14930_s7 + $0x3b8] sm:$0xff]  ;;  %v460_v44 = vld [vmem:[%s14930_s7 + $0x380] sm:$0xff]  ;;  %v462_v47 = vld [vmem:[%s14930_s7 + $0x390] sm:$0xff]  ;;  %v1042_v48 = vpack.c.bf16 %v458_v36, %v454_v35  ;;  %v1045_v49 = vpack.c.bf16 %v465_v40, %v461_v37 }
  0xae   : > { %v464_v45 = vld [vmem:[%s14930_s7 + $0x3a0] sm:$0xff]  ;;  %v466_v50 = vld [vmem:[%s14930_s7 + $0x3b0] sm:$0xff]  ;;  %v1047_v51 = vpack.c.bf16 %v467_v43, %v463_v42  ;;  %v469_v52 = vld [vmem:[%s14930_s7 + $0x3c8] sm:$0xff] }
  0xaf   : > { %3631 = vmatpush1.bf16.msra.mxu0 %v1024_v59  ;;  %v473_v53 = vld [vmem:[%s14930_s7 + $0x3e8] sm:$0xff]  ;;  %v471_v54 = vld [vmem:[%s14930_s7 + $0x3d8] sm:$0xff]  ;;  %v1044_v56 = vpack.c.bf16 %v464_v45, %v460_v44  ;;  %v468_v57 = vld [vmem:[%s14930_s7 + $0x3c0] sm:$0xff]  ;;  %v1046_v58 = vpack.c.bf16 %v466_v50, %v462_v47 }
  0xb0   : > { %5396 = vmatpush1.bf16.msra.mxu1 %v1026_v60  ;;  %3632 = vmatprep.subr.bf16.mxu0 %v1029_v61  ;;  %v475_v55 = vld [vmem:[%s14930_s7 + $0x3f8] sm:$0xff]  ;;  %v1049_v59 = vpack.c.bf16 %v473_v53, %v469_v52  ;;  %v472_v60 = vld [vmem:[%s14930_s7 + $0x3e0] sm:$0xff]  ;;  %v470_v62 = vld [vmem:[%s14930_s7 + $0x3d0] sm:$0xff] }
  0xb1   : > { %5397 = vmatprep.subr.bf16.mxu1 %v1031_v1  ;;  %v1051_v61 = vpack.c.bf16 %v475_v55, %v471_v54  ;;  %v474_v63 = vld [vmem:[%s14930_s7 + $0x3f0] sm:$0xff]  ;;  %v1048_v0 = vpack.c.bf16 %v472_v60, %v468_v57  ;;  %v13804_v2 = vld [vmem:[#allocation6] ss:$40 sps:$4 sm:$0xff]   ;;  %v479_v6 = vld [vmem:[%s14930_s7 + $0x418] sm:$0xff] }
  0xb2   : > { %v1050_v1 = vpack.c.bf16 %v474_v63, %v470_v62  ;;  %v13807_v3 = vld [vmem:[#allocation6 + $0x54] ss:$40 sps:$4 sm:$0xff]   ;;  %v477_v4 = vld [vmem:[%s14930_s7 + $0x408] sm:$0xff]  ;;  %v476_v9 = vld [vmem:[%s14930_s7 + $0x400] sm:$0xff] }
  0xb3   : > { %3633 = vmatpush1.bf16.msra.mxu0 %v1028_v7  ;;  %v481_v5 = vld [vmem:[%s14930_s7 + $0x428] sm:$0xff]  ;;  %v483_v8 = vld [vmem:[%s14930_s7 + $0x438] sm:$0xff]  ;;  %v480_v10 = vld [vmem:[%s14930_s7 + $0x420] sm:$0xff] }
  0xb4   : > { %5398 = vmatpush1.bf16.msra.mxu1 %v1030_v11  ;;  %3634 = vmatprep.subr.bf16.mxu0 %v1033_v12  ;;  %v1053_v7 = vpack.c.bf16 %v481_v5, %v477_v4  ;;  %v13809_v11 = vld [vmem:[#allocation6 + $0x50] ss:$40 sps:$4 sm:$0xff]   ;;  %v1055_v12 = vpack.c.bf16 %v483_v8, %v479_v6  ;;  %v1052_v13 = vpack.c.bf16 %v480_v10, %v476_v9  ;;  %v13812_v18 = vld [vmem:[#allocation6 + $0xa0] ss:$40 sps:$4 sm:$0xff]   ;;  %v13813_v19 = vld [vmem:[#allocation6 + $0xf4] ss:$40 sps:$4 sm:$0xff]  }
  0xb5   : > { %5399 = vmatprep.subr.bf16.mxu1 %v1035_v16  ;;  %v478_v14 = vld [vmem:[%s14930_s7 + $0x410] sm:$0xff]  ;;  %v13810_v16 = vld [vmem:[#allocation6 + $0xa4] ss:$40 sps:$4 sm:$0xff]   ;;  %v491_v24 = vld [vmem:[%s14930_s7 + $0x478] sm:$0xff] }
  0xb6   : > { %v482_v15 = vld [vmem:[%s14930_s7 + $0x430] sm:$0xff]  ;;  %v485_v20 = vld [vmem:[%s14930_s7 + $0x448] sm:$0xff]  ;;  %v484_v25 = vld [vmem:[%s14930_s7 + $0x440] sm:$0xff] }
  0xb7   : > { %3635 = vmatpush1.bf16.msra.mxu0 %v1032_v22  ;;  %v1054_v17 = vpack.c.bf16 %v482_v15, %v478_v14  ;;  %v489_v21 = vld [vmem:[%s14930_s7 + $0x468] sm:$0xff]  ;;  %v487_v22 = vld [vmem:[%s14930_s7 + $0x458] sm:$0xff]  ;;  %v486_v30 = vld [vmem:[%s14930_s7 + $0x450] sm:$0xff] }
  0xb8   : > { %5400 = vmatpush1.bf16.msra.mxu1 %v1034_v26  ;;  %3636 = vmatprep.subr.bf16.mxu0 %v1037_v27  ;;  %v1057_v23 = vpack.c.bf16 %v489_v21, %v485_v20  ;;  %v488_v26 = vld [vmem:[%s14930_s7 + $0x460] sm:$0xff]  ;;  %v13815_v27 = vld [vmem:[#allocation6 + $0xf0] ss:$40 sps:$4 sm:$0xff]   ;;  %v1059_v28 = vpack.c.bf16 %v491_v24, %v487_v22  ;;  %v13819_v35 = vld [vmem:[#allocation6 + $0x194] ss:$40 sps:$4 sm:$0xff]  }
  0xb9   : > { %5401 = vmatprep.subr.bf16.mxu1 %v1039_v29  ;;  %v1056_v29 = vpack.c.bf16 %v488_v26, %v484_v25  ;;  %v490_v31 = vld [vmem:[%s14930_s7 + $0x470] sm:$0xff]  ;;  %v13816_v32 = vld [vmem:[#allocation6 + $0x144] ss:$40 sps:$4 sm:$0xff]   ;;  %v499_v40 = vld [vmem:[%s14930_s7 + $0x4b8] sm:$0xff] }
  0xba   : > { %v1058_v33 = vpack.c.bf16 %v490_v31, %v486_v30  ;;  %v493_v36 = vld [vmem:[%s14930_s7 + $0x488] sm:$0xff]  ;;  %v496_v42 = vld [vmem:[%s14930_s7 + $0x4a0] sm:$0xff]  ;;  %v13821_v43 = vld [vmem:[#allocation6 + $0x190] ss:$40 sps:$4 sm:$0xff]  }
  0xbb   : > { %3637 = vmatpush1.bf16.msra.mxu0 %v1036_v34  ;;  %v13818_v34 = vld [vmem:[#allocation6 + $0x140] ss:$40 sps:$4 sm:$0xff]   ;;  %v498_v47 = vld [vmem:[%s14930_s7 + $0x4b0] sm:$0xff]  ;;  %v503_v54 = vld [vmem:[%s14930_s7 + $0x4d8] sm:$0xff] }
  0xbc   : > { %5402 = vmatpush1.bf16.msra.mxu1 %v1038_v38  ;;  %3638 = vmatprep.subr.bf16.mxu0 %v1041_v39  ;;  %v497_v37 = vld [vmem:[%s14930_s7 + $0x4a8] sm:$0xff]  ;;  %v495_v38 = vld [vmem:[%s14930_s7 + $0x498] sm:$0xff]  ;;  %v500_v57 = vld [vmem:[%s14930_s7 + $0x4c0] sm:$0xff] }
  0xbd   : > { %5403 = vmatprep.subr.bf16.mxu1 %v1043_v41  ;;  %v1061_v39 = vpack.c.bf16 %v497_v37, %v493_v36  ;;  %v492_v41 = vld [vmem:[%s14930_s7 + $0x480] sm:$0xff]  ;;  %v1063_v44 = vpack.c.bf16 %v499_v40, %v495_v38  ;;  %v501_v52 = vld [vmem:[%s14930_s7 + $0x4c8] sm:$0xff]  ;;  %v502_v62 = vld [vmem:[%s14930_s7 + $0x4d0] sm:$0xff] }
  0xbe   : > { %v1060_v45 = vpack.c.bf16 %v496_v42, %v492_v41  ;;  %v13824_v50 = vld [vmem:[#allocation6 + $0x1e0] ss:$40 sps:$4 sm:$0xff]   ;;  %v506_v63 = vld [vmem:[%s14930_s7 + $0x4f0] sm:$0xff]  ;;  %v511_v6 = vld [vmem:[%s14930_s7 + $0x518] sm:$0xff] }
  0xbf   : > { %3639 = vmatpush1.bf16.msra.mxu0 %v1040_v46  ;;  %v494_v46 = vld [vmem:[%s14930_s7 + $0x490] sm:$0xff]  ;;  %v505_v53 = vld [vmem:[%s14930_s7 + $0x4e8] sm:$0xff]  ;;  %v515_v8 = vld [vmem:[%s14930_s7 + $0x538] sm:$0xff] }
  0xc0   : > { %5404 = vmatpush1.bf16.msra.mxu1 %v1042_v48  ;;  %3640 = vmatprep.subr.bf16.mxu0 %v1045_v49  ;;  %v13822_v48 = vld [vmem:[#allocation6 + $0x1e4] ss:$40 sps:$4 sm:$0xff]   ;;  %v1062_v49 = vpack.c.bf16 %v498_v47, %v494_v46  ;;  %v1065_v55 = vpack.c.bf16 %v505_v53, %v501_v52  ;;  %v510_v14 = vld [vmem:[%s14930_s7 + $0x510] sm:$0xff]  ;;  %v519_v22 = vld [vmem:[%s14930_s7 + $0x558] sm:$0xff] }
  0xc1   : > { %5405 = vmatprep.subr.bf16.mxu1 %v1047_v51  ;;  %v13825_v51 = vld [vmem:[#allocation6 + $0x234] ss:$40 sps:$4 sm:$0xff]   ;;  %v509_v4 = vld [vmem:[%s14930_s7 + $0x508] sm:$0xff]  ;;  %v508_v9 = vld [vmem:[%s14930_s7 + $0x500] sm:$0xff] }
  0xc2   : > { %v513_v5 = vld [vmem:[%s14930_s7 + $0x528] sm:$0xff]  ;;  %v512_v10 = vld [vmem:[%s14930_s7 + $0x520] sm:$0xff]  ;;  %v514_v15 = vld [vmem:[%s14930_s7 + $0x530] sm:$0xff] }
  0xc3   : > { %3641 = vmatpush1.bf16.msra.mxu0 %v1044_v56  ;;  %v507_v56 = vld [vmem:[%s14930_s7 + $0x4f8] sm:$0xff]  ;;  %v517_v20 = vld [vmem:[%s14930_s7 + $0x548] sm:$0xff]  ;;  %v516_v25 = vld [vmem:[%s14930_s7 + $0x540] sm:$0xff] }
  0xc4   : > { %5406 = vmatpush1.bf16.msra.mxu1 %v1046_v58  ;;  %3642 = vmatprep.subr.bf16.mxu0 %v1049_v59  ;;  %v504_v58 = vld [vmem:[%s14930_s7 + $0x4e0] sm:$0xff]  ;;  %v13827_v59 = vld [vmem:[#allocation6 + $0x230] ss:$40 sps:$4 sm:$0xff]   ;;  %v1067_v60 = vpack.c.bf16 %v507_v56, %v503_v54  ;;  %v521_v21 = vld [vmem:[%s14930_s7 + $0x568] sm:$0xff] }
  0xc5   : > { %5407 = vmatprep.subr.bf16.mxu1 %v1051_v61  ;;  %v1064_v61 = vpack.c.bf16 %v504_v58, %v500_v57  ;;  %v523_v24 = vld [vmem:[%s14930_s7 + $0x578] sm:$0xff]  ;;  %v520_v26 = vld [vmem:[%s14930_s7 + $0x560] sm:$0xff]  ;;  %v518_v30 = vld [vmem:[%s14930_s7 + $0x550] sm:$0xff] }
  0xc6   : > { %v522_v31 = vld [vmem:[%s14930_s7 + $0x570] sm:$0xff]  ;;  %v527_v36 = vld [vmem:[%s14930_s7 + $0x598] sm:$0xff]  ;;  %v528_v40 = vld [vmem:[%s14930_s7 + $0x5a0] sm:$0xff] }
  0xc7   : > { %3643 = vmatpush1.bf16.msra.mxu0 %v1048_v0  ;;  %v13828_v0 = vld [vmem:[#allocation6 + $0x284] ss:$40 sps:$4 sm:$0xff]   ;;  %v531_v38 = vld [vmem:[%s14930_s7 + $0x5b8] sm:$0xff]  ;;  %v13842_v53 = vld [vmem:[#allocation6 + $0x3c0] ss:$40 sps:$4 sm:$0xff]  }
  0xc8   : > { %5408 = vmatpush1.bf16.msra.mxu1 %v1050_v1  ;;  %3965 = vmatprep.subr.bf16.mxu0 %v1053_v7  ;;  %v1066_v1 = vpack.c.bf16 %v506_v63, %v502_v62  ;;  %v1069_v7 = vpack.c.bf16 %v513_v5, %v509_v4  ;;  %v1079_v41 = vpack.c.bf16 %v531_v38, %v527_v36  ;;  %v533_v46 = vld [vmem:[%s14930_s7 + $0x5c8] sm:$0xff]  ;;  %v536_v52 = vld [vmem:[%s14930_s7 + $0x5e0] sm:$0xff]  ;;  %v534_v56 = vld [vmem:[%s14930_s7 + $0x5d0] sm:$0xff] }
  0xc9   : > { %5730 = vmatprep.subr.bf16.mxu1 %v1055_v12  ;;  %v1071_v12 = vpack.c.bf16 %v515_v8, %v511_v6  ;;  %v537_v47 = vld [vmem:[%s14930_s7 + $0x5e8] sm:$0xff]  ;;  %v538_v57 = vld [vmem:[%s14930_s7 + $0x5f0] sm:$0xff]  ;;  %v543_v62 = vld [vmem:[%s14930_s7 + $0x618] sm:$0xff] }
  0xca   : > { %3645 = vmatmul.mubr.bf16.vlgmr.msra.gmra.mrb[0].mxu0 %v13804_v2  ;;  %v13843_v58 = vld [vmem:[#allocation6 + $0x414] ss:$40 sps:$4 sm:$0xff]   ;;  %v549_v8 = vld [vmem:[%s14930_s7 + $0x648] sm:$0xff] }
  0xcb   : > { %5410 = vmatmul.mubr.bf16.vlgmr.msra.gmra.mrb[0].mxu1 %v13804_v2  ;;  %3654 = vmatprep.mubr.bf16.mxu0 %v13807_v3  ;;  %v13830_v2 = vld [vmem:[#allocation6 + $0x280] ss:$40 sps:$4 sm:$0xff]   ;;  %v542_v5 = vld [vmem:[%s14930_s7 + $0x610] sm:$0xff]  ;;  %v567_v36 = vld [vmem:[%s14930_s7 + $0x6d8] sm:$0xff] }
  0xcc   : > { %5419 = vmatprep.mubr.bf16.mxu1 %v13807_v3  ;;  %3966 = vmatpush1.bf16.msra.mxu0 %v1052_v13  ;;  %v13831_v3 = vld [vmem:[#allocation6 + $0x2d4] ss:$40 sps:$4 sm:$0xff]   ;;  %v1068_v13 = vpack.c.bf16 %v512_v10, %v508_v9  ;;  %v553_v9 = vld [vmem:[%s14930_s7 + $0x668] sm:$0xff] }
  0xcd   : > { %5731 = vmatpush1.bf16.msra.mxu1 %v1054_v17  ;;  %3967 = vmatprep.subr.bf16.mxu0 %v1057_v23  ;;  %v1070_v17 = vpack.c.bf16 %v514_v15, %v510_v14  ;;  %v1073_v23 = vpack.c.bf16 %v521_v21, %v517_v20  ;;  %v546_v6 = vld [vmem:[%s14930_s7 + $0x630] sm:$0xff]  ;;  %v551_v10 = vld [vmem:[%s14930_s7 + $0x658] sm:$0xff]  ;;  %v552_v14 = vld [vmem:[%s14930_s7 + $0x660] sm:$0xff] }
  0xce   : > { %5732 = vmatprep.subr.bf16.mxu1 %v1059_v28  ;;  %v1075_v28 = vpack.c.bf16 %v523_v24, %v519_v22  ;;  %v13845_v15 = vld [vmem:[#allocation6 + $0x410] ss:$40 sps:$4 sm:$0xff]   ;;  %v13846_v20 = vld [vmem:[#allocation6 + $0x464] ss:$40 sps:$4 sm:$0xff]  }
  0xcf   : > { %v557_v22 = vld [vmem:[%s14930_s7 + $0x688] sm:$0xff]  ;;  %v559_v24 = vld [vmem:[%s14930_s7 + $0x698] sm:$0xff] }
  0xd0   : > { %3968 = vmatpush1.bf16.msra.mxu0 %v1056_v29  ;;  %v1072_v29 = vpack.c.bf16 %v520_v26, %v516_v25  ;;  %v563_v26 = vld [vmem:[%s14930_s7 + $0x6b8] sm:$0xff] }
  0xd1   : > { %5733 = vmatpush1.bf16.msra.mxu1 %v1058_v33  ;;  %3969 = vmatprep.subr.bf16.mxu0 %v1061_v39  ;;  %v1074_v33 = vpack.c.bf16 %v522_v31, %v518_v30  ;;  %v524_v39 = vld [vmem:[%s14930_s7 + $0x580] sm:$0xff]  ;;  %v558_v31 = vld [vmem:[%s14930_s7 + $0x690] sm:$0xff]  ;;  %v571_v38 = vld [vmem:[%s14930_s7 + $0x6f8] sm:$0xff] }
  0xd2   : > { %3655 = vmatmul.mubr.bf16.gmra.mrb[4].mxu0 %v13809_v11  ;;  %5734 = vmatprep.subr.bf16.mxu1 %v1063_v44  ;;  %v1076_v42 = vpack.c.bf16 %v528_v40, %v524_v39  ;;  %v530_v44 = vld [vmem:[%s14930_s7 + $0x5b0] sm:$0xff]  ;;  %v564_v39 = vld [vmem:[%s14930_s7 + $0x6c0] sm:$0xff] }
  0xd3   : > { %5420 = vmatmul.mubr.bf16.gmra.mrb[4].mxu1 %v13809_v11  ;;  %3664 = vmatprep.mubr.bf16.mxu0 %v13810_v16  ;;  %v13833_v11 = vld [vmem:[#allocation6 + $0x2d0] ss:$40 sps:$4 sm:$0xff]   ;;  %v568_v40 = vld [vmem:[%s14930_s7 + $0x6e0] sm:$0xff] }
  0xd4   : > { %5429 = vmatprep.mubr.bf16.mxu1 %v13810_v16  ;;  %3970 = vmatpush1.bf16.msra.mxu0 %v1060_v45  ;;  %v13834_v16 = vld [vmem:[#allocation6 + $0x324] ss:$40 sps:$4 sm:$0xff]  }
  0xd5   : > { %5735 = vmatpush1.bf16.msra.mxu1 %v1062_v49  ;;  %3971 = vmatprep.subr.bf16.mxu0 %v1065_v55  ;;  %v1081_v49 = vpack.c.bf16 %v537_v47, %v533_v46  ;;  %v13849_v46 = vld [vmem:[#allocation6 + $0x4b4] ss:$40 sps:$4 sm:$0xff]  }
  0xd6   : > { %5736 = vmatprep.subr.bf16.mxu1 %v1067_v60  ;;  %v541_v60 = vld [vmem:[%s14930_s7 + $0x608] sm:$0xff] }
  0xd8   : > { %3972 = vmatpush1.bf16.msra.mxu0 %v1064_v61  ;;  %v545_v61 = vld [vmem:[%s14930_s7 + $0x628] sm:$0xff] }
  0xd9   : > { %5737 = vmatpush1.bf16.msra.mxu1 %v1066_v1  ;;  %3973 = vmatprep.subr.bf16.mxu0 %v1069_v7  ;;  %v1085_v63 = vpack.c.bf16 %v545_v61, %v541_v60  ;;  %v540_v1 = vld [vmem:[%s14930_s7 + $0x600] sm:$0xff]  ;;  %v1086_v7 = vpack.c.bf16 %v546_v6, %v542_v5  ;;  %v581_v60 = vld [vmem:[%s14930_s7 + $0x748] sm:$0xff]  ;;  %v582_v6 = vld [vmem:[%s14930_s7 + $0x750] sm:$0xff] }
  0xda   : > { %3665 = vmatmul.mubr.bf16.gmra.mrb[8].mxu0 %v13812_v18  ;;  %5738 = vmatprep.subr.bf16.mxu1 %v1071_v12  ;;  %v555_v12 = vld [vmem:[%s14930_s7 + $0x678] sm:$0xff]  ;;  %v585_v61 = vld [vmem:[%s14930_s7 + $0x768] sm:$0xff] }
  0xdb   : > { %5430 = vmatmul.mubr.bf16.gmra.mrb[8].mxu1 %v13812_v18  ;;  %3674 = vmatprep.mubr.bf16.mxu0 %v13813_v19  ;;  %v13836_v18 = vld [vmem:[#allocation6 + $0x320] ss:$40 sps:$4 sm:$0xff]  }
  0xdc   : > { %5439 = vmatprep.mubr.bf16.mxu1 %v13813_v19  ;;  %3974 = vmatpush1.bf16.msra.mxu0 %v1068_v13  ;;  %v13837_v19 = vld [vmem:[#allocation6 + $0x374] ss:$40 sps:$4 sm:$0xff]   ;;  %v548_v13 = vld [vmem:[%s14930_s7 + $0x640] sm:$0xff] }
  0xdd   : > { %5739 = vmatpush1.bf16.msra.mxu1 %v1070_v17  ;;  %3975 = vmatprep.subr.bf16.mxu0 %v1073_v23  ;;  %v1088_v17 = vpack.c.bf16 %v552_v14, %v548_v13  ;;  %v561_v23 = vld [vmem:[%s14930_s7 + $0x6a8] sm:$0xff]  ;;  %v595_v14 = vld [vmem:[%s14930_s7 + $0x7b8] sm:$0xff] }
  0xde   : > { %5740 = vmatprep.subr.bf16.mxu1 %v1075_v28  ;;  %v1093_v25 = vpack.c.bf16 %v561_v23, %v557_v22  ;;  %v560_v28 = vld [vmem:[%s14930_s7 + $0x6a0] sm:$0xff]  ;;  %v597_v22 = vld [vmem:[%s14930_s7 + $0x7c8] sm:$0xff] }
  0xdf   : > { %v601_v23 = vld [vmem:[%s14930_s7 + $0x7e8] sm:$0xff] }
  0xe0   : > { %3976 = vmatpush1.bf16.msra.mxu0 %v1072_v29  ;;  %v1095_v29 = vpack.c.bf16 %v563_v26, %v559_v24  ;;  %v599_v24 = vld [vmem:[%s14930_s7 + $0x7d8] sm:$0xff] }
  0xe1   : > { %5741 = vmatpush1.bf16.msra.mxu1 %v1074_v33  ;;  %v603_v26 = vld [vmem:[%s14930_s7 + $0x7f8] sm:$0xff] }
  0xe2   : > { %3675 = vmatmul.mubr.bf16.gmra.mrb[12].mxu0 %v13815_v27  ;;  %5742 = vmatprep.subr.bf16.mxu1 %v1079_v41  ;;  %v13848_v41 = vld [vmem:[#allocation6 + $0x460] ss:$40 sps:$4 sm:$0xff]  }
  0xe3   : > { %5440 = vmatmul.mubr.bf16.gmra.mrb[12].mxu1 %v13815_v27  ;;  %3684 = vmatprep.mubr.bf16.mxu0 %v13816_v32  ;;  %v13839_v27 = vld [vmem:[#allocation6 + $0x370] ss:$40 sps:$4 sm:$0xff]  }
  0xe4   : > { %5449 = vmatprep.mubr.bf16.mxu1 %v13816_v32  ;;  %v13840_v32 = vld [vmem:[#allocation6 + $0x3c4] ss:$40 sps:$4 sm:$0xff]  }
  0xea   : > { %3685 = vmatmul.mubr.bf16.gmra.mrb[16].mxu0 %v13818_v34 }
  0xeb   : > { %5450 = vmatmul.mubr.bf16.gmra.mrb[16].mxu1 %v13818_v34  ;;  %3694 = vmatprep.mubr.bf16.mxu0 %v13819_v35  ;;  %v525_v34 = vld [vmem:[%s14930_s7 + $0x588] sm:$0xff] }
  0xec   : > { %5459 = vmatprep.mubr.bf16.mxu1 %v13819_v35  ;;  %v529_v35 = vld [vmem:[%s14930_s7 + $0x5a8] sm:$0xff] }
  0xed   : > { %v1077_v37 = vpack.c.bf16 %v529_v35, %v525_v34  ;;  %v565_v34 = vld [vmem:[%s14930_s7 + $0x6c8] sm:$0xff] }
  0xee   : > { %v569_v35 = vld [vmem:[%s14930_s7 + $0x6e8] sm:$0xff] }
  0xef   : > { %3977 = vmatprep.subr.bf16.mxu0 %v1077_v37  ;;  %v1097_v37 = vpack.c.bf16 %v569_v35, %v565_v34  ;;  %v13855_v34 = vld [vmem:[#allocation6 + $0x554] ss:$40 sps:$4 sm:$0xff]  }
  0xf0   : > { %3978 = vmatpush1.bf16.msra.mxu0 %v1076_v42  ;;  %v1099_v42 = vpack.c.bf16 %v571_v38, %v567_v36  ;;  %v13857_v36 = vld [vmem:[#allocation6 + $0x550] ss:$40 sps:$4 sm:$0xff]   ;;  %v13860_v38 = vld [vmem:[#allocation6 + $0x5a0] ss:$40 sps:$4 sm:$0xff]  }
  0xf1   : > { %3979 = vmatprep.subr.bf16.mxu0 %v1081_v49  ;;  %v577_v49 = vld [vmem:[%s14930_s7 + $0x728] sm:$0xff] }
  0xf2   : > { %3695 = vmatmul.mubr.bf16.gmra.mrb[20].mxu0 %v13821_v43 }
  0xf3   : > { %5460 = vmatmul.mubr.bf16.gmra.mrb[20].mxu1 %v13821_v43  ;;  %3704 = vmatprep.mubr.bf16.mxu0 %v13822_v48  ;;  %v526_v43 = vld [vmem:[%s14930_s7 + $0x590] sm:$0xff] }
  0xf4   : > { %5469 = vmatprep.mubr.bf16.mxu1 %v13822_v48  ;;  %v1078_v45 = vpack.c.bf16 %v530_v44, %v526_v43  ;;  %v535_v48 = vld [vmem:[%s14930_s7 + $0x5d8] sm:$0xff]  ;;  %v1096_v43 = vpack.c.bf16 %v568_v40, %v564_v39  ;;  %v566_v44 = vld [vmem:[%s14930_s7 + $0x6d0] sm:$0xff] }
  0xf5   : > { %v13861_v39 = vld [vmem:[#allocation6 + $0x5f4] ss:$40 sps:$4 sm:$0xff]   ;;  %v13863_v40 = vld [vmem:[#allocation6 + $0x5f0] ss:$40 sps:$4 sm:$0xff]  }
  0xf6   : > { %5743 = vmatpush1.bf16.msra.mxu1 %v1078_v45  ;;  %v570_v45 = vld [vmem:[%s14930_s7 + $0x6f0] sm:$0xff] }
  0xf7   : > { %v1098_v47 = vpack.c.bf16 %v570_v45, %v566_v44  ;;  %v13869_v44 = vld [vmem:[#allocation6 + $0x690] ss:$40 sps:$4 sm:$0xff]   ;;  %v13870_v45 = vld [vmem:[#allocation6 + $0x6e4] ss:$40 sps:$4 sm:$0xff]  }
  0xfa   : > { %3705 = vmatmul.mubr.bf16.gmra.mrb[24].mxu0 %v13824_v50 }
  0xfb   : > { %5470 = vmatmul.mubr.bf16.gmra.mrb[24].mxu1 %v13824_v50  ;;  %3714 = vmatprep.mubr.bf16.mxu0 %v13825_v51  ;;  %v539_v50 = vld [vmem:[%s14930_s7 + $0x5f8] sm:$0xff] }
  0xfc   : > { %5479 = vmatprep.mubr.bf16.mxu1 %v13825_v51  ;;  %v532_v51 = vld [vmem:[%s14930_s7 + $0x5c0] sm:$0xff]  ;;  %v1083_v54 = vpack.c.bf16 %v539_v50, %v535_v48  ;;  %v573_v48 = vld [vmem:[%s14930_s7 + $0x708] sm:$0xff]  ;;  %v575_v50 = vld [vmem:[%s14930_s7 + $0x718] sm:$0xff] }
  0xfd   : > { %v1080_v55 = vpack.c.bf16 %v536_v52, %v532_v51  ;;  %v1101_v51 = vpack.c.bf16 %v577_v49, %v573_v48  ;;  %v579_v52 = vld [vmem:[%s14930_s7 + $0x738] sm:$0xff]  ;;  %v13876_v49 = vld [vmem:[#allocation6 + $0x784] ss:$40 sps:$4 sm:$0xff]  }
  0xfe   : > { %5744 = vmatprep.subr.bf16.mxu1 %v1083_v54  ;;  %v576_v54 = vld [vmem:[%s14930_s7 + $0x720] sm:$0xff]  ;;  %v13875_v48 = vld [vmem:[#allocation6 + $0x730] ss:$40 sps:$4 sm:$0xff]  }
  0xff   : > { %3980 = vmatpush1.bf16.msra.mxu0 %v1080_v55  ;;  %v1103_v55 = vpack.c.bf16 %v579_v52, %v575_v50  ;;  %v13878_v50 = vld [vmem:[#allocation6 + $0x780] ss:$40 sps:$4 sm:$0xff]   ;;  %v13881_v52 = vld [vmem:[#allocation6 + $0x7d0] ss:$40 sps:$4 sm:$0xff]  }
 0x100   : > { %3981 = vmatprep.subr.bf16.mxu0 %v1085_v63  ;;  %v1105_v63 = vpack.c.bf16 %v585_v61, %v581_v60  ;;  %v13893_v60 = vld [vmem:[#allocation6 + $0x910] ss:$40 sps:$4 sm:$0xff]   ;;  %v13894_v61 = vld [vmem:[#allocation6 + $0x964] ss:$40 sps:$4 sm:$0xff]  }
 0x102   : > { %3715 = vmatmul.mubr.bf16.gmra.mrb[28].mxu0 %v13827_v59 }
 0x103   : > { %5480 = vmatmul.mubr.bf16.gmra.mrb[28].mxu1 %v13827_v59  ;;  %3724 = vmatprep.mubr.bf16.mxu0 %v13828_v0  ;;  %v1082_v59 = vpack.c.bf16 %v538_v57, %v534_v56  ;;  %v574_v57 = vld [vmem:[%s14930_s7 + $0x710] sm:$0xff] }
 0x104   : > { %5489 = vmatprep.mubr.bf16.mxu1 %v13828_v0  ;;  %v547_v0 = vld [vmem:[%s14930_s7 + $0x638] sm:$0xff] }
 0x105   : > { %5745 = vmatpush1.bf16.msra.mxu1 %v1082_v59 }
 0x10a   : > { %3725 = vmatmul.mubr.bf16.gmra.mrb[32].mxu0 %v13830_v2 }
 0x10b   : > { %5490 = vmatmul.mubr.bf16.gmra.mrb[32].mxu1 %v13830_v2  ;;  %3734 = vmatprep.mubr.bf16.mxu0 %v13831_v3  ;;  %v544_v2 = vld [vmem:[%s14930_s7 + $0x620] sm:$0xff] }
 0x10c   : > { %5499 = vmatprep.mubr.bf16.mxu1 %v13831_v3  ;;  %v1087_v3 = vpack.c.bf16 %v547_v0, %v543_v62  ;;  %v1084_v4 = vpack.c.bf16 %v544_v2, %v540_v1  ;;  %v583_v62 = vld [vmem:[%s14930_s7 + $0x758] sm:$0xff]  ;;  %v580_v1 = vld [vmem:[%s14930_s7 + $0x740] sm:$0xff] }
 0x10d   : > { %v587_v0 = vld [vmem:[%s14930_s7 + $0x778] sm:$0xff]  ;;  %v584_v2 = vld [vmem:[%s14930_s7 + $0x760] sm:$0xff] }
 0x10e   : > { %5746 = vmatprep.subr.bf16.mxu1 %v1087_v3  ;;  %3982 = vmatpush1.bf16.msra.mxu0 %v1084_v4  ;;  %v13851_v3 = vld [vmem:[#allocation6 + $0x4b0] ss:$40 sps:$4 sm:$0xff]   ;;  %v1107_v4 = vpack.c.bf16 %v587_v0, %v583_v62  ;;  %v1104_v5 = vpack.c.bf16 %v584_v2, %v580_v1  ;;  %v13896_v62 = vld [vmem:[#allocation6 + $0x960] ss:$40 sps:$4 sm:$0xff]   ;;  %v13902_v1 = vld [vmem:[#allocation6 + $0xc] ss:$40 sps:$4 sm:$0xff]  }
 0x10f   : > { %5747 = vmatpush1.bf16.msra.mxu1 %v1086_v7  ;;  %v586_v7 = vld [vmem:[%s14930_s7 + $0x770] sm:$0xff] }
 0x110   : > { %v13899_v0 = vld [vmem:[#allocation6 + $0x9b0] ss:$40 sps:$4 sm:$0xff]  }
 0x111   : > { %v13900_v2 = vld [vmem:[#allocation6 + $0x8] ss:$40 sps:$4 sm:$0xff]  }
 0x112   : > { %3735 = vmatmul.mubr.bf16.gmra.mrb[36].mxu0 %v13833_v11 }
 0x113   : > { %5500 = vmatmul.mubr.bf16.gmra.mrb[36].mxu1 %v13833_v11  ;;  %3744 = vmatprep.mubr.bf16.mxu0 %v13834_v16  ;;  %v1089_v11 = vpack.c.bf16 %v553_v9, %v549_v8  ;;  %v13852_v8 = vld [vmem:[#allocation6 + $0x504] ss:$40 sps:$4 sm:$0xff]   ;;  %v1106_v9 = vpack.c.bf16 %v586_v7, %v582_v6  ;;  %v607_v6 = vld [vmem:[%s14930_s7 + $0x818] sm:$0xff] }
 0x114   : > { %5509 = vmatprep.mubr.bf16.mxu1 %v13834_v16  ;;  %v1091_v16 = vpack.c.bf16 %v555_v12, %v551_v10  ;;  %v589_v10 = vld [vmem:[%s14930_s7 + $0x788] sm:$0xff]  ;;  %v591_v12 = vld [vmem:[%s14930_s7 + $0x798] sm:$0xff] }
 0x115   : > { %3983 = vmatprep.subr.bf16.mxu0 %v1089_v11  ;;  %v593_v11 = vld [vmem:[%s14930_s7 + $0x7a8] sm:$0xff] }
 0x116   : > { %5748 = vmatprep.subr.bf16.mxu1 %v1091_v16  ;;  %3984 = vmatpush1.bf16.msra.mxu0 %v1088_v17  ;;  %v1109_v13 = vpack.c.bf16 %v593_v11, %v589_v10  ;;  %v592_v16 = vld [vmem:[%s14930_s7 + $0x7a0] sm:$0xff]  ;;  %v1111_v17 = vpack.c.bf16 %v595_v14, %v591_v12  ;;  %v610_v14 = vld [vmem:[%s14930_s7 + $0x830] sm:$0xff] }
 0x117   : > { %3985 = vmatprep.subr.bf16.mxu0 %v1093_v25  ;;  %v1113_v25 = vpack.c.bf16 %v601_v23, %v597_v22  ;;  %v608_v10 = vld [vmem:[%s14930_s7 + $0x820] sm:$0xff]  ;;  %v615_v22 = vld [vmem:[%s14930_s7 + $0x858] sm:$0xff] }
 0x11a   : > { %3745 = vmatmul.mubr.bf16.gmra.mrb[40].mxu0 %v13836_v18 }
 0x11b   : > { %5510 = vmatmul.mubr.bf16.gmra.mrb[40].mxu1 %v13836_v18  ;;  %3754 = vmatprep.mubr.bf16.mxu0 %v13837_v19  ;;  %v550_v18 = vld [vmem:[%s14930_s7 + $0x650] sm:$0xff] }
 0x11c   : > { %5519 = vmatprep.mubr.bf16.mxu1 %v13837_v19  ;;  %v554_v19 = vld [vmem:[%s14930_s7 + $0x670] sm:$0xff] }
 0x11d   : > { %v1090_v21 = vpack.c.bf16 %v554_v19, %v550_v18  ;;  %v590_v19 = vld [vmem:[%s14930_s7 + $0x790] sm:$0xff] }
 0x11f   : > { %5749 = vmatpush1.bf16.msra.mxu1 %v1090_v21 }
 0x120   : > { %5750 = vmatprep.subr.bf16.mxu1 %v1095_v29  ;;  %v13854_v29 = vld [vmem:[#allocation6 + $0x500] ss:$40 sps:$4 sm:$0xff]  }
 0x122   : > { %3755 = vmatmul.mubr.bf16.gmra.mrb[44].mxu0 %v13839_v27 }
 0x123   : > { %5520 = vmatmul.mubr.bf16.gmra.mrb[44].mxu1 %v13839_v27  ;;  %3764 = vmatprep.mubr.bf16.mxu0 %v13840_v32  ;;  %v556_v27 = vld [vmem:[%s14930_s7 + $0x680] sm:$0xff] }
 0x124   : > { %5529 = vmatprep.mubr.bf16.mxu1 %v13840_v32  ;;  %v1092_v30 = vpack.c.bf16 %v560_v28, %v556_v27  ;;  %v562_v32 = vld [vmem:[%s14930_s7 + $0x6b0] sm:$0xff]  ;;  %v596_v27 = vld [vmem:[%s14930_s7 + $0x7c0] sm:$0xff] }
 0x125   : > { %v1094_v33 = vpack.c.bf16 %v562_v32, %v558_v31  ;;  %v600_v28 = vld [vmem:[%s14930_s7 + $0x7e0] sm:$0xff]  ;;  %v598_v32 = vld [vmem:[%s14930_s7 + $0x7d0] sm:$0xff] }
 0x126   : > { %3986 = vmatpush1.bf16.msra.mxu0 %v1092_v30  ;;  %v1115_v30 = vpack.c.bf16 %v603_v26, %v599_v24  ;;  %v1112_v31 = vpack.c.bf16 %v600_v28, %v596_v27  ;;  %v619_v24 = vld [vmem:[%s14930_s7 + $0x878] sm:$0xff]  ;;  %v616_v26 = vld [vmem:[%s14930_s7 + $0x860] sm:$0xff] }
 0x127   : > { %5751 = vmatpush1.bf16.msra.mxu1 %v1094_v33  ;;  %3987 = vmatprep.subr.bf16.mxu0 %v1097_v37  ;;  %v602_v33 = vld [vmem:[%s14930_s7 + $0x7f0] sm:$0xff]  ;;  %v13858_v37 = vld [vmem:[#allocation6 + $0x5a4] ss:$40 sps:$4 sm:$0xff]   ;;  %v1123_v27 = vpack.c.bf16 %v619_v24, %v615_v22  ;;  %v647_v22 = vld [vmem:[%s14930_s7 + $0x958] sm:$0xff] }
 0x128   : > { %5752 = vmatprep.subr.bf16.mxu1 %v1099_v42  ;;  %v1114_v35 = vpack.c.bf16 %v602_v33, %v598_v32  ;;  %v13866_v42 = vld [vmem:[#allocation6 + $0x640] ss:$40 sps:$4 sm:$0xff]   ;;  %v13912_v33 = vld [vmem:[#allocation6 + $0x14c] ss:$40 sps:$4 sm:$0xff]   ;;  %v651_v24 = vld [vmem:[%s14930_s7 + $0x978] sm:$0xff] }
 0x12a   : > { %3765 = vmatmul.mubr.bf16.gmra.mrb[48].mxu0 %v13842_v53 }
 0x12b   : > { %5530 = vmatmul.mubr.bf16.gmra.mrb[48].mxu1 %v13842_v53  ;;  %3774 = vmatprep.mubr.bf16.mxu0 %v13843_v58  ;;  %v572_v53 = vld [vmem:[%s14930_s7 + $0x700] sm:$0xff] }
 0x12c   : > { %5539 = vmatprep.mubr.bf16.mxu1 %v13843_v58  ;;  %3988 = vmatpush1.bf16.msra.mxu0 %v1096_v43  ;;  %v1100_v56 = vpack.c.bf16 %v576_v54, %v572_v53  ;;  %v578_v58 = vld [vmem:[%s14930_s7 + $0x730] sm:$0xff]  ;;  %v13882_v53 = vld [vmem:[#allocation6 + $0x824] ss:$40 sps:$4 sm:$0xff]   ;;  %v13884_v54 = vld [vmem:[#allocation6 + $0x820] ss:$40 sps:$4 sm:$0xff]  }
 0x12d   : > { %5753 = vmatpush1.bf16.msra.mxu1 %v1098_v47  ;;  %v1102_v59 = vpack.c.bf16 %v578_v58, %v574_v57  ;;  %3989 = vmatprep.subr.bf16.mxu0 %v1101_v51  ;;  %v13867_v43 = vld [vmem:[#allocation6 + $0x694] ss:$40 sps:$4 sm:$0xff]   ;;  %v13888_v57 = vld [vmem:[#allocation6 + $0x8c4] ss:$40 sps:$4 sm:$0xff]   ;;  %v13890_v58 = vld [vmem:[#allocation6 + $0x8c0] ss:$40 sps:$4 sm:$0xff]  }
 0x12e   : > { %5754 = vmatprep.subr.bf16.mxu1 %v1103_v55  ;;  %v13873_v47 = vld [vmem:[#allocation6 + $0x734] ss:$40 sps:$4 sm:$0xff]  }
 0x12f   : > { %v13879_v51 = vld [vmem:[#allocation6 + $0x7d4] ss:$40 sps:$4 sm:$0xff]  }
 0x130   : > { %3990 = vmatpush1.bf16.msra.mxu0 %v1100_v56  ;;  %v13885_v55 = vld [vmem:[#allocation6 + $0x874] ss:$40 sps:$4 sm:$0xff]   ;;  %v13887_v56 = vld [vmem:[#allocation6 + $0x870] ss:$40 sps:$4 sm:$0xff]  }
 0x131   : > { %5755 = vmatpush1.bf16.msra.mxu1 %v1102_v59  ;;  %3991 = vmatprep.subr.bf16.mxu0 %v1105_v63  ;;  %v13891_v59 = vld [vmem:[#allocation6 + $0x914] ss:$40 sps:$4 sm:$0xff]  }
 0x132   : > { %3775 = vmatmul.mubr.bf16.gmra.mrb[52].mxu0 %v13845_v15  ;;  %5756 = vmatprep.subr.bf16.mxu1 %v1107_v4  ;;  %v13897_v63 = vld [vmem:[#allocation6 + $0x9b4] ss:$40 sps:$4 sm:$0xff]   ;;  %v605_v4 = vld [vmem:[%s14930_s7 + $0x808] sm:$0xff] }
 0x133   : > { %5540 = vmatmul.mubr.bf16.gmra.mrb[52].mxu1 %v13845_v15  ;;  %3784 = vmatprep.mubr.bf16.mxu0 %v13846_v20  ;;  %v588_v15 = vld [vmem:[%s14930_s7 + $0x780] sm:$0xff] }
 0x134   : > { %5549 = vmatprep.mubr.bf16.mxu1 %v13846_v20  ;;  %3992 = vmatpush1.bf16.msra.mxu0 %v1104_v5  ;;  %v1108_v18 = vpack.c.bf16 %v592_v16, %v588_v15  ;;  %v594_v20 = vld [vmem:[%s14930_s7 + $0x7b0] sm:$0xff]  ;;  %v609_v5 = vld [vmem:[%s14930_s7 + $0x828] sm:$0xff]  ;;  %v13905_v15 = vld [vmem:[#allocation6 + $0x58] ss:$40 sps:$4 sm:$0xff]  }
 0x135   : > { %5757 = vmatpush1.bf16.msra.mxu1 %v1106_v9  ;;  %v1110_v21 = vpack.c.bf16 %v594_v20, %v590_v19  ;;  %3993 = vmatprep.subr.bf16.mxu0 %v1109_v13  ;;  %v1117_v7 = vpack.c.bf16 %v609_v5, %v605_v4  ;;  %v604_v9 = vld [vmem:[%s14930_s7 + $0x800] sm:$0xff]  ;;  %v606_v13 = vld [vmem:[%s14930_s7 + $0x810] sm:$0xff]  ;;  %v613_v20 = vld [vmem:[%s14930_s7 + $0x848] sm:$0xff] }
 0x136   : > { %5758 = vmatprep.subr.bf16.mxu1 %v1111_v17  ;;  %v1116_v12 = vpack.c.bf16 %v608_v10, %v604_v9  ;;  %v1118_v16 = vpack.c.bf16 %v610_v14, %v606_v13  ;;  %v13906_v17 = vld [vmem:[#allocation6 + $0xac] ss:$40 sps:$4 sm:$0xff]   ;;  %v13909_v19 = vld [vmem:[#allocation6 + $0xfc] ss:$40 sps:$4 sm:$0xff]  }
 0x137   : > { %v637_v4 = vld [vmem:[%s14930_s7 + $0x908] sm:$0xff]  ;;  %v636_v9 = vld [vmem:[%s14930_s7 + $0x900] sm:$0xff]  ;;  %v638_v13 = vld [vmem:[%s14930_s7 + $0x910] sm:$0xff] }
 0x138   : > { %3994 = vmatpush1.bf16.msra.mxu0 %v1108_v18  ;;  %v13908_v18 = vld [vmem:[#allocation6 + $0xa8] ss:$40 sps:$4 sm:$0xff]   ;;  %v640_v10 = vld [vmem:[%s14930_s7 + $0x920] sm:$0xff] }
 0x139   : > { %5759 = vmatpush1.bf16.msra.mxu1 %v1110_v21  ;;  %3995 = vmatprep.subr.bf16.mxu0 %v1113_v25  ;;  %v617_v21 = vld [vmem:[%s14930_s7 + $0x868] sm:$0xff]  ;;  %v612_v25 = vld [vmem:[%s14930_s7 + $0x840] sm:$0xff]  ;;  %v642_v14 = vld [vmem:[%s14930_s7 + $0x930] sm:$0xff] }
 0x13a   : > { %3785 = vmatmul.mubr.bf16.gmra.mrb[56].mxu0 %v13848_v41  ;;  %5760 = vmatprep.subr.bf16.mxu1 %v1115_v30  ;;  %v1121_v23 = vpack.c.bf16 %v617_v21, %v613_v20  ;;  %v1120_v28 = vpack.c.bf16 %v616_v26, %v612_v25  ;;  %v618_v30 = vld [vmem:[%s14930_s7 + $0x870] sm:$0xff]  ;;  %v641_v5 = vld [vmem:[%s14930_s7 + $0x928] sm:$0xff]  ;;  %v644_v25 = vld [vmem:[%s14930_s7 + $0x940] sm:$0xff] }
 0x13b   : > { %5550 = vmatmul.mubr.bf16.gmra.mrb[56].mxu1 %v13848_v41  ;;  %3794 = vmatprep.mubr.bf16.mxu0 %v13849_v46  ;;  %v13864_v41 = vld [vmem:[#allocation6 + $0x644] ss:$40 sps:$4 sm:$0xff]  }
 0x13c   : > { %5559 = vmatprep.mubr.bf16.mxu1 %v13849_v46  ;;  %3996 = vmatpush1.bf16.msra.mxu0 %v1112_v31  ;;  %v13872_v46 = vld [vmem:[#allocation6 + $0x6e0] ss:$40 sps:$4 sm:$0xff]  }
 0x13d   : > { %5761 = vmatpush1.bf16.msra.mxu1 %v1114_v35  ;;  %4318 = vmatprep.subr.bf16.mxu0 %v1117_v7  ;;  %v13911_v31 = vld [vmem:[#allocation6 + $0xf8] ss:$40 sps:$4 sm:$0xff]   ;;  %v13915_v35 = vld [vmem:[#allocation6 + $0x19c] ss:$40 sps:$4 sm:$0xff]   ;;  %v1133_v7 = vpack.c.bf16 %v641_v5, %v637_v4  ;;  %v645_v20 = vld [vmem:[%s14930_s7 + $0x948] sm:$0xff] }
 0x13e   : > { %v649_v21 = vld [vmem:[%s14930_s7 + $0x968] sm:$0xff]  ;;  %v648_v26 = vld [vmem:[%s14930_s7 + $0x960] sm:$0xff]  ;;  %v670_v5 = vld [vmem:[%s14930_s7 + $0xa10] sm:$0xff] }
 0x142   : > { %3795 = vmatmul.mubr.bf16.gmra.mrb[60].mxu0 %v13851_v3 }
 0x143   : > { %5560 = vmatmul.mubr.bf16.gmra.mrb[60].mxu1 %v13851_v3  ;;  %3804 = vmatprep.mubr.bf16.mxu0 %v13852_v8  ;;  %v13903_v3 = vld [vmem:[#allocation6 + $0x5c] ss:$40 sps:$4 sm:$0xff]  }
 0x144   : > { %5569 = vmatprep.mubr.bf16.mxu1 %v13852_v8  ;;  %v611_v8 = vld [vmem:[%s14930_s7 + $0x838] sm:$0xff] }
 0x145   : > { %v1119_v11 = vpack.c.bf16 %v611_v8, %v607_v6  ;;  %v639_v6 = vld [vmem:[%s14930_s7 + $0x918] sm:$0xff] }
 0x146   : > { %v643_v8 = vld [vmem:[%s14930_s7 + $0x938] sm:$0xff] }
 0x147   : > { %6083 = vmatprep.subr.bf16.mxu1 %v1119_v11  ;;  %v1135_v11 = vpack.c.bf16 %v643_v8, %v639_v6  ;;  %v674_v6 = vld [vmem:[%s14930_s7 + $0xa30] sm:$0xff]  ;;  %v677_v8 = vld [vmem:[%s14930_s7 + $0xa48] sm:$0xff] }
 0x14a   : > { %3805 = vmatmul.mubr.bf16.gmra.mrb[64].mxu0 %v13854_v29 }
 0x14b   : > { %5570 = vmatmul.mubr.bf16.gmra.mrb[64].mxu1 %v13854_v29  ;;  %3814 = vmatprep.mubr.bf16.mxu0 %v13855_v34  ;;  %v614_v29 = vld [vmem:[%s14930_s7 + $0x850] sm:$0xff] }
 0x14c   : > { %5579 = vmatprep.mubr.bf16.mxu1 %v13855_v34  ;;  %v1122_v32 = vpack.c.bf16 %v618_v30, %v614_v29  ;;  %v13914_v34 = vld [vmem:[#allocation6 + $0x148] ss:$40 sps:$4 sm:$0xff]  }
 0x14d   : > { %v646_v29 = vld [vmem:[%s14930_s7 + $0x950] sm:$0xff] }
 0x14e   : > { %v650_v30 = vld [vmem:[%s14930_s7 + $0x970] sm:$0xff] }
 0x152   : > { %3815 = vmatmul.mubr.bf16.gmra.mrb[68].mxu0 %v13857_v36 }
 0x153   : > { %5580 = vmatmul.mubr.bf16.gmra.mrb[68].mxu1 %v13857_v36  ;;  %3824 = vmatprep.mubr.bf16.mxu0 %v13858_v37  ;;  %v621_v36 = vld [vmem:[%s14930_s7 + $0x888] sm:$0xff] }
 0x154   : > { %5589 = vmatprep.mubr.bf16.mxu1 %v13858_v37  ;;  %v625_v37 = vld [vmem:[%s14930_s7 + $0x8a8] sm:$0xff] }
 0x15a   : > { %3825 = vmatmul.mubr.bf16.gmra.mrb[72].mxu0 %v13860_v38 }
 0x15b   : > { %5590 = vmatmul.mubr.bf16.gmra.mrb[72].mxu1 %v13860_v38  ;;  %3834 = vmatprep.mubr.bf16.mxu0 %v13861_v39  ;;  %v623_v38 = vld [vmem:[%s14930_s7 + $0x898] sm:$0xff] }
 0x15c   : > { %5599 = vmatprep.mubr.bf16.mxu1 %v13861_v39  ;;  %v1125_v39 = vpack.c.bf16 %v625_v37, %v621_v36  ;;  %v655_v36 = vld [vmem:[%s14930_s7 + $0x998] sm:$0xff] }
 0x162   : > { %3835 = vmatmul.mubr.bf16.gmra.mrb[76].mxu0 %v13863_v40 }
 0x163   : > { %5600 = vmatmul.mubr.bf16.gmra.mrb[76].mxu1 %v13863_v40  ;;  %3844 = vmatprep.mubr.bf16.mxu0 %v13864_v41  ;;  %v627_v40 = vld [vmem:[%s14930_s7 + $0x8b8] sm:$0xff] }
 0x164   : > { %5609 = vmatprep.mubr.bf16.mxu1 %v13864_v41  ;;  %v620_v41 = vld [vmem:[%s14930_s7 + $0x880] sm:$0xff] }
 0x16a   : > { %3845 = vmatmul.mubr.bf16.gmra.mrb[80].mxu0 %v13866_v42 }
 0x16b   : > { %5610 = vmatmul.mubr.bf16.gmra.mrb[80].mxu1 %v13866_v42  ;;  %3854 = vmatprep.mubr.bf16.mxu0 %v13867_v43  ;;  %v624_v42 = vld [vmem:[%s14930_s7 + $0x8a0] sm:$0xff] }
 0x16c   : > { %5619 = vmatprep.mubr.bf16.mxu1 %v13867_v43  ;;  %v1127_v43 = vpack.c.bf16 %v627_v40, %v623_v38  ;;  %v659_v38 = vld [vmem:[%s14930_s7 + $0x9b8] sm:$0xff]  ;;  %v656_v40 = vld [vmem:[%s14930_s7 + $0x9a0] sm:$0xff] }
 0x172   : > { %3855 = vmatmul.mubr.bf16.gmra.mrb[84].mxu0 %v13869_v44 }
 0x173   : > { %5620 = vmatmul.mubr.bf16.gmra.mrb[84].mxu1 %v13869_v44  ;;  %3864 = vmatprep.mubr.bf16.mxu0 %v13870_v45  ;;  %v1124_v44 = vpack.c.bf16 %v624_v42, %v620_v41  ;;  %v1143_v41 = vpack.c.bf16 %v659_v38, %v655_v36  ;;  %v695_v36 = vld [vmem:[%s14930_s7 + $0xad8] sm:$0xff] }
 0x174   : > { %5629 = vmatprep.mubr.bf16.mxu1 %v13870_v45  ;;  %v622_v45 = vld [vmem:[%s14930_s7 + $0x890] sm:$0xff]  ;;  %v699_v38 = vld [vmem:[%s14930_s7 + $0xaf8] sm:$0xff] }
 0x17a   : > { %3865 = vmatmul.mubr.bf16.gmra.mrb[88].mxu0 %v13872_v46 }
 0x17b   : > { %5630 = vmatmul.mubr.bf16.gmra.mrb[88].mxu1 %v13872_v46  ;;  %3874 = vmatprep.mubr.bf16.mxu0 %v13873_v47  ;;  %v626_v46 = vld [vmem:[%s14930_s7 + $0x8b0] sm:$0xff] }
 0x17c   : > { %5639 = vmatprep.mubr.bf16.mxu1 %v13873_v47  ;;  %v13917_v47 = vld [vmem:[#allocation6 + $0x198] ss:$40 sps:$4 sm:$0xff]  }
 0x182   : > { %3875 = vmatmul.mubr.bf16.gmra.mrb[92].mxu0 %v13875_v48 }
 0x183   : > { %5640 = vmatmul.mubr.bf16.gmra.mrb[92].mxu1 %v13875_v48  ;;  %3884 = vmatprep.mubr.bf16.mxu0 %v13876_v49  ;;  %v1126_v48 = vpack.c.bf16 %v626_v46, %v622_v45  ;;  %v661_v46 = vld [vmem:[%s14930_s7 + $0x9c8] sm:$0xff] }
 0x184   : > { %5649 = vmatprep.mubr.bf16.mxu1 %v13876_v49  ;;  %v13918_v49 = vld [vmem:[#allocation6 + $0x1ec] ss:$40 sps:$4 sm:$0xff]  }
 0x18a   : > { %3885 = vmatmul.mubr.bf16.gmra.mrb[96].mxu0 %v13878_v50 }
 0x18b   : > { %5650 = vmatmul.mubr.bf16.gmra.mrb[96].mxu1 %v13878_v50  ;;  %3894 = vmatprep.mubr.bf16.mxu0 %v13879_v51  ;;  %v13920_v50 = vld [vmem:[#allocation6 + $0x1e8] ss:$40 sps:$4 sm:$0xff]  }
 0x18c   : > { %5659 = vmatprep.mubr.bf16.mxu1 %v13879_v51  ;;  %v13921_v51 = vld [vmem:[#allocation6 + $0x23c] ss:$40 sps:$4 sm:$0xff]  }
 0x192   : > { %3895 = vmatmul.mubr.bf16.gmra.mrb[100].mxu0 %v13881_v52 }
 0x193   : > { %5660 = vmatmul.mubr.bf16.gmra.mrb[100].mxu1 %v13881_v52  ;;  %3904 = vmatprep.mubr.bf16.mxu0 %v13882_v53  ;;  %v629_v52 = vld [vmem:[%s14930_s7 + $0x8c8] sm:$0xff] }
 0x194   : > { %5669 = vmatprep.mubr.bf16.mxu1 %v13882_v53  ;;  %v633_v53 = vld [vmem:[%s14930_s7 + $0x8e8] sm:$0xff] }
 0x19a   : > { %3905 = vmatmul.mubr.bf16.gmra.mrb[104].mxu0 %v13884_v54 }
 0x19b   : > { %5670 = vmatmul.mubr.bf16.gmra.mrb[104].mxu1 %v13884_v54  ;;  %3914 = vmatprep.mubr.bf16.mxu0 %v13885_v55  ;;  %v631_v54 = vld [vmem:[%s14930_s7 + $0x8d8] sm:$0xff] }
 0x19c   : > { %5679 = vmatprep.mubr.bf16.mxu1 %v13885_v55  ;;  %v1129_v55 = vpack.c.bf16 %v633_v53, %v629_v52  ;;  %v664_v52 = vld [vmem:[%s14930_s7 + $0x9e0] sm:$0xff] }
 0x1a2   : > { %3915 = vmatmul.mubr.bf16.gmra.mrb[108].mxu0 %v13887_v56 }
 0x1a3   : > { %5680 = vmatmul.mubr.bf16.gmra.mrb[108].mxu1 %v13887_v56  ;;  %3924 = vmatprep.mubr.bf16.mxu0 %v13888_v57  ;;  %v635_v56 = vld [vmem:[%s14930_s7 + $0x8f8] sm:$0xff] }
 0x1a4   : > { %5689 = vmatprep.mubr.bf16.mxu1 %v13888_v57  ;;  %v628_v57 = vld [vmem:[%s14930_s7 + $0x8c0] sm:$0xff] }
 0x1aa   : > { %3925 = vmatmul.mubr.bf16.gmra.mrb[112].mxu0 %v13890_v58 }
 0x1ab   : > { %5690 = vmatmul.mubr.bf16.gmra.mrb[112].mxu1 %v13890_v58  ;;  %3934 = vmatprep.mubr.bf16.mxu0 %v13891_v59  ;;  %v632_v58 = vld [vmem:[%s14930_s7 + $0x8e0] sm:$0xff] }
 0x1ac   : > { %5699 = vmatprep.mubr.bf16.mxu1 %v13891_v59  ;;  %v1131_v59 = vpack.c.bf16 %v635_v56, %v631_v54  ;;  %v666_v56 = vld [vmem:[%s14930_s7 + $0x9f0] sm:$0xff] }
 0x1b2   : > { %3935 = vmatmul.mubr.bf16.gmra.mrb[116].mxu0 %v13893_v60 }
 0x1b3   : > { %5700 = vmatmul.mubr.bf16.gmra.mrb[116].mxu1 %v13893_v60  ;;  %3944 = vmatprep.mubr.bf16.mxu0 %v13894_v61  ;;  %v1128_v60 = vpack.c.bf16 %v632_v58, %v628_v57  ;;  %v13938_v57 = vld [vmem:[#allocation6 + $0x3c8] ss:$40 sps:$4 sm:$0xff]  }
 0x1b4   : > { %5709 = vmatprep.mubr.bf16.mxu1 %v13894_v61  ;;  %v630_v61 = vld [vmem:[%s14930_s7 + $0x8d0] sm:$0xff] }
 0x1ba   : > { %3945 = vmatmul.mubr.bf16.gmra.mrb[120].mxu0 %v13896_v62 }
 0x1bb   : > { %5710 = vmatmul.mubr.bf16.gmra.mrb[120].mxu1 %v13896_v62  ;;  %3954 = vmatprep.mubr.bf16.mxu0 %v13897_v63  ;;  %v634_v62 = vld [vmem:[%s14930_s7 + $0x8f0] sm:$0xff] }
 0x1bc   : > { %5719 = vmatprep.mubr.bf16.mxu1 %v13897_v63  ;;  %v13923_v63 = vld [vmem:[#allocation6 + $0x238] ss:$40 sps:$4 sm:$0xff]  }
 0x1c2   : > { %3955 = vmatmul.mubr.bf16.gmra.mrb[124].mxu0 %v13899_v0 }
 0x1c3   : > { %5720 = vmatmul.mubr.bf16.gmra.mrb[124].mxu1 %v13899_v0  ;;  %3997 = vmatprep.mubr.bf16.mxu0 %v13902_v1  ;;  %v1130_v0 = vpack.c.bf16 %v634_v62, %v630_v61  ;;  %v673_v61 = vld [vmem:[%s14930_s7 + $0xa28] sm:$0xff]  ;;  %v671_v62 = vld [vmem:[%s14930_s7 + $0xa18] sm:$0xff] }
 0x1c4   : > { %5762 = vmatprep.mubr.bf16.mxu1 %v13902_v1  ;;  %v13924_v1 = vld [vmem:[#allocation6 + $0x28c] ss:$40 sps:$4 sm:$0xff]  }
 0x1ca   : > { %3998 = vmatmul.mubr.bf16.vlgmr.msra.gmra.mrb[0].mxu0 %v13900_v2 }
 0x1cb   : > { %5763 = vmatmul.mubr.bf16.vlgmr.msra.gmra.mrb[0].mxu1 %v13900_v2  ;;  %4007 = vmatprep.mubr.bf16.mxu0 %v13903_v3  ;;  %v13926_v2 = vld [vmem:[#allocation6 + $0x288] ss:$40 sps:$4 sm:$0xff]  }
 0x1cc   : > { %5772 = vmatprep.mubr.bf16.mxu1 %v13903_v3  ;;  %4319 = vmatpush1.bf16.msra.mxu0 %v1116_v12  ;;  %v13927_v3 = vld [vmem:[#allocation6 + $0x2dc] ss:$40 sps:$4 sm:$0xff]   ;;  %v1132_v12 = vpack.c.bf16 %v640_v10, %v636_v9  ;;  %v681_v9 = vld [vmem:[%s14930_s7 + $0xa68] sm:$0xff] }
 0x1cd   : > { %6084 = vmatpush1.bf16.msra.mxu1 %v1118_v16  ;;  %4320 = vmatprep.subr.bf16.mxu0 %v1121_v23  ;;  %v1134_v16 = vpack.c.bf16 %v642_v14, %v638_v13  ;;  %v1137_v23 = vpack.c.bf16 %v649_v21, %v645_v20  ;;  %v679_v10 = vld [vmem:[%s14930_s7 + $0xa58] sm:$0xff]  ;;  %v676_v13 = vld [vmem:[%s14930_s7 + $0xa40] sm:$0xff]  ;;  %v13942_v21 = vld [vmem:[#allocation6 + $0x46c] ss:$40 sps:$4 sm:$0xff]  }
 0x1ce   : > { %6085 = vmatprep.subr.bf16.mxu1 %v1123_v27  ;;  %v1139_v27 = vpack.c.bf16 %v651_v24, %v647_v22  ;;  %v680_v14 = vld [vmem:[%s14930_s7 + $0xa60] sm:$0xff]  ;;  %v685_v22 = vld [vmem:[%s14930_s7 + $0xa88] sm:$0xff]  ;;  %v687_v24 = vld [vmem:[%s14930_s7 + $0xa98] sm:$0xff] }
 0x1d0   : > { %4321 = vmatpush1.bf16.msra.mxu0 %v1120_v28  ;;  %v1136_v28 = vpack.c.bf16 %v648_v26, %v644_v25  ;;  %v691_v26 = vld [vmem:[%s14930_s7 + $0xab8] sm:$0xff] }
 0x1d1   : > { %6086 = vmatpush1.bf16.msra.mxu1 %v1122_v32  ;;  %4322 = vmatprep.subr.bf16.mxu0 %v1125_v39  ;;  %v1138_v32 = vpack.c.bf16 %v650_v30, %v646_v29  ;;  %v652_v39 = vld [vmem:[%s14930_s7 + $0x980] sm:$0xff]  ;;  %v1159_v29 = vpack.c.bf16 %v691_v26, %v687_v24  ;;  %v727_v24 = vld [vmem:[%s14930_s7 + $0xbd8] sm:$0xff] }
 0x1d2   : > { %4008 = vmatmul.mubr.bf16.gmra.mrb[4].mxu0 %v13905_v15  ;;  %6087 = vmatprep.subr.bf16.mxu1 %v1127_v43  ;;  %v1140_v42 = vpack.c.bf16 %v656_v40, %v652_v39  ;;  %v654_v43 = vld [vmem:[%s14930_s7 + $0x990] sm:$0xff]  ;;  %v692_v39 = vld [vmem:[%s14930_s7 + $0xac0] sm:$0xff]  ;;  %v731_v26 = vld [vmem:[%s14930_s7 + $0xbf8] sm:$0xff] }
 0x1d3   : > { %5773 = vmatmul.mubr.bf16.gmra.mrb[4].mxu1 %v13905_v15  ;;  %4017 = vmatprep.mubr.bf16.mxu0 %v13906_v17  ;;  %v13929_v15 = vld [vmem:[#allocation6 + $0x2d8] ss:$40 sps:$4 sm:$0xff]  }
 0x1d4   : > { %5782 = vmatprep.mubr.bf16.mxu1 %v13906_v17  ;;  %4323 = vmatpush1.bf16.msra.mxu0 %v1124_v44  ;;  %v13930_v17 = vld [vmem:[#allocation6 + $0x32c] ss:$40 sps:$4 sm:$0xff]   ;;  %v696_v40 = vld [vmem:[%s14930_s7 + $0xae0] sm:$0xff] }
 0x1d5   : > { %6088 = vmatpush1.bf16.msra.mxu1 %v1126_v48  ;;  %4324 = vmatprep.subr.bf16.mxu0 %v1129_v55  ;;  %v658_v44 = vld [vmem:[%s14930_s7 + $0x9b0] sm:$0xff]  ;;  %v663_v48 = vld [vmem:[%s14930_s7 + $0x9d8] sm:$0xff] }
 0x1d6   : > { %6089 = vmatprep.subr.bf16.mxu1 %v1131_v59  ;;  %v1142_v45 = vpack.c.bf16 %v658_v44, %v654_v43  ;;  %v662_v55 = vld [vmem:[%s14930_s7 + $0x9d0] sm:$0xff]  ;;  %v13939_v59 = vld [vmem:[#allocation6 + $0x41c] ss:$40 sps:$4 sm:$0xff]  }
 0x1d7   : > { %v1146_v58 = vpack.c.bf16 %v666_v56, %v662_v55  ;;  %v694_v43 = vld [vmem:[%s14930_s7 + $0xad0] sm:$0xff] }
 0x1d8   : > { %4325 = vmatpush1.bf16.msra.mxu0 %v1128_v60  ;;  %v669_v60 = vld [vmem:[%s14930_s7 + $0xa08] sm:$0xff]  ;;  %v698_v44 = vld [vmem:[%s14930_s7 + $0xaf0] sm:$0xff] }
 0x1d9   : > { %6090 = vmatpush1.bf16.msra.mxu1 %v1130_v0  ;;  %4326 = vmatprep.subr.bf16.mxu0 %v1133_v7  ;;  %v675_v0 = vld [vmem:[%s14930_s7 + $0xa38] sm:$0xff]  ;;  %v1150_v7 = vpack.c.bf16 %v674_v6, %v670_v5  ;;  %v710_v5 = vld [vmem:[%s14930_s7 + $0xb50] sm:$0xff] }
 0x1da   : > { %4018 = vmatmul.mubr.bf16.gmra.mrb[8].mxu0 %v13908_v18  ;;  %6091 = vmatprep.subr.bf16.mxu1 %v1135_v11  ;;  %v1153_v11 = vpack.c.bf16 %v681_v9, %v677_v8  ;;  %v714_v6 = vld [vmem:[%s14930_s7 + $0xb70] sm:$0xff] }
 0x1db   : > { %5783 = vmatmul.mubr.bf16.gmra.mrb[8].mxu1 %v13908_v18  ;;  %4027 = vmatprep.mubr.bf16.mxu0 %v13909_v19  ;;  %v13932_v18 = vld [vmem:[#allocation6 + $0x328] ss:$40 sps:$4 sm:$0xff]   ;;  %v1170_v8 = vpack.c.bf16 %v714_v6, %v710_v5  ;;  %v13948_v9 = vld [vmem:[#allocation6 + $0x50c] ss:$40 sps:$4 sm:$0xff]   ;;  %v735_v6 = vld [vmem:[%s14930_s7 + $0xc18] sm:$0xff] }
 0x1dc   : > { %5792 = vmatprep.mubr.bf16.mxu1 %v13909_v19  ;;  %4327 = vmatpush1.bf16.msra.mxu0 %v1132_v12  ;;  %v13933_v19 = vld [vmem:[#allocation6 + $0x37c] ss:$40 sps:$4 sm:$0xff]   ;;  %v737_v5 = vld [vmem:[%s14930_s7 + $0xc28] sm:$0xff] }
 0x1dd   : > { %6092 = vmatpush1.bf16.msra.mxu1 %v1134_v16  ;;  %4328 = vmatprep.subr.bf16.mxu0 %v1137_v23  ;;  %v683_v12 = vld [vmem:[%s14930_s7 + $0xa78] sm:$0xff]  ;;  %v1152_v16 = vpack.c.bf16 %v680_v14, %v676_v13  ;;  %v689_v23 = vld [vmem:[%s14930_s7 + $0xaa8] sm:$0xff] }
 0x1de   : > { %6093 = vmatprep.subr.bf16.mxu1 %v1139_v27  ;;  %v1157_v25 = vpack.c.bf16 %v689_v23, %v685_v22  ;;  %v684_v27 = vld [vmem:[%s14930_s7 + $0xa80] sm:$0xff]  ;;  %v723_v14 = vld [vmem:[%s14930_s7 + $0xbb8] sm:$0xff]  ;;  %v725_v22 = vld [vmem:[%s14930_s7 + $0xbc8] sm:$0xff] }
 0x1df   : > { %v729_v23 = vld [vmem:[%s14930_s7 + $0xbe8] sm:$0xff] }
 0x1e0   : > { %4329 = vmatpush1.bf16.msra.mxu0 %v1136_v28  ;;  %v688_v28 = vld [vmem:[%s14930_s7 + $0xaa0] sm:$0xff] }
 0x1e1   : > { %6094 = vmatpush1.bf16.msra.mxu1 %v1138_v32  ;;  %v1156_v30 = vpack.c.bf16 %v688_v28, %v684_v27  ;;  %v690_v32 = vld [vmem:[%s14930_s7 + $0xab0] sm:$0xff]  ;;  %v724_v27 = vld [vmem:[%s14930_s7 + $0xbc0] sm:$0xff] }
 0x1e2   : > { %4028 = vmatmul.mubr.bf16.gmra.mrb[12].mxu0 %v13911_v31  ;;  %6095 = vmatprep.subr.bf16.mxu1 %v1143_v41  ;;  %v1163_v41 = vpack.c.bf16 %v699_v38, %v695_v36  ;;  %v728_v28 = vld [vmem:[%s14930_s7 + $0xbe0] sm:$0xff]  ;;  %v13956_v38 = vld [vmem:[#allocation6 + $0x5a8] ss:$40 sps:$4 sm:$0xff]  }
 0x1e3   : > { %5793 = vmatmul.mubr.bf16.gmra.mrb[12].mxu1 %v13911_v31  ;;  %4037 = vmatprep.mubr.bf16.mxu0 %v13912_v33  ;;  %v13935_v31 = vld [vmem:[#allocation6 + $0x378] ss:$40 sps:$4 sm:$0xff]  }
 0x1e4   : > { %5802 = vmatprep.mubr.bf16.mxu1 %v13912_v33  ;;  %v13936_v33 = vld [vmem:[#allocation6 + $0x3cc] ss:$40 sps:$4 sm:$0xff]   ;;  %v13953_v36 = vld [vmem:[#allocation6 + $0x558] ss:$40 sps:$4 sm:$0xff]  }
 0x1e5   : > { %6096 = vmatpush1.bf16.msra.mxu1 %v1142_v45  ;;  %v13944_v45 = vld [vmem:[#allocation6 + $0x468] ss:$40 sps:$4 sm:$0xff]  }
 0x1ea   : > { %4038 = vmatmul.mubr.bf16.gmra.mrb[16].mxu0 %v13914_v34 }
 0x1eb   : > { %5803 = vmatmul.mubr.bf16.gmra.mrb[16].mxu1 %v13914_v34  ;;  %4047 = vmatprep.mubr.bf16.mxu0 %v13915_v35  ;;  %v653_v34 = vld [vmem:[%s14930_s7 + $0x988] sm:$0xff] }
 0x1ec   : > { %5812 = vmatprep.mubr.bf16.mxu1 %v13915_v35  ;;  %v657_v35 = vld [vmem:[%s14930_s7 + $0x9a8] sm:$0xff] }
 0x1ed   : > { %v1141_v37 = vpack.c.bf16 %v657_v35, %v653_v34  ;;  %v693_v34 = vld [vmem:[%s14930_s7 + $0xac8] sm:$0xff] }
 0x1ee   : > { %v697_v35 = vld [vmem:[%s14930_s7 + $0xae8] sm:$0xff] }
 0x1ef   : > { %4330 = vmatprep.subr.bf16.mxu0 %v1141_v37  ;;  %v1161_v37 = vpack.c.bf16 %v697_v35, %v693_v34  ;;  %v13951_v35 = vld [vmem:[#allocation6 + $0x55c] ss:$40 sps:$4 sm:$0xff]  }
 0x1f0   : > { %4331 = vmatpush1.bf16.msra.mxu0 %v1140_v42  ;;  %v1160_v42 = vpack.c.bf16 %v696_v40, %v692_v39  ;;  %v13957_v39 = vld [vmem:[#allocation6 + $0x5fc] ss:$40 sps:$4 sm:$0xff]   ;;  %v13959_v40 = vld [vmem:[#allocation6 + $0x5f8] ss:$40 sps:$4 sm:$0xff]  }
 0x1f2   : > { %4048 = vmatmul.mubr.bf16.gmra.mrb[20].mxu0 %v13917_v47 }
 0x1f3   : > { %5813 = vmatmul.mubr.bf16.gmra.mrb[20].mxu1 %v13917_v47  ;;  %4057 = vmatprep.mubr.bf16.mxu0 %v13918_v49  ;;  %v665_v47 = vld [vmem:[%s14930_s7 + $0x9e8] sm:$0xff] }
 0x1f4   : > { %5822 = vmatprep.mubr.bf16.mxu1 %v13918_v49  ;;  %v1145_v49 = vpack.c.bf16 %v665_v47, %v661_v46  ;;  %v1162_v46 = vpack.c.bf16 %v698_v44, %v694_v43  ;;  %v13945_v47 = vld [vmem:[#allocation6 + $0x4bc] ss:$40 sps:$4 sm:$0xff]   ;;  %v13965_v44 = vld [vmem:[#allocation6 + $0x698] ss:$40 sps:$4 sm:$0xff]  }
 0x1f5   : > { %v13963_v43 = vld [vmem:[#allocation6 + $0x69c] ss:$40 sps:$4 sm:$0xff]  }
 0x1f6   : > { %4332 = vmatprep.subr.bf16.mxu0 %v1145_v49  ;;  %v705_v49 = vld [vmem:[%s14930_s7 + $0xb28] sm:$0xff] }
 0x1fa   : > { %4058 = vmatmul.mubr.bf16.gmra.mrb[24].mxu0 %v13920_v50 }
 0x1fb   : > { %5823 = vmatmul.mubr.bf16.gmra.mrb[24].mxu1 %v13920_v50  ;;  %4067 = vmatprep.mubr.bf16.mxu0 %v13921_v51  ;;  %v667_v50 = vld [vmem:[%s14930_s7 + $0x9f8] sm:$0xff] }
 0x1fc   : > { %5832 = vmatprep.mubr.bf16.mxu1 %v13921_v51  ;;  %v660_v51 = vld [vmem:[%s14930_s7 + $0x9c0] sm:$0xff]  ;;  %v1147_v53 = vpack.c.bf16 %v667_v50, %v663_v48  ;;  %v701_v48 = vld [vmem:[%s14930_s7 + $0xb08] sm:$0xff]  ;;  %v703_v50 = vld [vmem:[%s14930_s7 + $0xb18] sm:$0xff] }
 0x1fd   : > { %v1144_v54 = vpack.c.bf16 %v664_v52, %v660_v51  ;;  %v1165_v51 = vpack.c.bf16 %v705_v49, %v701_v48  ;;  %v707_v52 = vld [vmem:[%s14930_s7 + $0xb38] sm:$0xff]  ;;  %v13972_v49 = vld [vmem:[#allocation6 + $0x78c] ss:$40 sps:$4 sm:$0xff]  }
 0x1fe   : > { %6097 = vmatprep.subr.bf16.mxu1 %v1147_v53  ;;  %v700_v53 = vld [vmem:[%s14930_s7 + $0xb00] sm:$0xff]  ;;  %v1167_v55 = vpack.c.bf16 %v707_v52, %v703_v50  ;;  %v13974_v50 = vld [vmem:[#allocation6 + $0x788] ss:$40 sps:$4 sm:$0xff]  }
 0x1ff   : > { %4333 = vmatpush1.bf16.msra.mxu0 %v1144_v54  ;;  %6098 = vmatpush1.bf16.msra.mxu1 %v1146_v58  ;;  %v704_v54 = vld [vmem:[%s14930_s7 + $0xb20] sm:$0xff]  ;;  %v706_v58 = vld [vmem:[%s14930_s7 + $0xb30] sm:$0xff] }
 0x200   : > { %v1164_v56 = vpack.c.bf16 %v704_v54, %v700_v53  ;;  %v13971_v48 = vld [vmem:[#allocation6 + $0x738] ss:$40 sps:$4 sm:$0xff]   ;;  %v13978_v53 = vld [vmem:[#allocation6 + $0x82c] ss:$40 sps:$4 sm:$0xff]   ;;  %v13980_v54 = vld [vmem:[#allocation6 + $0x828] ss:$40 sps:$4 sm:$0xff]  }
 0x201   : > { %v13977_v52 = vld [vmem:[#allocation6 + $0x7d8] ss:$40 sps:$4 sm:$0xff]  }
 0x202   : > { %4068 = vmatmul.mubr.bf16.gmra.mrb[28].mxu0 %v13923_v63 }
 0x203   : > { %5833 = vmatmul.mubr.bf16.gmra.mrb[28].mxu1 %v13923_v63  ;;  %4077 = vmatprep.mubr.bf16.mxu0 %v13924_v1  ;;  %v1149_v63 = vpack.c.bf16 %v673_v61, %v669_v60  ;;  %v709_v60 = vld [vmem:[%s14930_s7 + $0xb48] sm:$0xff] }
 0x204   : > { %5842 = vmatprep.mubr.bf16.mxu1 %v13924_v1  ;;  %v668_v1 = vld [vmem:[%s14930_s7 + $0xa00] sm:$0xff]  ;;  %v713_v61 = vld [vmem:[%s14930_s7 + $0xb68] sm:$0xff] }
 0x205   : > { %4334 = vmatprep.subr.bf16.mxu0 %v1149_v63  ;;  %v1169_v63 = vpack.c.bf16 %v713_v61, %v709_v60  ;;  %v13989_v60 = vld [vmem:[#allocation6 + $0x918] ss:$40 sps:$4 sm:$0xff]   ;;  %v13990_v61 = vld [vmem:[#allocation6 + $0x96c] ss:$40 sps:$4 sm:$0xff]  }
 0x20a   : > { %4078 = vmatmul.mubr.bf16.gmra.mrb[32].mxu0 %v13926_v2 }
 0x20b   : > { %5843 = vmatmul.mubr.bf16.gmra.mrb[32].mxu1 %v13926_v2  ;;  %4087 = vmatprep.mubr.bf16.mxu0 %v13927_v3  ;;  %v672_v2 = vld [vmem:[%s14930_s7 + $0xa20] sm:$0xff] }
 0x20c   : > { %5852 = vmatprep.mubr.bf16.mxu1 %v13927_v3  ;;  %v1151_v3 = vpack.c.bf16 %v675_v0, %v671_v62  ;;  %v1148_v4 = vpack.c.bf16 %v672_v2, %v668_v1  ;;  %v711_v62 = vld [vmem:[%s14930_s7 + $0xb58] sm:$0xff]  ;;  %v708_v1 = vld [vmem:[%s14930_s7 + $0xb40] sm:$0xff] }
 0x20d   : > { %v715_v0 = vld [vmem:[%s14930_s7 + $0xb78] sm:$0xff]  ;;  %v712_v2 = vld [vmem:[%s14930_s7 + $0xb60] sm:$0xff] }
 0x20e   : > { %6099 = vmatprep.subr.bf16.mxu1 %v1151_v3  ;;  %4335 = vmatpush1.bf16.msra.mxu0 %v1148_v4  ;;  %v1171_v3 = vpack.c.bf16 %v715_v0, %v711_v62  ;;  %v1168_v4 = vpack.c.bf16 %v712_v2, %v708_v1  ;;  %v13992_v62 = vld [vmem:[#allocation6 + $0x968] ss:$40 sps:$4 sm:$0xff]   ;;  %v13995_v0 = vld [vmem:[#allocation6 + $0x9b8] ss:$40 sps:$4 sm:$0xff]   ;;  %v13998_v1 = vld [vmem:[#allocation6 + $0x14] ss:$40 sps:$4 sm:$0xff]  }
 0x20f   : > { %6100 = vmatpush1.bf16.msra.mxu1 %v1150_v7  ;;  %4336 = vmatprep.subr.bf16.mxu0 %v1153_v11  ;;  %v13947_v7 = vld [vmem:[#allocation6 + $0x4b8] ss:$40 sps:$4 sm:$0xff]   ;;  %v721_v11 = vld [vmem:[%s14930_s7 + $0xba8] sm:$0xff] }
 0x210   : > { %v13996_v2 = vld [vmem:[#allocation6 + $0x10] ss:$40 sps:$4 sm:$0xff]  }
 0x212   : > { %4088 = vmatmul.mubr.bf16.gmra.mrb[36].mxu0 %v13929_v15 }
 0x213   : > { %5853 = vmatmul.mubr.bf16.gmra.mrb[36].mxu1 %v13929_v15  ;;  %4097 = vmatprep.mubr.bf16.mxu0 %v13930_v17  ;;  %v1155_v15 = vpack.c.bf16 %v683_v12, %v679_v10  ;;  %v717_v10 = vld [vmem:[%s14930_s7 + $0xb88] sm:$0xff]  ;;  %v719_v12 = vld [vmem:[%s14930_s7 + $0xb98] sm:$0xff] }
 0x214   : > { %5862 = vmatprep.mubr.bf16.mxu1 %v13930_v17  ;;  %v678_v17 = vld [vmem:[%s14930_s7 + $0xa50] sm:$0xff]  ;;  %4337 = vmatpush1.bf16.msra.mxu0 %v1152_v16  ;;  %v1173_v13 = vpack.c.bf16 %v721_v11, %v717_v10  ;;  %v720_v16 = vld [vmem:[%s14930_s7 + $0xba0] sm:$0xff] }
 0x215   : > { %6101 = vmatprep.subr.bf16.mxu1 %v1155_v15  ;;  %4338 = vmatprep.subr.bf16.mxu0 %v1157_v25  ;;  %v716_v15 = vld [vmem:[%s14930_s7 + $0xb80] sm:$0xff]  ;;  %v1177_v25 = vpack.c.bf16 %v729_v23, %v725_v22  ;;  %v743_v22 = vld [vmem:[%s14930_s7 + $0xc58] sm:$0xff] }
 0x216   : > { %v736_v10 = vld [vmem:[%s14930_s7 + $0xc20] sm:$0xff] }
 0x218   : > { %4339 = vmatpush1.bf16.msra.mxu0 %v1156_v30  ;;  %v1176_v30 = vpack.c.bf16 %v728_v28, %v724_v27 }
 0x219   : > { %4340 = vmatprep.subr.bf16.mxu0 %v1161_v37  ;;  %v13954_v37 = vld [vmem:[#allocation6 + $0x5ac] ss:$40 sps:$4 sm:$0xff]  }
 0x21a   : > { %4098 = vmatmul.mubr.bf16.gmra.mrb[40].mxu0 %v13932_v18 }
 0x21b   : > { %5863 = vmatmul.mubr.bf16.gmra.mrb[40].mxu1 %v13932_v18  ;;  %4107 = vmatprep.mubr.bf16.mxu0 %v13933_v19  ;;  %v682_v18 = vld [vmem:[%s14930_s7 + $0xa70] sm:$0xff] }
 0x21c   : > { %5872 = vmatprep.mubr.bf16.mxu1 %v13933_v19  ;;  %v13941_v19 = vld [vmem:[#allocation6 + $0x418] ss:$40 sps:$4 sm:$0xff]   ;;  %v1154_v20 = vpack.c.bf16 %v682_v18, %v678_v17  ;;  %4341 = vmatpush1.bf16.msra.mxu0 %v1160_v42  ;;  %v1175_v17 = vpack.c.bf16 %v723_v14, %v719_v12  ;;  %v1172_v18 = vpack.c.bf16 %v720_v16, %v716_v15  ;;  %v13962_v42 = vld [vmem:[#allocation6 + $0x648] ss:$40 sps:$4 sm:$0xff]  }
 0x21d   : > { %4342 = vmatprep.subr.bf16.mxu0 %v1165_v51  ;;  %v13975_v51 = vld [vmem:[#allocation6 + $0x7dc] ss:$40 sps:$4 sm:$0xff]   ;;  %v738_v14 = vld [vmem:[%s14930_s7 + $0xc30] sm:$0xff]  ;;  %v14001_v15 = vld [vmem:[#allocation6 + $0x60] ss:$40 sps:$4 sm:$0xff]  }
 0x21e   : > { %6102 = vmatpush1.bf16.msra.mxu1 %v1154_v20  ;;  %v722_v20 = vld [vmem:[%s14930_s7 + $0xbb0] sm:$0xff] }
 0x21f   : > { %6103 = vmatprep.subr.bf16.mxu1 %v1159_v29  ;;  %v1179_v29 = vpack.c.bf16 %v731_v26, %v727_v24  ;;  %v747_v24 = vld [vmem:[%s14930_s7 + $0xc78] sm:$0xff]  ;;  %v744_v26 = vld [vmem:[%s14930_s7 + $0xc60] sm:$0xff] }
 0x220   : > { %4343 = vmatpush1.bf16.msra.mxu0 %v1164_v56  ;;  %v13983_v56 = vld [vmem:[#allocation6 + $0x878] ss:$40 sps:$4 sm:$0xff]   ;;  %v1187_v27 = vpack.c.bf16 %v747_v24, %v743_v22  ;;  %v777_v22 = vld [vmem:[%s14930_s7 + $0xd68] sm:$0xff] }
 0x221   : > { %4344 = vmatprep.subr.bf16.mxu0 %v1169_v63  ;;  %v13993_v63 = vld [vmem:[#allocation6 + $0x9bc] ss:$40 sps:$4 sm:$0xff]  }
 0x222   : > { %4108 = vmatmul.mubr.bf16.gmra.mrb[44].mxu0 %v13935_v31 }
 0x223   : > { %5873 = vmatmul.mubr.bf16.gmra.mrb[44].mxu1 %v13935_v31  ;;  %4117 = vmatprep.mubr.bf16.mxu0 %v13936_v33  ;;  %v686_v31 = vld [vmem:[%s14930_s7 + $0xa90] sm:$0xff] }
 0x224   : > { %5882 = vmatprep.mubr.bf16.mxu1 %v13936_v33  ;;  %v1158_v33 = vpack.c.bf16 %v690_v32, %v686_v31  ;;  %4345 = vmatpush1.bf16.msra.mxu0 %v1168_v4  ;;  %v726_v31 = vld [vmem:[%s14930_s7 + $0xbd0] sm:$0xff]  ;;  %v733_v4 = vld [vmem:[%s14930_s7 + $0xc08] sm:$0xff] }
 0x225   : > { %4346 = vmatprep.subr.bf16.mxu0 %v1173_v13  ;;  %v730_v32 = vld [vmem:[%s14930_s7 + $0xbf0] sm:$0xff] }
 0x226   : > { %6104 = vmatpush1.bf16.msra.mxu1 %v1158_v33  ;;  %v13950_v33 = vld [vmem:[#allocation6 + $0x508] ss:$40 sps:$4 sm:$0xff]   ;;  %v1178_v34 = vpack.c.bf16 %v730_v32, %v726_v31 }
 0x227   : > { %6105 = vmatprep.subr.bf16.mxu1 %v1163_v41  ;;  %v13960_v41 = vld [vmem:[#allocation6 + $0x64c] ss:$40 sps:$4 sm:$0xff]   ;;  %v14007_v31 = vld [vmem:[#allocation6 + $0x100] ss:$40 sps:$4 sm:$0xff]  }
 0x228   : > { %4347 = vmatpush1.bf16.msra.mxu0 %v1172_v18  ;;  %v734_v13 = vld [vmem:[%s14930_s7 + $0xc10] sm:$0xff] }
 0x229   : > { %4348 = vmatprep.subr.bf16.mxu0 %v1177_v25  ;;  %v1182_v16 = vpack.c.bf16 %v738_v14, %v734_v13  ;;  %v14004_v18 = vld [vmem:[#allocation6 + $0xb0] ss:$40 sps:$4 sm:$0xff]   ;;  %v740_v25 = vld [vmem:[%s14930_s7 + $0xc40] sm:$0xff] }
 0x22a   : > { %4118 = vmatmul.mubr.bf16.gmra.mrb[48].mxu0 %v13938_v57  ;;  %6106 = vmatpush1.bf16.msra.mxu1 %v1162_v46  ;;  %v13968_v46 = vld [vmem:[#allocation6 + $0x6e8] ss:$40 sps:$4 sm:$0xff]   ;;  %v1184_v28 = vpack.c.bf16 %v744_v26, %v740_v25  ;;  %v775_v25 = vld [vmem:[%s14930_s7 + $0xd58] sm:$0xff] }
 0x22b   : > { %5883 = vmatmul.mubr.bf16.gmra.mrb[48].mxu1 %v13938_v57  ;;  %4127 = vmatprep.mubr.bf16.mxu0 %v13939_v59  ;;  %v702_v57 = vld [vmem:[%s14930_s7 + $0xb10] sm:$0xff]  ;;  %v779_v26 = vld [vmem:[%s14930_s7 + $0xd78] sm:$0xff] }
 0x22c   : > { %5892 = vmatprep.mubr.bf16.mxu1 %v13939_v59  ;;  %v1166_v59 = vpack.c.bf16 %v706_v58, %v702_v57  ;;  %6107 = vmatprep.subr.bf16.mxu1 %v1167_v55  ;;  %v13981_v55 = vld [vmem:[#allocation6 + $0x87c] ss:$40 sps:$4 sm:$0xff]   ;;  %v13984_v57 = vld [vmem:[#allocation6 + $0x8cc] ss:$40 sps:$4 sm:$0xff]   ;;  %v13986_v58 = vld [vmem:[#allocation6 + $0x8c8] ss:$40 sps:$4 sm:$0xff]  }
 0x22d   : > { %4349 = vmatpush1.bf16.msra.mxu0 %v1176_v30  ;;  %v746_v30 = vld [vmem:[%s14930_s7 + $0xc70] sm:$0xff] }
 0x22e   : > { %6108 = vmatpush1.bf16.msra.mxu1 %v1166_v59  ;;  %v13987_v59 = vld [vmem:[#allocation6 + $0x91c] ss:$40 sps:$4 sm:$0xff]   ;;  %v766_v13 = vld [vmem:[%s14930_s7 + $0xd10] sm:$0xff] }
 0x22f   : > { %6109 = vmatprep.subr.bf16.mxu1 %v1171_v3  ;;  %v13999_v3 = vld [vmem:[#allocation6 + $0x64] ss:$40 sps:$4 sm:$0xff]   ;;  %v770_v14 = vld [vmem:[%s14930_s7 + $0xd30] sm:$0xff] }
 0x232   : > { %4128 = vmatmul.mubr.bf16.gmra.mrb[52].mxu0 %v13941_v19  ;;  %6110 = vmatpush1.bf16.msra.mxu1 %v1170_v8  ;;  %v739_v8 = vld [vmem:[%s14930_s7 + $0xc38] sm:$0xff] }
 0x233   : > { %5893 = vmatmul.mubr.bf16.gmra.mrb[52].mxu1 %v13941_v19  ;;  %4137 = vmatprep.mubr.bf16.mxu0 %v13942_v21  ;;  %v718_v19 = vld [vmem:[%s14930_s7 + $0xb90] sm:$0xff]  ;;  %v1183_v11 = vpack.c.bf16 %v739_v8, %v735_v6  ;;  %v767_v6 = vld [vmem:[%s14930_s7 + $0xd18] sm:$0xff] }
 0x234   : > { %5902 = vmatprep.mubr.bf16.mxu1 %v13942_v21  ;;  %v1174_v21 = vpack.c.bf16 %v722_v20, %v718_v19  ;;  %6111 = vmatprep.subr.bf16.mxu1 %v1175_v17  ;;  %v14002_v17 = vld [vmem:[#allocation6 + $0xb4] ss:$40 sps:$4 sm:$0xff]   ;;  %v14005_v19 = vld [vmem:[#allocation6 + $0x104] ss:$40 sps:$4 sm:$0xff]  }
 0x235   : > { %v741_v20 = vld [vmem:[%s14930_s7 + $0xc48] sm:$0xff]  ;;  %v771_v8 = vld [vmem:[%s14930_s7 + $0xd38] sm:$0xff] }
 0x236   : > { %6112 = vmatpush1.bf16.msra.mxu1 %v1174_v21  ;;  %v745_v21 = vld [vmem:[%s14930_s7 + $0xc68] sm:$0xff] }
 0x237   : > { %6113 = vmatprep.subr.bf16.mxu1 %v1179_v29  ;;  %v1185_v23 = vpack.c.bf16 %v745_v21, %v741_v20  ;;  %v742_v29 = vld [vmem:[%s14930_s7 + $0xc50] sm:$0xff]  ;;  %v1628_v20 = vld [vmem:[%s16986_s2] sm:$0xff]  ;;  %v773_v21 = vld [vmem:[%s14930_s7 + $0xd48] sm:$0xff] }
 0x238   : > { %v1186_v32 = vpack.c.bf16 %v746_v30, %v742_v29  ;;  %v1201_v24 = vpack.c.bf16 %v777_v22, %v773_v21  ;;  %v776_v29 = vld [vmem:[%s14930_s7 + $0xd60] sm:$0xff]  ;;  %v774_v30 = vld [vmem:[%s14930_s7 + $0xd50] sm:$0xff] }
 0x239   : > { %v808_v21 = vld [vmem:[%s14930_s7 + $0xe60] sm:$0xff]  ;;  %v806_v22 = vld [vmem:[%s14930_s7 + $0xe50] sm:$0xff] }
 0x23a   : > { %4138 = vmatmul.mubr.bf16.gmra.mrb[56].mxu0 %v13944_v45  ;;  %6114 = vmatpush1.bf16.msra.mxu1 %v1178_v34  ;;  %v14010_v34 = vld [vmem:[#allocation6 + $0x150] ss:$40 sps:$4 sm:$0xff]  }
 0x23b   : > { %5903 = vmatmul.mubr.bf16.gmra.mrb[56].mxu1 %v13944_v45  ;;  %4147 = vmatprep.mubr.bf16.mxu0 %v13945_v47  ;;  %v13966_v45 = vld [vmem:[#allocation6 + $0x6ec] ss:$40 sps:$4 sm:$0xff]  }
 0x23c   : > { %5912 = vmatprep.mubr.bf16.mxu1 %v13945_v47  ;;  %v13969_v47 = vld [vmem:[#allocation6 + $0x73c] ss:$40 sps:$4 sm:$0xff]   ;;  %6436 = vmatprep.subr.bf16.mxu1 %v1183_v11  ;;  %v1199_v11 = vpack.c.bf16 %v771_v8, %v767_v6 }
 0x23d   : > { %v796_v6 = vld [vmem:[%s14930_s7 + $0xe00] sm:$0xff] }
 0x242   : > { %4148 = vmatmul.mubr.bf16.gmra.mrb[60].mxu0 %v13947_v7 }
 0x243   : > { %5913 = vmatmul.mubr.bf16.gmra.mrb[60].mxu1 %v13947_v7  ;;  %4157 = vmatprep.mubr.bf16.mxu0 %v13948_v9  ;;  %v1181_v7 = vpack.c.bf16 %v737_v5, %v733_v4  ;;  %v765_v4 = vld [vmem:[%s14930_s7 + $0xd08] sm:$0xff] }
 0x244   : > { %5922 = vmatprep.mubr.bf16.mxu1 %v13948_v9  ;;  %v732_v9 = vld [vmem:[%s14930_s7 + $0xc00] sm:$0xff]  ;;  %v769_v5 = vld [vmem:[%s14930_s7 + $0xd28] sm:$0xff] }
 0x245   : > { %v1180_v12 = vpack.c.bf16 %v736_v10, %v732_v9  ;;  %4671 = vmatprep.subr.bf16.mxu0 %v1181_v7  ;;  %v1197_v7 = vpack.c.bf16 %v769_v5, %v765_v4  ;;  %v764_v9 = vld [vmem:[%s14930_s7 + $0xd00] sm:$0xff]  ;;  %v803_v5 = vld [vmem:[%s14930_s7 + $0xe38] sm:$0xff] }
 0x246   : > { %v768_v10 = vld [vmem:[%s14930_s7 + $0xd20] sm:$0xff] }
 0x24a   : > { %4158 = vmatmul.mubr.bf16.gmra.mrb[64].mxu0 %v13950_v33 }
 0x24b   : > { %5923 = vmatmul.mubr.bf16.gmra.mrb[64].mxu1 %v13950_v33  ;;  %4167 = vmatprep.mubr.bf16.mxu0 %v13951_v35  ;;  %v14008_v33 = vld [vmem:[#allocation6 + $0x154] ss:$40 sps:$4 sm:$0xff]  }
 0x24c   : > { %5932 = vmatprep.mubr.bf16.mxu1 %v13951_v35  ;;  %v14011_v35 = vld [vmem:[#allocation6 + $0x1a4] ss:$40 sps:$4 sm:$0xff]  }
 0x252   : > { %4168 = vmatmul.mubr.bf16.gmra.mrb[68].mxu0 %v13953_v36 }
 0x253   : > { %5933 = vmatmul.mubr.bf16.gmra.mrb[68].mxu1 %v13953_v36  ;;  %4177 = vmatprep.mubr.bf16.mxu0 %v13954_v37  ;;  %v749_v36 = vld [vmem:[%s14930_s7 + $0xc88] sm:$0xff] }
 0x254   : > { %5942 = vmatprep.mubr.bf16.mxu1 %v13954_v37  ;;  %v753_v37 = vld [vmem:[%s14930_s7 + $0xca8] sm:$0xff] }
 0x25a   : > { %4178 = vmatmul.mubr.bf16.gmra.mrb[72].mxu0 %v13956_v38 }
 0x25b   : > { %5943 = vmatmul.mubr.bf16.gmra.mrb[72].mxu1 %v13956_v38  ;;  %4187 = vmatprep.mubr.bf16.mxu0 %v13957_v39  ;;  %v751_v38 = vld [vmem:[%s14930_s7 + $0xc98] sm:$0xff] }
 0x25c   : > { %5952 = vmatprep.mubr.bf16.mxu1 %v13957_v39  ;;  %v1189_v39 = vpack.c.bf16 %v753_v37, %v749_v36  ;;  %v14032_v36 = vld [vmem:[#allocation6 + $0x3d4] ss:$40 sps:$4 sm:$0xff]   ;;  %v781_v37 = vld [vmem:[%s14930_s7 + $0xd88] sm:$0xff] }
 0x262   : > { %4188 = vmatmul.mubr.bf16.gmra.mrb[76].mxu0 %v13959_v40 }
 0x263   : > { %5953 = vmatmul.mubr.bf16.gmra.mrb[76].mxu1 %v13959_v40  ;;  %4197 = vmatprep.mubr.bf16.mxu0 %v13960_v41  ;;  %v755_v40 = vld [vmem:[%s14930_s7 + $0xcb8] sm:$0xff] }
 0x264   : > { %5962 = vmatprep.mubr.bf16.mxu1 %v13960_v41  ;;  %v748_v41 = vld [vmem:[%s14930_s7 + $0xc80] sm:$0xff] }
 0x26a   : > { %4198 = vmatmul.mubr.bf16.gmra.mrb[80].mxu0 %v13962_v42 }
 0x26b   : > { %5963 = vmatmul.mubr.bf16.gmra.mrb[80].mxu1 %v13962_v42  ;;  %4207 = vmatprep.mubr.bf16.mxu0 %v13963_v43  ;;  %v752_v42 = vld [vmem:[%s14930_s7 + $0xca0] sm:$0xff] }
 0x26c   : > { %5972 = vmatprep.mubr.bf16.mxu1 %v13963_v43  ;;  %v1191_v43 = vpack.c.bf16 %v755_v40, %v751_v38  ;;  %v785_v38 = vld [vmem:[%s14930_s7 + $0xda8] sm:$0xff] }
 0x26d   : > { %v1205_v40 = vpack.c.bf16 %v785_v38, %v781_v37  ;;  %v814_v38 = vld [vmem:[%s14930_s7 + $0xe90] sm:$0xff] }
 0x272   : > { %4208 = vmatmul.mubr.bf16.gmra.mrb[84].mxu0 %v13965_v44 }
 0x273   : > { %5973 = vmatmul.mubr.bf16.gmra.mrb[84].mxu1 %v13965_v44  ;;  %4217 = vmatprep.mubr.bf16.mxu0 %v13966_v45  ;;  %v1188_v44 = vpack.c.bf16 %v752_v42, %v748_v41  ;;  %v787_v41 = vld [vmem:[%s14930_s7 + $0xdb8] sm:$0xff]  ;;  %v780_v42 = vld [vmem:[%s14930_s7 + $0xd80] sm:$0xff] }
 0x274   : > { %5982 = vmatprep.mubr.bf16.mxu1 %v13966_v45  ;;  %v750_v45 = vld [vmem:[%s14930_s7 + $0xc90] sm:$0xff] }
 0x27a   : > { %4218 = vmatmul.mubr.bf16.gmra.mrb[88].mxu0 %v13968_v46 }
 0x27b   : > { %5983 = vmatmul.mubr.bf16.gmra.mrb[88].mxu1 %v13968_v46  ;;  %4227 = vmatprep.mubr.bf16.mxu0 %v13969_v47  ;;  %v754_v46 = vld [vmem:[%s14930_s7 + $0xcb0] sm:$0xff] }
 0x27c   : > { %5992 = vmatprep.mubr.bf16.mxu1 %v13969_v47  ;;  %v14013_v47 = vld [vmem:[#allocation6 + $0x1a0] ss:$40 sps:$4 sm:$0xff]  }
 0x282   : > { %4228 = vmatmul.mubr.bf16.gmra.mrb[92].mxu0 %v13971_v48 }
 0x283   : > { %5993 = vmatmul.mubr.bf16.gmra.mrb[92].mxu1 %v13971_v48  ;;  %4237 = vmatprep.mubr.bf16.mxu0 %v13972_v49  ;;  %v1190_v48 = vpack.c.bf16 %v754_v46, %v750_v45  ;;  %v782_v46 = vld [vmem:[%s14930_s7 + $0xd90] sm:$0xff] }
 0x284   : > { %6002 = vmatprep.mubr.bf16.mxu1 %v13972_v49  ;;  %v14014_v49 = vld [vmem:[#allocation6 + $0x1f4] ss:$40 sps:$4 sm:$0xff]  }
 0x28a   : > { %4238 = vmatmul.mubr.bf16.gmra.mrb[96].mxu0 %v13974_v50 }
 0x28b   : > { %6003 = vmatmul.mubr.bf16.gmra.mrb[96].mxu1 %v13974_v50  ;;  %4247 = vmatprep.mubr.bf16.mxu0 %v13975_v51  ;;  %v14016_v50 = vld [vmem:[#allocation6 + $0x1f0] ss:$40 sps:$4 sm:$0xff]  }
 0x28c   : > { %6012 = vmatprep.mubr.bf16.mxu1 %v13975_v51  ;;  %v14017_v51 = vld [vmem:[#allocation6 + $0x244] ss:$40 sps:$4 sm:$0xff]  }
 0x292   : > { %4248 = vmatmul.mubr.bf16.gmra.mrb[100].mxu0 %v13977_v52 }
 0x293   : > { %6013 = vmatmul.mubr.bf16.gmra.mrb[100].mxu1 %v13977_v52  ;;  %4257 = vmatprep.mubr.bf16.mxu0 %v13978_v53  ;;  %v757_v52 = vld [vmem:[%s14930_s7 + $0xcc8] sm:$0xff] }
 0x294   : > { %6022 = vmatprep.mubr.bf16.mxu1 %v13978_v53  ;;  %v761_v53 = vld [vmem:[%s14930_s7 + $0xce8] sm:$0xff] }
 0x29a   : > { %4258 = vmatmul.mubr.bf16.gmra.mrb[104].mxu0 %v13980_v54 }
 0x29b   : > { %6023 = vmatmul.mubr.bf16.gmra.mrb[104].mxu1 %v13980_v54  ;;  %4267 = vmatprep.mubr.bf16.mxu0 %v13981_v55  ;;  %v759_v54 = vld [vmem:[%s14930_s7 + $0xcd8] sm:$0xff] }
 0x29c   : > { %6032 = vmatprep.mubr.bf16.mxu1 %v13981_v55  ;;  %v1193_v55 = vpack.c.bf16 %v761_v53, %v757_v52  ;;  %v791_v53 = vld [vmem:[%s14930_s7 + $0xdd8] sm:$0xff] }
 0x2a2   : > { %4268 = vmatmul.mubr.bf16.gmra.mrb[108].mxu0 %v13983_v56 }
 0x2a3   : > { %6033 = vmatmul.mubr.bf16.gmra.mrb[108].mxu1 %v13983_v56  ;;  %4277 = vmatprep.mubr.bf16.mxu0 %v13984_v57  ;;  %v763_v56 = vld [vmem:[%s14930_s7 + $0xcf8] sm:$0xff] }
 0x2a4   : > { %6042 = vmatprep.mubr.bf16.mxu1 %v13984_v57  ;;  %v756_v57 = vld [vmem:[%s14930_s7 + $0xcc0] sm:$0xff] }
 0x2aa   : > { %4278 = vmatmul.mubr.bf16.gmra.mrb[112].mxu0 %v13986_v58 }
 0x2ab   : > { %6043 = vmatmul.mubr.bf16.gmra.mrb[112].mxu1 %v13986_v58  ;;  %4287 = vmatprep.mubr.bf16.mxu0 %v13987_v59  ;;  %v760_v58 = vld [vmem:[%s14930_s7 + $0xce0] sm:$0xff] }
 0x2ac   : > { %6052 = vmatprep.mubr.bf16.mxu1 %v13987_v59  ;;  %v1195_v59 = vpack.c.bf16 %v763_v56, %v759_v54  ;;  %v795_v54 = vld [vmem:[%s14930_s7 + $0xdf8] sm:$0xff] }
 0x2ad   : > { %v1211_v56 = vpack.c.bf16 %v795_v54, %v791_v53  ;;  %v822_v53 = vld [vmem:[%s14930_s7 + $0xed0] sm:$0xff] }
 0x2ae   : > { %v826_v54 = vld [vmem:[%s14930_s7 + $0xef0] sm:$0xff] }
 0x2b2   : > { %4288 = vmatmul.mubr.bf16.gmra.mrb[116].mxu0 %v13989_v60 }
 0x2b3   : > { %6053 = vmatmul.mubr.bf16.gmra.mrb[116].mxu1 %v13989_v60  ;;  %4297 = vmatprep.mubr.bf16.mxu0 %v13990_v61  ;;  %v1192_v60 = vpack.c.bf16 %v760_v58, %v756_v57  ;;  %v792_v57 = vld [vmem:[%s14930_s7 + $0xde0] sm:$0xff]  ;;  %v790_v58 = vld [vmem:[%s14930_s7 + $0xdd0] sm:$0xff] }
 0x2b4   : > { %6062 = vmatprep.mubr.bf16.mxu1 %v13990_v61  ;;  %v758_v61 = vld [vmem:[%s14930_s7 + $0xcd0] sm:$0xff] }
 0x2ba   : > { %4298 = vmatmul.mubr.bf16.gmra.mrb[120].mxu0 %v13992_v62 }
 0x2bb   : > { %6063 = vmatmul.mubr.bf16.gmra.mrb[120].mxu1 %v13992_v62  ;;  %4307 = vmatprep.mubr.bf16.mxu0 %v13993_v63  ;;  %v762_v62 = vld [vmem:[%s14930_s7 + $0xcf0] sm:$0xff] }
 0x2bc   : > { %6072 = vmatprep.mubr.bf16.mxu1 %v13993_v63  ;;  %v14019_v63 = vld [vmem:[#allocation6 + $0x240] ss:$40 sps:$4 sm:$0xff]  }
 0x2c2   : > { %4308 = vmatmul.mubr.bf16.gmra.mrb[124].mxu0 %v13995_v0 }
 0x2c3   : > { %6073 = vmatmul.mubr.bf16.gmra.mrb[124].mxu1 %v13995_v0  ;;  %4350 = vmatprep.mubr.bf16.mxu0 %v13998_v1  ;;  %v1194_v0 = vpack.c.bf16 %v762_v62, %v758_v61 }
 0x2c4   : > { %6115 = vmatprep.mubr.bf16.mxu1 %v13998_v1  ;;  %v14020_v1 = vld [vmem:[#allocation6 + $0x294] ss:$40 sps:$4 sm:$0xff]  }
 0x2ca   : > { %4351 = vmatmul.mubr.bf16.vlgmr.msra.gmra.mrb[0].mxu0 %v13996_v2 }
 0x2cb   : > { %6116 = vmatmul.mubr.bf16.vlgmr.msra.gmra.mrb[0].mxu1 %v13996_v2  ;;  %4360 = vmatprep.mubr.bf16.mxu0 %v13999_v3  ;;  %v14022_v2 = vld [vmem:[#allocation6 + $0x290] ss:$40 sps:$4 sm:$0xff]  }
 0x2cc   : > { %6125 = vmatprep.mubr.bf16.mxu1 %v13999_v3  ;;  %4672 = vmatpush1.bf16.msra.mxu0 %v1180_v12  ;;  %v14023_v3 = vld [vmem:[#allocation6 + $0x2e4] ss:$40 sps:$4 sm:$0xff]   ;;  %v1196_v12 = vpack.c.bf16 %v768_v10, %v764_v9  ;;  %v798_v10 = vld [vmem:[%s14930_s7 + $0xe10] sm:$0xff] }
 0x2cd   : > { %6437 = vmatpush1.bf16.msra.mxu1 %v1182_v16  ;;  %4673 = vmatprep.subr.bf16.mxu0 %v1185_v23  ;;  %v1198_v16 = vpack.c.bf16 %v770_v14, %v766_v13  ;;  %v14676_v23 = vmov 0   ;;  %v1636_v13 = vld [vmem:[%s16986_s2 + $0x40] sm:$0xff]  ;;  %v805_v14 = vld [vmem:[%s14930_s7 + $0xe48] sm:$0xff] }
 0x2ce   : > { %6438 = vmatprep.subr.bf16.mxu1 %v1187_v27  ;;  %13802 = vset.pattern.permute.xlu0 %v14676_v23  ;;  %v772_v27 = vld [vmem:[%s14930_s7 + $0xd40] sm:$0xff] }
 0x2cf   : > { %1694 = vperm.xlu0 %13802, %v1628_v20   ;;  %13803 = vset.pattern.permute.xlu1 %v14676_v23  ;;  %v810_v23 = vld [vmem:[%s14930_s7 + $0xe70] sm:$0xff] }
 0x2d0   : > { %4674 = vmatpush1.bf16.msra.mxu0 %v1184_v28  ;;  %v1203_v28 = vpack.c.bf16 %v779_v26, %v775_v25  ;;  %v1218_v25 = vpack.c.bf16 %v810_v23, %v806_v22  ;;  %v1630_v26 = vld [vmem:[%s16986_s2 + $0x10] sm:$0xff] }
 0x2d1   : > { %6439 = vmatpush1.bf16.msra.mxu1 %v1186_v32  ;;  %4675 = vmatprep.subr.bf16.mxu0 %v1189_v39  ;;  %v14031_v32 = vld [vmem:[#allocation6 + $0x380] ss:$40 sps:$4 sm:$0xff]   ;;  %v783_v39 = vld [vmem:[%s14930_s7 + $0xd98] sm:$0xff] }
 0x2d2   : > { %4361 = vmatmul.mubr.bf16.gmra.mrb[4].mxu0 %v14001_v15  ;;  %6440 = vmatprep.subr.bf16.mxu1 %v1191_v43  ;;  %v784_v43 = vld [vmem:[%s14930_s7 + $0xda0] sm:$0xff]  ;;  %v845_v22 = vld [vmem:[%s14930_s7 + $0xf88] sm:$0xff] }
 0x2d3   : > { %6126 = vmatmul.mubr.bf16.gmra.mrb[4].mxu1 %v14001_v15  ;;  %4370 = vmatprep.mubr.bf16.mxu0 %v14002_v17  ;;  %v14025_v15 = vld [vmem:[#allocation6 + $0x2e0] ss:$40 sps:$4 sm:$0xff]   ;;  %v1204_v45 = vpack.c.bf16 %v784_v43, %v780_v42 }
 0x2d4   : > { %6135 = vmatprep.mubr.bf16.mxu1 %v14002_v17  ;;  %4676 = vmatpush1.bf16.msra.mxu0 %v1188_v44  ;;  %v14026_v17 = vld [vmem:[#allocation6 + $0x334] ss:$40 sps:$4 sm:$0xff]   ;;  %v1207_v44 = vpack.c.bf16 %v787_v41, %v783_v39  ;;  %v821_v42 = vld [vmem:[%s14930_s7 + $0xec8] sm:$0xff] }
 0x2d5   : > { %6441 = vmatpush1.bf16.msra.mxu1 %v1190_v48  ;;  %4677 = vmatprep.subr.bf16.mxu0 %v1193_v55  ;;  %v788_v55 = vld [vmem:[%s14930_s7 + $0xdc0] sm:$0xff]  ;;  %v818_v39 = vld [vmem:[%s14930_s7 + $0xeb0] sm:$0xff]  ;;  %v849_v23 = vld [vmem:[%s14930_s7 + $0xfa8] sm:$0xff] }
 0x2d6   : > { %6442 = vmatprep.subr.bf16.mxu1 %v1195_v59  ;;  %v794_v59 = vld [vmem:[%s14930_s7 + $0xdf0] sm:$0xff]  ;;  %v1208_v61 = vpack.c.bf16 %v792_v57, %v788_v55  ;;  %1704 = vperm.xlu1 %13803, %v1630_v26   ;;  %v14041_v55 = vld [vmem:[#allocation6 + $0x4c4] ss:$40 sps:$4 sm:$0xff]  }
 0x2d7   : > { %v1210_v62 = vpack.c.bf16 %v794_v59, %v790_v58  ;;  %v1631_v41 = vld [vmem:[%s16986_s2 + $0x18] sm:$0xff]  ;;  %v829_v58 = vld [vmem:[%s14930_s7 + $0xf08] sm:$0xff] }
 0x2d8   : > { %4678 = vmatpush1.bf16.msra.mxu0 %v1192_v60  ;;  %v14034_v60 = vld [vmem:[#allocation6 + $0x3d0] ss:$40 sps:$4 sm:$0xff]   ;;  %v833_v59 = vld [vmem:[%s14930_s7 + $0xf28] sm:$0xff] }
 0x2d9   : > { %6443 = vmatpush1.bf16.msra.mxu1 %v1194_v0  ;;  %4679 = vmatprep.subr.bf16.mxu0 %v1197_v7  ;;  %v1634_v0 = vld [vmem:[%s16986_s2 + $0x30] sm:$0xff]  ;;  %v800_v7 = vld [vmem:[%s14930_s7 + $0xe20] sm:$0xff] }
 0x2da   : > { %4371 = vmatmul.mubr.bf16.gmra.mrb[8].mxu0 %v14004_v18  ;;  %6444 = vmatprep.subr.bf16.mxu1 %v1199_v11  ;;  %v1212_v9 = vpack.c.bf16 %v800_v7, %v796_v6  ;;  %v802_v11 = vld [vmem:[%s14930_s7 + $0xe30] sm:$0xff]  ;;  %v837_v6 = vld [vmem:[%s14930_s7 + $0xf48] sm:$0xff] }
 0x2db   : > { %6136 = vmatmul.mubr.bf16.gmra.mrb[8].mxu1 %v14004_v18  ;;  %4380 = vmatprep.mubr.bf16.mxu0 %v14005_v19  ;;  %v14028_v18 = vld [vmem:[#allocation6 + $0x330] ss:$40 sps:$4 sm:$0xff]   ;;  %v14043_v7 = vld [vmem:[#allocation6 + $0x4c0] ss:$40 sps:$4 sm:$0xff]  }
 0x2dc   : > { %6145 = vmatprep.mubr.bf16.mxu1 %v14005_v19  ;;  %4680 = vmatpush1.bf16.msra.mxu0 %v1196_v12  ;;  %v14029_v19 = vld [vmem:[#allocation6 + $0x384] ss:$40 sps:$4 sm:$0xff]   ;;  %v1214_v12 = vpack.c.bf16 %v802_v11, %v798_v10 }
 0x2dd   : > { %6445 = vmatpush1.bf16.msra.mxu1 %v1198_v16  ;;  %4681 = vmatprep.subr.bf16.mxu0 %v1201_v24  ;;  %v14037_v24 = vld [vmem:[#allocation6 + $0x420] ss:$40 sps:$4 sm:$0xff]  }
 0x2de   : > { %6446 = vmatprep.subr.bf16.mxu1 %v1203_v28  ;;  %1709 = vperm.xlu1 %13803, %v1631_v41   ;;  %v1644_v10 = vld [vmem:[%s16986_s2 + $0x80] sm:$0xff]  ;;  %v841_v11 = vld [vmem:[%s14930_s7 + $0xf68] sm:$0xff] }
 0x2df   : > { %v853_v41 = vld [vmem:[%s14930_s7 + $0xfc8] sm:$0xff] }
 0x2e2   : > { %4381 = vmatmul.mubr.bf16.gmra.mrb[12].mxu0 %v14007_v31 }
 0x2e3   : > { %6146 = vmatmul.mubr.bf16.gmra.mrb[12].mxu1 %v14007_v31  ;;  %4390 = vmatprep.mubr.bf16.mxu0 %v14008_v33  ;;  %v778_v31 = vld [vmem:[%s14930_s7 + $0xd70] sm:$0xff] }
 0x2e4   : > { %6155 = vmatprep.mubr.bf16.mxu1 %v14008_v33  ;;  %v1200_v33 = vpack.c.bf16 %v776_v29, %v772_v27  ;;  %v14038_v27 = vld [vmem:[#allocation6 + $0x474] ss:$40 sps:$4 sm:$0xff]   ;;  %v813_v29 = vld [vmem:[%s14930_s7 + $0xe88] sm:$0xff] }
 0x2e6   : > { %4682 = vmatpush1.bf16.msra.mxu0 %v1200_v33  ;;  %v819_v33 = vld [vmem:[%s14930_s7 + $0xeb8] sm:$0xff] }
 0x2e7   : > { %4683 = vmatprep.subr.bf16.mxu0 %v1205_v40  ;;  %v1222_v40 = vpack.c.bf16 %v818_v39, %v814_v38 }
 0x2ea   : > { %4391 = vmatmul.mubr.bf16.gmra.mrb[16].mxu0 %v14010_v34 }
 0x2eb   : > { %6156 = vmatmul.mubr.bf16.gmra.mrb[16].mxu1 %v14010_v34  ;;  %4400 = vmatprep.mubr.bf16.mxu0 %v14011_v35  ;;  %v1202_v34 = vpack.c.bf16 %v778_v31, %v774_v30  ;;  %v817_v30 = vld [vmem:[%s14930_s7 + $0xea8] sm:$0xff]  ;;  %v815_v31 = vld [vmem:[%s14930_s7 + $0xe98] sm:$0xff] }
 0x2ec   : > { %6165 = vmatprep.mubr.bf16.mxu1 %v14011_v35  ;;  %v1629_v35 = vld [vmem:[%s16986_s2 + $0x8] sm:$0xff]  ;;  %4684 = vmatpush1.bf16.msra.mxu0 %v1204_v45  ;;  %v1223_v37 = vpack.c.bf16 %v819_v33, %v815_v31  ;;  %v823_v45 = vld [vmem:[%s14930_s7 + $0xed8] sm:$0xff]  ;;  %v850_v31 = vld [vmem:[%s14930_s7 + $0xfb0] sm:$0xff] }
 0x2ed   : > { %6447 = vmatpush1.bf16.msra.mxu1 %v1202_v34  ;;  %1699 = vperm.xlu0 %13802, %v1629_v35   ;;  %v812_v34 = vld [vmem:[%s14930_s7 + $0xe80] sm:$0xff]  ;;  %v1646_v33 = vld [vmem:[%s16986_s2 + $0x90] sm:$0xff] }
 0x2ee   : > { %6448 = vmatprep.subr.bf16.mxu1 %v1207_v44  ;;  %v816_v35 = vld [vmem:[%s14930_s7 + $0xea0] sm:$0xff]  ;;  %v825_v44 = vld [vmem:[%s14930_s7 + $0xee8] sm:$0xff] }
 0x2ef   : > { %v1220_v43 = vpack.c.bf16 %v816_v35, %v812_v34  ;;  %v1237_v34 = vpack.c.bf16 %v849_v23, %v845_v22  ;;  %v1670_v22 = vld [vmem:[%s16986_s2 + $0x150] sm:$0xff] }
 0x2f0   : > { %v14065_v23 = vld [vmem:[#allocation6 + $0x744] ss:$40 sps:$4 sm:$0xff]  }
 0x2f2   : > { %4401 = vmatmul.mubr.bf16.gmra.mrb[20].mxu0 %v14013_v47 }
 0x2f3   : > { %6166 = vmatmul.mubr.bf16.gmra.mrb[20].mxu1 %v14013_v47  ;;  %4410 = vmatprep.mubr.bf16.mxu0 %v14014_v49  ;;  %v786_v47 = vld [vmem:[%s14930_s7 + $0xdb0] sm:$0xff] }
 0x2f4   : > { %6175 = vmatprep.mubr.bf16.mxu1 %v14014_v49  ;;  %v1206_v48 = vpack.c.bf16 %v786_v47, %v782_v46  ;;  %v1632_v49 = vld [vmem:[%s16986_s2 + $0x20] sm:$0xff]  ;;  %v14040_v47 = vld [vmem:[#allocation6 + $0x470] ss:$40 sps:$4 sm:$0xff]  }
 0x2f5   : > { %1714 = vperm.xlu0 %13802, %v1632_v49   ;;  %v827_v46 = vld [vmem:[%s14930_s7 + $0xef8] sm:$0xff] }
 0x2f6   : > { %6449 = vmatpush1.bf16.msra.mxu1 %v1206_v48  ;;  %v1225_v48 = vpack.c.bf16 %v825_v44, %v821_v42  ;;  %v1227_v49 = vpack.c.bf16 %v827_v46, %v823_v45  ;;  %v857_v42 = vld [vmem:[%s14930_s7 + $0xfe8] sm:$0xff]  ;;  %v859_v44 = vld [vmem:[%s14930_s7 + $0xff8] sm:$0xff]  ;;  %v852_v45 = vld [vmem:[%s14930_s7 + $0xfc0] sm:$0xff] }
 0x2f7   : > { %6450 = vmatprep.subr.bf16.mxu1 %v1211_v56  ;;  %v1633_v56 = vld [vmem:[%s16986_s2 + $0x28] sm:$0xff] }
 0x2f8   : > { %1719 = vperm.xlu1 %13803, %v1633_v56   ;;  %v856_v46 = vld [vmem:[%s14930_s7 + $0xfe0] sm:$0xff] }
 0x2f9   : > { %1724 = vperm.xlu0 %13802, %v1634_v0   ;;  %v832_v0 = vld [vmem:[%s14930_s7 + $0xf20] sm:$0xff] }
 0x2fa   : > { %4411 = vmatmul.mubr.bf16.gmra.mrb[24].mxu0 %v14016_v50  ;;  %6451 = vmatpush1.bf16.msra.mxu1 %v1210_v62  ;;  %v835_v62 = vld [vmem:[%s14930_s7 + $0xf38] sm:$0xff]  ;;  %v14049_v56 = vld [vmem:[#allocation6 + $0x560] ss:$40 sps:$4 sm:$0xff]  }
 0x2fb   : > { %6176 = vmatmul.mubr.bf16.gmra.mrb[24].mxu1 %v14016_v50  ;;  %4420 = vmatprep.mubr.bf16.mxu0 %v14017_v51  ;;  %v789_v50 = vld [vmem:[%s14930_s7 + $0xdc8] sm:$0xff] }
 0x2fc   : > { %6185 = vmatprep.mubr.bf16.mxu1 %v14017_v51  ;;  %v793_v51 = vld [vmem:[%s14930_s7 + $0xde8] sm:$0xff] }
 0x2fd   : > { %v1209_v52 = vpack.c.bf16 %v793_v51, %v789_v50  ;;  %1734 = vperm.xlu0 %13802, %v1636_v13   ;;  %v820_v50 = vld [vmem:[%s14930_s7 + $0xec0] sm:$0xff]  ;;  %v839_v13 = vld [vmem:[%s14930_s7 + $0xf58] sm:$0xff] }
 0x2fe   : > { %v824_v51 = vld [vmem:[%s14930_s7 + $0xee0] sm:$0xff] }
 0x2ff   : > { %4685 = vmatprep.subr.bf16.mxu0 %v1209_v52  ;;  %v1640_v52 = vld [vmem:[%s16986_s2 + $0x60] sm:$0xff]  ;;  %v1224_v57 = vpack.c.bf16 %v824_v51, %v820_v50  ;;  %v1241_v50 = vpack.c.bf16 %v857_v42, %v853_v41  ;;  %v1675_v42 = vld [vmem:[%s16986_s2 + $0x178] sm:$0xff] }
 0x300   : > { %4686 = vmatpush1.bf16.msra.mxu0 %v1208_v61  ;;  %v1226_v61 = vpack.c.bf16 %v826_v54, %v822_v53  ;;  %v1641_v54 = vld [vmem:[%s16986_s2 + $0x68] sm:$0xff]  ;;  %v14074_v41 = vld [vmem:[#allocation6 + $0x834] ss:$40 sps:$4 sm:$0xff]  }
 0x302   : > { %4421 = vmatmul.mubr.bf16.gmra.mrb[28].mxu0 %v14019_v63 }
 0x303   : > { %6186 = vmatmul.mubr.bf16.gmra.mrb[28].mxu1 %v14019_v63  ;;  %4430 = vmatprep.mubr.bf16.mxu0 %v14020_v1  ;;  %v14035_v63 = vld [vmem:[#allocation6 + $0x424] ss:$40 sps:$4 sm:$0xff]  }
 0x304   : > { %6195 = vmatprep.mubr.bf16.mxu1 %v14020_v1  ;;  %v797_v1 = vld [vmem:[%s14930_s7 + $0xe08] sm:$0xff] }
 0x30a   : > { %4431 = vmatmul.mubr.bf16.gmra.mrb[32].mxu0 %v14022_v2 }
 0x30b   : > { %6196 = vmatmul.mubr.bf16.gmra.mrb[32].mxu1 %v14022_v2  ;;  %4440 = vmatprep.mubr.bf16.mxu0 %v14023_v3  ;;  %v801_v2 = vld [vmem:[%s14930_s7 + $0xe28] sm:$0xff] }
 0x30c   : > { %6205 = vmatprep.mubr.bf16.mxu1 %v14023_v3  ;;  %v799_v3 = vld [vmem:[%s14930_s7 + $0xe18] sm:$0xff]  ;;  %v1213_v4 = vpack.c.bf16 %v801_v2, %v797_v1  ;;  %v1642_v1 = vld [vmem:[%s16986_s2 + $0x70] sm:$0xff]  ;;  %v1229_v2 = vpack.c.bf16 %v833_v59, %v829_v58 }
 0x30d   : > { %v1215_v8 = vpack.c.bf16 %v803_v5, %v799_v3  ;;  %v834_v5 = vld [vmem:[%s14930_s7 + $0xf30] sm:$0xff]  ;;  %v1652_v59 = vld [vmem:[%s16986_s2 + $0xc0] sm:$0xff] }
 0x30e   : > { %4687 = vmatprep.subr.bf16.mxu0 %v1213_v4  ;;  %v830_v4 = vld [vmem:[%s14930_s7 + $0xf10] sm:$0xff] }
 0x30f   : > { %6452 = vmatprep.subr.bf16.mxu1 %v1215_v8  ;;  %4688 = vmatpush1.bf16.msra.mxu0 %v1212_v9  ;;  %v1635_v9 = vld [vmem:[%s16986_s2 + $0x38] sm:$0xff] }
 0x310   : > { %6453 = vmatpush1.bf16.msra.mxu1 %v1214_v12  ;;  %v1230_v12 = vpack.c.bf16 %v834_v5, %v830_v4  ;;  %1729 = vperm.xlu1 %13803, %v1635_v9   ;;  %v1643_v58 = vld [vmem:[%s16986_s2 + $0x78] sm:$0xff]  ;;  %v1658_v4 = vld [vmem:[%s16986_s2 + $0xf0] sm:$0xff] }
 0x311   : > { %v14056_v5 = vld [vmem:[#allocation6 + $0x654] ss:$40 sps:$4 sm:$0xff]   ;;  %v14058_v9 = vld [vmem:[#allocation6 + $0x650] ss:$40 sps:$4 sm:$0xff]  }
 0x312   : > { %4441 = vmatmul.mubr.bf16.gmra.mrb[36].mxu0 %v14025_v15 }
 0x313   : > { %6206 = vmatmul.mubr.bf16.gmra.mrb[36].mxu1 %v14025_v15  ;;  %4450 = vmatprep.mubr.bf16.mxu0 %v14026_v17  ;;  %v809_v15 = vld [vmem:[%s14930_s7 + $0xe68] sm:$0xff] }
 0x314   : > { %6215 = vmatprep.mubr.bf16.mxu1 %v14026_v17  ;;  %v1217_v16 = vpack.c.bf16 %v809_v15, %v805_v14  ;;  %v807_v17 = vld [vmem:[%s14930_s7 + $0xe58] sm:$0xff]  ;;  %v836_v15 = vld [vmem:[%s14930_s7 + $0xf40] sm:$0xff] }
 0x315   : > { %v843_v14 = vld [vmem:[%s14930_s7 + $0xf78] sm:$0xff] }
 0x316   : > { %4689 = vmatprep.subr.bf16.mxu0 %v1217_v16  ;;  %v1233_v16 = vpack.c.bf16 %v841_v11, %v837_v6  ;;  %v1651_v6 = vld [vmem:[%s16986_s2 + $0xb8] sm:$0xff]  ;;  %v14059_v11 = vld [vmem:[#allocation6 + $0x6a4] ss:$40 sps:$4 sm:$0xff]  }
 0x31a   : > { %4451 = vmatmul.mubr.bf16.gmra.mrb[40].mxu0 %v14028_v18 }
 0x31b   : > { %6216 = vmatmul.mubr.bf16.gmra.mrb[40].mxu1 %v14028_v18  ;;  %4460 = vmatprep.mubr.bf16.mxu0 %v14029_v19  ;;  %v811_v18 = vld [vmem:[%s14930_s7 + $0xe78] sm:$0xff] }
 0x31c   : > { %6225 = vmatprep.mubr.bf16.mxu1 %v14029_v19  ;;  %v804_v19 = vld [vmem:[%s14930_s7 + $0xe40] sm:$0xff]  ;;  %v1219_v20 = vpack.c.bf16 %v811_v18, %v807_v17  ;;  %v838_v18 = vld [vmem:[%s14930_s7 + $0xf50] sm:$0xff] }
 0x31d   : > { %v1216_v28 = vpack.c.bf16 %v808_v21, %v804_v19  ;;  %v840_v17 = vld [vmem:[%s14930_s7 + $0xf60] sm:$0xff]  ;;  %v842_v19 = vld [vmem:[%s14930_s7 + $0xf70] sm:$0xff]  ;;  %v1235_v21 = vpack.c.bf16 %v843_v14, %v839_v13 }
 0x31e   : > { %6454 = vmatprep.subr.bf16.mxu1 %v1219_v20  ;;  %v14044_v20 = vld [vmem:[#allocation6 + $0x514] ss:$40 sps:$4 sm:$0xff]   ;;  %v1234_v26 = vpack.c.bf16 %v842_v19, %v838_v18  ;;  %v1657_v14 = vld [vmem:[%s16986_s2 + $0xe8] sm:$0xff] }
 0x31f   : > { %6455 = vmatpush1.bf16.msra.mxu1 %v1218_v25  ;;  %4690 = vmatpush1.bf16.msra.mxu0 %v1216_v28  ;;  %v1232_v25 = vpack.c.bf16 %v840_v17, %v836_v15  ;;  %v844_v28 = vld [vmem:[%s14930_s7 + $0xf80] sm:$0xff]  ;;  %v14062_v17 = vld [vmem:[#allocation6 + $0x6f4] ss:$40 sps:$4 sm:$0xff]  }
 0x320   : > { %6456 = vmatprep.subr.bf16.mxu1 %v1223_v37  ;;  %v14047_v37 = vld [vmem:[#allocation6 + $0x564] ss:$40 sps:$4 sm:$0xff]   ;;  %v14061_v15 = vld [vmem:[#allocation6 + $0x6a0] ss:$40 sps:$4 sm:$0xff]   ;;  %v1659_v18 = vld [vmem:[%s16986_s2 + $0xf8] sm:$0xff] }
 0x321   : > { %v1664_v13 = vld [vmem:[%s16986_s2 + $0x120] sm:$0xff] }
 0x322   : > { %4461 = vmatmul.mubr.bf16.gmra.mrb[44].mxu0 %v14031_v32  ;;  %v1668_v19 = vld [vmem:[%s16986_s2 + $0x140] sm:$0xff] }
 0x323   : > { %6226 = vmatmul.mubr.bf16.gmra.mrb[44].mxu1 %v14031_v32  ;;  %4470 = vmatprep.mubr.bf16.mxu0 %v14032_v36  ;;  %v1221_v32 = vpack.c.bf16 %v817_v30, %v813_v29  ;;  %v848_v29 = vld [vmem:[%s14930_s7 + $0xfa0] sm:$0xff]  ;;  %v846_v30 = vld [vmem:[%s14930_s7 + $0xf90] sm:$0xff] }
 0x324   : > { %6235 = vmatprep.mubr.bf16.mxu1 %v14032_v36  ;;  %v1638_v36 = vld [vmem:[%s16986_s2 + $0x50] sm:$0xff]  ;;  %6457 = vmatpush1.bf16.msra.mxu1 %v1222_v40  ;;  %v1236_v38 = vpack.c.bf16 %v848_v29, %v844_v28  ;;  %v1238_v39 = vpack.c.bf16 %v850_v31, %v846_v30  ;;  %v1639_v40 = vld [vmem:[%s16986_s2 + $0x58] sm:$0xff]  ;;  %v1676_v31 = vld [vmem:[%s16986_s2 + $0x180] sm:$0xff] }
 0x325   : > { %1744 = vperm.xlu0 %13802, %v1638_v36   ;;  %4691 = vmatprep.subr.bf16.mxu0 %v1221_v32  ;;  %v1637_v32 = vld [vmem:[%s16986_s2 + $0x48] sm:$0xff]  ;;  %v14046_v36 = vld [vmem:[#allocation6 + $0x510] ss:$40 sps:$4 sm:$0xff]   ;;  %v14068_v29 = vld [vmem:[#allocation6 + $0x794] ss:$40 sps:$4 sm:$0xff]  }
 0x326   : > { %4692 = vmatpush1.bf16.msra.mxu0 %v1220_v43  ;;  %6458 = vmatprep.subr.bf16.mxu1 %v1227_v49  ;;  %v855_v43 = vld [vmem:[%s14930_s7 + $0xfd8] sm:$0xff]  ;;  %v1674_v28 = vld [vmem:[%s16986_s2 + $0x170] sm:$0xff] }
 0x327   : > { %4693 = vmatprep.subr.bf16.mxu0 %v1225_v48  ;;  %1739 = vperm.xlu1 %13803, %v1637_v32   ;;  %v858_v48 = vld [vmem:[%s14930_s7 + $0xff0] sm:$0xff]  ;;  %v1648_v49 = vld [vmem:[%s16986_s2 + $0xa0] sm:$0xff]  ;;  %v1243_v51 = vpack.c.bf16 %v859_v44, %v855_v43  ;;  %v1669_v32 = vld [vmem:[%s16986_s2 + $0x148] sm:$0xff] }
 0x328   : > { %6459 = vmatpush1.bf16.msra.mxu1 %v1226_v61  ;;  %v14052_v61 = vld [vmem:[#allocation6 + $0x5b0] ss:$40 sps:$4 sm:$0xff]   ;;  %v1684_v43 = vld [vmem:[%s16986_s2 + $0x1c0] sm:$0xff]  ;;  %v1677_v44 = vld [vmem:[%s16986_s2 + $0x188] sm:$0xff] }
 0x329   : > { %1754 = vperm.xlu0 %13802, %v1640_v52   ;;  %v1240_v52 = vpack.c.bf16 %v856_v46, %v852_v45  ;;  %v1667_v30 = vld [vmem:[%s16986_s2 + $0x138] sm:$0xff]  ;;  %v1686_v46 = vld [vmem:[%s16986_s2 + $0x1d0] sm:$0xff] }
 0x32a   : > { %4471 = vmatmul.mubr.bf16.gmra.mrb[48].mxu0 %v14034_v60  ;;  %v14076_v45 = vld [vmem:[#allocation6 + $0x830] ss:$40 sps:$4 sm:$0xff]  }
 0x32b   : > { %6236 = vmatmul.mubr.bf16.gmra.mrb[48].mxu1 %v14034_v60  ;;  %4480 = vmatprep.mubr.bf16.mxu0 %v14035_v63  ;;  %v831_v60 = vld [vmem:[%s14930_s7 + $0xf18] sm:$0xff] }
 0x32c   : > { %6245 = vmatprep.mubr.bf16.mxu1 %v14035_v63  ;;  %v828_v63 = vld [vmem:[%s14930_s7 + $0xf00] sm:$0xff]  ;;  %v1231_v3 = vpack.c.bf16 %v835_v62, %v831_v60  ;;  %4694 = vmatpush1.bf16.msra.mxu0 %v1224_v57  ;;  %v14050_v57 = vld [vmem:[#allocation6 + $0x5b4] ss:$40 sps:$4 sm:$0xff]  }
 0x32d   : > { %v1228_v8 = vpack.c.bf16 %v832_v0, %v828_v63  ;;  %1764 = vperm.xlu0 %13802, %v1642_v1   ;;  %4695 = vmatprep.subr.bf16.mxu0 %v1229_v2  ;;  %v1645_v60 = vld [vmem:[%s16986_s2 + $0x88] sm:$0xff]  ;;  %v1654_v62 = vld [vmem:[%s16986_s2 + $0xd0] sm:$0xff]  ;;  %v1647_v0 = vld [vmem:[%s16986_s2 + $0x98] sm:$0xff] }
 0x32e   : > { %6460 = vmatprep.subr.bf16.mxu1 %v1231_v3  ;;  %1749 = vperm.xlu1 %13803, %v1639_v40   ;;  %v14053_v63 = vld [vmem:[#allocation6 + $0x604] ss:$40 sps:$4 sm:$0xff]   ;;  %v14055_v3 = vld [vmem:[#allocation6 + $0x600] ss:$40 sps:$4 sm:$0xff]  }
 0x32f   : > { %6461 = vmatpush1.bf16.msra.mxu1 %v1230_v12  ;;  %v1656_v1 = vld [vmem:[%s16986_s2 + $0xe0] sm:$0xff]  ;;  %v1649_v2 = vld [vmem:[%s16986_s2 + $0xa8] sm:$0xff]  ;;  %v1655_v12 = vld [vmem:[%s16986_s2 + $0xd8] sm:$0xff] }
 0x330   : > { %4696 = vmatpush1.bf16.msra.mxu0 %v1228_v8  ;;  %6462 = vmatprep.subr.bf16.mxu1 %v1235_v21  ;;  %v1653_v8 = vld [vmem:[%s16986_s2 + $0xc8] sm:$0xff]  ;;  %v14064_v21 = vld [vmem:[#allocation6 + $0x6f0] ss:$40 sps:$4 sm:$0xff]  }
 0x331   : > { %1774 = vperm.xlu0 %13802, %v1644_v10   ;;  %4697 = vmatprep.subr.bf16.mxu0 %v1233_v16  ;;  %v1662_v10 = vld [vmem:[%s16986_s2 + $0x110] sm:$0xff] }
 0x332   : > { %4481 = vmatmul.mubr.bf16.gmra.mrb[52].mxu0 %v14037_v24  ;;  %1759 = vperm.xlu1 %13803, %v1641_v54   ;;  %v1666_v16 = vld [vmem:[%s16986_s2 + $0x130] sm:$0xff] }
 0x333   : > { %6246 = vmatmul.mubr.bf16.gmra.mrb[52].mxu1 %v14037_v24  ;;  %4490 = vmatprep.mubr.bf16.mxu0 %v14038_v27  ;;  %v847_v24 = vld [vmem:[%s14930_s7 + $0xf98] sm:$0xff]  ;;  %v1682_v40 = vld [vmem:[%s16986_s2 + $0x1b0] sm:$0xff] }
 0x334   : > { %6255 = vmatprep.mubr.bf16.mxu1 %v14038_v27  ;;  %v851_v27 = vld [vmem:[%s14930_s7 + $0xfb8] sm:$0xff]  ;;  %4698 = vmatpush1.bf16.msra.mxu0 %v1232_v25 }
 0x335   : > { %v1239_v35 = vpack.c.bf16 %v851_v27, %v847_v24  ;;  %6463 = vmatpush1.bf16.msra.mxu1 %v1234_v26  ;;  %1784 = vperm.xlu0 %13802, %v1646_v33   ;;  %v1663_v24 = vld [vmem:[%s16986_s2 + $0x118] sm:$0xff]  ;;  %v1672_v25 = vld [vmem:[%s16986_s2 + $0x160] sm:$0xff]  ;;  %v1665_v26 = vld [vmem:[%s16986_s2 + $0x128] sm:$0xff] }
 0x336   : > { %4699 = vmatprep.subr.bf16.mxu0 %v1237_v34  ;;  %1769 = vperm.xlu1 %13803, %v1643_v58   ;;  %v14067_v27 = vld [vmem:[#allocation6 + $0x740] ss:$40 sps:$4 sm:$0xff]   ;;  %v14070_v33 = vld [vmem:[#allocation6 + $0x790] ss:$40 sps:$4 sm:$0xff]   ;;  %v14080_v54 = vld [vmem:[#allocation6 + $0x8d4] ss:$40 sps:$4 sm:$0xff]  }
 0x337   : > { %6464 = vmatprep.subr.bf16.mxu1 %v1239_v35  ;;  %v1678_v34 = vld [vmem:[%s16986_s2 + $0x190] sm:$0xff]  ;;  %v1685_v58 = vld [vmem:[%s16986_s2 + $0x1c8] sm:$0xff] }
 0x338   : > { %4700 = vmatpush1.bf16.msra.mxu0 %v1236_v38  ;;  %v14071_v35 = vld [vmem:[#allocation6 + $0x7e4] ss:$40 sps:$4 sm:$0xff]  }
 0x339   : > { %6465 = vmatpush1.bf16.msra.mxu1 %v1238_v39  ;;  %1794 = vperm.xlu0 %13802, %v1648_v49   ;;  %v1673_v38 = vld [vmem:[%s16986_s2 + $0x168] sm:$0xff]  ;;  %v1688_v49 = vld [vmem:[%s16986_s2 + $0x1e0] sm:$0xff] }
 0x33a   : > { %4491 = vmatmul.mubr.bf16.gmra.mrb[56].mxu0 %v14040_v47  ;;  %4701 = vmatprep.subr.bf16.mxu0 %v1241_v50  ;;  %v14073_v39 = vld [vmem:[#allocation6 + $0x7e0] ss:$40 sps:$4 sm:$0xff]  }
 0x33b   : > { %6256 = vmatmul.mubr.bf16.gmra.mrb[56].mxu1 %v14040_v47  ;;  %4500 = vmatprep.mubr.bf16.mxu0 %v14041_v55  ;;  %v854_v47 = vld [vmem:[%s14930_s7 + $0xfd0] sm:$0xff] }
 0x33c   : > { %6265 = vmatprep.mubr.bf16.mxu1 %v14041_v55  ;;  %v1242_v53 = vpack.c.bf16 %v858_v48, %v854_v47  ;;  %6466 = vmatprep.subr.bf16.mxu1 %v1243_v51  ;;  %v1650_v55 = vld [vmem:[%s16986_s2 + $0xb0] sm:$0xff]  ;;  %v1679_v48 = vld [vmem:[%s16986_s2 + $0x198] sm:$0xff]  ;;  %v1681_v51 = vld [vmem:[%s16986_s2 + $0x1a8] sm:$0xff] }
 0x33d   : > { %4702 = vmatpush1.bf16.msra.mxu0 %v1240_v52  ;;  %1804 = vperm.xlu0 %13802, %v1650_v55   ;;  %v14077_v47 = vld [vmem:[#allocation6 + $0x884] ss:$40 sps:$4 sm:$0xff]   ;;  %v14079_v52 = vld [vmem:[#allocation6 + $0x880] ss:$40 sps:$4 sm:$0xff]  }
 0x33e   : > { %6467 = vmatpush1.bf16.msra.mxu1 %v1242_v53  ;;  %1779 = vperm.xlu1 %13803, %v1645_v60   ;;  %v1690_v53 = vld [vmem:[%s16986_s2 + $0x1f0] sm:$0xff] }
 0x33f   : > { %v14082_v60 = vld [vmem:[#allocation6 + $0x8d0] ss:$40 sps:$4 sm:$0xff]  }
 0x341   : > { %1814 = vperm.xlu0 %13802, %v1652_v59  }
 0x342   : > { %4501 = vmatmul.mubr.bf16.gmra.mrb[60].mxu0 %v14043_v7  ;;  %1789 = vperm.xlu1 %13803, %v1647_v0   ;;  %v7658_v0 = vld [vmem:[%s16988_s4 + $0x20] sm:$0xff] }
 0x343   : > { %6266 = vmatmul.mubr.bf16.gmra.mrb[60].mxu1 %v14043_v7  ;;  %4510 = vmatprep.mubr.bf16.mxu0 %v14044_v20  ;;  %v1660_v7 = vld [vmem:[%s16986_s2 + $0x100] sm:$0xff] }
 0x344   : > { %6275 = vmatprep.mubr.bf16.mxu1 %v14044_v20  ;;  %v1661_v20 = vld [vmem:[%s16986_s2 + $0x108] sm:$0xff] }
 0x345   : > { %1824 = vperm.xlu0 %13802, %v1654_v62   ;;  %v14083_v62 = vld [vmem:[#allocation6 + $0x924] ss:$40 sps:$4 sm:$0xff]  }
 0x346   : > { %1799 = vperm.xlu1 %13803, %v1649_v2   ;;  %v1689_v2 = vld [vmem:[%s16986_s2 + $0x1e8] sm:$0xff] }
 0x349   : > { %1834 = vperm.xlu0 %13802, %v1656_v1  }
 0x34a   : > { %4511 = vmatmul.mubr.bf16.gmra.mrb[64].mxu0 %v14046_v36  ;;  %1809 = vperm.xlu1 %13803, %v1651_v6  }
 0x34b   : > { %6276 = vmatmul.mubr.bf16.gmra.mrb[64].mxu1 %v14046_v36  ;;  %4520 = vmatprep.mubr.bf16.mxu0 %v14047_v37  ;;  %v1671_v36 = vld [vmem:[%s16986_s2 + $0x158] sm:$0xff] }
 0x34c   : > { %6285 = vmatprep.mubr.bf16.mxu1 %v14047_v37  ;;  %v1680_v37 = vld [vmem:[%s16986_s2 + $0x1a0] sm:$0xff] }
 0x34d   : > { %1844 = vperm.xlu0 %13802, %v1658_v4   ;;  %v7660_v4 = vld [vmem:[%s16988_s4 + $0x30] sm:$0xff] }
 0x34e   : > { %1819 = vperm.xlu1 %13803, %v1653_v8   ;;  %v15623_v50 = vpop.permute.xlu0 %1694  ;;  %v1691_v8 = vld [vmem:[%s16986_s2 + $0x1f8] sm:$0xff] }
 0x351   : > { %1854 = vperm.xlu0 %13802, %v1660_v7  }
 0x352   : > { %4521 = vmatmul.mubr.bf16.gmra.mrb[68].mxu0 %v14049_v56  ;;  %1829 = vperm.xlu1 %13803, %v1655_v12  }
 0x353   : > { %6286 = vmatmul.mubr.bf16.gmra.mrb[68].mxu1 %v14049_v56  ;;  %4530 = vmatprep.mubr.bf16.mxu0 %v14050_v57  ;;  %v1683_v56 = vld [vmem:[%s16986_s2 + $0x1b8] sm:$0xff] }
 0x354   : > { %6295 = vmatprep.mubr.bf16.mxu1 %v14050_v57  ;;  %v7654_v57 = vld [vmem:[%s16988_s4] sm:$0xff] }
 0x355   : > { %1864 = vperm.xlu0 %13802, %v1662_v10   ;;  %v15663_v7 = vpop.permute.xlu1 %1704 }
 0x356   : > { %1839 = vperm.xlu1 %13803, %v1657_v14   ;;  %v7664_v14 = vld [vmem:[%s16988_s4 + $0x50] sm:$0xff] }
 0x359   : > { %1874 = vperm.xlu0 %13802, %v1664_v13   ;;  %v14088_v13 = vld [vmem:[#allocation6 + $0x970] ss:$40 sps:$4 sm:$0xff]  }
 0x35a   : > { %4531 = vmatmul.mubr.bf16.gmra.mrb[72].mxu0 %v14052_v61  ;;  %1849 = vperm.xlu1 %13803, %v1659_v18  }
 0x35b   : > { %6296 = vmatmul.mubr.bf16.gmra.mrb[72].mxu1 %v14052_v61  ;;  %4540 = vmatprep.mubr.bf16.mxu0 %v14053_v63  ;;  %v7656_v61 = vld [vmem:[%s16988_s4 + $0x10] sm:$0xff] }
 0x35c   : > { %6305 = vmatprep.mubr.bf16.mxu1 %v14053_v63  ;;  %v1687_v63 = vld [vmem:[%s16986_s2 + $0x1d8] sm:$0xff] }
 0x35d   : > { %1884 = vperm.xlu0 %13802, %v1666_v16   ;;  %v15676_v12 = vpop.permute.xlu1 %1709 }
 0x35e   : > { %1859 = vperm.xlu1 %13803, %v1661_v20  }
 0x361   : > { %1894 = vperm.xlu0 %13802, %v1668_v19   ;;  %v7666_v19 = vld [vmem:[%s16988_s4 + $0x60] sm:$0xff] }
 0x362   : > { %4541 = vmatmul.mubr.bf16.gmra.mrb[76].mxu0 %v14055_v3  ;;  %1869 = vperm.xlu1 %13803, %v1663_v24   ;;  %v14094_v24 = vld [vmem:[#allocation6 + $0x1c] ss:$40 sps:$4 sm:$0xff]  }
 0x363   : > { %6306 = vmatmul.mubr.bf16.gmra.mrb[76].mxu1 %v14055_v3  ;;  %4550 = vmatprep.mubr.bf16.mxu0 %v14056_v5  ;;  %v14085_v3 = vld [vmem:[#allocation6 + $0x920] ss:$40 sps:$4 sm:$0xff]  }
 0x364   : > { %6315 = vmatprep.mubr.bf16.mxu1 %v14056_v5  ;;  %v14086_v5 = vld [vmem:[#allocation6 + $0x974] ss:$40 sps:$4 sm:$0xff]  }
 0x365   : > { %1904 = vperm.xlu0 %13802, %v1670_v22   ;;  %v14091_v22 = vld [vmem:[#allocation6 + $0x9c0] ss:$40 sps:$4 sm:$0xff]  }
 0x366   : > { %1879 = vperm.xlu1 %13803, %v1665_v26  }
 0x369   : > { %1914 = vperm.xlu0 %13802, %v1672_v25  }
 0x36a   : > { %4551 = vmatmul.mubr.bf16.gmra.mrb[80].mxu0 %v14058_v9  ;;  %1889 = vperm.xlu1 %13803, %v1667_v30   ;;  %v7663_v30 = vld [vmem:[%s16988_s4 + $0x48] sm:$0xff] }
 0x36b   : > { %6316 = vmatmul.mubr.bf16.gmra.mrb[80].mxu1 %v14058_v9  ;;  %4560 = vmatprep.mubr.bf16.mxu0 %v14059_v11  ;;  %v7662_v9 = vld [vmem:[%s16988_s4 + $0x40] sm:$0xff] }
 0x36c   : > { %6325 = vmatprep.mubr.bf16.mxu1 %v14059_v11  ;;  %v15631_v55 = vpop.permute.xlu0 %1699  ;;  %v7655_v11 = vld [vmem:[%s16988_s4 + $0x8] sm:$0xff] }
 0x36d   : > { %1924 = vperm.xlu0 %13802, %v1674_v28   ;;  %v7670_v28 = vld [vmem:[%s16988_s4 + $0x80] sm:$0xff] }
 0x36e   : > { %1899 = vperm.xlu1 %13803, %v1669_v32  }
 0x371   : > { %1934 = vperm.xlu0 %13802, %v1676_v31   ;;  %v14092_v31 = vld [vmem:[#allocation6 + $0x18] ss:$40 sps:$4 sm:$0xff]  }
 0x372   : > { %4561 = vmatmul.mubr.bf16.gmra.mrb[84].mxu0 %v14061_v15  ;;  %1909 = vperm.xlu1 %13803, %v1671_v36   ;;  %v7665_v36 = vld [vmem:[%s16988_s4 + $0x58] sm:$0xff] }
 0x373   : > { %6326 = vmatmul.mubr.bf16.gmra.mrb[84].mxu1 %v14061_v15  ;;  %4570 = vmatprep.mubr.bf16.mxu0 %v14062_v17  ;;  %v14089_v15 = vld [vmem:[#allocation6 + $0x9c4] ss:$40 sps:$4 sm:$0xff]  }
 0x374   : > { %6335 = vmatprep.mubr.bf16.mxu1 %v14062_v17  ;;  %v15642_v59 = vpop.permute.xlu0 %1714  ;;  %v7657_v17 = vld [vmem:[%s16988_s4 + $0x18] sm:$0xff] }
 0x375   : > { %1944 = vperm.xlu0 %13802, %v1678_v34   ;;  %v14095_v34 = vld [vmem:[#allocation6 + $0x6c] ss:$40 sps:$4 sm:$0xff]  }
 0x376   : > { %1919 = vperm.xlu1 %13803, %v1673_v38   ;;  %v7667_v38 = vld [vmem:[%s16988_s4 + $0x68] sm:$0xff] }
 0x377   : > { %v15686_v18 = vpop.permute.xlu1 %1719 }
 0x378   : > { %v15653_v1 = vpop.permute.xlu0 %1724 }
 0x379   : > { %1954 = vperm.xlu0 %13802, %v1680_v37   ;;  %v7674_v37 = vld [vmem:[%s16988_s4 + $0xa0] sm:$0xff] }
 0x37a   : > { %4571 = vmatmul.mubr.bf16.gmra.mrb[88].mxu0 %v14064_v21  ;;  %1929 = vperm.xlu1 %13803, %v1675_v42   ;;  %v863_v42 = vld [vmem:[%s14930_s7 + $0x1018] sm:$0xff] }
 0x37b   : > { %6336 = vmatmul.mubr.bf16.gmra.mrb[88].mxu1 %v14064_v21  ;;  %4580 = vmatprep.mubr.bf16.mxu0 %v14065_v23  ;;  %v7659_v21 = vld [vmem:[%s16988_s4 + $0x28] sm:$0xff] }
 0x37c   : > { %6345 = vmatprep.mubr.bf16.mxu1 %v14065_v23  ;;  %v15661_v6 = vpop.permute.xlu0 %1734  ;;  %v7668_v23 = vld [vmem:[%s16988_s4 + $0x70] sm:$0xff] }
 0x37d   : > { %1964 = vperm.xlu0 %13802, %v1682_v40  }
 0x37e   : > { %1939 = vperm.xlu1 %13803, %v1677_v44  }
 0x381   : > { %1974 = vperm.xlu0 %13802, %v1684_v43   ;;  %v867_v43 = vld [vmem:[%s14930_s7 + $0x1038] sm:$0xff] }
 0x382   : > { %4581 = vmatmul.mubr.bf16.gmra.mrb[92].mxu0 %v14067_v27  ;;  %1949 = vperm.xlu1 %13803, %v1679_v48   ;;  %v862_v48 = vld [vmem:[%s14930_s7 + $0x1010] sm:$0xff] }
 0x383   : > { %6346 = vmatmul.mubr.bf16.gmra.mrb[92].mxu1 %v14067_v27  ;;  %4590 = vmatprep.mubr.bf16.mxu0 %v14068_v29  ;;  %v7661_v27 = vld [vmem:[%s16988_s4 + $0x38] sm:$0xff] }
 0x384   : > { %6355 = vmatprep.mubr.bf16.mxu1 %v14068_v29 }
 0x385   : > { %1984 = vperm.xlu0 %13802, %v1686_v46   ;;  %v860_v46 = vld [vmem:[%s14930_s7 + $0x1000] sm:$0xff] }
 0x386   : > { %1959 = vperm.xlu1 %13803, %v1681_v51  }
 0x389   : > { %1994 = vperm.xlu0 %13802, %v1688_v49   ;;  %v14097_v49 = vld [vmem:[#allocation6 + $0x68] ss:$40 sps:$4 sm:$0xff]  }
 0x38a   : > { %4591 = vmatmul.mubr.bf16.gmra.mrb[96].mxu0 %v14070_v33  ;;  %1969 = vperm.xlu1 %13803, %v1683_v56   ;;  %v14098_v56 = vld [vmem:[#allocation6 + $0xbc] ss:$40 sps:$4 sm:$0xff]  }
 0x38b   : > { %6356 = vmatmul.mubr.bf16.gmra.mrb[96].mxu1 %v14070_v33  ;;  %4600 = vmatprep.mubr.bf16.mxu0 %v14071_v35  ;;  %v7672_v33 = vld [vmem:[%s16988_s4 + $0x90] sm:$0xff] }
 0x38c   : > { %6365 = vmatprep.mubr.bf16.mxu1 %v14071_v35 }
 0x38d   : > { %2004 = vperm.xlu0 %13802, %v1690_v53  }
 0x38e   : > { %1979 = vperm.xlu1 %13803, %v1685_v58   ;;  %v7669_v58 = vld [vmem:[%s16988_s4 + $0x78] sm:$0xff] }
 0x38f   : > { %v15699_v25 = vpop.permute.xlu1 %1729 }
 0x391   : > { %7720 = vperm.xlu0 %13802, %v7654_v57  }
 0x392   : > { %4601 = vmatmul.mubr.bf16.gmra.mrb[100].mxu0 %v14073_v39  ;;  %1989 = vperm.xlu1 %13803, %v1687_v63   ;;  %v7671_v63 = vld [vmem:[%s16988_s4 + $0x88] sm:$0xff] }
 0x393   : > { %6366 = vmatmul.mubr.bf16.gmra.mrb[100].mxu1 %v14073_v39  ;;  %4610 = vmatprep.mubr.bf16.mxu0 %v14074_v41  ;;  %v861_v39 = vld [vmem:[%s14930_s7 + $0x1008] sm:$0xff] }
 0x394   : > { %6375 = vmatprep.mubr.bf16.mxu1 %v14074_v41  ;;  %v865_v41 = vld [vmem:[%s14930_s7 + $0x1028] sm:$0xff] }
 0x395   : > { %7730 = vperm.xlu0 %13802, %v7656_v61   ;;  %v1245_v44 = vpack.c.bf16 %v865_v41, %v861_v39  ;;  %v7678_v61 = vld [vmem:[%s16988_s4 + $0xc0] sm:$0xff]  ;;  %v7677_v39 = vld [vmem:[%s16988_s4 + $0xb8] sm:$0xff] }
 0x396   : > { %1999 = vperm.xlu1 %13803, %v1689_v2   ;;  %v7680_v2 = vld [vmem:[%s16988_s4 + $0xd0] sm:$0xff]  ;;  %v7686_v41 = vld [vmem:[%s16988_s4 + $0x100] sm:$0xff] }
 0x397   : > { %5024 = vmatprep.subr.bf16.mxu0 %v1245_v44  ;;  %v14106_v44 = vld [vmem:[#allocation6 + $0x158] ss:$40 sps:$4 sm:$0xff]  }
 0x399   : > { %7740 = vperm.xlu0 %13802, %v7658_v0   ;;  %v14100_v0 = vld [vmem:[#allocation6 + $0xb8] ss:$40 sps:$4 sm:$0xff]  }
 0x39a   : > { %4611 = vmatmul.mubr.bf16.gmra.mrb[104].mxu0 %v14076_v45  ;;  %2009 = vperm.xlu1 %13803, %v1691_v8   ;;  %v7673_v8 = vld [vmem:[%s16988_s4 + $0x98] sm:$0xff] }
 0x39b   : > { %6376 = vmatmul.mubr.bf16.gmra.mrb[104].mxu1 %v14076_v45  ;;  %4620 = vmatprep.mubr.bf16.mxu0 %v14077_v47  ;;  %v1247_v45 = vpack.c.bf16 %v867_v43, %v863_v42  ;;  %v7679_v43 = vld [vmem:[%s16988_s4 + $0xc8] sm:$0xff] }
 0x39c   : > { %6385 = vmatprep.mubr.bf16.mxu1 %v14077_v47  ;;  %v864_v47 = vld [vmem:[%s14930_s7 + $0x1020] sm:$0xff] }
 0x39d   : > { %7750 = vperm.xlu0 %13802, %v7660_v4   ;;  %v1244_v53 = vpack.c.bf16 %v864_v47, %v860_v46  ;;  %6789 = vmatprep.subr.bf16.mxu1 %v1247_v45  ;;  %v7688_v45 = vld [vmem:[%s16988_s4 + $0x110] sm:$0xff] }
 0x39e   : > { %7725 = vperm.xlu1 %13803, %v7655_v11   ;;  %v14107_v46 = vld [vmem:[#allocation6 + $0x1ac] ss:$40 sps:$4 sm:$0xff]  }
 0x3a1   : > { %7760 = vperm.xlu0 %13802, %v7662_v9   ;;  %v7682_v9 = vld [vmem:[%s16988_s4 + $0xe0] sm:$0xff] }
 0x3a2   : > { %4621 = vmatmul.mubr.bf16.gmra.mrb[108].mxu0 %v14079_v52  ;;  %7735 = vperm.xlu1 %13803, %v7657_v17   ;;  %v871_v17 = vld [vmem:[%s14930_s7 + $0x1058] sm:$0xff] }
 0x3a3   : > { %6386 = vmatmul.mubr.bf16.gmra.mrb[108].mxu1 %v14079_v52  ;;  %4630 = vmatprep.mubr.bf16.mxu0 %v14080_v54  ;;  %v7676_v52 = vld [vmem:[%s16988_s4 + $0xb0] sm:$0xff] }
 0x3a4   : > { %6395 = vmatprep.mubr.bf16.mxu1 %v14080_v54  ;;  %v15671_v10 = vpop.permute.xlu0 %1744  ;;  %v866_v54 = vld [vmem:[%s14930_s7 + $0x1030] sm:$0xff] }
 0x3a5   : > { %7770 = vperm.xlu0 %13802, %v7664_v14   ;;  %v1246_v57 = vpack.c.bf16 %v866_v54, %v862_v48  ;;  %v869_v14 = vld [vmem:[%s14930_s7 + $0x1048] sm:$0xff]  ;;  %v7681_v48 = vld [vmem:[%s16988_s4 + $0xd8] sm:$0xff] }
 0x3a6   : > { %7745 = vperm.xlu1 %13803, %v7659_v21   ;;  %v15709_v29 = vpop.permute.xlu1 %1739  ;;  %v877_v54 = vld [vmem:[%s14930_s7 + $0x1088] sm:$0xff] }
 0x3a8   : > { %v15681_v16 = vpop.permute.xlu0 %1754 }
 0x3a9   : > { %7780 = vperm.xlu0 %13802, %v7666_v19   ;;  %v875_v19 = vld [vmem:[%s14930_s7 + $0x1078] sm:$0xff] }
 0x3aa   : > { %4631 = vmatmul.mubr.bf16.gmra.mrb[112].mxu0 %v14082_v60  ;;  %7755 = vperm.xlu1 %13803, %v7661_v27   ;;  %v870_v27 = vld [vmem:[%s14930_s7 + $0x1050] sm:$0xff] }
 0x3ab   : > { %6396 = vmatmul.mubr.bf16.gmra.mrb[112].mxu1 %v14082_v60  ;;  %4640 = vmatprep.mubr.bf16.mxu0 %v14083_v62 }
 0x3ac   : > { %6405 = vmatprep.mubr.bf16.mxu1 %v14083_v62  ;;  %v15691_v20 = vpop.permute.xlu0 %1764 }
 0x3ad   : > { %7790 = vperm.xlu0 %13802, %v7668_v23   ;;  %v15719_v35 = vpop.permute.xlu1 %1749  ;;  %v868_v23 = vld [vmem:[%s14930_s7 + $0x1040] sm:$0xff] }
 0x3ae   : > { %7765 = vperm.xlu1 %13803, %v7663_v30  }
 0x3b0   : > { %v15701_v26 = vpop.permute.xlu0 %1774 }
 0x3b1   : > { %7800 = vperm.xlu0 %13802, %v7670_v28   ;;  %v15739_v51 = vpop.permute.xlu1 %1759  ;;  %v14103_v28 = vld [vmem:[#allocation6 + $0x108] ss:$40 sps:$4 sm:$0xff]  }
 0x3b2   : > { %4641 = vmatmul.mubr.bf16.gmra.mrb[116].mxu0 %v14085_v3  ;;  %7775 = vperm.xlu1 %13803, %v7665_v36   ;;  %v14104_v36 = vld [vmem:[#allocation6 + $0x15c] ss:$40 sps:$4 sm:$0xff]  }
 0x3b3   : > { %6406 = vmatmul.mubr.bf16.gmra.mrb[116].mxu1 %v14085_v3  ;;  %4650 = vmatprep.mubr.bf16.mxu0 %v14086_v5  ;;  %v14101_v3 = vld [vmem:[#allocation6 + $0x10c] ss:$40 sps:$4 sm:$0xff]  }
 0x3b4   : > { %6415 = vmatprep.mubr.bf16.mxu1 %v14086_v5  ;;  %v15714_v32 = vpop.permute.xlu0 %1784 }
 0x3b5   : > { %7810 = vperm.xlu0 %13802, %v7672_v33   ;;  %v15753_v62 = vpop.permute.xlu1 %1769 }
 0x3b6   : > { %7785 = vperm.xlu1 %13803, %v7667_v38  }
 0x3b8   : > { %v15731_v40 = vpop.permute.xlu0 %1794 }
 0x3b9   : > { %7820 = vperm.xlu0 %13802, %v7674_v37  }
 0x3ba   : > { %4651 = vmatmul.mubr.bf16.gmra.mrb[120].mxu0 %v14088_v13  ;;  %7795 = vperm.xlu1 %13803, %v7669_v58   ;;  %v883_v58 = vld [vmem:[%s14930_s7 + $0x10b8] sm:$0xff] }
 0x3bb   : > { %6416 = vmatmul.mubr.bf16.gmra.mrb[120].mxu1 %v14088_v13  ;;  %4660 = vmatprep.mubr.bf16.mxu0 %v14089_v15  ;;  %v7675_v13 = vld [vmem:[%s16988_s4 + $0xa8] sm:$0xff] }
 0x3bc   : > { %6425 = vmatprep.mubr.bf16.mxu1 %v14089_v15  ;;  %v15748_v60 = vpop.permute.xlu0 %1804  ;;  %v873_v15 = vld [vmem:[%s14930_s7 + $0x1068] sm:$0xff] }
 0x3bd   : > { %7830 = vperm.xlu0 %13802, %v7676_v52   ;;  %v15761_v4 = vpop.permute.xlu1 %1779  ;;  %v1249_v21 = vpack.c.bf16 %v873_v15, %v869_v14  ;;  %v7690_v52 = vld [vmem:[%s16988_s4 + $0x120] sm:$0xff]  ;;  %v882_v15 = vld [vmem:[%s14930_s7 + $0x10b0] sm:$0xff] }
 0x3be   : > { %7805 = vperm.xlu1 %13803, %v7671_v63  }
 0x3c0   : > { %v15763_v5 = vpop.permute.xlu0 %1814 }
 0x3c1   : > { %7840 = vperm.xlu0 %13802, %v7678_v61   ;;  %v15771_v11 = vpop.permute.xlu1 %1789 }
 0x3c2   : > { %4661 = vmatmul.mubr.bf16.gmra.mrb[124].mxu0 %v14091_v22  ;;  %7815 = vperm.xlu1 %13803, %v7673_v8   ;;  %v878_v8 = vld [vmem:[%s14930_s7 + $0x1090] sm:$0xff] }
 0x3c3   : > { %6426 = vmatmul.mubr.bf16.gmra.mrb[124].mxu1 %v14091_v22  ;;  %4703 = vmatprep.mubr.bf16.mxu0 %v14094_v24  ;;  %v1251_v22 = vpack.c.bf16 %v875_v19, %v871_v17  ;;  %v14110_v17 = vld [vmem:[#allocation6 + $0x1fc] ss:$40 sps:$4 sm:$0xff]   ;;  %v1254_v19 = vpack.c.bf16 %v882_v15, %v878_v8 }
 0x3c4   : > { %6468 = vmatprep.mubr.bf16.mxu1 %v14094_v24  ;;  %v872_v24 = vld [vmem:[%s14930_s7 + $0x1060] sm:$0xff]  ;;  %v15783_v30 = vpop.permute.xlu0 %1824 }
 0x3c5   : > { %7850 = vperm.xlu0 %13802, %v7680_v2   ;;  %v1248_v33 = vpack.c.bf16 %v872_v24, %v868_v23  ;;  %v15789_v38 = vpop.permute.xlu1 %1799  ;;  %v876_v2 = vld [vmem:[%s14930_s7 + $0x1080] sm:$0xff] }
 0x3c6   : > { %7825 = vperm.xlu1 %13803, %v7675_v13   ;;  %v7692_v13 = vld [vmem:[%s16988_s4 + $0x130] sm:$0xff]  ;;  %v7694_v23 = vld [vmem:[%s16988_s4 + $0x140] sm:$0xff] }
 0x3c7   : > { %v7702_v15 = vld [vmem:[%s16988_s4 + $0x180] sm:$0xff] }
 0x3c8   : > { %v15797_v42 = vpop.permute.xlu0 %1834 }
 0x3c9   : > { %7860 = vperm.xlu0 %13802, %v7682_v9   ;;  %v15805_v47 = vpop.permute.xlu1 %1809  ;;  %v14109_v9 = vld [vmem:[#allocation6 + $0x1a8] ss:$40 sps:$4 sm:$0xff]  }
 0x3ca   : > { %4704 = vmatmul.mubr.bf16.vlgmr.msra.gmra.mrb[0].mxu0 %v14092_v31  ;;  %7835 = vperm.xlu1 %13803, %v7677_v39   ;;  %v7698_v39 = vld [vmem:[%s16988_s4 + $0x160] sm:$0xff] }
 0x3cb   : > { %6469 = vmatmul.mubr.bf16.vlgmr.msra.gmra.mrb[0].mxu1 %v14092_v31  ;;  %4713 = vmatprep.mubr.bf16.mxu0 %v14095_v34  ;;  %v7684_v31 = vld [vmem:[%s16988_s4 + $0xf0] sm:$0xff] }
 0x3cc   : > { %6478 = vmatprep.mubr.bf16.mxu1 %v14095_v34  ;;  %5025 = vmatpush1.bf16.msra.mxu0 %v1244_v53  ;;  %v874_v34 = vld [vmem:[%s14930_s7 + $0x1070] sm:$0xff]  ;;  %v7683_v53 = vld [vmem:[%s16988_s4 + $0xe8] sm:$0xff] }
 0x3cd   : > { %6790 = vmatpush1.bf16.msra.mxu1 %v1246_v57  ;;  %5026 = vmatprep.subr.bf16.mxu0 %v1249_v21  ;;  %v1250_v37 = vpack.c.bf16 %v874_v34, %v870_v27  ;;  %v879_v57 = vld [vmem:[%s14930_s7 + $0x1098] sm:$0xff]  ;;  %v15822_v61 = vpop.permute.xlu1 %1819  ;;  %v7687_v27 = vld [vmem:[%s16988_s4 + $0x108] sm:$0xff] }
 0x3ce   : > { %6791 = vmatprep.subr.bf16.mxu1 %v1251_v22  ;;  %7870 = vperm.xlu0 %13802, %v7684_v31   ;;  %v7685_v22 = vld [vmem:[%s16988_s4 + $0xf8] sm:$0xff] }
 0x3cf   : > { %7845 = vperm.xlu1 %13803, %v7679_v43   ;;  %v14113_v34 = vld [vmem:[#allocation6 + $0x24c] ss:$40 sps:$4 sm:$0xff]  }
 0x3d0   : > { %5027 = vmatpush1.bf16.msra.mxu0 %v1248_v33  ;;  %v7696_v33 = vld [vmem:[%s16988_s4 + $0x150] sm:$0xff] }
 0x3d1   : > { %6792 = vmatpush1.bf16.msra.mxu1 %v1250_v37  ;;  %v15839_v24 = vpop.permute.xlu1 %1829  ;;  %v7689_v37 = vld [vmem:[%s16988_s4 + $0x118] sm:$0xff]  ;;  %v885_v43 = vld [vmem:[%s14930_s7 + $0x10c8] sm:$0xff] }
 0x3d2   : > { %4714 = vmatmul.mubr.bf16.gmra.mrb[4].mxu0 %v14097_v49  ;;  %7880 = vperm.xlu0 %13802, %v7686_v41   ;;  %v7691_v41 = vld [vmem:[%s16988_s4 + $0x128] sm:$0xff] }
 0x3d3   : > { %6479 = vmatmul.mubr.bf16.gmra.mrb[4].mxu1 %v14097_v49  ;;  %4723 = vmatprep.mubr.bf16.mxu0 %v14098_v56  ;;  %v15810_v49 = vpop.permute.xlu0 %1844 }
 0x3d4   : > { %6488 = vmatprep.mubr.bf16.mxu1 %v14098_v56  ;;  %7855 = vperm.xlu1 %13803, %v7681_v48   ;;  %v881_v56 = vld [vmem:[%s14930_s7 + $0x10a8] sm:$0xff]  ;;  %v891_v48 = vld [vmem:[%s14930_s7 + $0x10f8] sm:$0xff] }
 0x3d5   : > { %v1253_v63 = vpack.c.bf16 %v881_v56, %v877_v54  ;;  %v884_v54 = vld [vmem:[%s14930_s7 + $0x10c0] sm:$0xff] }
 0x3d6   : > { %7890 = vperm.xlu0 %13802, %v7688_v45   ;;  %v889_v45 = vld [vmem:[%s14930_s7 + $0x10e8] sm:$0xff]  ;;  %v888_v56 = vld [vmem:[%s14930_s7 + $0x10e0] sm:$0xff] }
 0x3d7   : > { %5028 = vmatprep.subr.bf16.mxu0 %v1253_v63  ;;  %v15831_v21 = vpop.permute.xlu0 %1854  ;;  %v7700_v63 = vld [vmem:[%s16988_s4 + $0x170] sm:$0xff] }
 0x3d8   : > { %7865 = vperm.xlu1 %13803, %v7683_v53  }
 0x3da   : > { %4724 = vmatmul.mubr.bf16.gmra.mrb[8].mxu0 %v14100_v0  ;;  %7900 = vperm.xlu0 %13802, %v7690_v52   ;;  %v1257_v52 = vpack.c.bf16 %v889_v45, %v885_v43  ;;  %v897_v43 = vld [vmem:[%s14930_s7 + $0x1128] sm:$0xff]  ;;  %v895_v45 = vld [vmem:[%s14930_s7 + $0x1118] sm:$0xff] }
 0x3db   : > { %6489 = vmatmul.mubr.bf16.gmra.mrb[8].mxu1 %v14100_v0  ;;  %4733 = vmatprep.mubr.bf16.mxu0 %v14101_v3  ;;  %v1255_v0 = vpack.c.bf16 %v883_v58, %v879_v57  ;;  %v15844_v31 = vpop.permute.xlu0 %1864  ;;  %v886_v57 = vld [vmem:[%s14930_s7 + $0x10d0] sm:$0xff] }
 0x3dc   : > { %6498 = vmatprep.mubr.bf16.mxu1 %v14101_v3  ;;  %v880_v3 = vld [vmem:[%s14930_s7 + $0x10a0] sm:$0xff]  ;;  %7875 = vperm.xlu1 %13803, %v7685_v22   ;;  %v14115_v58 = vld [vmem:[#allocation6 + $0x248] ss:$40 sps:$4 sm:$0xff]  }
 0x3dd   : > { %v1252_v14 = vpack.c.bf16 %v880_v3, %v876_v2  ;;  %6793 = vmatprep.subr.bf16.mxu1 %v1255_v0  ;;  %v1256_v0 = vpack.c.bf16 %v888_v56, %v884_v54  ;;  %v890_v2 = vld [vmem:[%s14930_s7 + $0x10f0] sm:$0xff]  ;;  %v14116_v3 = vld [vmem:[#allocation6 + $0x29c] ss:$40 sps:$4 sm:$0xff]   ;;  %v14118_v22 = vld [vmem:[#allocation6 + $0x298] ss:$40 sps:$4 sm:$0xff]  }
 0x3de   : > { %7910 = vperm.xlu0 %13802, %v7692_v13   ;;  %6794 = vmatpush1.bf16.msra.mxu1 %v1254_v19  ;;  %v7693_v13 = vld [vmem:[%s16988_s4 + $0x138] sm:$0xff]  ;;  %v7695_v19 = vld [vmem:[%s16988_s4 + $0x148] sm:$0xff] }
 0x3df   : > { %5029 = vmatpush1.bf16.msra.mxu0 %v1252_v14  ;;  %v896_v54 = vld [vmem:[%s14930_s7 + $0x1120] sm:$0xff]  ;;  %v894_v56 = vld [vmem:[%s14930_s7 + $0x1110] sm:$0xff] }
 0x3e0   : > { %7885 = vperm.xlu1 %13803, %v7687_v27   ;;  %5030 = vmatprep.subr.bf16.mxu0 %v1257_v52  ;;  %v14119_v27 = vld [vmem:[#allocation6 + $0x2ec] ss:$40 sps:$4 sm:$0xff]  }
 0x3e2   : > { %4734 = vmatmul.mubr.bf16.gmra.mrb[12].mxu0 %v14103_v28  ;;  %7920 = vperm.xlu0 %13802, %v7694_v23   ;;  %v7704_v23 = vld [vmem:[%s16988_s4 + $0x190] sm:$0xff] }
 0x3e3   : > { %6499 = vmatmul.mubr.bf16.gmra.mrb[12].mxu1 %v14103_v28  ;;  %4743 = vmatprep.mubr.bf16.mxu0 %v14104_v36  ;;  %v14112_v28 = vld [vmem:[#allocation6 + $0x1f8] ss:$40 sps:$4 sm:$0xff]  }
 0x3e4   : > { %6508 = vmatprep.mubr.bf16.mxu1 %v14104_v36  ;;  %v15849_v36 = vpop.permute.xlu1 %1839  ;;  %7895 = vperm.xlu1 %13803, %v7689_v37  }
 0x3e5   : > { %5031 = vmatpush1.bf16.msra.mxu0 %v1256_v0 }
 0x3e6   : > { %7930 = vperm.xlu0 %13802, %v7696_v33   ;;  %v7697_v33 = vld [vmem:[%s16988_s4 + $0x158] sm:$0xff] }
 0x3e8   : > { %v15873_v8 = vpop.permute.xlu1 %1849  ;;  %7905 = vperm.xlu1 %13803, %v7691_v41   ;;  %v893_v41 = vld [vmem:[%s14930_s7 + $0x1108] sm:$0xff] }
 0x3ea   : > { %4744 = vmatmul.mubr.bf16.gmra.mrb[16].mxu0 %v14106_v44  ;;  %7940 = vperm.xlu0 %13802, %v7698_v39   ;;  %v7699_v39 = vld [vmem:[%s16988_s4 + $0x168] sm:$0xff] }
 0x3eb   : > { %6509 = vmatmul.mubr.bf16.gmra.mrb[16].mxu1 %v14106_v44  ;;  %4753 = vmatprep.mubr.bf16.mxu0 %v14107_v46  ;;  %v15861_v44 = vpop.permute.xlu0 %1874 }
 0x3ec   : > { %6518 = vmatprep.mubr.bf16.mxu1 %v14107_v46  ;;  %v887_v46 = vld [vmem:[%s14930_s7 + $0x10d8] sm:$0xff]  ;;  %7915 = vperm.xlu1 %13803, %v7693_v13  }
 0x3ed   : > { %v1259_v53 = vpack.c.bf16 %v891_v48, %v887_v46  ;;  %v899_v46 = vld [vmem:[%s14930_s7 + $0x1138] sm:$0xff]  ;;  %v1261_v48 = vpack.c.bf16 %v897_v43, %v893_v41 }
 0x3ee   : > { %7950 = vperm.xlu0 %13802, %v7700_v63   ;;  %v1263_v52 = vpack.c.bf16 %v899_v46, %v895_v45  ;;  %v7708_v63 = vld [vmem:[%s16988_s4 + $0x1b0] sm:$0xff]  ;;  %v7705_v41 = vld [vmem:[%s16988_s4 + $0x198] sm:$0xff]  ;;  %v7714_v45 = vld [vmem:[%s16988_s4 + $0x1e0] sm:$0xff] }
 0x3ef   : > { %6795 = vmatprep.subr.bf16.mxu1 %v1259_v53  ;;  %v15878_v14 = vpop.permute.xlu0 %1884  ;;  %v892_v53 = vld [vmem:[%s14930_s7 + $0x1100] sm:$0xff]  ;;  %5032 = vmatprep.subr.bf16.mxu0 %v1261_v48  ;;  %v901_v48 = vld [vmem:[%s14930_s7 + $0x1148] sm:$0xff] }
 0x3f0   : > { %7925 = vperm.xlu1 %13803, %v7695_v19   ;;  %v1260_v0 = vpack.c.bf16 %v896_v54, %v892_v53  ;;  %v7710_v19 = vld [vmem:[%s16988_s4 + $0x1c0] sm:$0xff]  ;;  %v7707_v46 = vld [vmem:[%s16988_s4 + $0x1a8] sm:$0xff] }
 0x3f1   : > { %v903_v53 = vld [vmem:[%s14930_s7 + $0x1158] sm:$0xff] }
 0x3f2   : > { %4754 = vmatmul.mubr.bf16.gmra.mrb[20].mxu0 %v14109_v9  ;;  %7960 = vperm.xlu0 %13802, %v7702_v15   ;;  %v7701_v15 = vld [vmem:[%s16988_s4 + $0x178] sm:$0xff] }
 0x3f3   : > { %6519 = vmatmul.mubr.bf16.gmra.mrb[20].mxu1 %v14109_v9  ;;  %4763 = vmatprep.mubr.bf16.mxu0 %v14110_v17  ;;  %v1258_v9 = vpack.c.bf16 %v890_v2, %v886_v57  ;;  %v14121_v57 = vld [vmem:[#allocation6 + $0x2e8] ss:$40 sps:$4 sm:$0xff]   ;;  %v907_v54 = vld [vmem:[%s14930_s7 + $0x1178] sm:$0xff] }
 0x3f4   : > { %6528 = vmatprep.mubr.bf16.mxu1 %v14110_v17  ;;  %v15883_v17 = vpop.permute.xlu1 %1859  ;;  %7935 = vperm.xlu1 %13803, %v7697_v33   ;;  %v898_v2 = vld [vmem:[%s14930_s7 + $0x1130] sm:$0xff] }
 0x3f5   : > { %6796 = vmatpush1.bf16.msra.mxu1 %v1258_v9  ;;  %v1262_v9 = vpack.c.bf16 %v898_v2, %v894_v56  ;;  %5033 = vmatpush1.bf16.msra.mxu0 %v1260_v0  ;;  %v7712_v33 = vld [vmem:[%s16988_s4 + $0x1d0] sm:$0xff]  ;;  %v900_v0 = vld [vmem:[%s14930_s7 + $0x1140] sm:$0xff] }
 0x3f6   : > { %7970 = vperm.xlu0 %13802, %v7704_v23   ;;  %6797 = vmatprep.subr.bf16.mxu1 %v1263_v52  ;;  %v7703_v23 = vld [vmem:[%s16988_s4 + $0x188] sm:$0xff] }
 0x3f7   : > { %v905_v52 = vld [vmem:[%s14930_s7 + $0x1168] sm:$0xff]  ;;  %v904_v2 = vld [vmem:[%s14930_s7 + $0x1160] sm:$0xff] }
 0x3f8   : > { %v15899_v37 = vpop.permute.xlu1 %1869  ;;  %7945 = vperm.xlu1 %13803, %v7699_v39  }
 0x3f9   : > { %6798 = vmatpush1.bf16.msra.mxu1 %v1262_v9  ;;  %v14127_v9 = vld [vmem:[#allocation6 + $0x388] ss:$40 sps:$4 sm:$0xff]  }
 0x3fa   : > { %4764 = vmatmul.mubr.bf16.gmra.mrb[24].mxu0 %v14112_v28 }
 0x3fb   : > { %6529 = vmatmul.mubr.bf16.gmra.mrb[24].mxu1 %v14112_v28  ;;  %4773 = vmatprep.mubr.bf16.mxu0 %v14113_v34  ;;  %v15891_v28 = vpop.permute.xlu0 %1894 }
 0x3fc   : > { %6538 = vmatprep.mubr.bf16.mxu1 %v14113_v34  ;;  %17080 = vst [vmem:[#allocation17_spill] sm:$0xff] %v15891_v28  ;;  %v7706_v34 = vld [vmem:[%s16988_s4 + $0x1a0] sm:$0xff]  ;;  %v15917_v13 = vpop.permute.xlu1 %1879  ;;  %7955 = vperm.xlu1 %13803, %v7701_v15   ;;  %v7716_v15 = vld [vmem:[%s16988_s4 + $0x1f0] sm:$0xff] }
 0x3fd   : > { %7980 = vperm.xlu0 %13802, %v7706_v34   ;;  %v14125_v34 = vld [vmem:[#allocation6 + $0x38c] ss:$40 sps:$4 sm:$0xff]   ;;  %v964_v28 = vld [vmem:[%s14930_s7 + $0x1340] sm:$0xff] }
 0x400   : > { %v15933_v39 = vpop.permute.xlu1 %1889  ;;  %7965 = vperm.xlu1 %13803, %v7703_v23   ;;  %v906_v23 = vld [vmem:[%s14930_s7 + $0x1170] sm:$0xff] }
 0x401   : > { %7990 = vperm.xlu0 %13802, %v7708_v63   ;;  %17083 = vst [vmem:[#allocation20_spill] sm:$0xff] %v15933_v39  ;;  %v1267_v63 = vpack.c.bf16 %v907_v54, %v903_v53  ;;  %v915_v54 = vld [vmem:[%s14930_s7 + $0x11b8] sm:$0xff]  ;;  %v968_v39 = vld [vmem:[%s14930_s7 + $0x1360] sm:$0xff] }
 0x402   : > { %4774 = vmatmul.mubr.bf16.gmra.mrb[28].mxu0 %v14115_v58 }
 0x403   : > { %6539 = vmatmul.mubr.bf16.gmra.mrb[28].mxu1 %v14115_v58  ;;  %4783 = vmatprep.mubr.bf16.mxu0 %v14116_v3  ;;  %v15911_v58 = vpop.permute.xlu0 %1904 }
 0x404   : > { %6548 = vmatprep.mubr.bf16.mxu1 %v14116_v3  ;;  %17081 = vst [vmem:[#allocation18_spill] sm:$0xff] %v15911_v58  ;;  %v14122_v3 = vld [vmem:[#allocation6 + $0x33c] ss:$40 sps:$4 sm:$0xff]   ;;  %7975 = vperm.xlu1 %13803, %v7705_v41   ;;  %v15950_v56 = vpop.permute.xlu1 %1899  ;;  %v938_v58 = vld [vmem:[%s14930_s7 + $0x1270] sm:$0xff] }
 0x405   : > { %8000 = vperm.xlu0 %13802, %v7710_v19   ;;  %17085 = vst [vmem:[#allocation22_spill] sm:$0xff] %v15950_v56  ;;  %v1264_v19 = vpack.c.bf16 %v904_v2, %v900_v0  ;;  %6799 = vmatprep.subr.bf16.mxu1 %v1267_v63  ;;  %v908_v0 = vld [vmem:[%s14930_s7 + $0x1180] sm:$0xff]  ;;  %v941_v56 = vld [vmem:[%s14930_s7 + $0x1288] sm:$0xff] }
 0x408   : > { %7985 = vperm.xlu1 %13803, %v7707_v46   ;;  %v10346_v46 = vld [vmem:[%s16989_s5] sm:$0xff] }
 0x409   : > { %8010 = vperm.xlu0 %13802, %v7712_v33   ;;  %v7709_v33 = vld [vmem:[%s16988_s4 + $0x1b8] sm:$0xff] }
 0x40a   : > { %4784 = vmatmul.mubr.bf16.gmra.mrb[32].mxu0 %v14118_v22 }
 0x40b   : > { %6549 = vmatmul.mubr.bf16.gmra.mrb[32].mxu1 %v14118_v22  ;;  %4793 = vmatprep.mubr.bf16.mxu0 %v14119_v27  ;;  %v15925_v22 = vpop.permute.xlu0 %1914 }
 0x40c   : > { %6558 = vmatprep.mubr.bf16.mxu1 %v14119_v27  ;;  %17082 = vst [vmem:[#allocation19_spill] sm:$0xff] %v15925_v22  ;;  %v14124_v27 = vld [vmem:[#allocation6 + $0x338] ss:$40 sps:$4 sm:$0xff]   ;;  %7995 = vperm.xlu1 %13803, %v7709_v33   ;;  %v10348_v33 = vld [vmem:[%s16989_s5 + $0x10] sm:$0xff] }
 0x40d   : > { %8020 = vperm.xlu0 %13802, %v7714_v45   ;;  %v909_v45 = vld [vmem:[%s14930_s7 + $0x1188] sm:$0xff]  ;;  %v930_v22 = vld [vmem:[%s14930_s7 + $0x1230] sm:$0xff] }
 0x40f   : > { %v15938_v43 = vpop.permute.xlu0 %1924 }
 0x410   : > { %17084 = vst [vmem:[#allocation21_spill] sm:$0xff] %v15938_v43  ;;  %v14130_v43 = vld [vmem:[#allocation6 + $0x3d8] ss:$40 sps:$4 sm:$0xff]  }
 0x411   : > { %8030 = vperm.xlu0 %13802, %v7716_v15   ;;  %v15975_v15 = vpop.permute.xlu1 %1909 }
 0x412   : > { %4794 = vmatmul.mubr.bf16.gmra.mrb[36].mxu0 %v14121_v57  ;;  %17087 = vst [vmem:[#allocation24_spill] sm:$0xff] %v15975_v15  ;;  %v14134_v15 = vld [vmem:[#allocation6 + $0x47c] ss:$40 sps:$4 sm:$0xff]  }
 0x413   : > { %6559 = vmatmul.mubr.bf16.gmra.mrb[36].mxu1 %v14121_v57  ;;  %4803 = vmatprep.mubr.bf16.mxu0 %v14122_v3  ;;  %v1265_v57 = vpack.c.bf16 %v905_v52, %v901_v48  ;;  %v15962_v41 = vpop.permute.xlu0 %1934  ;;  %v913_v48 = vld [vmem:[%s14930_s7 + $0x11a8] sm:$0xff]  ;;  %v911_v52 = vld [vmem:[%s14930_s7 + $0x1198] sm:$0xff] }
 0x414   : > { %6568 = vmatprep.mubr.bf16.mxu1 %v14122_v3  ;;  %v902_v3 = vld [vmem:[%s14930_s7 + $0x1150] sm:$0xff]  ;;  %17086 = vst [vmem:[#allocation23_spill] sm:$0xff] %v15962_v41  ;;  %v1269_v53 = vpack.c.bf16 %v913_v48, %v909_v45  ;;  %v1271_v63 = vpack.c.bf16 %v915_v54, %v911_v52  ;;  %v921_v45 = vld [vmem:[%s14930_s7 + $0x11e8] sm:$0xff]  ;;  %v919_v48 = vld [vmem:[%s14930_s7 + $0x11d8] sm:$0xff] }
 0x415   : > { %5034 = vmatprep.subr.bf16.mxu0 %v1265_v57  ;;  %v912_v57 = vld [vmem:[%s14930_s7 + $0x11a0] sm:$0xff]  ;;  %v923_v41 = vld [vmem:[%s14930_s7 + $0x11f8] sm:$0xff]  ;;  %10412 = vperm.xlu0 %13802, %v10346_v46   ;;  %v14131_v46 = vld [vmem:[#allocation6 + $0x42c] ss:$40 sps:$4 sm:$0xff]  }
 0x416   : > { %5035 = vmatpush1.bf16.msra.mxu0 %v1264_v19  ;;  %v1268_v2 = vpack.c.bf16 %v912_v57, %v908_v0  ;;  %v914_v19 = vld [vmem:[%s14930_s7 + $0x11b0] sm:$0xff]  ;;  %v1275_v54 = vpack.c.bf16 %v923_v41, %v919_v48  ;;  %v916_v0 = vld [vmem:[%s14930_s7 + $0x11c0] sm:$0xff]  ;;  %v925_v41 = vld [vmem:[%s14930_s7 + $0x1208] sm:$0xff] }
 0x417   : > { %5036 = vmatprep.subr.bf16.mxu0 %v1269_v53  ;;  %v920_v57 = vld [vmem:[%s14930_s7 + $0x11e0] sm:$0xff]  ;;  %v918_v53 = vld [vmem:[%s14930_s7 + $0x11d0] sm:$0xff] }
 0x418   : > { %v10350_v48 = vld [vmem:[%s16989_s5 + $0x20] sm:$0xff] }
 0x419   : > { %10422 = vperm.xlu0 %13802, %v10348_v33   ;;  %v926_v33 = vld [vmem:[%s14930_s7 + $0x1210] sm:$0xff] }
 0x41a   : > { %4804 = vmatmul.mubr.bf16.gmra.mrb[40].mxu0 %v14124_v27 }
 0x41b   : > { %6569 = vmatmul.mubr.bf16.gmra.mrb[40].mxu1 %v14124_v27  ;;  %4813 = vmatprep.mubr.bf16.mxu0 %v14125_v34  ;;  %v14128_v27 = vld [vmem:[#allocation6 + $0x3dc] ss:$40 sps:$4 sm:$0xff]  }
 0x41c   : > { %6578 = vmatprep.mubr.bf16.mxu1 %v14125_v34  ;;  %v1266_v34 = vpack.c.bf16 %v906_v23, %v902_v3  ;;  %v910_v3 = vld [vmem:[%s14930_s7 + $0x1190] sm:$0xff]  ;;  %5037 = vmatpush1.bf16.msra.mxu0 %v1268_v2  ;;  %v1272_v2 = vpack.c.bf16 %v920_v57, %v916_v0 }
 0x41d   : > { %v1270_v23 = vpack.c.bf16 %v914_v19, %v910_v3  ;;  %v922_v3 = vld [vmem:[%s14930_s7 + $0x11f0] sm:$0xff]  ;;  %v929_v19 = vld [vmem:[%s14930_s7 + $0x1228] sm:$0xff]  ;;  %10432 = vperm.xlu0 %13802, %v10350_v48   ;;  %v936_v48 = vld [vmem:[%s14930_s7 + $0x1260] sm:$0xff] }
 0x41e   : > { %6800 = vmatpush1.bf16.msra.mxu1 %v1266_v34  ;;  %v917_v34 = vld [vmem:[%s14930_s7 + $0x11c8] sm:$0xff] }
 0x41f   : > { %v1273_v52 = vpack.c.bf16 %v921_v45, %v917_v34  ;;  %6801 = vmatprep.subr.bf16.mxu1 %v1271_v63  ;;  %v927_v34 = vld [vmem:[%s14930_s7 + $0x1218] sm:$0xff]  ;;  %v15996_v45 = vpop.permute.xlu1 %1919  ;;  %v14133_v0 = vld [vmem:[#allocation6 + $0x428] ss:$40 sps:$4 sm:$0xff]  }
 0x420   : > { %17089 = vst [vmem:[#allocation26_spill] sm:$0xff] %v15996_v45  ;;  %v7713_v63 = vld [vmem:[%s16988_s4 + $0x1d8] sm:$0xff] }
 0x421   : > { %5038 = vmatprep.subr.bf16.mxu0 %v1273_v52  ;;  %v1277_v52 = vpack.c.bf16 %v929_v19, %v925_v41  ;;  %v1278_v41 = vpack.c.bf16 %v930_v22, %v926_v33  ;;  %v937_v19 = vld [vmem:[%s14930_s7 + $0x1268] sm:$0xff]  ;;  %v7717_v22 = vld [vmem:[%s16988_s4 + $0x1f8] sm:$0xff] }
 0x422   : > { %4814 = vmatmul.mubr.bf16.gmra.mrb[44].mxu0 %v14127_v9  ;;  %6802 = vmatpush1.bf16.msra.mxu1 %v1270_v23  ;;  %v931_v23 = vld [vmem:[%s14930_s7 + $0x1238] sm:$0xff] }
 0x423   : > { %6579 = vmatmul.mubr.bf16.gmra.mrb[44].mxu1 %v14127_v9  ;;  %4823 = vmatprep.mubr.bf16.mxu0 %v14128_v27  ;;  %v7711_v9 = vld [vmem:[%s16988_s4 + $0x1c8] sm:$0xff]  ;;  %v1279_v45 = vpack.c.bf16 %v931_v23, %v927_v34  ;;  %v935_v34 = vld [vmem:[%s14930_s7 + $0x1258] sm:$0xff] }
 0x424   : > { %6588 = vmatprep.mubr.bf16.mxu1 %v14128_v27  ;;  %v15984_v27 = vpop.permute.xlu0 %1944  ;;  %8005 = vperm.xlu1 %13803, %v7711_v9   ;;  %v1274_v9 = vpack.c.bf16 %v922_v3, %v918_v53  ;;  %v933_v3 = vld [vmem:[%s14930_s7 + $0x1248] sm:$0xff]  ;;  %v932_v23 = vld [vmem:[%s14930_s7 + $0x1240] sm:$0xff] }
 0x425   : > { %17088 = vst [vmem:[#allocation25_spill] sm:$0xff] %v15984_v27  ;;  %6803 = vmatprep.subr.bf16.mxu1 %v1275_v54  ;;  %v924_v54 = vld [vmem:[%s14930_s7 + $0x1200] sm:$0xff]  ;;  %5039 = vmatpush1.bf16.msra.mxu0 %v1272_v2  ;;  %v16021_v2 = vpop.permute.xlu1 %1929 }
 0x426   : > { %v928_v27 = vld [vmem:[%s14930_s7 + $0x1220] sm:$0xff]  ;;  %6804 = vmatpush1.bf16.msra.mxu1 %v1274_v9  ;;  %5040 = vmatprep.subr.bf16.mxu0 %v1277_v52  ;;  %17091 = vst [vmem:[#allocation28_spill] sm:$0xff] %v16021_v2  ;;  %v1281_v9 = vpack.c.bf16 %v937_v19, %v933_v3  ;;  %v943_v52 = vld [vmem:[%s14930_s7 + $0x1298] sm:$0xff] }
 0x427   : > { %v1276_v53 = vpack.c.bf16 %v928_v27, %v924_v54  ;;  %6805 = vmatprep.subr.bf16.mxu1 %v1279_v45  ;;  %v945_v27 = vld [vmem:[%s14930_s7 + $0x12a8] sm:$0xff]  ;;  %v947_v54 = vld [vmem:[%s14930_s7 + $0x12b8] sm:$0xff] }
 0x428   : > { %v16009_v57 = vpop.permute.xlu0 %1954  ;;  %8015 = vperm.xlu1 %13803, %v7713_v63   ;;  %v939_v63 = vld [vmem:[%s14930_s7 + $0x1278] sm:$0xff]  ;;  %v1285_v3 = vpack.c.bf16 %v945_v27, %v941_v56  ;;  %v942_v56 = vld [vmem:[%s14930_s7 + $0x1290] sm:$0xff] }
 0x429   : > { %17090 = vst [vmem:[#allocation27_spill] sm:$0xff] %v16009_v57  ;;  %v934_v57 = vld [vmem:[%s14930_s7 + $0x1250] sm:$0xff]  ;;  %5041 = vmatpush1.bf16.msra.mxu0 %v1276_v53  ;;  %v10354_v45 = vld [vmem:[%s16989_s5 + $0x40] sm:$0xff] }
 0x42a   : > { %4824 = vmatmul.mubr.bf16.gmra.mrb[48].mxu0 %v14130_v43  ;;  %6806 = vmatpush1.bf16.msra.mxu1 %v1278_v41  ;;  %v1282_v53 = vpack.c.bf16 %v938_v58, %v934_v57  ;;  %v14136_v19 = vld [vmem:[#allocation6 + $0x478] ss:$40 sps:$4 sm:$0xff]   ;;  %v16039_v41 = vpop.permute.xlu1 %1939  ;;  %v10356_v58 = vld [vmem:[%s16989_s5 + $0x50] sm:$0xff] }
 0x42b   : > { %6589 = vmatmul.mubr.bf16.gmra.mrb[48].mxu1 %v14130_v43  ;;  %4833 = vmatprep.mubr.bf16.mxu0 %v14131_v46  ;;  %v7715_v43 = vld [vmem:[%s16988_s4 + $0x1e8] sm:$0xff]  ;;  %17093 = vst [vmem:[#allocation30_spill] sm:$0xff] %v16039_v41  ;;  %v954_v41 = vld [vmem:[%s14930_s7 + $0x12f0] sm:$0xff] }
 0x42c   : > { %6598 = vmatprep.mubr.bf16.mxu1 %v14131_v46  ;;  %v10352_v46 = vld [vmem:[%s16989_s5 + $0x30] sm:$0xff]  ;;  %8025 = vperm.xlu1 %13803, %v7715_v43   ;;  %v16034_v33 = vpop.permute.xlu0 %1964  ;;  %v1283_v43 = vpack.c.bf16 %v939_v63, %v935_v34  ;;  %v10347_v34 = vld [vmem:[%s16989_s5 + $0x8] sm:$0xff] }
 0x42d   : > { %10442 = vperm.xlu0 %13802, %v10352_v46   ;;  %17092 = vst [vmem:[#allocation29_spill] sm:$0xff] %v16034_v33  ;;  %v1280_v46 = vpack.c.bf16 %v936_v48, %v932_v23  ;;  %v1287_v33 = vpack.c.bf16 %v947_v54, %v943_v52  ;;  %5042 = vmatprep.subr.bf16.mxu0 %v1281_v9  ;;  %v944_v63 = vld [vmem:[%s14930_s7 + $0x12a0] sm:$0xff]  ;;  %v14137_v57 = vld [vmem:[#allocation6 + $0x4cc] ss:$40 sps:$4 sm:$0xff]   ;;  %v951_v9 = vld [vmem:[%s14930_s7 + $0x12d8] sm:$0xff] }
 0x42e   : > { %6807 = vmatprep.subr.bf16.mxu1 %v1283_v43  ;;  %v949_v23 = vld [vmem:[%s14930_s7 + $0x12c8] sm:$0xff]  ;;  %v955_v52 = vld [vmem:[%s14930_s7 + $0x12f8] sm:$0xff]  ;;  %v952_v43 = vld [vmem:[%s14930_s7 + $0x12e0] sm:$0xff] }
 0x42f   : > { %5043 = vmatpush1.bf16.msra.mxu0 %v1280_v46  ;;  %6808 = vmatpush1.bf16.msra.mxu1 %v1282_v53  ;;  %v953_v48 = vld [vmem:[%s14930_s7 + $0x12e8] sm:$0xff]  ;;  %v10349_v46 = vld [vmem:[%s16989_s5 + $0x18] sm:$0xff] }
 0x430   : > { %8035 = vperm.xlu1 %13803, %v7717_v22   ;;  %5044 = vmatprep.subr.bf16.mxu0 %v1285_v3  ;;  %v16053_v27 = vpop.permute.xlu0 %1974  ;;  %v1289_v53 = vpack.c.bf16 %v953_v48, %v949_v23  ;;  %v950_v3 = vld [vmem:[%s14930_s7 + $0x12d0] sm:$0xff]  ;;  %v957_v23 = vld [vmem:[%s14930_s7 + $0x1308] sm:$0xff] }
 0x431   : > { %10452 = vperm.xlu0 %13802, %v10354_v45   ;;  %17094 = vst [vmem:[#allocation31_spill] sm:$0xff] %v16053_v27  ;;  %6809 = vmatprep.subr.bf16.mxu1 %v1287_v33  ;;  %v948_v45 = vld [vmem:[%s14930_s7 + $0x12c0] sm:$0xff]  ;;  %v16064_v33 = vpop.permute.xlu1 %1949  ;;  %v961_v48 = vld [vmem:[%s14930_s7 + $0x1328] sm:$0xff]  ;;  %v967_v27 = vld [vmem:[%s14930_s7 + $0x1358] sm:$0xff] }
 0x432   : > { %4834 = vmatmul.mubr.bf16.gmra.mrb[52].mxu0 %v14133_v0  ;;  %17095 = vst [vmem:[#allocation32_spill] sm:$0xff] %v16064_v33  ;;  %v971_v33 = vld [vmem:[%s14930_s7 + $0x1378] sm:$0xff] }
 0x433   : > { %6599 = vmatmul.mubr.bf16.gmra.mrb[52].mxu1 %v14133_v0  ;;  %4843 = vmatprep.mubr.bf16.mxu0 %v14134_v15  ;;  %v940_v0 = vld [vmem:[%s14930_s7 + $0x1280] sm:$0xff] }
 0x434   : > { %6608 = vmatprep.mubr.bf16.mxu1 %v14134_v15  ;;  %v946_v15 = vld [vmem:[%s14930_s7 + $0x12b0] sm:$0xff]  ;;  %10417 = vperm.xlu1 %13803, %v10347_v34   ;;  %v1284_v22 = vpack.c.bf16 %v944_v63, %v940_v0  ;;  %v10358_v34 = vld [vmem:[%s16989_s5 + $0x60] sm:$0xff]  ;;  %v1291_v0 = vpack.c.bf16 %v955_v52, %v951_v9  ;;  %v16075_v9 = vpop.permute.xlu0 %1984 }
 0x435   : > { %10462 = vperm.xlu0 %13802, %v10356_v58   ;;  %v1286_v54 = vpack.c.bf16 %v946_v15, %v942_v56  ;;  %v14139_v63 = vld [vmem:[#allocation6 + $0x4c8] ss:$40 sps:$4 sm:$0xff]   ;;  %v1288_v58 = vpack.c.bf16 %v952_v43, %v948_v45  ;;  %v14140_v56 = vld [vmem:[#allocation6 + $0x51c] ss:$40 sps:$4 sm:$0xff]   ;;  %v1290_v15 = vpack.c.bf16 %v954_v41, %v950_v3  ;;  %17096 = vst [vmem:[#allocation33_spill] sm:$0xff] %v16075_v9 }
 0x436   : > { %5045 = vmatpush1.bf16.msra.mxu0 %v1284_v22  ;;  %v963_v22 = vld [vmem:[%s14930_s7 + $0x1338] sm:$0xff]  ;;  %v956_v52 = vld [vmem:[%s14930_s7 + $0x1300] sm:$0xff]  ;;  %v958_v41 = vld [vmem:[%s14930_s7 + $0x1310] sm:$0xff] }
 0x437   : > { %6810 = vmatpush1.bf16.msra.mxu1 %v1286_v54  ;;  %5046 = vmatprep.subr.bf16.mxu0 %v1289_v53  ;;  %v960_v45 = vld [vmem:[%s14930_s7 + $0x1320] sm:$0xff]  ;;  %v10360_v54 = vld [vmem:[%s16989_s5 + $0x70] sm:$0xff] }
 0x438   : > { %10427 = vperm.xlu1 %13803, %v10349_v46   ;;  %6811 = vmatprep.subr.bf16.mxu1 %v1291_v0  ;;  %v962_v43 = vld [vmem:[%s14930_s7 + $0x1330] sm:$0xff]  ;;  %v1293_v46 = vpack.c.bf16 %v961_v48, %v957_v23  ;;  %v965_v3 = vld [vmem:[%s14930_s7 + $0x1348] sm:$0xff]  ;;  %v1292_v0 = vpack.c.bf16 %v960_v45, %v956_v52  ;;  %v16098_v48 = vpop.permute.xlu0 %1994 }
 0x439   : > { %10472 = vperm.xlu0 %13802, %v10358_v34   ;;  %v969_v9 = vld [vmem:[%s14930_s7 + $0x1368] sm:$0xff]  ;;  %v16087_v34 = vpop.permute.xlu1 %1959  ;;  %v1294_v2 = vpack.c.bf16 %v962_v43, %v958_v41  ;;  %17097 = vst [vmem:[#allocation34_spill] sm:$0xff] %v16098_v48  ;;  %v975_v41 = vld [vmem:[%s14930_s7 + $0x1398] sm:$0xff]  ;;  %v972_v43 = vld [vmem:[%s14930_s7 + $0x1380] sm:$0xff] }
 0x43a   : > { %4844 = vmatmul.mubr.bf16.gmra.mrb[56].mxu0 %v14136_v19  ;;  %v1297_v23 = vpack.c.bf16 %v969_v9, %v965_v3  ;;  %v14143_v52 = vld [vmem:[#allocation6 + $0x56c] ss:$40 sps:$4 sm:$0xff]   ;;  %v1296_v9 = vpack.c.bf16 %v968_v39, %v964_v28 }
 0x43b   : > { %6609 = vmatmul.mubr.bf16.gmra.mrb[56].mxu1 %v14136_v19  ;;  %4853 = vmatprep.mubr.bf16.mxu0 %v14137_v57  ;;  %v10351_v19 = vld [vmem:[%s16989_s5 + $0x28] sm:$0xff]  ;;  %v974_v3 = vld [vmem:[%s14930_s7 + $0x1390] sm:$0xff] }
 0x43c   : > { %6618 = vmatprep.mubr.bf16.mxu1 %v14137_v57  ;;  %v959_v57 = vld [vmem:[%s14930_s7 + $0x1318] sm:$0xff]  ;;  %5047 = vmatpush1.bf16.msra.mxu0 %v1288_v58  ;;  %v978_v28 = vld [vmem:[%s14930_s7 + $0x13b0] sm:$0xff]  ;;  %v981_v39 = vld [vmem:[%s14930_s7 + $0x13c8] sm:$0xff] }
 0x43d   : > { %6812 = vmatpush1.bf16.msra.mxu1 %v1290_v15  ;;  %10437 = vperm.xlu1 %13803, %v10351_v19   ;;  %v1295_v53 = vpack.c.bf16 %v963_v22, %v959_v57  ;;  %v10353_v58 = vld [vmem:[%s16989_s5 + $0x38] sm:$0xff]  ;;  %v1299_v57 = vpack.c.bf16 %v971_v33, %v967_v27  ;;  %v16107_v33 = vpop.permute.xlu1 %1969 }
 0x43e   : > { %10482 = vperm.xlu0 %13802, %v10360_v54   ;;  %v966_v15 = vld [vmem:[%s14930_s7 + $0x1350] sm:$0xff]  ;;  %5048 = vmatprep.subr.bf16.mxu0 %v1293_v46  ;;  %v14142_v22 = vld [vmem:[#allocation6 + $0x518] ss:$40 sps:$4 sm:$0xff]   ;;  %v977_v54 = vld [vmem:[%s14930_s7 + $0x13a8] sm:$0xff]  ;;  %17098 = vst [vmem:[#allocation35_spill] sm:$0xff] %v16107_v33 }
 0x43f   : > { %v970_v19 = vld [vmem:[%s14930_s7 + $0x1370] sm:$0xff]  ;;  %6813 = vmatprep.subr.bf16.mxu1 %v1295_v53  ;;  %v979_v27 = vld [vmem:[%s14930_s7 + $0x13b8] sm:$0xff]  ;;  %v976_v46 = vld [vmem:[%s14930_s7 + $0x13a0] sm:$0xff] }
 0x440   : > { %5049 = vmatpush1.bf16.msra.mxu0 %v1292_v0  ;;  %v1298_v45 = vpack.c.bf16 %v970_v19, %v966_v15  ;;  %v985_v53 = vld [vmem:[%s14930_s7 + $0x13e8] sm:$0xff]  ;;  %v987_v15 = vld [vmem:[%s14930_s7 + $0x13f8] sm:$0xff]  ;;  %v16120_v19 = vpop.permute.xlu0 %2004 }
 0x441   : > { %6814 = vmatpush1.bf16.msra.mxu1 %v1294_v2  ;;  %10447 = vperm.xlu1 %13803, %v10353_v58   ;;  %v10355_v2 = vld [vmem:[%s16989_s5 + $0x48] sm:$0xff]  ;;  %v983_v58 = vld [vmem:[%s14930_s7 + $0x13d8] sm:$0xff]  ;;  %17099 = vst [vmem:[#allocation36_spill] sm:$0xff] %v16120_v19  ;;  %v16125_v19 = vpop.permute.xlu1 %1979 }
 0x442   : > { %4854 = vmatmul.mubr.bf16.gmra.mrb[60].mxu0 %v14139_v63  ;;  %5050 = vmatprep.subr.bf16.mxu0 %v1297_v23  ;;  %v10364_v23 = vld [vmem:[%s16989_s5 + $0x90] sm:$0xff]  ;;  %v1307_v48 = vpack.c.bf16 %v987_v15, %v983_v58  ;;  %17100 = vst [vmem:[#allocation37_spill] sm:$0xff] %v16125_v19  ;;  %v10361_v15 = vld [vmem:[%s16989_s5 + $0x78] sm:$0xff] }
 0x443   : > { %6619 = vmatmul.mubr.bf16.gmra.mrb[60].mxu1 %v14139_v63  ;;  %4863 = vmatprep.mubr.bf16.mxu0 %v14140_v56  ;;  %v10362_v63 = vld [vmem:[%s16989_s5 + $0x80] sm:$0xff] }
 0x444   : > { %6628 = vmatprep.mubr.bf16.mxu1 %v14140_v56  ;;  %v973_v56 = vld [vmem:[%s14930_s7 + $0x1388] sm:$0xff]  ;;  %10492 = vperm.xlu0 %13802, %v10362_v63   ;;  %v1303_v63 = vpack.c.bf16 %v979_v27, %v975_v41  ;;  %v980_v41 = vld [vmem:[%s14930_s7 + $0x13c0] sm:$0xff] }
 0x445   : > { %6815 = vmatprep.subr.bf16.mxu1 %v1299_v57  ;;  %5051 = vmatpush1.bf16.msra.mxu0 %v1296_v9  ;;  %v1301_v0 = vpack.c.bf16 %v977_v54, %v973_v56  ;;  %v1300_v57 = vpack.c.bf16 %v976_v46, %v972_v43  ;;  %v1302_v9 = vpack.c.bf16 %v978_v28, %v974_v3  ;;  %v14145_v54 = vld [vmem:[#allocation6 + $0x568] ss:$40 sps:$4 sm:$0xff]   ;;  %v984_v27 = vld [vmem:[%s14930_s7 + $0x13e0] sm:$0xff]  ;;  %v16137_v3 = vpop.permute.xlu0 %7720 }
 0x446   : > { %6816 = vmatpush1.bf16.msra.mxu1 %v1298_v45  ;;  %v1305_v56 = vpack.c.bf16 %v985_v53, %v981_v39  ;;  %10457 = vperm.xlu1 %13803, %v10355_v2   ;;  %v10357_v45 = vld [vmem:[%s16989_s5 + $0x58] sm:$0xff]  ;;  %17101 = vst [vmem:[#allocation38_spill] sm:$0xff] %v16137_v3  ;;  %v1304_v28 = vpack.c.bf16 %v984_v27, %v980_v41  ;;  %v10359_v53 = vld [vmem:[%s16989_s5 + $0x68] sm:$0xff]  ;;  %v16142_v2 = vpop.permute.xlu1 %1989 }
 0x447   : > { %5052 = vmatprep.subr.bf16.mxu0 %v1301_v0  ;;  %6817 = vmatprep.subr.bf16.mxu1 %v1303_v63  ;;  %v986_v43 = vld [vmem:[%s14930_s7 + $0x13f0] sm:$0xff]  ;;  %v14146_v46 = vld [vmem:[#allocation6 + $0x5bc] ss:$40 sps:$4 sm:$0xff]   ;;  %17102 = vst [vmem:[#allocation39_spill] sm:$0xff] %v16142_v2 }
 0x448   : > { %10502 = vperm.xlu0 %13802, %v10364_v23   ;;  %v10368_v0 = vld [vmem:[%s16989_s5 + $0xb0] sm:$0xff]  ;;  %v10370_v63 = vld [vmem:[%s16989_s5 + $0xc0] sm:$0xff]  ;;  %v10365_v41 = vld [vmem:[%s16989_s5 + $0x98] sm:$0xff] }
 0x449   : > { %5053 = vmatpush1.bf16.msra.mxu0 %v1300_v57  ;;  %v16147_v58 = vpop.permute.xlu0 %7730  ;;  %v14149_v23 = vld [vmem:[#allocation6 + $0x60c] ss:$40 sps:$4 sm:$0xff]   ;;  %v14152_v27 = vld [vmem:[#allocation6 + $0x65c] ss:$40 sps:$4 sm:$0xff]  }
 0x44a   : > { %4864 = vmatmul.mubr.bf16.gmra.mrb[64].mxu0 %v14142_v22  ;;  %6818 = vmatpush1.bf16.msra.mxu1 %v1302_v9  ;;  %17103 = vst [vmem:[#allocation40_spill] sm:$0xff] %v16147_v58  ;;  %v16155_v57 = vpop.permute.xlu1 %1999  ;;  %v10363_v9 = vld [vmem:[%s16989_s5 + $0x88] sm:$0xff] }
 0x44b   : > { %6629 = vmatmul.mubr.bf16.gmra.mrb[64].mxu1 %v14142_v22  ;;  %4873 = vmatprep.mubr.bf16.mxu0 %v14143_v52  ;;  %v10366_v22 = vld [vmem:[%s16989_s5 + $0xa0] sm:$0xff]  ;;  %17104 = vst [vmem:[#allocation41_spill] sm:$0xff] %v16155_v57 }
 0x44c   : > { %6638 = vmatprep.mubr.bf16.mxu1 %v14143_v52  ;;  %v982_v52 = vld [vmem:[%s14930_s7 + $0x13d0] sm:$0xff]  ;;  %5054 = vmatprep.subr.bf16.mxu0 %v1305_v56  ;;  %s16930_s7 = scalar_lea.hbm %s17196_s18, %s11896_s21 }
 0x44d   : > { %10467 = vperm.xlu1 %13803, %v10357_v45   ;;  %6819 = vmatprep.subr.bf16.mxu1 %v1307_v48  ;;  %v1306_v39 = vpack.c.bf16 %v986_v43, %v982_v52  ;;  %v14148_v48 = vld [vmem:[#allocation6 + $0x5b8] ss:$40 sps:$4 sm:$0xff]   ;;  %v10372_v56 = vld [vmem:[%s16989_s5 + $0xd0] sm:$0xff] }
 0x44e   : > { %10512 = vperm.xlu0 %13802, %v10366_v22   ;;  %5055 = vmatpush1.bf16.msra.mxu0 %v1304_v28  ;;  %v14151_v45 = vld [vmem:[#allocation6 + $0x608] ss:$40 sps:$4 sm:$0xff]   ;;  %v16168_v22 = vpop.permute.xlu1 %2009  ;;  %v10374_v52 = vld [vmem:[%s16989_s5 + $0xe0] sm:$0xff] }
 0x44f   : > { %6820 = vmatpush1.bf16.msra.mxu1 %v1306_v39  ;;  %17106 = vst [vmem:[#allocation43_spill] sm:$0xff] %v16168_v22  ;;  %v10376_v28 = vld [vmem:[%s16989_s5 + $0xf0] sm:$0xff] }
 0x451   : > { %10477 = vperm.xlu1 %13803, %v10359_v53   ;;  %v14154_v53 = vld [vmem:[#allocation6 + $0x658] ss:$40 sps:$4 sm:$0xff]  }
 0x452   : > { %4874 = vmatmul.mubr.bf16.gmra.mrb[68].mxu0 %v14145_v54  ;;  %10522 = vperm.xlu0 %13802, %v10368_v0   ;;  %v16181_v39 = vpop.permute.xlu1 %7725  ;;  %v10369_v0 = vld [vmem:[%s16989_s5 + $0xb8] sm:$0xff] }
 0x453   : > { %6639 = vmatmul.mubr.bf16.gmra.mrb[68].mxu1 %v14145_v54  ;;  %4883 = vmatprep.mubr.bf16.mxu0 %v14146_v46  ;;  %v16163_v54 = vpop.permute.xlu0 %7740  ;;  %17108 = vst [vmem:[#allocation45_spill] sm:$0xff] %v16181_v39 }
 0x454   : > { %6648 = vmatprep.mubr.bf16.mxu1 %v14146_v46  ;;  %17105 = vst [vmem:[#allocation42_spill] sm:$0xff] %v16163_v54  ;;  %v10367_v46 = vld [vmem:[%s16989_s5 + $0xa8] sm:$0xff] }
 0x455   : > { %10487 = vperm.xlu1 %13803, %v10361_v15   ;;  %v10378_v15 = vld [vmem:[%s16989_s5 + $0x100] sm:$0xff] }
 0x456   : > { %10532 = vperm.xlu0 %13802, %v10370_v63   ;;  %v10371_v63 = vld [vmem:[%s16989_s5 + $0xc8] sm:$0xff] }
 0x457   : > { %v16173_v43 = vpop.permute.xlu0 %7750 }
 0x458   : > { %17107 = vst [vmem:[#allocation44_spill] sm:$0xff] %v16173_v43  ;;  %v14272_v43 = vld [vmem:[#allocation6 + $0x8e4] ss:$40 sps:$4 sm:$0xff]  }
 0x459   : > { %10497 = vperm.xlu1 %13803, %v10363_v9   ;;  %v16194_v9 = vpop.permute.xlu1 %7735 }
 0x45a   : > { %4884 = vmatmul.mubr.bf16.gmra.mrb[72].mxu0 %v14148_v48  ;;  %10542 = vperm.xlu0 %13802, %v10372_v56   ;;  %17110 = vst [vmem:[#allocation47_spill] sm:$0xff] %v16194_v9  ;;  %v10380_v56 = vld [vmem:[%s16989_s5 + $0x110] sm:$0xff] }
 0x45b   : > { %6649 = vmatmul.mubr.bf16.gmra.mrb[72].mxu1 %v14148_v48  ;;  %4893 = vmatprep.mubr.bf16.mxu0 %v14149_v23  ;;  %v14155_v48 = vld [vmem:[#allocation6 + $0x6ac] ss:$40 sps:$4 sm:$0xff]  }
 0x45c   : > { %6658 = vmatprep.mubr.bf16.mxu1 %v14149_v23  ;;  %v16189_v23 = vpop.permute.xlu0 %7760 }
 0x45d   : > { %10507 = vperm.xlu1 %13803, %v10365_v41   ;;  %17109 = vst [vmem:[#allocation46_spill] sm:$0xff] %v16189_v23 }
 0x45e   : > { %10552 = vperm.xlu0 %13802, %v10374_v52   ;;  %v14158_v52 = vld [vmem:[#allocation6 + $0x6fc] ss:$40 sps:$4 sm:$0xff]  }
 0x460   : > { %v16199_v41 = vpop.permute.xlu0 %7770 }
 0x461   : > { %10517 = vperm.xlu1 %13803, %v10367_v46   ;;  %17111 = vst [vmem:[#allocation48_spill] sm:$0xff] %v16199_v41  ;;  %v10382_v46 = vld [vmem:[%s16989_s5 + $0x120] sm:$0xff] }
 0x462   : > { %4894 = vmatmul.mubr.bf16.gmra.mrb[76].mxu0 %v14151_v45  ;;  %10562 = vperm.xlu0 %13802, %v10376_v28   ;;  %v16207_v28 = vpop.permute.xlu1 %7745  ;;  %v14166_v41 = vld [vmem:[#allocation6 + $0x798] ss:$40 sps:$4 sm:$0xff]  }
 0x463   : > { %6659 = vmatmul.mubr.bf16.gmra.mrb[76].mxu1 %v14151_v45  ;;  %4903 = vmatprep.mubr.bf16.mxu0 %v14152_v27  ;;  %v14157_v45 = vld [vmem:[#allocation6 + $0x6a8] ss:$40 sps:$4 sm:$0xff]   ;;  %17112 = vst [vmem:[#allocation49_spill] sm:$0xff] %v16207_v28 }
 0x464   : > { %6668 = vmatprep.mubr.bf16.mxu1 %v14152_v27  ;;  %v10373_v27 = vld [vmem:[%s16989_s5 + $0xd8] sm:$0xff] }
 0x465   : > { %10527 = vperm.xlu1 %13803, %v10369_v0   ;;  %v10384_v0 = vld [vmem:[%s16989_s5 + $0x130] sm:$0xff] }
 0x466   : > { %10572 = vperm.xlu0 %13802, %v10378_v15   ;;  %v14160_v15 = vld [vmem:[#allocation6 + $0x6f8] ss:$40 sps:$4 sm:$0xff]  }
 0x469   : > { %10537 = vperm.xlu1 %13803, %v10371_v63   ;;  %v10377_v63 = vld [vmem:[%s16989_s5 + $0xf8] sm:$0xff] }
 0x46a   : > { %4904 = vmatmul.mubr.bf16.gmra.mrb[80].mxu0 %v14154_v53  ;;  %10582 = vperm.xlu0 %13802, %v10380_v56   ;;  %v14161_v56 = vld [vmem:[#allocation6 + $0x74c] ss:$40 sps:$4 sm:$0xff]  }
 0x46b   : > { %6669 = vmatmul.mubr.bf16.gmra.mrb[80].mxu1 %v14154_v53  ;;  %4913 = vmatprep.mubr.bf16.mxu0 %v14155_v48  ;;  %v10375_v53 = vld [vmem:[%s16989_s5 + $0xe8] sm:$0xff] }
 0x46c   : > { %6678 = vmatprep.mubr.bf16.mxu1 %v14155_v48  ;;  %v16215_v48 = vpop.permute.xlu0 %7780 }
 0x46d   : > { %10547 = vperm.xlu1 %13803, %v10373_v27   ;;  %17113 = vst [vmem:[#allocation50_spill] sm:$0xff] %v16215_v48  ;;  %v16220_v27 = vpop.permute.xlu1 %7755  ;;  %v14163_v48 = vld [vmem:[#allocation6 + $0x748] ss:$40 sps:$4 sm:$0xff]  }
 0x46e   : > { %10592 = vperm.xlu0 %13802, %v10382_v46   ;;  %17114 = vst [vmem:[#allocation51_spill] sm:$0xff] %v16220_v27 }
 0x470   : > { %v16225_v46 = vpop.permute.xlu0 %7790 }
 0x471   : > { %10557 = vperm.xlu1 %13803, %v10375_v53   ;;  %17115 = vst [vmem:[#allocation52_spill] sm:$0xff] %v16225_v46  ;;  %v10388_v53 = vld [vmem:[%s16989_s5 + $0x150] sm:$0xff] }
 0x472   : > { %4914 = vmatmul.mubr.bf16.gmra.mrb[84].mxu0 %v14157_v45  ;;  %10602 = vperm.xlu0 %13802, %v10384_v0   ;;  %v16233_v0 = vpop.permute.xlu1 %7765 }
 0x473   : > { %6679 = vmatmul.mubr.bf16.gmra.mrb[84].mxu1 %v14157_v45  ;;  %4923 = vmatprep.mubr.bf16.mxu0 %v14158_v52  ;;  %v10386_v45 = vld [vmem:[%s16989_s5 + $0x140] sm:$0xff]  ;;  %17116 = vst [vmem:[#allocation53_spill] sm:$0xff] %v16233_v0 }
 0x474   : > { %6688 = vmatprep.mubr.bf16.mxu1 %v14158_v52  ;;  %v10379_v52 = vld [vmem:[%s16989_s5 + $0x108] sm:$0xff]  ;;  %v16241_v46 = vpop.permute.xlu0 %7800 }
 0x475   : > { %10567 = vperm.xlu1 %13803, %v10377_v63   ;;  %v10381_v63 = vld [vmem:[%s16989_s5 + $0x118] sm:$0xff]  ;;  %17117 = vst [vmem:[#allocation54_spill] sm:$0xff] %v16241_v46 }
 0x476   : > { %10612 = vperm.xlu0 %13802, %v10386_v45   ;;  %v14164_v45 = vld [vmem:[#allocation6 + $0x79c] ss:$40 sps:$4 sm:$0xff]  }
 0x478   : > { %v16251_v0 = vpop.permute.xlu0 %7810 }
 0x479   : > { %10577 = vperm.xlu1 %13803, %v10379_v52   ;;  %v16246_v52 = vpop.permute.xlu1 %7775  ;;  %17119 = vst [vmem:[#allocation56_spill] sm:$0xff] %v16251_v0  ;;  %v14169_v0 = vld [vmem:[#allocation6 + $0x7e8] ss:$40 sps:$4 sm:$0xff]  }
 0x47a   : > { %4924 = vmatmul.mubr.bf16.gmra.mrb[88].mxu0 %v14160_v15  ;;  %10622 = vperm.xlu0 %13802, %v10388_v53   ;;  %17118 = vst [vmem:[#allocation55_spill] sm:$0xff] %v16246_v52  ;;  %v10392_v53 = vld [vmem:[%s16989_s5 + $0x170] sm:$0xff] }
 0x47b   : > { %6689 = vmatmul.mubr.bf16.gmra.mrb[88].mxu1 %v14160_v15  ;;  %4933 = vmatprep.mubr.bf16.mxu0 %v14161_v56  ;;  %v10390_v15 = vld [vmem:[%s16989_s5 + $0x160] sm:$0xff] }
 0x47c   : > { %6698 = vmatprep.mubr.bf16.mxu1 %v14161_v56  ;;  %v10383_v56 = vld [vmem:[%s16989_s5 + $0x128] sm:$0xff] }
 0x47d   : > { %10587 = vperm.xlu1 %13803, %v10381_v63   ;;  %v10385_v63 = vld [vmem:[%s16989_s5 + $0x138] sm:$0xff]  ;;  %v16259_v46 = vpop.permute.xlu1 %7785 }
 0x47e   : > { %10632 = vperm.xlu0 %13802, %v10390_v15   ;;  %v14167_v15 = vld [vmem:[#allocation6 + $0x7ec] ss:$40 sps:$4 sm:$0xff]   ;;  %17120 = vst [vmem:[#allocation57_spill] sm:$0xff] %v16259_v46 }
 0x481   : > { %10597 = vperm.xlu1 %13803, %v10383_v56   ;;  %v10396_v56 = vld [vmem:[%s16989_s5 + $0x190] sm:$0xff]  ;;  %v16272_v46 = vpop.permute.xlu1 %7795 }
 0x482   : > { %4934 = vmatmul.mubr.bf16.gmra.mrb[92].mxu0 %v14163_v48  ;;  %10642 = vperm.xlu0 %13802, %v10392_v53   ;;  %v16267_v53 = vpop.permute.xlu0 %7820  ;;  %17122 = vst [vmem:[#allocation59_spill] sm:$0xff] %v16272_v46 }
 0x483   : > { %6699 = vmatmul.mubr.bf16.gmra.mrb[92].mxu1 %v14163_v48  ;;  %4943 = vmatprep.mubr.bf16.mxu0 %v14164_v45  ;;  %v10394_v48 = vld [vmem:[%s16989_s5 + $0x180] sm:$0xff]  ;;  %17121 = vst [vmem:[#allocation58_spill] sm:$0xff] %v16267_v53 }
 0x484   : > { %6708 = vmatprep.mubr.bf16.mxu1 %v14164_v45  ;;  %v10387_v45 = vld [vmem:[%s16989_s5 + $0x148] sm:$0xff]  ;;  %v14172_v53 = vld [vmem:[#allocation6 + $0x838] ss:$40 sps:$4 sm:$0xff]  }
 0x485   : > { %10607 = vperm.xlu1 %13803, %v10385_v63   ;;  %v10389_v63 = vld [vmem:[%s16989_s5 + $0x158] sm:$0xff] }
 0x486   : > { %10652 = vperm.xlu0 %13802, %v10394_v48   ;;  %v14170_v48 = vld [vmem:[#allocation6 + $0x83c] ss:$40 sps:$4 sm:$0xff]   ;;  %v16277_v52 = vpop.permute.xlu0 %7830 }
 0x487   : > { %17123 = vst [vmem:[#allocation60_spill] sm:$0xff] %v16277_v52 }
 0x489   : > { %10617 = vperm.xlu1 %13803, %v10387_v45   ;;  %v10400_v45 = vld [vmem:[%s16989_s5 + $0x1b0] sm:$0xff] }
 0x48a   : > { %4944 = vmatmul.mubr.bf16.gmra.mrb[96].mxu0 %v14166_v41  ;;  %10662 = vperm.xlu0 %13802, %v10396_v56   ;;  %v16285_v56 = vpop.permute.xlu1 %7805  ;;  %v16293_v52 = vpop.permute.xlu0 %7840 }
 0x48b   : > { %6709 = vmatmul.mubr.bf16.gmra.mrb[96].mxu1 %v14166_v41  ;;  %4953 = vmatprep.mubr.bf16.mxu0 %v14167_v15  ;;  %v10398_v41 = vld [vmem:[%s16989_s5 + $0x1a0] sm:$0xff]  ;;  %17124 = vst [vmem:[#allocation61_spill] sm:$0xff] %v16285_v56  ;;  %17125 = vst [vmem:[#allocation62_spill] sm:$0xff] %v16293_v52  ;;  %v14175_v56 = vld [vmem:[#allocation6 + $0x888] ss:$40 sps:$4 sm:$0xff]  }
 0x48c   : > { %6718 = vmatprep.mubr.bf16.mxu1 %v14167_v15  ;;  %v10391_v15 = vld [vmem:[%s16989_s5 + $0x168] sm:$0xff] }
 0x48d   : > { %10627 = vperm.xlu1 %13803, %v10389_v63   ;;  %v10393_v63 = vld [vmem:[%s16989_s5 + $0x178] sm:$0xff] }
 0x48e   : > { %10672 = vperm.xlu0 %13802, %v10398_v41   ;;  %v14173_v41 = vld [vmem:[#allocation6 + $0x88c] ss:$40 sps:$4 sm:$0xff]   ;;  %v16303_v46 = vpop.permute.xlu0 %7850 }
 0x48f   : > { %17127 = vst [vmem:[#allocation64_spill] sm:$0xff] %v16303_v46  ;;  %v14178_v46 = vld [vmem:[#allocation6 + $0x8d8] ss:$40 sps:$4 sm:$0xff]  }
 0x491   : > { %10637 = vperm.xlu1 %13803, %v10391_v15   ;;  %v16298_v15 = vpop.permute.xlu1 %7815 }
 0x492   : > { %4954 = vmatmul.mubr.bf16.gmra.mrb[100].mxu0 %v14169_v0  ;;  %10682 = vperm.xlu0 %13802, %v10400_v45   ;;  %17126 = vst [vmem:[#allocation63_spill] sm:$0xff] %v16298_v15  ;;  %v10404_v45 = vld [vmem:[%s16989_s5 + $0x1d0] sm:$0xff]  ;;  %v11262_v15 = vld [vmem:[#allocation2] sm:$0x1] }
 0x493   : > { %6719 = vmatmul.mubr.bf16.gmra.mrb[100].mxu1 %v14169_v0  ;;  %4963 = vmatprep.mubr.bf16.mxu0 %v14170_v48  ;;  %v10402_v0 = vld [vmem:[%s16989_s5 + $0x1c0] sm:$0xff] }
 0x494   : > { %6728 = vmatprep.mubr.bf16.mxu1 %v14170_v48  ;;  %v10395_v48 = vld [vmem:[%s16989_s5 + $0x188] sm:$0xff] }
 0x495   : > { %10647 = vperm.xlu1 %13803, %v10393_v63   ;;  %v10397_v63 = vld [vmem:[%s16989_s5 + $0x198] sm:$0xff]  ;;  %v16311_v52 = vpop.permute.xlu1 %7825 }
 0x496   : > { %10692 = vperm.xlu0 %13802, %v10402_v0   ;;  %v14176_v0 = vld [vmem:[#allocation6 + $0x8dc] ss:$40 sps:$4 sm:$0xff]   ;;  %17128 = vst [vmem:[#allocation65_spill] sm:$0xff] %v16311_v52 }
 0x499   : > { %10657 = vperm.xlu1 %13803, %v10395_v48   ;;  %v10408_v48 = vld [vmem:[%s16989_s5 + $0x1f0] sm:$0xff]  ;;  %v16324_v52 = vpop.permute.xlu1 %7835 }
 0x49a   : > { %4964 = vmatmul.mubr.bf16.gmra.mrb[104].mxu0 %v14172_v53  ;;  %10702 = vperm.xlu0 %13802, %v10404_v45   ;;  %v16319_v45 = vpop.permute.xlu0 %7860  ;;  %17130 = vst [vmem:[#allocation67_spill] sm:$0xff] %v16324_v52  ;;  %v14194_v52 = vld [vmem:[#allocation6 + $0xc4] ss:$40 sps:$4 sm:$0xff]  }
 0x49b   : > { %6729 = vmatmul.mubr.bf16.gmra.mrb[104].mxu1 %v14172_v53  ;;  %4973 = vmatprep.mubr.bf16.mxu0 %v14173_v41  ;;  %v10406_v53 = vld [vmem:[%s16989_s5 + $0x1e0] sm:$0xff]  ;;  %17129 = vst [vmem:[#allocation66_spill] sm:$0xff] %v16319_v45  ;;  %v10405_v45 = vld [vmem:[%s16989_s5 + $0x1d8] sm:$0xff] }
 0x49c   : > { %6738 = vmatprep.mubr.bf16.mxu1 %v14173_v41  ;;  %v10399_v41 = vld [vmem:[%s16989_s5 + $0x1a8] sm:$0xff] }
 0x49d   : > { %10667 = vperm.xlu1 %13803, %v10397_v63   ;;  %v10401_v63 = vld [vmem:[%s16989_s5 + $0x1b8] sm:$0xff] }
 0x49e   : > { %10712 = vperm.xlu0 %13802, %v10406_v53   ;;  %v14179_v53 = vld [vmem:[#allocation6 + $0x92c] ss:$40 sps:$4 sm:$0xff]  }
 0x4a1   : > { %10677 = vperm.xlu1 %13803, %v10399_v41   ;;  %v16331_v41 = vpop.permute.xlu1 %7845 }
 0x4a2   : > { %4974 = vmatmul.mubr.bf16.gmra.mrb[108].mxu0 %v14175_v56  ;;  %10722 = vperm.xlu0 %13802, %v10408_v48   ;;  %17132 = vst [vmem:[#allocation69_spill] sm:$0xff] %v16331_v41  ;;  %v14181_v48 = vld [vmem:[#allocation6 + $0x928] ss:$40 sps:$4 sm:$0xff]  }
 0x4a3   : > { %6739 = vmatmul.mubr.bf16.gmra.mrb[108].mxu1 %v14175_v56  ;;  %4983 = vmatprep.mubr.bf16.mxu0 %v14176_v0  ;;  %v16326_v56 = vpop.permute.xlu0 %7870 }
 0x4a4   : > { %6748 = vmatprep.mubr.bf16.mxu1 %v14176_v0  ;;  %17131 = vst [vmem:[#allocation68_spill] sm:$0xff] %v16326_v56  ;;  %v10403_v0 = vld [vmem:[%s16989_s5 + $0x1c8] sm:$0xff] }
 0x4a5   : > { %10687 = vperm.xlu1 %13803, %v10401_v63   ;;  %v14182_v63 = vld [vmem:[#allocation6 + $0x97c] ss:$40 sps:$4 sm:$0xff]   ;;  %v14185_v56 = vld [vmem:[#allocation6 + $0x9cc] ss:$40 sps:$4 sm:$0xff]  }
 0x4a6   : > { %11265 = vperm.xlu0 %13802, %v11262_v15   ;;  %v10407_v15 = vld [vmem:[%s16989_s5 + $0x1e8] sm:$0xff] }
 0x4a9   : > { %10697 = vperm.xlu1 %13803, %v10403_v0   ;;  %v10409_v0 = vld [vmem:[%s16989_s5 + $0x1f8] sm:$0xff] }
 0x4aa   : > { %4984 = vmatmul.mubr.bf16.gmra.mrb[112].mxu0 %v14178_v46 }
 0x4ab   : > { %6749 = vmatmul.mubr.bf16.gmra.mrb[112].mxu1 %v14178_v46  ;;  %4993 = vmatprep.mubr.bf16.mxu0 %v14179_v53  ;;  %v16339_v46 = vpop.permute.xlu1 %7855 }
 0x4ac   : > { %6758 = vmatprep.mubr.bf16.mxu1 %v14179_v53  ;;  %17133 = vst [vmem:[#allocation70_spill] sm:$0xff] %v16339_v46  ;;  %v14184_v53 = vld [vmem:[#allocation6 + $0x978] ss:$40 sps:$4 sm:$0xff]  }
 0x4ad   : > { %10707 = vperm.xlu1 %13803, %v10405_v45   ;;  %v14187_v45 = vld [vmem:[#allocation6 + $0x9c8] ss:$40 sps:$4 sm:$0xff]  }
 0x4ae   : > { %v14193_v46 = vld [vmem:[#allocation6 + $0x70] ss:$40 sps:$4 sm:$0xff]  }
 0x4af   : > { %v16344_v41 = vpop.permute.xlu1 %7865 }
 0x4b0   : > { %17134 = vst [vmem:[#allocation71_spill] sm:$0xff] %v16344_v41 }
 0x4b1   : > { %10717 = vperm.xlu1 %13803, %v10407_v15   ;;  %v14191_v15 = vld [vmem:[#allocation6 + $0x74] ss:$40 sps:$4 sm:$0xff]  }
 0x4b2   : > { %4994 = vmatmul.mubr.bf16.gmra.mrb[116].mxu0 %v14181_v48 }
 0x4b3   : > { %6759 = vmatmul.mubr.bf16.gmra.mrb[116].mxu1 %v14181_v48  ;;  %5003 = vmatprep.mubr.bf16.mxu0 %v14182_v63  ;;  %v14190_v48 = vld [vmem:[#allocation6 + $0x24] ss:$40 sps:$4 sm:$0xff]  }
 0x4b4   : > { %6768 = vmatprep.mubr.bf16.mxu1 %v14182_v63  ;;  %v14188_v63 = vld [vmem:[#allocation6 + $0x20] ss:$40 sps:$4 sm:$0xff]  }
 0x4b5   : > { %10727 = vperm.xlu1 %13803, %v10409_v0   ;;  %v14199_v0 = vld [vmem:[#allocation6 + $0x110] ss:$40 sps:$4 sm:$0xff]  }
 0x4ba   : > { %5004 = vmatmul.mubr.bf16.gmra.mrb[120].mxu0 %v14184_v53 }
 0x4bb   : > { %6769 = vmatmul.mubr.bf16.gmra.mrb[120].mxu1 %v14184_v53  ;;  %5013 = vmatprep.mubr.bf16.mxu0 %v14185_v56  ;;  %v14196_v53 = vld [vmem:[#allocation6 + $0xc0] ss:$40 sps:$4 sm:$0xff]  }
 0x4bc   : > { %6778 = vmatprep.mubr.bf16.mxu1 %v14185_v56  ;;  %v14197_v56 = vld [vmem:[#allocation6 + $0x114] ss:$40 sps:$4 sm:$0xff]  }
 0x4c2   : > { %5014 = vmatmul.mubr.bf16.gmra.mrb[124].mxu0 %v14187_v45 }
 0x4c3   : > { %6779 = vmatmul.mubr.bf16.gmra.mrb[124].mxu1 %v14187_v45  ;;  %5056 = vmatprep.mubr.bf16.mxu0 %v14190_v48  ;;  %v14200_v45 = vld [vmem:[#allocation6 + $0x164] ss:$40 sps:$4 sm:$0xff]  }
 0x4c4   : > { %6821 = vmatprep.mubr.bf16.mxu1 %v14190_v48  ;;  %v14202_v48 = vld [vmem:[#allocation6 + $0x160] ss:$40 sps:$4 sm:$0xff]  }
 0x4ca   : > { %5057 = vmatmul.mubr.bf16.vlgmr.msra.gmra.mrb[0].mxu0 %v14188_v63 }
 0x4cb   : > { %6822 = vmatmul.mubr.bf16.vlgmr.msra.gmra.mrb[0].mxu1 %v14188_v63  ;;  %5066 = vmatprep.mubr.bf16.mxu0 %v14191_v15  ;;  %v14203_v63 = vld [vmem:[#allocation6 + $0x1b4] ss:$40 sps:$4 sm:$0xff]  }
 0x4cc   : > { %6831 = vmatprep.mubr.bf16.mxu1 %v14191_v15  ;;  %v14208_v15 = vld [vmem:[#allocation6 + $0x200] ss:$40 sps:$4 sm:$0xff]  }
 0x4d2   : > { %5067 = vmatmul.mubr.bf16.gmra.mrb[4].mxu0 %v14193_v46 }
 0x4d3   : > { %6832 = vmatmul.mubr.bf16.gmra.mrb[4].mxu1 %v14193_v46  ;;  %5076 = vmatprep.mubr.bf16.mxu0 %v14194_v52  ;;  %v14205_v46 = vld [vmem:[#allocation6 + $0x1b0] ss:$40 sps:$4 sm:$0xff]  }
 0x4d4   : > { %6841 = vmatprep.mubr.bf16.mxu1 %v14194_v52  ;;  %v14206_v52 = vld [vmem:[#allocation6 + $0x204] ss:$40 sps:$4 sm:$0xff]  }
 0x4da   : > { %5077 = vmatmul.mubr.bf16.gmra.mrb[8].mxu0 %v14196_v53 }
 0x4db   : > { %6842 = vmatmul.mubr.bf16.gmra.mrb[8].mxu1 %v14196_v53  ;;  %5086 = vmatprep.mubr.bf16.mxu0 %v14197_v56  ;;  %v14209_v53 = vld [vmem:[#allocation6 + $0x254] ss:$40 sps:$4 sm:$0xff]  }
 0x4dc   : > { %6851 = vmatprep.mubr.bf16.mxu1 %v14197_v56  ;;  %v14211_v56 = vld [vmem:[#allocation6 + $0x250] ss:$40 sps:$4 sm:$0xff]  }
 0x4e2   : > { %5087 = vmatmul.mubr.bf16.gmra.mrb[12].mxu0 %v14199_v0 }
 0x4e3   : > { %6852 = vmatmul.mubr.bf16.gmra.mrb[12].mxu1 %v14199_v0  ;;  %5096 = vmatprep.mubr.bf16.mxu0 %v14200_v45  ;;  %v14212_v0 = vld [vmem:[#allocation6 + $0x2a4] ss:$40 sps:$4 sm:$0xff]  }
 0x4e4   : > { %6861 = vmatprep.mubr.bf16.mxu1 %v14200_v45  ;;  %v14214_v45 = vld [vmem:[#allocation6 + $0x2a0] ss:$40 sps:$4 sm:$0xff]  }
 0x4ea   : > { %5097 = vmatmul.mubr.bf16.gmra.mrb[16].mxu0 %v14202_v48 }
 0x4eb   : > { %6862 = vmatmul.mubr.bf16.gmra.mrb[16].mxu1 %v14202_v48  ;;  %5106 = vmatprep.mubr.bf16.mxu0 %v14203_v63  ;;  %v14215_v48 = vld [vmem:[#allocation6 + $0x2f4] ss:$40 sps:$4 sm:$0xff]  }
 0x4ec   : > { %6871 = vmatprep.mubr.bf16.mxu1 %v14203_v63  ;;  %v14217_v63 = vld [vmem:[#allocation6 + $0x2f0] ss:$40 sps:$4 sm:$0xff]  }
 0x4f2   : > { %5107 = vmatmul.mubr.bf16.gmra.mrb[20].mxu0 %v14205_v46 }
 0x4f3   : > { %6872 = vmatmul.mubr.bf16.gmra.mrb[20].mxu1 %v14205_v46  ;;  %5116 = vmatprep.mubr.bf16.mxu0 %v14206_v52  ;;  %v14218_v46 = vld [vmem:[#allocation6 + $0x344] ss:$40 sps:$4 sm:$0xff]  }
 0x4f4   : > { %6881 = vmatprep.mubr.bf16.mxu1 %v14206_v52  ;;  %v14220_v52 = vld [vmem:[#allocation6 + $0x340] ss:$40 sps:$4 sm:$0xff]  }
 0x4fa   : > { %5117 = vmatmul.mubr.bf16.gmra.mrb[24].mxu0 %v14208_v15 }
 0x4fb   : > { %6882 = vmatmul.mubr.bf16.gmra.mrb[24].mxu1 %v14208_v15  ;;  %5126 = vmatprep.mubr.bf16.mxu0 %v14209_v53  ;;  %v14221_v15 = vld [vmem:[#allocation6 + $0x394] ss:$40 sps:$4 sm:$0xff]  }
 0x4fc   : > { %6891 = vmatprep.mubr.bf16.mxu1 %v14209_v53  ;;  %v14223_v53 = vld [vmem:[#allocation6 + $0x390] ss:$40 sps:$4 sm:$0xff]  }
 0x502   : > { %5127 = vmatmul.mubr.bf16.gmra.mrb[28].mxu0 %v14211_v56 }
 0x503   : > { %6892 = vmatmul.mubr.bf16.gmra.mrb[28].mxu1 %v14211_v56  ;;  %5136 = vmatprep.mubr.bf16.mxu0 %v14212_v0  ;;  %v14224_v56 = vld [vmem:[#allocation6 + $0x3e4] ss:$40 sps:$4 sm:$0xff]  }
 0x504   : > { %6901 = vmatprep.mubr.bf16.mxu1 %v14212_v0  ;;  %v14226_v0 = vld [vmem:[#allocation6 + $0x3e0] ss:$40 sps:$4 sm:$0xff]  }
 0x50a   : > { %5137 = vmatmul.mubr.bf16.gmra.mrb[32].mxu0 %v14214_v45 }
 0x50b   : > { %6902 = vmatmul.mubr.bf16.gmra.mrb[32].mxu1 %v14214_v45  ;;  %5146 = vmatprep.mubr.bf16.mxu0 %v14215_v48  ;;  %v14227_v45 = vld [vmem:[#allocation6 + $0x434] ss:$40 sps:$4 sm:$0xff]  }
 0x50c   : > { %6911 = vmatprep.mubr.bf16.mxu1 %v14215_v48  ;;  %v14229_v48 = vld [vmem:[#allocation6 + $0x430] ss:$40 sps:$4 sm:$0xff]  }
 0x512   : > { %5147 = vmatmul.mubr.bf16.gmra.mrb[36].mxu0 %v14217_v63 }
 0x513   : > { %6912 = vmatmul.mubr.bf16.gmra.mrb[36].mxu1 %v14217_v63  ;;  %5156 = vmatprep.mubr.bf16.mxu0 %v14218_v46  ;;  %v14230_v63 = vld [vmem:[#allocation6 + $0x484] ss:$40 sps:$4 sm:$0xff]  }
 0x514   : > { %6921 = vmatprep.mubr.bf16.mxu1 %v14218_v46  ;;  %v14232_v46 = vld [vmem:[#allocation6 + $0x480] ss:$40 sps:$4 sm:$0xff]  }
 0x51a   : > { %5157 = vmatmul.mubr.bf16.gmra.mrb[40].mxu0 %v14220_v52 }
 0x51b   : > { %6922 = vmatmul.mubr.bf16.gmra.mrb[40].mxu1 %v14220_v52  ;;  %5166 = vmatprep.mubr.bf16.mxu0 %v14221_v15  ;;  %v14233_v52 = vld [vmem:[#allocation6 + $0x4d4] ss:$40 sps:$4 sm:$0xff]  }
 0x51c   : > { %6931 = vmatprep.mubr.bf16.mxu1 %v14221_v15  ;;  %v14235_v15 = vld [vmem:[#allocation6 + $0x4d0] ss:$40 sps:$4 sm:$0xff]  }
 0x522   : > { %5167 = vmatmul.mubr.bf16.gmra.mrb[44].mxu0 %v14223_v53 }
 0x523   : > { %6932 = vmatmul.mubr.bf16.gmra.mrb[44].mxu1 %v14223_v53  ;;  %5176 = vmatprep.mubr.bf16.mxu0 %v14224_v56  ;;  %v14236_v53 = vld [vmem:[#allocation6 + $0x524] ss:$40 sps:$4 sm:$0xff]  }
 0x524   : > { %6941 = vmatprep.mubr.bf16.mxu1 %v14224_v56  ;;  %v14238_v56 = vld [vmem:[#allocation6 + $0x520] ss:$40 sps:$4 sm:$0xff]  }
 0x52a   : > { %5177 = vmatmul.mubr.bf16.gmra.mrb[48].mxu0 %v14226_v0 }
 0x52b   : > { %6942 = vmatmul.mubr.bf16.gmra.mrb[48].mxu1 %v14226_v0  ;;  %5186 = vmatprep.mubr.bf16.mxu0 %v14227_v45  ;;  %v14239_v0 = vld [vmem:[#allocation6 + $0x574] ss:$40 sps:$4 sm:$0xff]  }
 0x52c   : > { %6951 = vmatprep.mubr.bf16.mxu1 %v14227_v45  ;;  %v14241_v45 = vld [vmem:[#allocation6 + $0x570] ss:$40 sps:$4 sm:$0xff]  }
 0x532   : > { %5187 = vmatmul.mubr.bf16.gmra.mrb[52].mxu0 %v14229_v48 }
 0x533   : > { %6952 = vmatmul.mubr.bf16.gmra.mrb[52].mxu1 %v14229_v48  ;;  %5196 = vmatprep.mubr.bf16.mxu0 %v14230_v63  ;;  %v14242_v48 = vld [vmem:[#allocation6 + $0x5c4] ss:$40 sps:$4 sm:$0xff]  }
 0x534   : > { %6961 = vmatprep.mubr.bf16.mxu1 %v14230_v63  ;;  %v14244_v63 = vld [vmem:[#allocation6 + $0x5c0] ss:$40 sps:$4 sm:$0xff]  }
 0x53a   : > { %5197 = vmatmul.mubr.bf16.gmra.mrb[56].mxu0 %v14232_v46 }
 0x53b   : > { %6962 = vmatmul.mubr.bf16.gmra.mrb[56].mxu1 %v14232_v46  ;;  %5206 = vmatprep.mubr.bf16.mxu0 %v14233_v52  ;;  %v14245_v46 = vld [vmem:[#allocation6 + $0x614] ss:$40 sps:$4 sm:$0xff]  }
 0x53c   : > { %6971 = vmatprep.mubr.bf16.mxu1 %v14233_v52  ;;  %v14247_v52 = vld [vmem:[#allocation6 + $0x610] ss:$40 sps:$4 sm:$0xff]  }
 0x542   : > { %5207 = vmatmul.mubr.bf16.gmra.mrb[60].mxu0 %v14235_v15 }
 0x543   : > { %6972 = vmatmul.mubr.bf16.gmra.mrb[60].mxu1 %v14235_v15  ;;  %5216 = vmatprep.mubr.bf16.mxu0 %v14236_v53  ;;  %v14248_v15 = vld [vmem:[#allocation6 + $0x664] ss:$40 sps:$4 sm:$0xff]  }
 0x544   : > { %6981 = vmatprep.mubr.bf16.mxu1 %v14236_v53  ;;  %v14250_v53 = vld [vmem:[#allocation6 + $0x660] ss:$40 sps:$4 sm:$0xff]  }
 0x54a   : > { %5217 = vmatmul.mubr.bf16.gmra.mrb[64].mxu0 %v14238_v56 }
 0x54b   : > { %6982 = vmatmul.mubr.bf16.gmra.mrb[64].mxu1 %v14238_v56  ;;  %5226 = vmatprep.mubr.bf16.mxu0 %v14239_v0  ;;  %v14251_v56 = vld [vmem:[#allocation6 + $0x6b4] ss:$40 sps:$4 sm:$0xff]  }
 0x54c   : > { %6991 = vmatprep.mubr.bf16.mxu1 %v14239_v0  ;;  %v14253_v0 = vld [vmem:[#allocation6 + $0x6b0] ss:$40 sps:$4 sm:$0xff]  }
 0x552   : > { %5227 = vmatmul.mubr.bf16.gmra.mrb[68].mxu0 %v14241_v45 }
 0x553   : > { %6992 = vmatmul.mubr.bf16.gmra.mrb[68].mxu1 %v14241_v45  ;;  %5236 = vmatprep.mubr.bf16.mxu0 %v14242_v48  ;;  %v14254_v45 = vld [vmem:[#allocation6 + $0x704] ss:$40 sps:$4 sm:$0xff]  }
 0x554   : > { %7001 = vmatprep.mubr.bf16.mxu1 %v14242_v48  ;;  %v14256_v48 = vld [vmem:[#allocation6 + $0x700] ss:$40 sps:$4 sm:$0xff]  }
 0x55a   : > { %5237 = vmatmul.mubr.bf16.gmra.mrb[72].mxu0 %v14244_v63 }
 0x55b   : > { %7002 = vmatmul.mubr.bf16.gmra.mrb[72].mxu1 %v14244_v63  ;;  %5246 = vmatprep.mubr.bf16.mxu0 %v14245_v46  ;;  %v14257_v63 = vld [vmem:[#allocation6 + $0x754] ss:$40 sps:$4 sm:$0xff]  }
 0x55c   : > { %7011 = vmatprep.mubr.bf16.mxu1 %v14245_v46  ;;  %v14259_v46 = vld [vmem:[#allocation6 + $0x750] ss:$40 sps:$4 sm:$0xff]  }
 0x562   : > { %5247 = vmatmul.mubr.bf16.gmra.mrb[76].mxu0 %v14247_v52 }
 0x563   : > { %7012 = vmatmul.mubr.bf16.gmra.mrb[76].mxu1 %v14247_v52  ;;  %5256 = vmatprep.mubr.bf16.mxu0 %v14248_v15  ;;  %v14260_v52 = vld [vmem:[#allocation6 + $0x7a4] ss:$40 sps:$4 sm:$0xff]  }
 0x564   : > { %7021 = vmatprep.mubr.bf16.mxu1 %v14248_v15  ;;  %v14262_v15 = vld [vmem:[#allocation6 + $0x7a0] ss:$40 sps:$4 sm:$0xff]  }
 0x56a   : > { %5257 = vmatmul.mubr.bf16.gmra.mrb[80].mxu0 %v14250_v53 }
 0x56b   : > { %7022 = vmatmul.mubr.bf16.gmra.mrb[80].mxu1 %v14250_v53  ;;  %5266 = vmatprep.mubr.bf16.mxu0 %v14251_v56  ;;  %v14263_v53 = vld [vmem:[#allocation6 + $0x7f4] ss:$40 sps:$4 sm:$0xff]  }
 0x56c   : > { %7031 = vmatprep.mubr.bf16.mxu1 %v14251_v56  ;;  %v14265_v56 = vld [vmem:[#allocation6 + $0x7f0] ss:$40 sps:$4 sm:$0xff]  }
 0x572   : > { %5267 = vmatmul.mubr.bf16.gmra.mrb[84].mxu0 %v14253_v0 }
 0x573   : > { %7032 = vmatmul.mubr.bf16.gmra.mrb[84].mxu1 %v14253_v0  ;;  %5276 = vmatprep.mubr.bf16.mxu0 %v14254_v45  ;;  %v14266_v0 = vld [vmem:[#allocation6 + $0x844] ss:$40 sps:$4 sm:$0xff]  }
 0x574   : > { %7041 = vmatprep.mubr.bf16.mxu1 %v14254_v45  ;;  %v14268_v45 = vld [vmem:[#allocation6 + $0x840] ss:$40 sps:$4 sm:$0xff]  }
 0x57a   : > { %5277 = vmatmul.mubr.bf16.gmra.mrb[88].mxu0 %v14256_v48 }
 0x57b   : > { %7042 = vmatmul.mubr.bf16.gmra.mrb[88].mxu1 %v14256_v48  ;;  %5286 = vmatprep.mubr.bf16.mxu0 %v14257_v63  ;;  %v14269_v48 = vld [vmem:[#allocation6 + $0x894] ss:$40 sps:$4 sm:$0xff]  }
 0x57c   : > { %7051 = vmatprep.mubr.bf16.mxu1 %v14257_v63 }
 0x582   : > { %5287 = vmatmul.mubr.bf16.gmra.mrb[92].mxu0 %v14259_v46 }
 0x583   : > { %7052 = vmatmul.mubr.bf16.gmra.mrb[92].mxu1 %v14259_v46  ;;  %5296 = vmatprep.mubr.bf16.mxu0 %v14260_v52 }
 0x584   : > { %7061 = vmatprep.mubr.bf16.mxu1 %v14260_v52 }
 0x58a   : > { %5297 = vmatmul.mubr.bf16.gmra.mrb[96].mxu0 %v14262_v15 }
 0x58b   : > { %7062 = vmatmul.mubr.bf16.gmra.mrb[96].mxu1 %v14262_v15  ;;  %5306 = vmatprep.mubr.bf16.mxu0 %v14263_v53  ;;  %v14271_v15 = vld [vmem:[#allocation6 + $0x890] ss:$40 sps:$4 sm:$0xff]  }
 0x58c   : > { %7071 = vmatprep.mubr.bf16.mxu1 %v14263_v53 }
 0x592   : > { %5307 = vmatmul.mubr.bf16.gmra.mrb[100].mxu0 %v14265_v56 }
 0x593   : > { %7072 = vmatmul.mubr.bf16.gmra.mrb[100].mxu1 %v14265_v56  ;;  %5316 = vmatprep.mubr.bf16.mxu0 %v14266_v0 }
 0x594   : > { %7081 = vmatprep.mubr.bf16.mxu1 %v14266_v0 }
 0x59a   : > { %5317 = vmatmul.mubr.bf16.gmra.mrb[104].mxu0 %v14268_v45 }
 0x59b   : > { %7082 = vmatmul.mubr.bf16.gmra.mrb[104].mxu1 %v14268_v45  ;;  %5326 = vmatprep.mubr.bf16.mxu0 %v14269_v48 }
 0x59c   : > { %7091 = vmatprep.mubr.bf16.mxu1 %v14269_v48 }
 0x59d   : > { %v5058_v63 = vpop.f32.mrb[0].mxu0 }
 0x59e   : > { %v11899_v46 = vadd.f32 %v5058_v63, %v15623_v50  ;;  %v6823_v52 = vpop.f32.mrb[0].mxu1  ;;  %v5060_v41 = vpop.f32.mrb[1].mxu0 }
 0x59f   : > { %v12027_v53 = vadd.f32 %v6823_v52, %v15623_v50  ;;  %v11900_v23 = vadd.f32 %v5060_v41, %v15623_v50  ;;  %v6825_v27 = vpop.f32.mrb[1].mxu1  ;;  %v5062_v56 = vpop.f32.mrb[2].mxu0 }
 0x5a0   : > { %v12028_v0 = vadd.f32 %v6825_v27, %v15623_v50  ;;  %v11901_v28 = vadd.f32 %v5062_v56, %v15631_v55  ;;  %v6827_v45 = vpop.f32.mrb[2].mxu1  ;;  %v5064_v54 = vpop.f32.mrb[3].mxu0  ;;  %v7142_v58 = vmax.f32 %v11899_v46, 0.0 }
 0x5a1   : > { %v12029_v48 = vadd.f32 %v6827_v45, %v15631_v55  ;;  %v11902_v63 = vadd.f32 %v5064_v54, %v15631_v55  ;;  %v6829_v9 = vpop.f32.mrb[3].mxu1  ;;  %v7144_v41 = vmax.f32 %v12027_v53, 0.0  ;;  %v7143_v3 = vmax.f32 %v11900_v23, 0.0 }
 0x5a2   : > { %v7146_v39 = vmax.f32 %v11901_v28, 0.0  ;;  %v12030_v52 = vadd.f32 %v6829_v9, %v15631_v55  ;;  %5327 = vmatmul.mubr.bf16.gmra.mrb[108].mxu0 %v14271_v15  ;;  %v7145_v50 = vmax.f32 %v12028_v0, 0.0  ;;  %v14274_v55 = vld [vmem:[#allocation6 + $0x8e0] ss:$40 sps:$4 sm:$0xff]   ;;  %v14275_v0 = vld [vmem:[#allocation6 + $0x934] ss:$40 sps:$4 sm:$0xff]  }
 0x5a3   : > { %v7148_v22 = vmax.f32 %v12029_v48, 0.0  ;;  %v7147_v57 = vmax.f32 %v11902_v63, 0.0  ;;  %7092 = vmatmul.mubr.bf16.gmra.mrb[108].mxu1 %v14271_v15  ;;  %5336 = vmatprep.mubr.bf16.mxu0 %v14272_v43 }
 0x5a4   : > { %v7398_v27 = vpack.c.bf16 %v7146_v39, %v7142_v58  ;;  %v7149_v56 = vmax.f32 %v12030_v52, 0.0  ;;  %7101 = vmatprep.mubr.bf16.mxu1 %v14272_v43 }
 0x5a5   : > { %v7400_v2 = vpack.c.bf16 %v7148_v22, %v7144_v41  ;;  %v7399_v45 = vpack.c.bf16 %v7147_v57, %v7143_v3  ;;  %v5068_v19 = vpop.f32.mrb[4].mxu0 }
 0x5a6   : > { %v7401_v54 = vpack.c.bf16 %v7149_v56, %v7145_v50  ;;  %v11903_v46 = vadd.f32 %v5068_v19, %v15663_v7  ;;  %v6833_v28 = vpop.f32.mrb[4].mxu1  ;;  %v5070_v33 = vpop.f32.mrb[5].mxu0 }
 0x5a7   : > { %v12031_v9 = vadd.f32 %v6833_v28, %v15663_v7  ;;  %v11904_v23 = vadd.f32 %v5070_v33, %v15663_v7  ;;  %v6835_v53 = vpop.f32.mrb[5].mxu1  ;;  %v5072_v15 = vpop.f32.mrb[6].mxu0  ;;  %8678 = vmatprep.subr.bf16.mxu0 %v7399_v45 }
 0x5a8   : > { %v12032_v58 = vadd.f32 %v6835_v53, %v15663_v7  ;;  %v11905_v22 = vadd.f32 %v5072_v15, %v15676_v12  ;;  %v6837_v3 = vpop.f32.mrb[6].mxu1  ;;  %9384 = vmatprep.subr.bf16.mxu1 %v7401_v54  ;;  %v5074_v57 = vpop.f32.mrb[7].mxu0  ;;  %8679 = vmatpush1.bf16.msra.mxu0 %v7398_v27  ;;  %v7150_v48 = vmax.f32 %v11903_v46, 0.0 }
 0x5a9   : > { %v12033_v19 = vadd.f32 %v6837_v3, %v15676_v12  ;;  %v11906_v43 = vadd.f32 %v5074_v57, %v15676_v12  ;;  %v6839_v39 = vpop.f32.mrb[7].mxu1  ;;  %9385 = vmatpush1.bf16.msra.mxu1 %v7400_v2  ;;  %v7152_v52 = vmax.f32 %v12031_v9, 0.0  ;;  %v7151_v41 = vmax.f32 %v11904_v23, 0.0 }
 0x5aa   : > { %v7154_v33 = vmax.f32 %v11905_v22, 0.0  ;;  %v12034_v63 = vadd.f32 %v6839_v39, %v15676_v12  ;;  %5337 = vmatmul.mubr.bf16.gmra.mrb[112].mxu0 %v14274_v55  ;;  %v7153_v56 = vmax.f32 %v12032_v58, 0.0  ;;  %v14277_v12 = vld [vmem:[#allocation6 + $0x930] ss:$40 sps:$4 sm:$0xff]   ;;  %v14278_v58 = vld [vmem:[#allocation6 + $0x984] ss:$40 sps:$4 sm:$0xff]  }
 0x5ab   : > { %v7156_v7 = vmax.f32 %v12033_v19, 0.0  ;;  %v7155_v50 = vmax.f32 %v11906_v43, 0.0  ;;  %7102 = vmatmul.mubr.bf16.gmra.mrb[112].mxu1 %v14274_v55  ;;  %5346 = vmatprep.mubr.bf16.mxu0 %v14275_v0 }
 0x5ac   : > { %v7402_v45 = vpack.c.bf16 %v7154_v33, %v7150_v48  ;;  %v7157_v27 = vmax.f32 %v12034_v63, 0.0  ;;  %7111 = vmatprep.mubr.bf16.mxu1 %v14275_v0 }
 0x5ad   : > { %v7404_v54 = vpack.c.bf16 %v7156_v7, %v7152_v52  ;;  %v7403_v28 = vpack.c.bf16 %v7155_v50, %v7151_v41  ;;  %v5078_v53 = vpop.f32.mrb[8].mxu0 }
 0x5ae   : > { %v7405_v15 = vpack.c.bf16 %v7157_v27, %v7153_v56  ;;  %v11907_v2 = vadd.f32 %v5078_v53, %v15642_v59  ;;  %v6843_v46 = vpop.f32.mrb[8].mxu1  ;;  %v5080_v22 = vpop.f32.mrb[9].mxu0 }
 0x5af   : > { %v12035_v9 = vadd.f32 %v6843_v46, %v15642_v59  ;;  %v11908_v23 = vadd.f32 %v5080_v22, %v15642_v59  ;;  %v6845_v3 = vpop.f32.mrb[9].mxu1  ;;  %v5082_v55 = vpop.f32.mrb[10].mxu0  ;;  %8680 = vmatprep.subr.bf16.mxu0 %v7403_v28 }
 0x5b0   : > { %v12036_v57 = vadd.f32 %v6845_v3, %v15642_v59  ;;  %v11909_v0 = vadd.f32 %v5082_v55, %v15686_v18  ;;  %v6847_v19 = vpop.f32.mrb[10].mxu1  ;;  %9386 = vmatprep.subr.bf16.mxu1 %v7405_v15  ;;  %v5084_v43 = vpop.f32.mrb[11].mxu0  ;;  %8681 = vmatpush1.bf16.msra.mxu0 %v7402_v45  ;;  %v7158_v63 = vmax.f32 %v11907_v2, 0.0 }
 0x5b1   : > { %v12037_v39 = vadd.f32 %v6847_v19, %v15686_v18  ;;  %v11910_v48 = vadd.f32 %v5084_v43, %v15686_v18  ;;  %v6849_v33 = vpop.f32.mrb[11].mxu1  ;;  %9387 = vmatpush1.bf16.msra.mxu1 %v7404_v54  ;;  %v7160_v7 = vmax.f32 %v12035_v9, 0.0  ;;  %v7159_v50 = vmax.f32 %v11908_v23, 0.0 }
 0x5b2   : > { %v7162_v52 = vmax.f32 %v11909_v0, 0.0  ;;  %v12038_v41 = vadd.f32 %v6849_v33, %v15686_v18  ;;  %5347 = vmatmul.mubr.bf16.gmra.mrb[116].mxu0 %v14277_v12  ;;  %v7161_v27 = vmax.f32 %v12036_v57, 0.0  ;;  %v14280_v18 = vld [vmem:[#allocation6 + $0x980] ss:$40 sps:$4 sm:$0xff]   ;;  %v14281_v57 = vld [vmem:[#allocation6 + $0x9d4] ss:$40 sps:$4 sm:$0xff]  }
 0x5b3   : > { %v7164_v59 = vmax.f32 %v12037_v39, 0.0  ;;  %v7163_v56 = vmax.f32 %v11910_v48, 0.0  ;;  %7112 = vmatmul.mubr.bf16.gmra.mrb[116].mxu1 %v14277_v12  ;;  %5356 = vmatprep.mubr.bf16.mxu0 %v14278_v58 }
 0x5b4   : > { %v7406_v28 = vpack.c.bf16 %v7162_v52, %v7158_v63  ;;  %v7165_v45 = vmax.f32 %v12038_v41, 0.0  ;;  %7121 = vmatprep.mubr.bf16.mxu1 %v14278_v58 }
 0x5b5   : > { %v7408_v53 = vpack.c.bf16 %v7164_v59, %v7160_v7  ;;  %v7407_v15 = vpack.c.bf16 %v7163_v56, %v7159_v50  ;;  %v5088_v46 = vpop.f32.mrb[12].mxu0 }
 0x5b6   : > { %v7409_v22 = vpack.c.bf16 %v7165_v45, %v7161_v27  ;;  %v11911_v54 = vadd.f32 %v5088_v46, %v15653_v1  ;;  %v6853_v2 = vpop.f32.mrb[12].mxu1  ;;  %v5090_v3 = vpop.f32.mrb[13].mxu0 }
 0x5b7   : > { %v12039_v9 = vadd.f32 %v6853_v2, %v15653_v1  ;;  %v11912_v23 = vadd.f32 %v5090_v3, %v15653_v1  ;;  %v6855_v55 = vpop.f32.mrb[13].mxu1  ;;  %v5092_v12 = vpop.f32.mrb[14].mxu0  ;;  %8682 = vmatprep.subr.bf16.mxu0 %v7407_v15 }
 0x5b8   : > { %v12040_v0 = vadd.f32 %v6855_v55, %v15653_v1  ;;  %v11913_v58 = vadd.f32 %v5092_v12, %v15699_v25  ;;  %v6857_v19 = vpop.f32.mrb[14].mxu1  ;;  %9388 = vmatprep.subr.bf16.mxu1 %v7409_v22  ;;  %v5094_v43 = vpop.f32.mrb[15].mxu0  ;;  %8683 = vmatpush1.bf16.msra.mxu0 %v7406_v28  ;;  %v7166_v63 = vmax.f32 %v11911_v54, 0.0  ;;  %v14286_v55 = vld [vmem:[#allocation8 + $0x4] ss:$16 sps:$4 sm:$0xff]  }
 0x5b9   : > { %v12041_v39 = vadd.f32 %v6857_v19, %v15699_v25  ;;  %v11914_v48 = vadd.f32 %v5094_v43, %v15699_v25  ;;  %v6859_v33 = vpop.f32.mrb[15].mxu1  ;;  %9389 = vmatpush1.bf16.msra.mxu1 %v7408_v53  ;;  %v7168_v7 = vmax.f32 %v12039_v9, 0.0  ;;  %v7167_v50 = vmax.f32 %v11912_v23, 0.0 }
 0x5ba   : > { %v7170_v52 = vmax.f32 %v11913_v58, 0.0  ;;  %v12042_v41 = vadd.f32 %v6859_v33, %v15699_v25  ;;  %5357 = vmatmul.mubr.bf16.gmra.mrb[120].mxu0 %v14280_v18  ;;  %v7169_v56 = vmax.f32 %v12040_v0, 0.0  ;;  %v14283_v25 = vld [vmem:[#allocation6 + $0x9d0] ss:$40 sps:$4 sm:$0xff]  }
 0x5bb   : > { %v7172_v1 = vmax.f32 %v12041_v39, 0.0  ;;  %v7171_v59 = vmax.f32 %v11914_v48, 0.0  ;;  %7122 = vmatmul.mubr.bf16.gmra.mrb[120].mxu1 %v14280_v18  ;;  %5366 = vmatprep.mubr.bf16.mxu0 %v14281_v57 }
 0x5bc   : > { %v7410_v27 = vpack.c.bf16 %v7170_v52, %v7166_v63  ;;  %v7173_v28 = vmax.f32 %v12042_v41, 0.0  ;;  %7131 = vmatprep.mubr.bf16.mxu1 %v14281_v57 }
 0x5bd   : > { %v7412_v45 = vpack.c.bf16 %v7172_v1, %v7168_v7  ;;  %v7411_v15 = vpack.c.bf16 %v7171_v59, %v7167_v50  ;;  %v5098_v46 = vpop.f32.mrb[16].mxu0 }
 0x5be   : > { %v7413_v22 = vpack.c.bf16 %v7173_v28, %v7169_v56  ;;  %v11915_v53 = vadd.f32 %v5098_v46, %v15661_v6  ;;  %v6863_v54 = vpop.f32.mrb[16].mxu1  ;;  %v5100_v2 = vpop.f32.mrb[17].mxu0 }
 0x5bf   : > { %v12043_v3 = vadd.f32 %v6863_v54, %v15661_v6  ;;  %v11916_v9 = vadd.f32 %v5100_v2, %v15661_v6  ;;  %v6865_v23 = vpop.f32.mrb[17].mxu1  ;;  %v5102_v18 = vpop.f32.mrb[18].mxu0  ;;  %8684 = vmatprep.subr.bf16.mxu0 %v7411_v15 }
 0x5c0   : > { %v12044_v12 = vadd.f32 %v6865_v23, %v15661_v6  ;;  %v11917_v57 = vadd.f32 %v5102_v18, %v15709_v29  ;;  %v6867_v0 = vpop.f32.mrb[18].mxu1  ;;  %9390 = vmatprep.subr.bf16.mxu1 %v7413_v22  ;;  %v5104_v58 = vpop.f32.mrb[19].mxu0  ;;  %8685 = vmatpush1.bf16.msra.mxu0 %v7410_v27  ;;  %v7174_v48 = vmax.f32 %v11915_v53, 0.0 }
 0x5c1   : > { %v12045_v19 = vadd.f32 %v6867_v0, %v15709_v29  ;;  %v11918_v43 = vadd.f32 %v5104_v58, %v15709_v29  ;;  %v6869_v39 = vpop.f32.mrb[19].mxu1  ;;  %9391 = vmatpush1.bf16.msra.mxu1 %v7412_v45  ;;  %v7176_v52 = vmax.f32 %v12043_v3, 0.0  ;;  %v7175_v41 = vmax.f32 %v11916_v9, 0.0 }
 0x5c2   : > { %v7178_v33 = vmax.f32 %v11917_v57, 0.0  ;;  %v12046_v63 = vadd.f32 %v6869_v39, %v15709_v29  ;;  %5367 = vmatmul.mubr.bf16.gmra.mrb[124].mxu0 %v14283_v25  ;;  %v7177_v50 = vmax.f32 %v12044_v12, 0.0 }
 0x5c3   : > { %v7180_v6 = vmax.f32 %v12045_v19, 0.0  ;;  %v7179_v7 = vmax.f32 %v11918_v43, 0.0  ;;  %7132 = vmatmul.mubr.bf16.gmra.mrb[124].mxu1 %v14283_v25  ;;  %8710 = vmatprep.mubr.bf16.mxu0 %v14286_v55 }
 0x5c4   : > { %v7414_v1 = vpack.c.bf16 %v7178_v33, %v7174_v48  ;;  %v7181_v59 = vmax.f32 %v12046_v63, 0.0  ;;  %9416 = vmatprep.mubr.bf16.mxu1 %v14286_v55 }
 0x5c5   : > { %v7416_v56 = vpack.c.bf16 %v7180_v6, %v7176_v52  ;;  %v7415_v27 = vpack.c.bf16 %v7179_v7, %v7175_v41  ;;  %v5108_v28 = vpop.f32.mrb[20].mxu0 }
 0x5c6   : > { %v7417_v15 = vpack.c.bf16 %v7181_v59, %v7177_v50  ;;  %v11919_v45 = vadd.f32 %v5108_v28, %v15671_v10  ;;  %v6873_v46 = vpop.f32.mrb[20].mxu1  ;;  %v5110_v22 = vpop.f32.mrb[21].mxu0 }
 0x5c7   : > { %v12047_v29 = vadd.f32 %v6873_v46, %v15671_v10  ;;  %v11920_v53 = vadd.f32 %v5110_v22, %v15671_v10  ;;  %v6875_v54 = vpop.f32.mrb[21].mxu1  ;;  %v5112_v2 = vpop.f32.mrb[22].mxu0  ;;  %8686 = vmatprep.subr.bf16.mxu0 %v7415_v27 }
 0x5c8   : > { %v12048_v25 = vadd.f32 %v6875_v54, %v15671_v10  ;;  %v11921_v3 = vadd.f32 %v5112_v2, %v15719_v35  ;;  %v6877_v9 = vpop.f32.mrb[22].mxu1  ;;  %9392 = vmatprep.subr.bf16.mxu1 %v7417_v15  ;;  %v5114_v23 = vpop.f32.mrb[23].mxu0  ;;  %8687 = vmatpush1.bf16.msra.mxu0 %v7414_v1  ;;  %v7182_v57 = vmax.f32 %v11919_v45, 0.0 }
 0x5c9   : > { %v12049_v18 = vadd.f32 %v6877_v9, %v15719_v35  ;;  %v11922_v55 = vadd.f32 %v5114_v23, %v15719_v35  ;;  %v6879_v12 = vpop.f32.mrb[23].mxu1  ;;  %9393 = vmatpush1.bf16.msra.mxu1 %v7416_v56  ;;  %v7184_v19 = vmax.f32 %v12047_v29, 0.0  ;;  %v7183_v43 = vmax.f32 %v11920_v53, 0.0 }
 0x5ca   : > { %v7186_v0 = vmax.f32 %v11921_v3, 0.0  ;;  %v12050_v58 = vadd.f32 %v6879_v12, %v15719_v35  ;;  %v7185_v48 = vmax.f32 %v12048_v25, 0.0 }
 0x5cb   : > { %v7188_v39 = vmax.f32 %v12049_v18, 0.0  ;;  %v7187_v10 = vmax.f32 %v11922_v55, 0.0 }
 0x5cc   : > { %v7418_v33 = vpack.c.bf16 %v7186_v0, %v7182_v57  ;;  %v7189_v63 = vmax.f32 %v12050_v58, 0.0 }
 0x5cd   : > { %v7420_v52 = vpack.c.bf16 %v7188_v39, %v7184_v19  ;;  %v7419_v41 = vpack.c.bf16 %v7187_v10, %v7183_v43  ;;  %v5118_v6 = vpop.f32.mrb[24].mxu0 }
 0x5ce   : > { %v7421_v7 = vpack.c.bf16 %v7189_v63, %v7185_v48  ;;  %v11923_v50 = vadd.f32 %v5118_v6, %v15681_v16  ;;  %v6883_v1 = vpop.f32.mrb[24].mxu1  ;;  %v5120_v59 = vpop.f32.mrb[25].mxu0 }
 0x5cf   : > { %v12051_v56 = vadd.f32 %v6883_v1, %v15681_v16  ;;  %v11924_v27 = vadd.f32 %v5120_v59, %v15681_v16  ;;  %v6885_v35 = vpop.f32.mrb[25].mxu1  ;;  %v5122_v28 = vpop.f32.mrb[26].mxu0  ;;  %8688 = vmatprep.subr.bf16.mxu0 %v7419_v41 }
 0x5d0   : > { %v12052_v15 = vadd.f32 %v6885_v35, %v15681_v16  ;;  %v11925_v45 = vadd.f32 %v5122_v28, %v15739_v51  ;;  %v6887_v46 = vpop.f32.mrb[26].mxu1  ;;  %9394 = vmatprep.subr.bf16.mxu1 %v7421_v7  ;;  %v5124_v22 = vpop.f32.mrb[27].mxu0  ;;  %8689 = vmatpush1.bf16.msra.mxu0 %v7418_v33  ;;  %v7190_v2 = vmax.f32 %v11923_v50, 0.0 }
 0x5d1   : > { %v12053_v29 = vadd.f32 %v6887_v46, %v15739_v51  ;;  %v11926_v53 = vadd.f32 %v5124_v22, %v15739_v51  ;;  %v6889_v54 = vpop.f32.mrb[27].mxu1  ;;  %9395 = vmatpush1.bf16.msra.mxu1 %v7420_v52  ;;  %v7192_v9 = vmax.f32 %v12051_v56, 0.0  ;;  %v7191_v23 = vmax.f32 %v11924_v27, 0.0 }
 0x5d2   : > { %v7194_v25 = vmax.f32 %v11925_v45, 0.0  ;;  %v12054_v3 = vadd.f32 %v6889_v54, %v15739_v51  ;;  %v7193_v55 = vmax.f32 %v12052_v15, 0.0 }
 0x5d3   : > { %v7196_v18 = vmax.f32 %v12053_v29, 0.0  ;;  %v7195_v16 = vmax.f32 %v11926_v53, 0.0 }
 0x5d4   : > { %v7422_v12 = vpack.c.bf16 %v7194_v25, %v7190_v2  ;;  %v7197_v57 = vmax.f32 %v12054_v3, 0.0 }
 0x5d5   : > { %v7424_v0 = vpack.c.bf16 %v7196_v18, %v7192_v9  ;;  %v7423_v58 = vpack.c.bf16 %v7195_v16, %v7191_v23  ;;  %v5128_v19 = vpop.f32.mrb[28].mxu0 }
 0x5d6   : > { %v7425_v43 = vpack.c.bf16 %v7197_v57, %v7193_v55  ;;  %v11927_v39 = vadd.f32 %v5128_v19, %v15691_v20  ;;  %v6893_v10 = vpop.f32.mrb[28].mxu1  ;;  %v5130_v48 = vpop.f32.mrb[29].mxu0 }
 0x5d7   : > { %v12055_v33 = vadd.f32 %v6893_v10, %v15691_v20  ;;  %v11928_v63 = vadd.f32 %v5130_v48, %v15691_v20  ;;  %v6895_v51 = vpop.f32.mrb[29].mxu1  ;;  %v5132_v52 = vpop.f32.mrb[30].mxu0  ;;  %8690 = vmatprep.subr.bf16.mxu0 %v7423_v58 }
 0x5d8   : > { %v12056_v41 = vadd.f32 %v6895_v51, %v15691_v20  ;;  %v11929_v6 = vadd.f32 %v5132_v52, %v15753_v62  ;;  %v6897_v7 = vpop.f32.mrb[30].mxu1  ;;  %9396 = vmatprep.subr.bf16.mxu1 %v7425_v43  ;;  %v5134_v50 = vpop.f32.mrb[31].mxu0  ;;  %8691 = vmatpush1.bf16.msra.mxu0 %v7422_v12  ;;  %v7198_v27 = vmax.f32 %v11927_v39, 0.0 }
 0x5d9   : > { %v12057_v1 = vadd.f32 %v6897_v7, %v15753_v62  ;;  %v11930_v59 = vadd.f32 %v5134_v50, %v15753_v62  ;;  %v6899_v56 = vpop.f32.mrb[31].mxu1  ;;  %9397 = vmatpush1.bf16.msra.mxu1 %v7424_v0  ;;  %v7200_v15 = vmax.f32 %v12055_v33, 0.0  ;;  %v7199_v45 = vmax.f32 %v11928_v63, 0.0 }
 0x5da   : > { %v7202_v35 = vmax.f32 %v11929_v6, 0.0  ;;  %v12058_v28 = vadd.f32 %v6899_v56, %v15753_v62  ;;  %v7201_v22 = vmax.f32 %v12056_v41, 0.0 }
 0x5db   : > { %v7204_v46 = vmax.f32 %v12057_v1, 0.0  ;;  %v7203_v20 = vmax.f32 %v11930_v59, 0.0 }
 0x5dc   : > { %v7426_v29 = vpack.c.bf16 %v7202_v35, %v7198_v27  ;;  %v7205_v53 = vmax.f32 %v12058_v28, 0.0 }
 0x5dd   : > { %v7428_v54 = vpack.c.bf16 %v7204_v46, %v7200_v15  ;;  %v7427_v2 = vpack.c.bf16 %v7203_v20, %v7199_v45  ;;  %v5138_v25 = vpop.f32.mrb[32].mxu0 }
 0x5de   : > { %v7429_v3 = vpack.c.bf16 %v7205_v53, %v7201_v22  ;;  %v11931_v9 = vadd.f32 %v5138_v25, %v15701_v26  ;;  %v6903_v23 = vpop.f32.mrb[32].mxu1  ;;  %v5140_v18 = vpop.f32.mrb[33].mxu0 }
 0x5df   : > { %v12059_v16 = vadd.f32 %v6903_v23, %v15701_v26  ;;  %v11932_v55 = vadd.f32 %v5140_v18, %v15701_v26  ;;  %v6905_v62 = vpop.f32.mrb[33].mxu1  ;;  %v5142_v12 = vpop.f32.mrb[34].mxu0  ;;  %8692 = vmatprep.subr.bf16.mxu0 %v7427_v2 }
 0x5e0   : > { %v12060_v57 = vadd.f32 %v6905_v62, %v15701_v26  ;;  %v11933_v0 = vadd.f32 %v5142_v12, %v15761_v4  ;;  %v6907_v58 = vpop.f32.mrb[34].mxu1  ;;  %9398 = vmatprep.subr.bf16.mxu1 %v7429_v3  ;;  %v5144_v19 = vpop.f32.mrb[35].mxu0  ;;  %8693 = vmatpush1.bf16.msra.mxu0 %v7426_v29  ;;  %v7206_v48 = vmax.f32 %v11931_v9, 0.0 }
 0x5e1   : > { %v12061_v43 = vadd.f32 %v6907_v58, %v15761_v4  ;;  %v11934_v39 = vadd.f32 %v5144_v19, %v15761_v4  ;;  %v6909_v10 = vpop.f32.mrb[35].mxu1  ;;  %9399 = vmatpush1.bf16.msra.mxu1 %v7428_v54  ;;  %v7208_v51 = vmax.f32 %v12059_v16, 0.0  ;;  %v7207_v52 = vmax.f32 %v11932_v55, 0.0 }
 0x5e2   : > { %v7210_v33 = vmax.f32 %v11933_v0, 0.0  ;;  %v12062_v63 = vadd.f32 %v6909_v10, %v15761_v4  ;;  %v7209_v6 = vmax.f32 %v12060_v57, 0.0 }
 0x5e3   : > { %v7212_v41 = vmax.f32 %v12061_v43, 0.0  ;;  %v7211_v26 = vmax.f32 %v11934_v39, 0.0 }
 0x5e4   : > { %v7430_v7 = vpack.c.bf16 %v7210_v33, %v7206_v48  ;;  %v7213_v50 = vmax.f32 %v12062_v63, 0.0 }
 0x5e5   : > { %v7432_v1 = vpack.c.bf16 %v7212_v41, %v7208_v51  ;;  %v7431_v59 = vpack.c.bf16 %v7211_v26, %v7207_v52  ;;  %v5148_v56 = vpop.f32.mrb[36].mxu0 }
 0x5e6   : > { %v7433_v27 = vpack.c.bf16 %v7213_v50, %v7209_v6  ;;  %v11935_v35 = vadd.f32 %v5148_v56, %v15714_v32  ;;  %v6913_v28 = vpop.f32.mrb[36].mxu1  ;;  %v5150_v15 = vpop.f32.mrb[37].mxu0 }
 0x5e7   : > { %v12063_v45 = vadd.f32 %v6913_v28, %v15714_v32  ;;  %v11936_v46 = vadd.f32 %v5150_v15, %v15714_v32  ;;  %v6915_v4 = vpop.f32.mrb[37].mxu1  ;;  %v5152_v20 = vpop.f32.mrb[38].mxu0  ;;  %8694 = vmatprep.subr.bf16.mxu0 %v7431_v59 }
 0x5e8   : > { %v12064_v22 = vadd.f32 %v6915_v4, %v15714_v32  ;;  %v11937_v29 = vadd.f32 %v5152_v20, %v15771_v11  ;;  %v6917_v53 = vpop.f32.mrb[38].mxu1  ;;  %9400 = vmatprep.subr.bf16.mxu1 %v7433_v27  ;;  %v5154_v54 = vpop.f32.mrb[39].mxu0  ;;  %8695 = vmatpush1.bf16.msra.mxu0 %v7430_v7  ;;  %v7214_v9 = vmax.f32 %v11935_v35, 0.0 }
 0x5e9   : > { %v12065_v2 = vadd.f32 %v6917_v53, %v15771_v11  ;;  %v11938_v25 = vadd.f32 %v5154_v54, %v15771_v11  ;;  %v6919_v3 = vpop.f32.mrb[39].mxu1  ;;  %9401 = vmatpush1.bf16.msra.mxu1 %v7432_v1  ;;  %v7216_v16 = vmax.f32 %v12063_v45, 0.0  ;;  %v7215_v55 = vmax.f32 %v11936_v46, 0.0 }
 0x5ea   : > { %v7218_v23 = vmax.f32 %v11937_v29, 0.0  ;;  %v12066_v18 = vadd.f32 %v6919_v3, %v15771_v11  ;;  %v7217_v12 = vmax.f32 %v12064_v22, 0.0 }
 0x5eb   : > { %v7220_v62 = vmax.f32 %v12065_v2, 0.0  ;;  %v7219_v32 = vmax.f32 %v11938_v25, 0.0 }
 0x5ec   : > { %v7434_v57 = vpack.c.bf16 %v7218_v23, %v7214_v9  ;;  %v7221_v0 = vmax.f32 %v12066_v18, 0.0 }
 0x5ed   : > { %v7436_v58 = vpack.c.bf16 %v7220_v62, %v7216_v16  ;;  %v7435_v19 = vpack.c.bf16 %v7219_v32, %v7215_v55  ;;  %v5158_v43 = vpop.f32.mrb[40].mxu0 }
 0x5ee   : > { %v7437_v39 = vpack.c.bf16 %v7221_v0, %v7217_v12  ;;  %v11939_v10 = vadd.f32 %v5158_v43, %v15731_v40  ;;  %v6923_v48 = vpop.f32.mrb[40].mxu1  ;;  %v5160_v33 = vpop.f32.mrb[41].mxu0 }
 0x5ef   : > { %v12067_v63 = vadd.f32 %v6923_v48, %v15731_v40  ;;  %v11940_v51 = vadd.f32 %v5160_v33, %v15731_v40  ;;  %v6925_v11 = vpop.f32.mrb[41].mxu1  ;;  %v5162_v52 = vpop.f32.mrb[42].mxu0  ;;  %8696 = vmatprep.subr.bf16.mxu0 %v7435_v19 }
 0x5f0   : > { %v12068_v41 = vadd.f32 %v6925_v11, %v15731_v40  ;;  %v11941_v26 = vadd.f32 %v5162_v52, %v15789_v38  ;;  %v6927_v6 = vpop.f32.mrb[42].mxu1  ;;  %9402 = vmatprep.subr.bf16.mxu1 %v7437_v39  ;;  %v5164_v7 = vpop.f32.mrb[43].mxu0  ;;  %8697 = vmatpush1.bf16.msra.mxu0 %v7434_v57  ;;  %v7222_v56 = vmax.f32 %v11939_v10, 0.0 }
 0x5f1   : > { %v12069_v50 = vadd.f32 %v6927_v6, %v15789_v38  ;;  %v11942_v1 = vadd.f32 %v5164_v7, %v15789_v38  ;;  %v6929_v59 = vpop.f32.mrb[43].mxu1  ;;  %9403 = vmatpush1.bf16.msra.mxu1 %v7436_v58  ;;  %v7224_v28 = vmax.f32 %v12067_v63, 0.0  ;;  %v7223_v15 = vmax.f32 %v11940_v51, 0.0 }
 0x5f2   : > { %v7226_v27 = vmax.f32 %v11941_v26, 0.0  ;;  %v12070_v35 = vadd.f32 %v6929_v59, %v15789_v38  ;;  %v7225_v46 = vmax.f32 %v12068_v41, 0.0 }
 0x5f3   : > { %v7228_v45 = vmax.f32 %v12069_v50, 0.0  ;;  %v7227_v40 = vmax.f32 %v11942_v1, 0.0 }
 0x5f4   : > { %v7438_v4 = vpack.c.bf16 %v7226_v27, %v7222_v56  ;;  %v7229_v20 = vmax.f32 %v12070_v35, 0.0 }
 0x5f5   : > { %v7440_v22 = vpack.c.bf16 %v7228_v45, %v7224_v28  ;;  %v7439_v29 = vpack.c.bf16 %v7227_v40, %v7223_v15  ;;  %v5168_v53 = vpop.f32.mrb[44].mxu0 }
 0x5f6   : > { %v7441_v54 = vpack.c.bf16 %v7229_v20, %v7225_v46  ;;  %v11943_v2 = vadd.f32 %v5168_v53, %v15748_v60  ;;  %v6933_v25 = vpop.f32.mrb[44].mxu1  ;;  %v5170_v3 = vpop.f32.mrb[45].mxu0 }
 0x5f7   : > { %v12071_v9 = vadd.f32 %v6933_v25, %v15748_v60  ;;  %v11944_v23 = vadd.f32 %v5170_v3, %v15748_v60  ;;  %v6935_v38 = vpop.f32.mrb[45].mxu1  ;;  %v5172_v18 = vpop.f32.mrb[46].mxu0  ;;  %8698 = vmatprep.subr.bf16.mxu0 %v7439_v29 }
 0x5f8   : > { %v12072_v16 = vadd.f32 %v6935_v38, %v15748_v60  ;;  %v11945_v55 = vadd.f32 %v5172_v18, %v15805_v47  ;;  %v6937_v62 = vpop.f32.mrb[46].mxu1  ;;  %9404 = vmatprep.subr.bf16.mxu1 %v7441_v54  ;;  %v5174_v32 = vpop.f32.mrb[47].mxu0  ;;  %8699 = vmatpush1.bf16.msra.mxu0 %v7438_v4  ;;  %v7230_v58 = vmax.f32 %v11943_v2, 0.0 }
 0x5f9   : > { %v12073_v12 = vadd.f32 %v6937_v62, %v15805_v47  ;;  %v11946_v57 = vadd.f32 %v5174_v32, %v15805_v47  ;;  %v6939_v0 = vpop.f32.mrb[47].mxu1  ;;  %9405 = vmatpush1.bf16.msra.mxu1 %v7440_v22  ;;  %v7232_v39 = vmax.f32 %v12071_v9, 0.0  ;;  %v7231_v10 = vmax.f32 %v11944_v23, 0.0 }
 0x5fa   : > { %v7234_v19 = vmax.f32 %v11945_v55, 0.0  ;;  %v12074_v43 = vadd.f32 %v6939_v0, %v15805_v47  ;;  %v7233_v33 = vmax.f32 %v12072_v16, 0.0 }
 0x5fb   : > { %v7236_v48 = vmax.f32 %v12073_v12, 0.0  ;;  %v7235_v60 = vmax.f32 %v11946_v57, 0.0 }
 0x5fc   : > { %v7442_v63 = vpack.c.bf16 %v7234_v19, %v7230_v58  ;;  %v7237_v51 = vmax.f32 %v12074_v43, 0.0 }
 0x5fd   : > { %v7444_v11 = vpack.c.bf16 %v7236_v48, %v7232_v39  ;;  %v7443_v52 = vpack.c.bf16 %v7235_v60, %v7231_v10  ;;  %v5178_v41 = vpop.f32.mrb[48].mxu0 }
 0x5fe   : > { %v7445_v26 = vpack.c.bf16 %v7237_v51, %v7233_v33  ;;  %v11947_v6 = vadd.f32 %v5178_v41, %v15763_v5  ;;  %v6943_v7 = vpop.f32.mrb[48].mxu1  ;;  %v5180_v50 = vpop.f32.mrb[49].mxu0 }
 0x5ff   : > { %v12075_v1 = vadd.f32 %v6943_v7, %v15763_v5  ;;  %v11948_v59 = vadd.f32 %v5180_v50, %v15763_v5  ;;  %v6945_v47 = vpop.f32.mrb[49].mxu1  ;;  %v5182_v56 = vpop.f32.mrb[50].mxu0  ;;  %8700 = vmatprep.subr.bf16.mxu0 %v7443_v52 }
 0x600   : > { %v12076_v27 = vadd.f32 %v6945_v47, %v15763_v5  ;;  %v11949_v35 = vadd.f32 %v5182_v56, %v15822_v61  ;;  %v6947_v28 = vpop.f32.mrb[50].mxu1  ;;  %9406 = vmatprep.subr.bf16.mxu1 %v7445_v26  ;;  %v5184_v15 = vpop.f32.mrb[51].mxu0  ;;  %8701 = vmatpush1.bf16.msra.mxu0 %v7442_v63  ;;  %v7238_v4 = vmax.f32 %v11947_v6, 0.0 }
 0x601   : > { %v12077_v45 = vadd.f32 %v6947_v28, %v15822_v61  ;;  %v11950_v40 = vadd.f32 %v5184_v15, %v15822_v61  ;;  %v6949_v46 = vpop.f32.mrb[51].mxu1  ;;  %9407 = vmatpush1.bf16.msra.mxu1 %v7444_v11  ;;  %v7240_v29 = vmax.f32 %v12075_v1, 0.0  ;;  %v7239_v53 = vmax.f32 %v11948_v59, 0.0 }
 0x602   : > { %v7242_v20 = vmax.f32 %v11949_v35, 0.0  ;;  %v12078_v22 = vadd.f32 %v6949_v46, %v15822_v61  ;;  %v7241_v2 = vmax.f32 %v12076_v27, 0.0 }
 0x603   : > { %v7244_v54 = vmax.f32 %v12077_v45, 0.0  ;;  %v7243_v5 = vmax.f32 %v11950_v40, 0.0 }
 0x604   : > { %v7446_v25 = vpack.c.bf16 %v7242_v20, %v7238_v4  ;;  %v7245_v3 = vmax.f32 %v12078_v22, 0.0 }
 0x605   : > { %v7448_v9 = vpack.c.bf16 %v7244_v54, %v7240_v29  ;;  %v7447_v23 = vpack.c.bf16 %v7243_v5, %v7239_v53  ;;  %v5188_v38 = vpop.f32.mrb[52].mxu0 }
 0x606   : > { %v7449_v18 = vpack.c.bf16 %v7245_v3, %v7241_v2  ;;  %v11951_v16 = vadd.f32 %v5188_v38, %v15783_v30  ;;  %v6953_v55 = vpop.f32.mrb[52].mxu1  ;;  %v5190_v62 = vpop.f32.mrb[53].mxu0 }
 0x607   : > { %v12079_v32 = vadd.f32 %v6953_v55, %v15783_v30  ;;  %v11952_v12 = vadd.f32 %v5190_v62, %v15783_v30  ;;  %v6955_v61 = vpop.f32.mrb[53].mxu1  ;;  %v5192_v57 = vpop.f32.mrb[54].mxu0  ;;  %8702 = vmatprep.subr.bf16.mxu0 %v7447_v23 }
 0x608   : > { %v12080_v0 = vadd.f32 %v6955_v61, %v15783_v30  ;;  %v11953_v58 = vadd.f32 %v5192_v57, %v15839_v24  ;;  %v6957_v19 = vpop.f32.mrb[54].mxu1  ;;  %9408 = vmatprep.subr.bf16.mxu1 %v7449_v18  ;;  %v5194_v43 = vpop.f32.mrb[55].mxu0  ;;  %8703 = vmatpush1.bf16.msra.mxu0 %v7446_v25  ;;  %v7246_v60 = vmax.f32 %v11951_v16, 0.0 }
 0x609   : > { %v12081_v39 = vadd.f32 %v6957_v19, %v15839_v24  ;;  %v11954_v10 = vadd.f32 %v5194_v43, %v15839_v24  ;;  %v6959_v48 = vpop.f32.mrb[55].mxu1  ;;  %9409 = vmatpush1.bf16.msra.mxu1 %v7448_v9  ;;  %v7248_v51 = vmax.f32 %v12079_v32, 0.0  ;;  %v7247_v11 = vmax.f32 %v11952_v12, 0.0 }
 0x60a   : > { %v7250_v33 = vmax.f32 %v11953_v58, 0.0  ;;  %v12082_v63 = vadd.f32 %v6959_v48, %v15839_v24  ;;  %v7249_v41 = vmax.f32 %v12080_v0, 0.0 }
 0x60b   : > { %v7252_v52 = vmax.f32 %v12081_v39, 0.0  ;;  %v7251_v30 = vmax.f32 %v11954_v10, 0.0 }
 0x60c   : > { %v7450_v26 = vpack.c.bf16 %v7250_v33, %v7246_v60  ;;  %v7253_v6 = vmax.f32 %v12082_v63, 0.0 }
 0x60d   : > { %v7452_v7 = vpack.c.bf16 %v7252_v52, %v7248_v51  ;;  %v7451_v50 = vpack.c.bf16 %v7251_v30, %v7247_v11  ;;  %v5198_v1 = vpop.f32.mrb[56].mxu0 }
 0x60e   : > { %v7453_v59 = vpack.c.bf16 %v7253_v6, %v7249_v41  ;;  %v11955_v47 = vadd.f32 %v5198_v1, %v15797_v42  ;;  %v6963_v56 = vpop.f32.mrb[56].mxu1  ;;  %v5200_v27 = vpop.f32.mrb[57].mxu0 }
 0x60f   : > { %v12083_v35 = vadd.f32 %v6963_v56, %v15797_v42  ;;  %v11956_v28 = vadd.f32 %v5200_v27, %v15797_v42  ;;  %v6965_v24 = vpop.f32.mrb[57].mxu1  ;;  %v5202_v15 = vpop.f32.mrb[58].mxu0  ;;  %8704 = vmatprep.subr.bf16.mxu0 %v7451_v50 }
 0x610   : > { %v12084_v45 = vadd.f32 %v6965_v24, %v15797_v42  ;;  %v11957_v40 = vadd.f32 %v5202_v15, %v15849_v36  ;;  %v6967_v46 = vpop.f32.mrb[58].mxu1  ;;  %9410 = vmatprep.subr.bf16.mxu1 %v7453_v59  ;;  %v5204_v4 = vpop.f32.mrb[59].mxu0  ;;  %8705 = vmatpush1.bf16.msra.mxu0 %v7450_v26  ;;  %v7254_v53 = vmax.f32 %v11955_v47, 0.0 }
 0x611   : > { %v12085_v20 = vadd.f32 %v6967_v46, %v15849_v36  ;;  %v11958_v22 = vadd.f32 %v5204_v4, %v15849_v36  ;;  %v6969_v29 = vpop.f32.mrb[59].mxu1  ;;  %9411 = vmatpush1.bf16.msra.mxu1 %v7452_v7  ;;  %v7256_v2 = vmax.f32 %v12083_v35, 0.0  ;;  %v7255_v25 = vmax.f32 %v11956_v28, 0.0 }
 0x612   : > { %v7258_v54 = vmax.f32 %v11957_v40, 0.0  ;;  %v12086_v5 = vadd.f32 %v6969_v29, %v15849_v36  ;;  %v7257_v9 = vmax.f32 %v12084_v45, 0.0  ;;  %v14284_v45 = vld [vmem:[#allocation8] ss:$16 sps:$4 sm:$0xff]  }
 0x613   : > { %v7260_v3 = vmax.f32 %v12085_v20, 0.0  ;;  %v7259_v42 = vmax.f32 %v11958_v22, 0.0  ;;  %v14287_v22 = vld [vmem:[#allocation8 + $0x24] ss:$16 sps:$4 sm:$0xff]  }
 0x614   : > { %v7454_v23 = vpack.c.bf16 %v7258_v54, %v7254_v53  ;;  %v7261_v38 = vmax.f32 %v12086_v5, 0.0 }
 0x615   : > { %v7456_v18 = vpack.c.bf16 %v7260_v3, %v7256_v2  ;;  %v7455_v16 = vpack.c.bf16 %v7259_v42, %v7255_v25  ;;  %v5208_v55 = vpop.f32.mrb[60].mxu0 }
 0x616   : > { %v7457_v62 = vpack.c.bf16 %v7261_v38, %v7257_v9  ;;  %v11959_v32 = vadd.f32 %v5208_v55, %v15810_v49  ;;  %v6973_v12 = vpop.f32.mrb[60].mxu1  ;;  %v5210_v61 = vpop.f32.mrb[61].mxu0 }
 0x617   : > { %v12087_v57 = vadd.f32 %v6973_v12, %v15810_v49  ;;  %v11960_v0 = vadd.f32 %v5210_v61, %v15810_v49  ;;  %v6975_v36 = vpop.f32.mrb[61].mxu1  ;;  %v5212_v58 = vpop.f32.mrb[62].mxu0  ;;  %8706 = vmatprep.subr.bf16.mxu0 %v7455_v16 }
 0x618   : > { %v12088_v19 = vadd.f32 %v6975_v36, %v15810_v49  ;;  %v11961_v43 = vadd.f32 %v5212_v58, %v15873_v8  ;;  %v6977_v39 = vpop.f32.mrb[62].mxu1  ;;  %9412 = vmatprep.subr.bf16.mxu1 %v7457_v62  ;;  %v5214_v10 = vpop.f32.mrb[63].mxu0  ;;  %8707 = vmatpush1.bf16.msra.mxu0 %v7454_v23  ;;  %v7262_v63 = vmax.f32 %v11959_v32, 0.0 }
 0x619   : > { %v12089_v48 = vadd.f32 %v6977_v39, %v15873_v8  ;;  %v11962_v60 = vadd.f32 %v5214_v10, %v15873_v8  ;;  %v6979_v33 = vpop.f32.mrb[63].mxu1  ;;  %9413 = vmatpush1.bf16.msra.mxu1 %v7456_v18  ;;  %v7264_v52 = vmax.f32 %v12087_v57, 0.0  ;;  %v7263_v30 = vmax.f32 %v11960_v0, 0.0 }
 0x61a   : > { %v7266_v51 = vmax.f32 %v11961_v43, 0.0  ;;  %v12090_v11 = vadd.f32 %v6979_v33, %v15873_v8  ;;  %v7265_v26 = vmax.f32 %v12088_v19, 0.0  ;;  %v14289_v19 = vld [vmem:[#allocation8 + $0x20] ss:$16 sps:$4 sm:$0xff]  }
 0x61b   : > { %v7268_v41 = vmax.f32 %v12089_v48, 0.0  ;;  %v7267_v49 = vmax.f32 %v11962_v60, 0.0  ;;  %v14290_v60 = vld [vmem:[#allocation8 + $0x44] ss:$16 sps:$4 sm:$0xff]  }
 0x61c   : > { %v7458_v6 = vpack.c.bf16 %v7266_v51, %v7262_v63  ;;  %v7269_v7 = vmax.f32 %v12090_v11, 0.0 }
 0x61d   : > { %v7460_v50 = vpack.c.bf16 %v7268_v41, %v7264_v52  ;;  %v7459_v1 = vpack.c.bf16 %v7267_v49, %v7263_v30  ;;  %v5218_v59 = vpop.f32.mrb[64].mxu0 }
 0x61e   : > { %v7461_v47 = vpack.c.bf16 %v7269_v7, %v7265_v26  ;;  %v11963_v56 = vadd.f32 %v5218_v59, %v15831_v21  ;;  %v6983_v27 = vpop.f32.mrb[64].mxu1  ;;  %v5220_v35 = vpop.f32.mrb[65].mxu0 }
 0x61f   : > { %v12091_v28 = vadd.f32 %v6983_v27, %v15831_v21  ;;  %v11964_v24 = vadd.f32 %v5220_v35, %v15831_v21  ;;  %v6985_v8 = vpop.f32.mrb[65].mxu1  ;;  %v5222_v15 = vpop.f32.mrb[66].mxu0  ;;  %8708 = vmatprep.subr.bf16.mxu0 %v7459_v1 }
 0x620   : > { %v12092_v40 = vadd.f32 %v6985_v8, %v15831_v21  ;;  %v11965_v46 = vadd.f32 %v5222_v15, %v15883_v17  ;;  %v6987_v4 = vpop.f32.mrb[66].mxu1  ;;  %9414 = vmatprep.subr.bf16.mxu1 %v7461_v47  ;;  %v5224_v20 = vpop.f32.mrb[67].mxu0  ;;  %8709 = vmatpush1.bf16.msra.mxu0 %v7458_v6  ;;  %v7270_v5 = vmax.f32 %v11963_v56, 0.0 }
 0x621   : > { %v12093_v29 = vadd.f32 %v6987_v4, %v15883_v17  ;;  %v11966_v53 = vadd.f32 %v5224_v20, %v15883_v17  ;;  %v6989_v54 = vpop.f32.mrb[67].mxu1  ;;  %9415 = vmatpush1.bf16.msra.mxu1 %v7460_v50  ;;  %v7272_v3 = vmax.f32 %v12091_v28, 0.0  ;;  %v7271_v42 = vmax.f32 %v11964_v24, 0.0 }
 0x622   : > { %v7274_v2 = vmax.f32 %v11965_v46, 0.0  ;;  %v12094_v25 = vadd.f32 %v6989_v54, %v15883_v17  ;;  %v7273_v23 = vmax.f32 %v12092_v40, 0.0 }
 0x623   : > { %v7276_v21 = vmax.f32 %v12093_v29, 0.0  ;;  %v7275_v9 = vmax.f32 %v11966_v53, 0.0  ;;  %8711 = vmatmul.mubr.bf16.vlgmr.msra.gmra.mrb[128].mxu0 %v14284_v45 }
 0x624   : > { %v7462_v38 = vpack.c.bf16 %v7274_v2, %v7270_v5  ;;  %v7277_v18 = vmax.f32 %v12094_v25, 0.0  ;;  %9417 = vmatmul.mubr.bf16.vlgmr.msra.gmra.mrb[128].mxu1 %v14284_v45  ;;  %8720 = vmatprep.mubr.bf16.mxu0 %v14287_v22  ;;  %v14292_v45 = vld [vmem:[#allocation8 + $0x40] ss:$16 sps:$4 sm:$0xff]  }
 0x625   : > { %v7464_v16 = vpack.c.bf16 %v7276_v21, %v7272_v3  ;;  %v7463_v55 = vpack.c.bf16 %v7275_v9, %v7271_v42  ;;  %v5228_v62 = vpop.f32.mrb[68].mxu0  ;;  %9426 = vmatprep.mubr.bf16.mxu1 %v14287_v22  ;;  %v14293_v22 = vld [vmem:[#allocation8 + $0x64] ss:$16 sps:$4 sm:$0xff]  }
 0x626   : > { %v7465_v32 = vpack.c.bf16 %v7277_v18, %v7273_v23  ;;  %v11967_v12 = vadd.f32 %v5228_v62, %v15844_v31  ;;  %v6993_v61 = vpop.f32.mrb[68].mxu1  ;;  %v5230_v57 = vpop.f32.mrb[69].mxu0 }
 0x627   : > { %v12095_v17 = vadd.f32 %v6993_v61, %v15844_v31  ;;  %v11968_v0 = vadd.f32 %v5230_v57, %v15844_v31  ;;  %v6995_v36 = vpop.f32.mrb[69].mxu1  ;;  %v5232_v58 = vpop.f32.mrb[70].mxu0  ;;  %9031 = vmatprep.subr.bf16.mxu0 %v7463_v55 }
 0x628   : > { %v12096_v43 = vadd.f32 %v6995_v36, %v15844_v31  ;;  %v11969_v39 = vadd.f32 %v5232_v58, %v15899_v37  ;;  %v6997_v10 = vpop.f32.mrb[70].mxu1  ;;  %9737 = vmatprep.subr.bf16.mxu1 %v7465_v32  ;;  %v5234_v48 = vpop.f32.mrb[71].mxu0  ;;  %9032 = vmatpush1.bf16.msra.mxu0 %v7462_v38  ;;  %v7278_v11 = vmax.f32 %v11967_v12, 0.0  ;;  %v14295_v36 = vld [vmem:[#allocation8 + $0x60] ss:$16 sps:$4 sm:$0xff]  }
 0x629   : > { %v12097_v33 = vadd.f32 %v6997_v10, %v15899_v37  ;;  %v11970_v63 = vadd.f32 %v5234_v48, %v15899_v37  ;;  %v6999_v51 = vpop.f32.mrb[71].mxu1  ;;  %9738 = vmatpush1.bf16.msra.mxu1 %v7464_v16  ;;  %v7280_v41 = vmax.f32 %v12095_v17, 0.0  ;;  %v7279_v49 = vmax.f32 %v11968_v0, 0.0  ;;  %v14296_v48 = vld [vmem:[#allocation8 + $0x84] ss:$16 sps:$4 sm:$0xff]  }
 0x62a   : > { %v7282_v52 = vmax.f32 %v11969_v39, 0.0  ;;  %v12098_v30 = vadd.f32 %v6999_v51, %v15899_v37  ;;  %v7281_v6 = vmax.f32 %v12096_v43, 0.0 }
 0x62b   : > { %v7284_v31 = vmax.f32 %v12097_v33, 0.0  ;;  %v7283_v26 = vmax.f32 %v11970_v63, 0.0  ;;  %8721 = vmatmul.mubr.bf16.gmra.mrb[132].mxu0 %v14289_v19 }
 0x62c   : > { %v7466_v7 = vpack.c.bf16 %v7282_v52, %v7278_v11  ;;  %v7285_v50 = vmax.f32 %v12098_v30, 0.0  ;;  %9427 = vmatmul.mubr.bf16.gmra.mrb[132].mxu1 %v14289_v19  ;;  %8730 = vmatprep.mubr.bf16.mxu0 %v14290_v60  ;;  %v17135_v19 = vld [vmem:[#allocation20_spill] sm:$0xff] }
 0x62d   : > { %v7468_v1 = vpack.c.bf16 %v7284_v31, %v7280_v41  ;;  %v7467_v59 = vpack.c.bf16 %v7283_v26, %v7279_v49  ;;  %v5238_v47 = vpop.f32.mrb[72].mxu0  ;;  %9436 = vmatprep.mubr.bf16.mxu1 %v14290_v60 }
 0x62e   : > { %v7469_v56 = vpack.c.bf16 %v7285_v50, %v7281_v6  ;;  %v11971_v27 = vadd.f32 %v5238_v47, %v15861_v44  ;;  %v7003_v35 = vpop.f32.mrb[72].mxu1  ;;  %v5240_v28 = vpop.f32.mrb[73].mxu0  ;;  %v17136_v47 = vld [vmem:[#allocation17_spill] sm:$0xff] }
 0x62f   : > { %v12099_v37 = vadd.f32 %v7003_v35, %v15861_v44  ;;  %v11972_v24 = vadd.f32 %v5240_v28, %v15861_v44  ;;  %v7005_v8 = vpop.f32.mrb[73].mxu1  ;;  %v5242_v15 = vpop.f32.mrb[74].mxu0  ;;  %9033 = vmatprep.subr.bf16.mxu0 %v7467_v59 }
 0x630   : > { %v12100_v40 = vadd.f32 %v7005_v8, %v15861_v44  ;;  %v11973_v46 = vadd.f32 %v5242_v15, %v15917_v13  ;;  %v7007_v4 = vpop.f32.mrb[74].mxu1  ;;  %9739 = vmatprep.subr.bf16.mxu1 %v7469_v56  ;;  %v5244_v20 = vpop.f32.mrb[75].mxu0  ;;  %9034 = vmatpush1.bf16.msra.mxu0 %v7466_v7  ;;  %v7286_v5 = vmax.f32 %v11971_v27, 0.0  ;;  %v14298_v15 = vld [vmem:[#allocation8 + $0x80] ss:$16 sps:$4 sm:$0xff]  }
 0x631   : > { %v12101_v29 = vadd.f32 %v7007_v4, %v15917_v13  ;;  %v11974_v53 = vadd.f32 %v5244_v20, %v15917_v13  ;;  %v7009_v54 = vpop.f32.mrb[75].mxu1  ;;  %9740 = vmatpush1.bf16.msra.mxu1 %v7468_v1  ;;  %v7288_v3 = vmax.f32 %v12099_v37, 0.0  ;;  %v7287_v42 = vmax.f32 %v11972_v24, 0.0 }
 0x632   : > { %v7290_v2 = vmax.f32 %v11973_v46, 0.0  ;;  %v12102_v25 = vadd.f32 %v7009_v54, %v15917_v13  ;;  %v7289_v9 = vmax.f32 %v12100_v40, 0.0  ;;  %v17137_v40 = vld [vmem:[#allocation22_spill] sm:$0xff] }
 0x633   : > { %v7292_v44 = vmax.f32 %v12101_v29, 0.0  ;;  %v7291_v21 = vmax.f32 %v11974_v53, 0.0  ;;  %8731 = vmatmul.mubr.bf16.gmra.mrb[136].mxu0 %v14292_v45 }
 0x634   : > { %v7470_v23 = vpack.c.bf16 %v7290_v2, %v7286_v5  ;;  %v7293_v38 = vmax.f32 %v12102_v25, 0.0  ;;  %9437 = vmatmul.mubr.bf16.gmra.mrb[136].mxu1 %v14292_v45  ;;  %8740 = vmatprep.mubr.bf16.mxu0 %v14293_v22 }
 0x635   : > { %v7472_v18 = vpack.c.bf16 %v7292_v44, %v7288_v3  ;;  %v7471_v16 = vpack.c.bf16 %v7291_v21, %v7287_v42  ;;  %v5248_v55 = vpop.f32.mrb[76].mxu0  ;;  %9446 = vmatprep.mubr.bf16.mxu1 %v14293_v22  ;;  %v14299_v22 = vld [vmem:[#allocation8 + $0xa4] ss:$16 sps:$4 sm:$0xff]  }
 0x636   : > { %v7473_v62 = vpack.c.bf16 %v7293_v38, %v7289_v9  ;;  %v11975_v32 = vadd.f32 %v5248_v55, %v15878_v14  ;;  %v7013_v12 = vpop.f32.mrb[76].mxu1  ;;  %v5250_v61 = vpop.f32.mrb[77].mxu0 }
 0x637   : > { %v12103_v13 = vadd.f32 %v7013_v12, %v15878_v14  ;;  %v11976_v57 = vadd.f32 %v5250_v61, %v15878_v14  ;;  %v7015_v17 = vpop.f32.mrb[77].mxu1  ;;  %v5252_v0 = vpop.f32.mrb[78].mxu0  ;;  %9035 = vmatprep.subr.bf16.mxu0 %v7471_v16 }
 0x638   : > { %v12104_v58 = vadd.f32 %v7015_v17, %v15878_v14  ;;  %v11977_v43 = vadd.f32 %v5252_v0, %v17135_v19  ;;  %v7017_v39 = vpop.f32.mrb[78].mxu1  ;;  %9741 = vmatprep.subr.bf16.mxu1 %v7473_v62  ;;  %v5254_v10 = vpop.f32.mrb[79].mxu0  ;;  %9036 = vmatpush1.bf16.msra.mxu0 %v7470_v23  ;;  %v7294_v51 = vmax.f32 %v11975_v32, 0.0  ;;  %v17138_v32 = vld [vmem:[#allocation18_spill] sm:$0xff] }
 0x639   : > { %v12105_v60 = vadd.f32 %v7017_v39, %v17135_v19  ;;  %v11978_v33 = vadd.f32 %v5254_v10, %v17135_v19  ;;  %v7019_v63 = vpop.f32.mrb[79].mxu1  ;;  %9742 = vmatpush1.bf16.msra.mxu1 %v7472_v18  ;;  %v7296_v30 = vmax.f32 %v12103_v13, 0.0  ;;  %v7295_v41 = vmax.f32 %v11976_v57, 0.0 }
 0x63a   : > { %v7298_v11 = vmax.f32 %v11977_v43, 0.0  ;;  %v12106_v52 = vadd.f32 %v7019_v63, %v17135_v19  ;;  %v7297_v31 = vmax.f32 %v12104_v58, 0.0  ;;  %v14301_v58 = vld [vmem:[#allocation8 + $0xa0] ss:$16 sps:$4 sm:$0xff]  }
 0x63b   : > { %v7300_v14 = vmax.f32 %v12105_v60, 0.0  ;;  %v7299_v49 = vmax.f32 %v11978_v33, 0.0  ;;  %8741 = vmatmul.mubr.bf16.gmra.mrb[140].mxu0 %v14295_v36  ;;  %v17139_v43 = vld [vmem:[#allocation24_spill] sm:$0xff] }
 0x63c   : > { %v7474_v26 = vpack.c.bf16 %v7298_v11, %v7294_v51  ;;  %v7301_v6 = vmax.f32 %v12106_v52, 0.0  ;;  %9447 = vmatmul.mubr.bf16.gmra.mrb[140].mxu1 %v14295_v36  ;;  %8750 = vmatprep.mubr.bf16.mxu0 %v14296_v48  ;;  %v14302_v60 = vld [vmem:[#allocation8 + $0xc4] ss:$16 sps:$4 sm:$0xff]  }
 0x63d   : > { %v7476_v7 = vpack.c.bf16 %v7300_v14, %v7296_v30  ;;  %v7475_v50 = vpack.c.bf16 %v7299_v49, %v7295_v41  ;;  %v5258_v1 = vpop.f32.mrb[80].mxu0  ;;  %9456 = vmatprep.mubr.bf16.mxu1 %v14296_v48 }
 0x63e   : > { %v7477_v59 = vpack.c.bf16 %v7301_v6, %v7297_v31  ;;  %v11979_v56 = vadd.f32 %v5258_v1, %v17136_v47  ;;  %v7023_v27 = vpop.f32.mrb[80].mxu1  ;;  %v5260_v35 = vpop.f32.mrb[81].mxu0 }
 0x63f   : > { %v12107_v28 = vadd.f32 %v7023_v27, %v17136_v47  ;;  %v11980_v37 = vadd.f32 %v5260_v35, %v17136_v47  ;;  %v7025_v24 = vpop.f32.mrb[81].mxu1  ;;  %v5262_v8 = vpop.f32.mrb[82].mxu0  ;;  %9037 = vmatprep.subr.bf16.mxu0 %v7475_v50 }
 0x640   : > { %v12108_v45 = vadd.f32 %v7025_v24, %v17136_v47  ;;  %v11981_v46 = vadd.f32 %v5262_v8, %v17137_v40  ;;  %v7027_v4 = vpop.f32.mrb[82].mxu1  ;;  %9743 = vmatprep.subr.bf16.mxu1 %v7477_v59  ;;  %v5264_v20 = vpop.f32.mrb[83].mxu0  ;;  %9038 = vmatpush1.bf16.msra.mxu0 %v7474_v26  ;;  %v7302_v5 = vmax.f32 %v11979_v56, 0.0  ;;  %v17140_v56 = vld [vmem:[#allocation19_spill] sm:$0xff] }
 0x641   : > { %v12109_v29 = vadd.f32 %v7027_v4, %v17137_v40  ;;  %v11982_v53 = vadd.f32 %v5264_v20, %v17137_v40  ;;  %v7029_v54 = vpop.f32.mrb[83].mxu1  ;;  %9744 = vmatpush1.bf16.msra.mxu1 %v7476_v7  ;;  %v7304_v3 = vmax.f32 %v12107_v28, 0.0  ;;  %v7303_v42 = vmax.f32 %v11980_v37, 0.0 }
 0x642   : > { %v7306_v2 = vmax.f32 %v11981_v46, 0.0  ;;  %v12110_v25 = vadd.f32 %v7029_v54, %v17137_v40  ;;  %v7305_v9 = vmax.f32 %v12108_v45, 0.0  ;;  %v14304_v45 = vld [vmem:[#allocation8 + $0xc0] ss:$16 sps:$4 sm:$0xff]  }
 0x643   : > { %v7308_v44 = vmax.f32 %v12109_v29, 0.0  ;;  %v7307_v21 = vmax.f32 %v11982_v53, 0.0  ;;  %8751 = vmatmul.mubr.bf16.gmra.mrb[144].mxu0 %v14298_v15  ;;  %v17141_v46 = vld [vmem:[#allocation26_spill] sm:$0xff] }
 0x644   : > { %v7478_v23 = vpack.c.bf16 %v7306_v2, %v7302_v5  ;;  %v7309_v38 = vmax.f32 %v12110_v25, 0.0  ;;  %9457 = vmatmul.mubr.bf16.gmra.mrb[144].mxu1 %v14298_v15  ;;  %8760 = vmatprep.mubr.bf16.mxu0 %v14299_v22  ;;  %v14305_v29 = vld [vmem:[#allocation8 + $0xe4] ss:$16 sps:$4 sm:$0xff]  }
 0x645   : > { %v7480_v18 = vpack.c.bf16 %v7308_v44, %v7304_v3  ;;  %v7479_v16 = vpack.c.bf16 %v7307_v21, %v7303_v42  ;;  %v5268_v55 = vpop.f32.mrb[84].mxu0  ;;  %9466 = vmatprep.mubr.bf16.mxu1 %v14299_v22 }
 0x646   : > { %v7481_v62 = vpack.c.bf16 %v7309_v38, %v7305_v9  ;;  %v11983_v12 = vadd.f32 %v5268_v55, %v17138_v32  ;;  %v7033_v61 = vpop.f32.mrb[84].mxu1  ;;  %v5270_v13 = vpop.f32.mrb[85].mxu0 }
 0x647   : > { %v12111_v57 = vadd.f32 %v7033_v61, %v17138_v32  ;;  %v11984_v17 = vadd.f32 %v5270_v13, %v17138_v32  ;;  %v7035_v0 = vpop.f32.mrb[85].mxu1  ;;  %v5272_v36 = vpop.f32.mrb[86].mxu0  ;;  %9039 = vmatprep.subr.bf16.mxu0 %v7479_v16 }
 0x648   : > { %v12112_v19 = vadd.f32 %v7035_v0, %v17138_v32  ;;  %v11985_v39 = vadd.f32 %v5272_v36, %v17139_v43  ;;  %v7037_v10 = vpop.f32.mrb[86].mxu1  ;;  %9745 = vmatprep.subr.bf16.mxu1 %v7481_v62  ;;  %v5274_v48 = vpop.f32.mrb[87].mxu0  ;;  %9040 = vmatpush1.bf16.msra.mxu0 %v7478_v23  ;;  %v7310_v11 = vmax.f32 %v11983_v12, 0.0  ;;  %v17142_v12 = vld [vmem:[#allocation21_spill] sm:$0xff] }
 0x649   : > { %v12113_v33 = vadd.f32 %v7037_v10, %v17139_v43  ;;  %v11986_v63 = vadd.f32 %v5274_v48, %v17139_v43  ;;  %v7039_v51 = vpop.f32.mrb[87].mxu1  ;;  %9746 = vmatpush1.bf16.msra.mxu1 %v7480_v18  ;;  %v7312_v41 = vmax.f32 %v12111_v57, 0.0  ;;  %v7311_v14 = vmax.f32 %v11984_v17, 0.0 }
 0x64a   : > { %v7314_v52 = vmax.f32 %v11985_v39, 0.0  ;;  %v12114_v30 = vadd.f32 %v7039_v51, %v17139_v43  ;;  %v7313_v26 = vmax.f32 %v12112_v19, 0.0  ;;  %v14307_v19 = vld [vmem:[#allocation8 + $0xe0] ss:$16 sps:$4 sm:$0xff]  }
 0x64b   : > { %v7316_v49 = vmax.f32 %v12113_v33, 0.0  ;;  %v7315_v31 = vmax.f32 %v11986_v63, 0.0  ;;  %8761 = vmatmul.mubr.bf16.gmra.mrb[148].mxu0 %v14301_v58  ;;  %v17143_v39 = vld [vmem:[#allocation28_spill] sm:$0xff] }
 0x64c   : > { %v7482_v6 = vpack.c.bf16 %v7314_v52, %v7310_v11  ;;  %v7317_v7 = vmax.f32 %v12114_v30, 0.0  ;;  %9467 = vmatmul.mubr.bf16.gmra.mrb[148].mxu1 %v14301_v58  ;;  %8770 = vmatprep.mubr.bf16.mxu0 %v14302_v60  ;;  %v14308_v33 = vld [vmem:[#allocation8 + $0x104] ss:$16 sps:$4 sm:$0xff]  }
 0x64d   : > { %v7484_v50 = vpack.c.bf16 %v7316_v49, %v7312_v41  ;;  %v7483_v1 = vpack.c.bf16 %v7315_v31, %v7311_v14  ;;  %v5278_v59 = vpop.f32.mrb[88].mxu0  ;;  %9476 = vmatprep.mubr.bf16.mxu1 %v14302_v60 }
 0x64e   : > { %v7485_v47 = vpack.c.bf16 %v7317_v7, %v7313_v26  ;;  %v11987_v27 = vadd.f32 %v5278_v59, %v17140_v56  ;;  %v7043_v35 = vpop.f32.mrb[88].mxu1  ;;  %v5280_v28 = vpop.f32.mrb[89].mxu0 }
 0x64f   : > { %v12115_v37 = vadd.f32 %v7043_v35, %v17140_v56  ;;  %v11988_v24 = vadd.f32 %v5280_v28, %v17140_v56  ;;  %v7045_v8 = vpop.f32.mrb[89].mxu1  ;;  %v5282_v15 = vpop.f32.mrb[90].mxu0  ;;  %9041 = vmatprep.subr.bf16.mxu0 %v7483_v1 }
 0x650   : > { %v12116_v40 = vadd.f32 %v7045_v8, %v17140_v56  ;;  %v11989_v4 = vadd.f32 %v5282_v15, %v17141_v46  ;;  %v7047_v20 = vpop.f32.mrb[90].mxu1  ;;  %9747 = vmatprep.subr.bf16.mxu1 %v7485_v47  ;;  %v5284_v22 = vpop.f32.mrb[91].mxu0  ;;  %9042 = vmatpush1.bf16.msra.mxu0 %v7482_v6  ;;  %v7318_v2 = vmax.f32 %v11987_v27, 0.0  ;;  %v17144_v27 = vld [vmem:[#allocation23_spill] sm:$0xff] }
 0x651   : > { %v12117_v53 = vadd.f32 %v7047_v20, %v17141_v46  ;;  %v11990_v54 = vadd.f32 %v5284_v22, %v17141_v46  ;;  %v7049_v5 = vpop.f32.mrb[91].mxu1  ;;  %9748 = vmatpush1.bf16.msra.mxu1 %v7484_v50  ;;  %v7320_v42 = vmax.f32 %v12115_v37, 0.0  ;;  %v7319_v44 = vmax.f32 %v11988_v24, 0.0 }
 0x652   : > { %v7322_v25 = vmax.f32 %v11989_v4, 0.0  ;;  %v12118_v3 = vadd.f32 %v7049_v5, %v17141_v46  ;;  %v7321_v23 = vmax.f32 %v12116_v40, 0.0  ;;  %v14310_v40 = vld [vmem:[#allocation8 + $0x100] ss:$16 sps:$4 sm:$0xff]  }
 0x653   : > { %v7324_v21 = vmax.f32 %v12117_v53, 0.0  ;;  %v7323_v9 = vmax.f32 %v11990_v54, 0.0  ;;  %8771 = vmatmul.mubr.bf16.gmra.mrb[152].mxu0 %v14304_v45  ;;  %v17145_v4 = vld [vmem:[#allocation30_spill] sm:$0xff] }
 0x654   : > { %v7486_v38 = vpack.c.bf16 %v7322_v25, %v7318_v2  ;;  %v7325_v18 = vmax.f32 %v12118_v3, 0.0  ;;  %9477 = vmatmul.mubr.bf16.gmra.mrb[152].mxu1 %v14304_v45  ;;  %8780 = vmatprep.mubr.bf16.mxu0 %v14305_v29  ;;  %v14311_v53 = vld [vmem:[#allocation8 + $0x124] ss:$16 sps:$4 sm:$0xff]  }
 0x655   : > { %v7488_v16 = vpack.c.bf16 %v7324_v21, %v7320_v42  ;;  %v7487_v55 = vpack.c.bf16 %v7323_v9, %v7319_v44  ;;  %v5288_v62 = vpop.f32.mrb[92].mxu0  ;;  %9486 = vmatprep.mubr.bf16.mxu1 %v14305_v29 }
 0x656   : > { %v7489_v32 = vpack.c.bf16 %v7325_v18, %v7321_v23  ;;  %v11991_v61 = vadd.f32 %v5288_v62, %v17142_v12  ;;  %v7053_v13 = vpop.f32.mrb[92].mxu1  ;;  %v5290_v57 = vpop.f32.mrb[93].mxu0 }
 0x657   : > { %v12119_v17 = vadd.f32 %v7053_v13, %v17142_v12  ;;  %v11992_v0 = vadd.f32 %v5290_v57, %v17142_v12  ;;  %v7055_v36 = vpop.f32.mrb[93].mxu1  ;;  %v5292_v58 = vpop.f32.mrb[94].mxu0  ;;  %9043 = vmatprep.subr.bf16.mxu0 %v7487_v55 }
 0x658   : > { %v12120_v43 = vadd.f32 %v7055_v36, %v17142_v12  ;;  %v11993_v10 = vadd.f32 %v5292_v58, %v17143_v39  ;;  %v7057_v48 = vpop.f32.mrb[94].mxu1  ;;  %9749 = vmatprep.subr.bf16.mxu1 %v7489_v32  ;;  %v5294_v60 = vpop.f32.mrb[95].mxu0  ;;  %9044 = vmatpush1.bf16.msra.mxu0 %v7486_v38  ;;  %v7326_v52 = vmax.f32 %v11991_v61, 0.0  ;;  %v17146_v61 = vld [vmem:[#allocation25_spill] sm:$0xff] }
 0x659   : > { %v12121_v63 = vadd.f32 %v7057_v48, %v17143_v39  ;;  %v11994_v51 = vadd.f32 %v5294_v60, %v17143_v39  ;;  %v7059_v11 = vpop.f32.mrb[95].mxu1  ;;  %9750 = vmatpush1.bf16.msra.mxu1 %v7488_v16  ;;  %v7328_v14 = vmax.f32 %v12119_v17, 0.0  ;;  %v7327_v49 = vmax.f32 %v11992_v0, 0.0 }
 0x65a   : > { %v7330_v30 = vmax.f32 %v11993_v10, 0.0  ;;  %v12122_v41 = vadd.f32 %v7059_v11, %v17143_v39  ;;  %v7329_v6 = vmax.f32 %v12120_v43, 0.0  ;;  %v14313_v43 = vld [vmem:[#allocation8 + $0x120] ss:$16 sps:$4 sm:$0xff]  }
 0x65b   : > { %v7332_v31 = vmax.f32 %v12121_v63, 0.0  ;;  %v7331_v26 = vmax.f32 %v11994_v51, 0.0  ;;  %8781 = vmatmul.mubr.bf16.gmra.mrb[156].mxu0 %v14307_v19  ;;  %v17147_v10 = vld [vmem:[#allocation32_spill] sm:$0xff] }
 0x65c   : > { %v7490_v7 = vpack.c.bf16 %v7330_v30, %v7326_v52  ;;  %v7333_v50 = vmax.f32 %v12122_v41, 0.0  ;;  %9487 = vmatmul.mubr.bf16.gmra.mrb[156].mxu1 %v14307_v19  ;;  %8790 = vmatprep.mubr.bf16.mxu0 %v14308_v33  ;;  %v14314_v63 = vld [vmem:[#allocation8 + $0x144] ss:$16 sps:$4 sm:$0xff]  }
 0x65d   : > { %v7492_v1 = vpack.c.bf16 %v7332_v31, %v7328_v14  ;;  %v7491_v59 = vpack.c.bf16 %v7331_v26, %v7327_v49  ;;  %v5298_v47 = vpop.f32.mrb[96].mxu0  ;;  %9496 = vmatprep.mubr.bf16.mxu1 %v14308_v33 }
 0x65e   : > { %v7493_v56 = vpack.c.bf16 %v7333_v50, %v7329_v6  ;;  %v11995_v35 = vadd.f32 %v5298_v47, %v17144_v27  ;;  %v7063_v28 = vpop.f32.mrb[96].mxu1  ;;  %v5300_v37 = vpop.f32.mrb[97].mxu0 }
 0x65f   : > { %v12123_v24 = vadd.f32 %v7063_v28, %v17144_v27  ;;  %v11996_v8 = vadd.f32 %v5300_v37, %v17144_v27  ;;  %v7065_v15 = vpop.f32.mrb[97].mxu1  ;;  %v5302_v45 = vpop.f32.mrb[98].mxu0  ;;  %9045 = vmatprep.subr.bf16.mxu0 %v7491_v59 }
 0x660   : > { %v12124_v46 = vadd.f32 %v7065_v15, %v17144_v27  ;;  %v11997_v20 = vadd.f32 %v5302_v45, %v17145_v4  ;;  %v7067_v22 = vpop.f32.mrb[98].mxu1  ;;  %9751 = vmatprep.subr.bf16.mxu1 %v7493_v56  ;;  %v5304_v29 = vpop.f32.mrb[99].mxu0  ;;  %9046 = vmatpush1.bf16.msra.mxu0 %v7490_v7  ;;  %v7334_v25 = vmax.f32 %v11995_v35, 0.0  ;;  %v17148_v35 = vld [vmem:[#allocation27_spill] sm:$0xff] }
 0x661   : > { %v12125_v54 = vadd.f32 %v7067_v22, %v17145_v4  ;;  %v11998_v5 = vadd.f32 %v5304_v29, %v17145_v4  ;;  %v7069_v2 = vpop.f32.mrb[99].mxu1  ;;  %9752 = vmatpush1.bf16.msra.mxu1 %v7492_v1  ;;  %v7336_v44 = vmax.f32 %v12123_v24, 0.0  ;;  %v7335_v21 = vmax.f32 %v11996_v8, 0.0 }
 0x662   : > { %v7338_v3 = vmax.f32 %v11997_v20, 0.0  ;;  %v12126_v42 = vadd.f32 %v7069_v2, %v17145_v4  ;;  %v7337_v38 = vmax.f32 %v12124_v46, 0.0  ;;  %v14316_v46 = vld [vmem:[#allocation8 + $0x140] ss:$16 sps:$4 sm:$0xff]  }
 0x663   : > { %v7340_v9 = vmax.f32 %v12125_v54, 0.0  ;;  %v7339_v23 = vmax.f32 %v11998_v5, 0.0  ;;  %8791 = vmatmul.mubr.bf16.gmra.mrb[160].mxu0 %v14310_v40 }
 0x664   : > { %v7494_v18 = vpack.c.bf16 %v7338_v3, %v7334_v25  ;;  %v7341_v16 = vmax.f32 %v12126_v42, 0.0  ;;  %9497 = vmatmul.mubr.bf16.gmra.mrb[160].mxu1 %v14310_v40  ;;  %8800 = vmatprep.mubr.bf16.mxu0 %v14311_v53 }
 0x665   : > { %v7496_v55 = vpack.c.bf16 %v7340_v9, %v7336_v44  ;;  %v7495_v62 = vpack.c.bf16 %v7339_v23, %v7335_v21  ;;  %v5308_v32 = vpop.f32.mrb[100].mxu0  ;;  %9506 = vmatprep.mubr.bf16.mxu1 %v14311_v53  ;;  %v14317_v53 = vld [vmem:[#allocation8 + $0x164] ss:$16 sps:$4 sm:$0xff]  }
 0x666   : > { %v7497_v12 = vpack.c.bf16 %v7341_v16, %v7337_v38  ;;  %v11999_v13 = vadd.f32 %v5308_v32, %v17146_v61  ;;  %v7073_v57 = vpop.f32.mrb[100].mxu1  ;;  %v5310_v17 = vpop.f32.mrb[101].mxu0 }
 0x667   : > { %v12127_v0 = vadd.f32 %v7073_v57, %v17146_v61  ;;  %v12000_v36 = vadd.f32 %v5310_v17, %v17146_v61  ;;  %v7075_v58 = vpop.f32.mrb[101].mxu1  ;;  %v5312_v19 = vpop.f32.mrb[102].mxu0  ;;  %9047 = vmatprep.subr.bf16.mxu0 %v7495_v62 }
 0x668   : > { %v12128_v39 = vadd.f32 %v7075_v58, %v17146_v61  ;;  %v12001_v48 = vadd.f32 %v5312_v19, %v17147_v10  ;;  %v7077_v60 = vpop.f32.mrb[102].mxu1  ;;  %9753 = vmatprep.subr.bf16.mxu1 %v7497_v12  ;;  %v5314_v33 = vpop.f32.mrb[103].mxu0  ;;  %9048 = vmatpush1.bf16.msra.mxu0 %v7494_v18  ;;  %v7342_v30 = vmax.f32 %v11999_v13, 0.0  ;;  %v17149_v61 = vld [vmem:[#allocation29_spill] sm:$0xff]  ;;  %v14319_v19 = vld [vmem:[#allocation8 + $0x160] ss:$16 sps:$4 sm:$0xff]  }
 0x669   : > { %v12129_v51 = vadd.f32 %v7077_v60, %v17147_v10  ;;  %v12002_v11 = vadd.f32 %v5314_v33, %v17147_v10  ;;  %v7079_v52 = vpop.f32.mrb[103].mxu1  ;;  %9754 = vmatpush1.bf16.msra.mxu1 %v7496_v55  ;;  %v7344_v49 = vmax.f32 %v12127_v0, 0.0  ;;  %v7343_v31 = vmax.f32 %v12000_v36, 0.0  ;;  %v14320_v33 = vld [vmem:[#allocation8 + $0x184] ss:$16 sps:$4 sm:$0xff]  }
 0x66a   : > { %v7346_v41 = vmax.f32 %v12001_v48, 0.0  ;;  %v12130_v14 = vadd.f32 %v7079_v52, %v17147_v10  ;;  %v7345_v7 = vmax.f32 %v12128_v39, 0.0  ;;  %v17150_v39 = vld [vmem:[#allocation35_spill] sm:$0xff] }
 0x66b   : > { %v7348_v26 = vmax.f32 %v12129_v51, 0.0  ;;  %v7347_v6 = vmax.f32 %v12002_v11, 0.0  ;;  %8801 = vmatmul.mubr.bf16.gmra.mrb[164].mxu0 %v14313_v43 }
 0x66c   : > { %v7498_v50 = vpack.c.bf16 %v7346_v41, %v7342_v30  ;;  %v7349_v1 = vmax.f32 %v12130_v14, 0.0  ;;  %9507 = vmatmul.mubr.bf16.gmra.mrb[164].mxu1 %v14313_v43  ;;  %8810 = vmatprep.mubr.bf16.mxu0 %v14314_v63 }
 0x66d   : > { %v7500_v59 = vpack.c.bf16 %v7348_v26, %v7344_v49  ;;  %v7499_v47 = vpack.c.bf16 %v7347_v6, %v7343_v31  ;;  %v5318_v56 = vpop.f32.mrb[104].mxu0  ;;  %9516 = vmatprep.mubr.bf16.mxu1 %v14314_v63 }
 0x66e   : > { %v7501_v27 = vpack.c.bf16 %v7349_v1, %v7345_v7  ;;  %v12003_v28 = vadd.f32 %v5318_v56, %v17148_v35  ;;  %v7083_v37 = vpop.f32.mrb[104].mxu1  ;;  %v5320_v24 = vpop.f32.mrb[105].mxu0 }
 0x66f   : > { %v12131_v8 = vadd.f32 %v7083_v37, %v17148_v35  ;;  %v12004_v15 = vadd.f32 %v5320_v24, %v17148_v35  ;;  %v7085_v45 = vpop.f32.mrb[105].mxu1  ;;  %v5322_v40 = vpop.f32.mrb[106].mxu0  ;;  %9049 = vmatprep.subr.bf16.mxu0 %v7499_v47 }
 0x670   : > { %v12132_v4 = vadd.f32 %v7085_v45, %v17148_v35  ;;  %v12005_v20 = vadd.f32 %v5322_v40, %v16087_v34  ;;  %v7087_v22 = vpop.f32.mrb[106].mxu1  ;;  %9755 = vmatprep.subr.bf16.mxu1 %v7501_v27  ;;  %v5324_v29 = vpop.f32.mrb[107].mxu0  ;;  %9050 = vmatpush1.bf16.msra.mxu0 %v7498_v50  ;;  %v7350_v25 = vmax.f32 %v12003_v28, 0.0  ;;  %v17151_v27 = vld [vmem:[#allocation31_spill] sm:$0xff]  ;;  %v14322_v40 = vld [vmem:[#allocation8 + $0x180] ss:$16 sps:$4 sm:$0xff]  }
 0x671   : > { %v12133_v54 = vadd.f32 %v7087_v22, %v16087_v34  ;;  %v12006_v5 = vadd.f32 %v5324_v29, %v16087_v34  ;;  %v7089_v2 = vpop.f32.mrb[107].mxu1  ;;  %9756 = vmatpush1.bf16.msra.mxu1 %v7500_v59  ;;  %v7352_v44 = vmax.f32 %v12131_v8, 0.0  ;;  %v7351_v21 = vmax.f32 %v12004_v15, 0.0 }
 0x672   : > { %v7354_v3 = vmax.f32 %v12005_v20, 0.0  ;;  %v12134_v42 = vadd.f32 %v7089_v2, %v16087_v34  ;;  %v7353_v38 = vmax.f32 %v12132_v4, 0.0  ;;  %v17152_v4 = vld [vmem:[#allocation37_spill] sm:$0xff] }
 0x673   : > { %v7356_v9 = vmax.f32 %v12133_v54, 0.0  ;;  %v7355_v23 = vmax.f32 %v12006_v5, 0.0  ;;  %8811 = vmatmul.mubr.bf16.gmra.mrb[168].mxu0 %v14316_v46 }
 0x674   : > { %v7502_v18 = vpack.c.bf16 %v7354_v3, %v7350_v25  ;;  %v7357_v16 = vmax.f32 %v12134_v42, 0.0  ;;  %9517 = vmatmul.mubr.bf16.gmra.mrb[168].mxu1 %v14316_v46  ;;  %8820 = vmatprep.mubr.bf16.mxu0 %v14317_v53 }
 0x675   : > { %v7504_v55 = vpack.c.bf16 %v7356_v9, %v7352_v44  ;;  %v7503_v62 = vpack.c.bf16 %v7355_v23, %v7351_v21  ;;  %v5328_v32 = vpop.f32.mrb[108].mxu0  ;;  %9526 = vmatprep.mubr.bf16.mxu1 %v14317_v53  ;;  %v14323_v53 = vld [vmem:[#allocation8 + $0x1a4] ss:$16 sps:$4 sm:$0xff]  }
 0x676   : > { %v7505_v12 = vpack.c.bf16 %v7357_v16, %v7353_v38  ;;  %v12007_v13 = vadd.f32 %v5328_v32, %v17149_v61  ;;  %v7093_v57 = vpop.f32.mrb[108].mxu1  ;;  %v5330_v17 = vpop.f32.mrb[109].mxu0 }
 0x677   : > { %v12135_v34 = vadd.f32 %v7093_v57, %v17149_v61  ;;  %v12008_v0 = vadd.f32 %v5330_v17, %v17149_v61  ;;  %v7095_v36 = vpop.f32.mrb[109].mxu1  ;;  %v5332_v58 = vpop.f32.mrb[110].mxu0  ;;  %9051 = vmatprep.subr.bf16.mxu0 %v7503_v62 }
 0x678   : > { %v12136_v43 = vadd.f32 %v7095_v36, %v17149_v61  ;;  %v12009_v10 = vadd.f32 %v5332_v58, %v17150_v39  ;;  %v7097_v48 = vpop.f32.mrb[110].mxu1  ;;  %9757 = vmatprep.subr.bf16.mxu1 %v7505_v12  ;;  %v5334_v60 = vpop.f32.mrb[111].mxu0  ;;  %9052 = vmatpush1.bf16.msra.mxu0 %v7502_v18  ;;  %v7358_v52 = vmax.f32 %v12007_v13, 0.0  ;;  %v17153_v61 = vld [vmem:[#allocation33_spill] sm:$0xff] }
 0x679   : > { %v12137_v63 = vadd.f32 %v7097_v48, %v17150_v39  ;;  %v12010_v51 = vadd.f32 %v5334_v60, %v17150_v39  ;;  %v7099_v11 = vpop.f32.mrb[111].mxu1  ;;  %9758 = vmatpush1.bf16.msra.mxu1 %v7504_v55  ;;  %v7360_v14 = vmax.f32 %v12135_v34, 0.0  ;;  %v7359_v49 = vmax.f32 %v12008_v0, 0.0 }
 0x67a   : > { %v7362_v30 = vmax.f32 %v12009_v10, 0.0  ;;  %v12138_v41 = vadd.f32 %v7099_v11, %v17150_v39  ;;  %v7361_v6 = vmax.f32 %v12136_v43, 0.0  ;;  %v17154_v39 = vld [vmem:[#allocation39_spill] sm:$0xff] }
 0x67b   : > { %v7364_v31 = vmax.f32 %v12137_v63, 0.0  ;;  %v7363_v26 = vmax.f32 %v12010_v51, 0.0  ;;  %8821 = vmatmul.mubr.bf16.gmra.mrb[172].mxu0 %v14319_v19 }
 0x67c   : > { %v7506_v7 = vpack.c.bf16 %v7362_v30, %v7358_v52  ;;  %v7365_v50 = vmax.f32 %v12138_v41, 0.0  ;;  %9527 = vmatmul.mubr.bf16.gmra.mrb[172].mxu1 %v14319_v19  ;;  %8830 = vmatprep.mubr.bf16.mxu0 %v14320_v33  ;;  %v14325_v19 = vld [vmem:[#allocation8 + $0x1a0] ss:$16 sps:$4 sm:$0xff]  }
 0x67d   : > { %v7508_v1 = vpack.c.bf16 %v7364_v31, %v7360_v14  ;;  %v7507_v59 = vpack.c.bf16 %v7363_v26, %v7359_v49  ;;  %v5338_v47 = vpop.f32.mrb[112].mxu0  ;;  %9536 = vmatprep.mubr.bf16.mxu1 %v14320_v33  ;;  %v14326_v33 = vld [vmem:[#allocation8 + $0x1c4] ss:$16 sps:$4 sm:$0xff]  }
 0x67e   : > { %v7509_v56 = vpack.c.bf16 %v7365_v50, %v7361_v6  ;;  %v12011_v35 = vadd.f32 %v5338_v47, %v17151_v27  ;;  %v7103_v28 = vpop.f32.mrb[112].mxu1  ;;  %v5340_v37 = vpop.f32.mrb[113].mxu0 }
 0x67f   : > { %v12139_v24 = vadd.f32 %v7103_v28, %v17151_v27  ;;  %v12012_v8 = vadd.f32 %v5340_v37, %v17151_v27  ;;  %v7105_v15 = vpop.f32.mrb[113].mxu1  ;;  %v5342_v45 = vpop.f32.mrb[114].mxu0  ;;  %9053 = vmatprep.subr.bf16.mxu0 %v7507_v59 }
 0x680   : > { %v12140_v46 = vadd.f32 %v7105_v15, %v17151_v27  ;;  %v12013_v20 = vadd.f32 %v5342_v45, %v17152_v4  ;;  %v7107_v22 = vpop.f32.mrb[114].mxu1  ;;  %9759 = vmatprep.subr.bf16.mxu1 %v7509_v56  ;;  %v5344_v29 = vpop.f32.mrb[115].mxu0  ;;  %9054 = vmatpush1.bf16.msra.mxu0 %v7506_v7  ;;  %v7366_v25 = vmax.f32 %v12011_v35, 0.0  ;;  %v17155_v27 = vld [vmem:[#allocation34_spill] sm:$0xff] }
 0x681   : > { %v12141_v54 = vadd.f32 %v7107_v22, %v17152_v4  ;;  %v12014_v5 = vadd.f32 %v5344_v29, %v17152_v4  ;;  %v7109_v2 = vpop.f32.mrb[115].mxu1  ;;  %9760 = vmatpush1.bf16.msra.mxu1 %v7508_v1  ;;  %v7368_v44 = vmax.f32 %v12139_v24, 0.0  ;;  %v7367_v21 = vmax.f32 %v12012_v8, 0.0 }
 0x682   : > { %v7370_v3 = vmax.f32 %v12013_v20, 0.0  ;;  %v12142_v42 = vadd.f32 %v7109_v2, %v17152_v4  ;;  %v7369_v38 = vmax.f32 %v12140_v46, 0.0  ;;  %v17156_v4 = vld [vmem:[#allocation41_spill] sm:$0xff] }
 0x683   : > { %v7372_v9 = vmax.f32 %v12141_v54, 0.0  ;;  %v7371_v23 = vmax.f32 %v12014_v5, 0.0  ;;  %8831 = vmatmul.mubr.bf16.gmra.mrb[176].mxu0 %v14322_v40 }
 0x684   : > { %v7510_v18 = vpack.c.bf16 %v7370_v3, %v7366_v25  ;;  %v7373_v16 = vmax.f32 %v12142_v42, 0.0  ;;  %9537 = vmatmul.mubr.bf16.gmra.mrb[176].mxu1 %v14322_v40  ;;  %8840 = vmatprep.mubr.bf16.mxu0 %v14323_v53  ;;  %v14328_v40 = vld [vmem:[#allocation8 + $0x1c0] ss:$16 sps:$4 sm:$0xff]  }
 0x685   : > { %v7512_v55 = vpack.c.bf16 %v7372_v9, %v7368_v44  ;;  %v7511_v62 = vpack.c.bf16 %v7371_v23, %v7367_v21  ;;  %v5348_v32 = vpop.f32.mrb[116].mxu0  ;;  %9546 = vmatprep.mubr.bf16.mxu1 %v14323_v53  ;;  %v14329_v53 = vld [vmem:[#allocation8 + $0x1e4] ss:$16 sps:$4 sm:$0xff]  }
 0x686   : > { %v7513_v12 = vpack.c.bf16 %v7373_v16, %v7369_v38  ;;  %v12015_v13 = vadd.f32 %v5348_v32, %v17153_v61  ;;  %v7113_v57 = vpop.f32.mrb[116].mxu1  ;;  %v5350_v17 = vpop.f32.mrb[117].mxu0 }
 0x687   : > { %v12143_v34 = vadd.f32 %v7113_v57, %v17153_v61  ;;  %v12016_v0 = vadd.f32 %v5350_v17, %v17153_v61  ;;  %v7115_v36 = vpop.f32.mrb[117].mxu1  ;;  %v5352_v58 = vpop.f32.mrb[118].mxu0  ;;  %9055 = vmatprep.subr.bf16.mxu0 %v7511_v62 }
 0x688   : > { %v12144_v43 = vadd.f32 %v7115_v36, %v17153_v61  ;;  %v12017_v10 = vadd.f32 %v5352_v58, %v17154_v39  ;;  %v7117_v48 = vpop.f32.mrb[118].mxu1  ;;  %9761 = vmatprep.subr.bf16.mxu1 %v7513_v12  ;;  %v5354_v60 = vpop.f32.mrb[119].mxu0  ;;  %9056 = vmatpush1.bf16.msra.mxu0 %v7510_v18  ;;  %v7374_v52 = vmax.f32 %v12015_v13, 0.0  ;;  %v17157_v61 = vld [vmem:[#allocation36_spill] sm:$0xff] }
 0x689   : > { %v12145_v63 = vadd.f32 %v7117_v48, %v17154_v39  ;;  %v12018_v51 = vadd.f32 %v5354_v60, %v17154_v39  ;;  %v7119_v11 = vpop.f32.mrb[119].mxu1  ;;  %9762 = vmatpush1.bf16.msra.mxu1 %v7512_v55  ;;  %v7376_v14 = vmax.f32 %v12143_v34, 0.0  ;;  %v7375_v49 = vmax.f32 %v12016_v0, 0.0 }
 0x68a   : > { %v7378_v30 = vmax.f32 %v12017_v10, 0.0  ;;  %v12146_v41 = vadd.f32 %v7119_v11, %v17154_v39  ;;  %v7377_v6 = vmax.f32 %v12144_v43, 0.0  ;;  %v17158_v39 = vld [vmem:[#allocation43_spill] sm:$0xff] }
 0x68b   : > { %v7380_v31 = vmax.f32 %v12145_v63, 0.0  ;;  %v7379_v26 = vmax.f32 %v12018_v51, 0.0  ;;  %8841 = vmatmul.mubr.bf16.gmra.mrb[180].mxu0 %v14325_v19 }
 0x68c   : > { %v7514_v7 = vpack.c.bf16 %v7378_v30, %v7374_v52  ;;  %v7381_v50 = vmax.f32 %v12146_v41, 0.0  ;;  %9547 = vmatmul.mubr.bf16.gmra.mrb[180].mxu1 %v14325_v19  ;;  %8850 = vmatprep.mubr.bf16.mxu0 %v14326_v33  ;;  %v14331_v19 = vld [vmem:[#allocation8 + $0x1e0] ss:$16 sps:$4 sm:$0xff]  }
 0x68d   : > { %v7516_v1 = vpack.c.bf16 %v7380_v31, %v7376_v14  ;;  %v7515_v59 = vpack.c.bf16 %v7379_v26, %v7375_v49  ;;  %v5358_v47 = vpop.f32.mrb[120].mxu0  ;;  %9556 = vmatprep.mubr.bf16.mxu1 %v14326_v33  ;;  %v14332_v33 = vld [vmem:[#allocation8 + $0x204] ss:$16 sps:$4 sm:$0xff]  }
 0x68e   : > { %v7517_v56 = vpack.c.bf16 %v7381_v50, %v7377_v6  ;;  %v12019_v35 = vadd.f32 %v5358_v47, %v17155_v27  ;;  %v7123_v28 = vpop.f32.mrb[120].mxu1  ;;  %v5360_v37 = vpop.f32.mrb[121].mxu0 }
 0x68f   : > { %v12147_v24 = vadd.f32 %v7123_v28, %v17155_v27  ;;  %v12020_v8 = vadd.f32 %v5360_v37, %v17155_v27  ;;  %v7125_v15 = vpop.f32.mrb[121].mxu1  ;;  %v5362_v45 = vpop.f32.mrb[122].mxu0  ;;  %9057 = vmatprep.subr.bf16.mxu0 %v7515_v59  ;;  %v14338_v28 = vld [vmem:[#allocation8 + $0x244] ss:$16 sps:$4 sm:$0xff]   ;;  %v14340_v37 = vld [vmem:[#allocation8 + $0x240] ss:$16 sps:$4 sm:$0xff]  }
 0x690   : > { %v12148_v46 = vadd.f32 %v7125_v15, %v17155_v27  ;;  %v12021_v20 = vadd.f32 %v5362_v45, %v17156_v4  ;;  %v7127_v22 = vpop.f32.mrb[122].mxu1  ;;  %9763 = vmatprep.subr.bf16.mxu1 %v7517_v56  ;;  %v5364_v29 = vpop.f32.mrb[123].mxu0  ;;  %9058 = vmatpush1.bf16.msra.mxu0 %v7514_v7  ;;  %v7382_v25 = vmax.f32 %v12019_v35, 0.0  ;;  %v14334_v56 = vld [vmem:[#allocation8 + $0x200] ss:$16 sps:$4 sm:$0xff]  }
 0x691   : > { %v12149_v54 = vadd.f32 %v7127_v22, %v17156_v4  ;;  %v12022_v5 = vadd.f32 %v5364_v29, %v17156_v4  ;;  %v7129_v2 = vpop.f32.mrb[123].mxu1  ;;  %9764 = vmatpush1.bf16.msra.mxu1 %v7516_v1  ;;  %v7384_v44 = vmax.f32 %v12147_v24, 0.0  ;;  %v7383_v21 = vmax.f32 %v12020_v8, 0.0  ;;  %v14335_v27 = vld [vmem:[#allocation8 + $0x224] ss:$16 sps:$4 sm:$0xff]  }
 0x692   : > { %v7386_v3 = vmax.f32 %v12021_v20, 0.0  ;;  %v12150_v42 = vadd.f32 %v7129_v2, %v17156_v4  ;;  %v7385_v38 = vmax.f32 %v12148_v46, 0.0  ;;  %v14337_v35 = vld [vmem:[#allocation8 + $0x220] ss:$16 sps:$4 sm:$0xff]   ;;  %v14341_v24 = vld [vmem:[#allocation8 + $0x264] ss:$16 sps:$4 sm:$0xff]  }
 0x693   : > { %v7388_v9 = vmax.f32 %v12149_v54, 0.0  ;;  %v7387_v23 = vmax.f32 %v12022_v5, 0.0  ;;  %8851 = vmatmul.mubr.bf16.gmra.mrb[184].mxu0 %v14328_v40  ;;  %v14343_v8 = vld [vmem:[#allocation8 + $0x260] ss:$16 sps:$4 sm:$0xff]   ;;  %v14344_v15 = vld [vmem:[#allocation8 + $0x284] ss:$16 sps:$4 sm:$0xff]  }
 0x694   : > { %v7518_v18 = vpack.c.bf16 %v7386_v3, %v7382_v25  ;;  %v7389_v16 = vmax.f32 %v12150_v42, 0.0  ;;  %9557 = vmatmul.mubr.bf16.gmra.mrb[184].mxu1 %v14328_v40  ;;  %8860 = vmatprep.mubr.bf16.mxu0 %v14329_v53  ;;  %v14346_v45 = vld [vmem:[#allocation8 + $0x280] ss:$16 sps:$4 sm:$0xff]   ;;  %v14347_v40 = vld [vmem:[#allocation8 + $0x2a4] ss:$16 sps:$4 sm:$0xff]  }
 0x695   : > { %v7520_v55 = vpack.c.bf16 %v7388_v9, %v7384_v44  ;;  %v7519_v62 = vpack.c.bf16 %v7387_v23, %v7383_v21  ;;  %v5368_v32 = vpop.f32.mrb[124].mxu0  ;;  %9566 = vmatprep.mubr.bf16.mxu1 %v14329_v53  ;;  %v14349_v46 = vld [vmem:[#allocation8 + $0x2a0] ss:$16 sps:$4 sm:$0xff]   ;;  %v14350_v4 = vld [vmem:[#allocation8 + $0x2c4] ss:$16 sps:$4 sm:$0xff]  }
 0x696   : > { %v7521_v12 = vpack.c.bf16 %v7389_v16, %v7385_v38  ;;  %v12023_v13 = vadd.f32 %v5368_v32, %v17157_v61  ;;  %v7133_v57 = vpop.f32.mrb[124].mxu1  ;;  %v5370_v17 = vpop.f32.mrb[125].mxu0  ;;  %v14352_v20 = vld [vmem:[#allocation8 + $0x2c0] ss:$16 sps:$4 sm:$0xff]   ;;  %v14353_v22 = vld [vmem:[#allocation8 + $0x2e4] ss:$16 sps:$4 sm:$0xff]  }
 0x697   : > { %v12151_v34 = vadd.f32 %v7133_v57, %v17157_v61  ;;  %v12024_v0 = vadd.f32 %v5370_v17, %v17157_v61  ;;  %v7135_v36 = vpop.f32.mrb[125].mxu1  ;;  %v5372_v58 = vpop.f32.mrb[126].mxu0  ;;  %9059 = vmatprep.subr.bf16.mxu0 %v7519_v62  ;;  %v14355_v29 = vld [vmem:[#allocation8 + $0x2e0] ss:$16 sps:$4 sm:$0xff]   ;;  %v14356_v53 = vld [vmem:[#allocation8 + $0x304] ss:$16 sps:$4 sm:$0xff]  }
 0x698   : > { %v12152_v43 = vadd.f32 %v7135_v36, %v17157_v61  ;;  %v12025_v10 = vadd.f32 %v5372_v58, %v17158_v39  ;;  %v7137_v48 = vpop.f32.mrb[126].mxu1  ;;  %9765 = vmatprep.subr.bf16.mxu1 %v7521_v12  ;;  %v5374_v60 = vpop.f32.mrb[127].mxu0  ;;  %9060 = vmatpush1.bf16.msra.mxu0 %v7518_v18  ;;  %v7390_v52 = vmax.f32 %v12023_v13, 0.0  ;;  %v14358_v54 = vld [vmem:[#allocation8 + $0x300] ss:$16 sps:$4 sm:$0xff]  }
 0x699   : > { %v12153_v63 = vadd.f32 %v7137_v48, %v17158_v39  ;;  %v12026_v51 = vadd.f32 %v5374_v60, %v17158_v39  ;;  %v7139_v11 = vpop.f32.mrb[127].mxu1  ;;  %9766 = vmatpush1.bf16.msra.mxu1 %v7520_v55  ;;  %v7392_v14 = vmax.f32 %v12151_v34, 0.0  ;;  %v7391_v49 = vmax.f32 %v12024_v0, 0.0  ;;  %v14359_v5 = vld [vmem:[#allocation8 + $0x324] ss:$16 sps:$4 sm:$0xff]  }
 0x69a   : > { %v7394_v30 = vmax.f32 %v12025_v10, 0.0  ;;  %v12154_v41 = vadd.f32 %v7139_v11, %v17158_v39  ;;  %v7393_v6 = vmax.f32 %v12152_v43, 0.0  ;;  %v14361_v2 = vld [vmem:[#allocation8 + $0x320] ss:$16 sps:$4 sm:$0xff]   ;;  %v14362_v25 = vld [vmem:[#allocation8 + $0x344] ss:$16 sps:$4 sm:$0xff]  }
 0x69b   : > { %v7396_v31 = vmax.f32 %v12153_v63, 0.0  ;;  %v7395_v26 = vmax.f32 %v12026_v51, 0.0  ;;  %8861 = vmatmul.mubr.bf16.gmra.mrb[188].mxu0 %v14331_v19  ;;  %v14364_v3 = vld [vmem:[#allocation8 + $0x340] ss:$16 sps:$4 sm:$0xff]   ;;  %v14365_v42 = vld [vmem:[#allocation8 + $0x364] ss:$16 sps:$4 sm:$0xff]  }
 0x69c   : > { %v7522_v7 = vpack.c.bf16 %v7394_v30, %v7390_v52  ;;  %v7397_v50 = vmax.f32 %v12154_v41, 0.0  ;;  %9567 = vmatmul.mubr.bf16.gmra.mrb[188].mxu1 %v14331_v19  ;;  %8870 = vmatprep.mubr.bf16.mxu0 %v14332_v33  ;;  %v14367_v44 = vld [vmem:[#allocation8 + $0x360] ss:$16 sps:$4 sm:$0xff]   ;;  %v14368_v21 = vld [vmem:[#allocation8 + $0x384] ss:$16 sps:$4 sm:$0xff]  }
 0x69d   : > { %v7524_v1 = vpack.c.bf16 %v7396_v31, %v7392_v14  ;;  %v7523_v59 = vpack.c.bf16 %v7395_v26, %v7391_v49  ;;  %9576 = vmatprep.mubr.bf16.mxu1 %v14332_v33  ;;  %v14370_v9 = vld [vmem:[#allocation8 + $0x380] ss:$16 sps:$4 sm:$0xff]   ;;  %v14371_v23 = vld [vmem:[#allocation8 + $0x3a4] ss:$16 sps:$4 sm:$0xff]   ;;  %v14382_v32 = vld [vmem:[#allocation8 + $0xc] ss:$16 sps:$4 sm:$0xff]  }
 0x69e   : > { %v7525_v47 = vpack.c.bf16 %v7397_v50, %v7393_v6  ;;  %v14373_v38 = vld [vmem:[#allocation8 + $0x3a0] ss:$16 sps:$4 sm:$0xff]   ;;  %v14374_v18 = vld [vmem:[#allocation8 + $0x3c4] ss:$16 sps:$4 sm:$0xff]   ;;  %v14380_v12 = vld [vmem:[#allocation8 + $0x8] ss:$16 sps:$4 sm:$0xff]  }
 0x69f   : > { %9061 = vmatprep.subr.bf16.mxu0 %v7523_v59  ;;  %v14376_v16 = vld [vmem:[#allocation8 + $0x3c0] ss:$16 sps:$4 sm:$0xff]   ;;  %v14377_v55 = vld [vmem:[#allocation8 + $0x3e4] ss:$16 sps:$4 sm:$0xff]   ;;  %v14383_v61 = vld [vmem:[#allocation8 + $0x2c] ss:$16 sps:$4 sm:$0xff]   ;;  %v16602_v59 = vpop.permute.xlu1 %7875 }
 0x6a0   : > { %9767 = vmatprep.subr.bf16.mxu1 %v7525_v47  ;;  %9062 = vmatpush1.bf16.msra.mxu0 %v7522_v7  ;;  %v14379_v62 = vld [vmem:[#allocation8 + $0x3e0] ss:$16 sps:$4 sm:$0xff]   ;;  %v14385_v13 = vld [vmem:[#allocation8 + $0x28] ss:$16 sps:$4 sm:$0xff]   ;;  %v14386_v57 = vld [vmem:[#allocation8 + $0x4c] ss:$16 sps:$4 sm:$0xff]  }
 0x6a1   : > { %9768 = vmatpush1.bf16.msra.mxu1 %v7524_v1  ;;  %v14388_v17 = vld [vmem:[#allocation8 + $0x48] ss:$16 sps:$4 sm:$0xff]   ;;  %v14389_v34 = vld [vmem:[#allocation8 + $0x6c] ss:$16 sps:$4 sm:$0xff]  }
 0x6a2   : > { %v14391_v0 = vld [vmem:[#allocation8 + $0x68] ss:$16 sps:$4 sm:$0xff]   ;;  %v14392_v36 = vld [vmem:[#allocation8 + $0x8c] ss:$16 sps:$4 sm:$0xff]  }
 0x6a3   : > { %8871 = vmatmul.mubr.bf16.gmra.mrb[192].mxu0 %v14334_v56  ;;  %v14394_v58 = vld [vmem:[#allocation8 + $0x88] ss:$16 sps:$4 sm:$0xff]   ;;  %v14395_v19 = vld [vmem:[#allocation8 + $0xac] ss:$16 sps:$4 sm:$0xff]  }
 0x6a4   : > { %9577 = vmatmul.mubr.bf16.gmra.mrb[192].mxu1 %v14334_v56  ;;  %8880 = vmatprep.mubr.bf16.mxu0 %v14335_v27  ;;  %v14397_v43 = vld [vmem:[#allocation8 + $0xa8] ss:$16 sps:$4 sm:$0xff]   ;;  %v14398_v39 = vld [vmem:[#allocation8 + $0xcc] ss:$16 sps:$4 sm:$0xff]  }
 0x6a5   : > { %9586 = vmatprep.mubr.bf16.mxu1 %v14335_v27  ;;  %v14400_v10 = vld [vmem:[#allocation8 + $0xc8] ss:$16 sps:$4 sm:$0xff]   ;;  %v14401_v48 = vld [vmem:[#allocation8 + $0xec] ss:$16 sps:$4 sm:$0xff]   ;;  %v16604_v27 = vpop.permute.xlu0 %7880 }
 0x6a6   : > { %v14403_v60 = vld [vmem:[#allocation8 + $0xe8] ss:$16 sps:$4 sm:$0xff]   ;;  %v14404_v33 = vld [vmem:[#allocation8 + $0x10c] ss:$16 sps:$4 sm:$0xff]  }
 0x6a7   : > { %v14406_v63 = vld [vmem:[#allocation8 + $0x108] ss:$16 sps:$4 sm:$0xff]   ;;  %v14407_v51 = vld [vmem:[#allocation8 + $0x12c] ss:$16 sps:$4 sm:$0xff]  }
 0x6a8   : > { %v14409_v11 = vld [vmem:[#allocation8 + $0x128] ss:$16 sps:$4 sm:$0xff]   ;;  %v14410_v52 = vld [vmem:[#allocation8 + $0x14c] ss:$16 sps:$4 sm:$0xff]  }
 0x6a9   : > { %v14412_v30 = vld [vmem:[#allocation8 + $0x148] ss:$16 sps:$4 sm:$0xff]   ;;  %v14413_v41 = vld [vmem:[#allocation8 + $0x16c] ss:$16 sps:$4 sm:$0xff]  }
 0x6aa   : > { %v14415_v14 = vld [vmem:[#allocation8 + $0x168] ss:$16 sps:$4 sm:$0xff]   ;;  %v14416_v49 = vld [vmem:[#allocation8 + $0x18c] ss:$16 sps:$4 sm:$0xff]  }
 0x6ab   : > { %8881 = vmatmul.mubr.bf16.gmra.mrb[196].mxu0 %v14337_v35  ;;  %v14418_v31 = vld [vmem:[#allocation8 + $0x188] ss:$16 sps:$4 sm:$0xff]   ;;  %v14419_v26 = vld [vmem:[#allocation8 + $0x1ac] ss:$16 sps:$4 sm:$0xff]  }
 0x6ac   : > { %9587 = vmatmul.mubr.bf16.gmra.mrb[196].mxu1 %v14337_v35  ;;  %8890 = vmatprep.mubr.bf16.mxu0 %v14338_v28  ;;  %v14421_v6 = vld [vmem:[#allocation8 + $0x1a8] ss:$16 sps:$4 sm:$0xff]   ;;  %v14422_v7 = vld [vmem:[#allocation8 + $0x1cc] ss:$16 sps:$4 sm:$0xff]   ;;  %v16606_v35 = vpop.permute.xlu1 %7885 }
 0x6ad   : > { %9596 = vmatprep.mubr.bf16.mxu1 %v14338_v28  ;;  %v14424_v50 = vld [vmem:[#allocation8 + $0x1c8] ss:$16 sps:$4 sm:$0xff]   ;;  %v14425_v1 = vld [vmem:[#allocation8 + $0x1ec] ss:$16 sps:$4 sm:$0xff]  }
 0x6ae   : > { %v14427_v47 = vld [vmem:[#allocation8 + $0x1e8] ss:$16 sps:$4 sm:$0xff]   ;;  %v14428_v56 = vld [vmem:[#allocation8 + $0x20c] ss:$16 sps:$4 sm:$0xff]  }
 0x6af   : > { %v14430_v28 = vld [vmem:[#allocation8 + $0x208] ss:$16 sps:$4 sm:$0xff]  }
 0x6b3   : > { %8891 = vmatmul.mubr.bf16.gmra.mrb[200].mxu0 %v14340_v37 }
 0x6b4   : > { %9597 = vmatmul.mubr.bf16.gmra.mrb[200].mxu1 %v14340_v37  ;;  %8900 = vmatprep.mubr.bf16.mxu0 %v14341_v24  ;;  %v14431_v37 = vld [vmem:[#allocation8 + $0x22c] ss:$16 sps:$4 sm:$0xff]  }
 0x6b5   : > { %9606 = vmatprep.mubr.bf16.mxu1 %v14341_v24  ;;  %v16608_v24 = vpop.permute.xlu0 %7890 }
 0x6bb   : > { %8901 = vmatmul.mubr.bf16.gmra.mrb[204].mxu0 %v14343_v8 }
 0x6bc   : > { %9607 = vmatmul.mubr.bf16.gmra.mrb[204].mxu1 %v14343_v8  ;;  %8910 = vmatprep.mubr.bf16.mxu0 %v14344_v15  ;;  %v16610_v8 = vpop.permute.xlu1 %7895 }
 0x6bd   : > { %9616 = vmatprep.mubr.bf16.mxu1 %v14344_v15  ;;  %v16612_v15 = vpop.permute.xlu0 %7900 }
 0x6c3   : > { %8911 = vmatmul.mubr.bf16.gmra.mrb[208].mxu0 %v14346_v45 }
 0x6c4   : > { %9617 = vmatmul.mubr.bf16.gmra.mrb[208].mxu1 %v14346_v45  ;;  %8920 = vmatprep.mubr.bf16.mxu0 %v14347_v40  ;;  %v14433_v45 = vld [vmem:[#allocation8 + $0x228] ss:$16 sps:$4 sm:$0xff]  }
 0x6c5   : > { %9626 = vmatprep.mubr.bf16.mxu1 %v14347_v40  ;;  %v16614_v40 = vpop.permute.xlu1 %7905 }
 0x6cb   : > { %8921 = vmatmul.mubr.bf16.gmra.mrb[212].mxu0 %v14349_v46 }
 0x6cc   : > { %9627 = vmatmul.mubr.bf16.gmra.mrb[212].mxu1 %v14349_v46  ;;  %8930 = vmatprep.mubr.bf16.mxu0 %v14350_v4  ;;  %v14434_v46 = vld [vmem:[#allocation8 + $0x24c] ss:$16 sps:$4 sm:$0xff]  }
 0x6cd   : > { %9636 = vmatprep.mubr.bf16.mxu1 %v14350_v4  ;;  %v16616_v4 = vpop.permute.xlu0 %7910 }
 0x6d3   : > { %8931 = vmatmul.mubr.bf16.gmra.mrb[216].mxu0 %v14352_v20 }
 0x6d4   : > { %9637 = vmatmul.mubr.bf16.gmra.mrb[216].mxu1 %v14352_v20  ;;  %8940 = vmatprep.mubr.bf16.mxu0 %v14353_v22  ;;  %v16618_v20 = vpop.permute.xlu1 %7915 }
 0x6d5   : > { %9646 = vmatprep.mubr.bf16.mxu1 %v14353_v22  ;;  %v14436_v22 = vld [vmem:[#allocation8 + $0x248] ss:$16 sps:$4 sm:$0xff]  }
 0x6db   : > { %8941 = vmatmul.mubr.bf16.gmra.mrb[220].mxu0 %v14355_v29 }
 0x6dc   : > { %9647 = vmatmul.mubr.bf16.gmra.mrb[220].mxu1 %v14355_v29  ;;  %8950 = vmatprep.mubr.bf16.mxu0 %v14356_v53  ;;  %v14437_v29 = vld [vmem:[#allocation8 + $0x26c] ss:$16 sps:$4 sm:$0xff]  }
 0x6dd   : > { %9656 = vmatprep.mubr.bf16.mxu1 %v14356_v53  ;;  %v16620_v53 = vpop.permute.xlu0 %7920 }
 0x6e3   : > { %8951 = vmatmul.mubr.bf16.gmra.mrb[224].mxu0 %v14358_v54 }
 0x6e4   : > { %9657 = vmatmul.mubr.bf16.gmra.mrb[224].mxu1 %v14358_v54  ;;  %8960 = vmatprep.mubr.bf16.mxu0 %v14359_v5  ;;  %v16622_v54 = vpop.permute.xlu1 %7925 }
 0x6e5   : > { %9666 = vmatprep.mubr.bf16.mxu1 %v14359_v5  ;;  %v14439_v5 = vld [vmem:[#allocation8 + $0x268] ss:$16 sps:$4 sm:$0xff]  }
 0x6eb   : > { %8961 = vmatmul.mubr.bf16.gmra.mrb[228].mxu0 %v14361_v2 }
 0x6ec   : > { %9667 = vmatmul.mubr.bf16.gmra.mrb[228].mxu1 %v14361_v2  ;;  %8970 = vmatprep.mubr.bf16.mxu0 %v14362_v25  ;;  %v14440_v2 = vld [vmem:[#allocation8 + $0x28c] ss:$16 sps:$4 sm:$0xff]  }
 0x6ed   : > { %9676 = vmatprep.mubr.bf16.mxu1 %v14362_v25  ;;  %v16624_v25 = vpop.permute.xlu0 %7930 }
 0x6f3   : > { %8971 = vmatmul.mubr.bf16.gmra.mrb[232].mxu0 %v14364_v3 }
 0x6f4   : > { %9677 = vmatmul.mubr.bf16.gmra.mrb[232].mxu1 %v14364_v3  ;;  %8980 = vmatprep.mubr.bf16.mxu0 %v14365_v42  ;;  %v16626_v3 = vpop.permute.xlu1 %7935 }
 0x6f5   : > { %9686 = vmatprep.mubr.bf16.mxu1 %v14365_v42  ;;  %v16628_v42 = vpop.permute.xlu0 %7940 }
 0x6fb   : > { %8981 = vmatmul.mubr.bf16.gmra.mrb[236].mxu0 %v14367_v44 }
 0x6fc   : > { %9687 = vmatmul.mubr.bf16.gmra.mrb[236].mxu1 %v14367_v44  ;;  %8990 = vmatprep.mubr.bf16.mxu0 %v14368_v21  ;;  %v14442_v44 = vld [vmem:[#allocation8 + $0x288] ss:$16 sps:$4 sm:$0xff]  }
 0x6fd   : > { %9696 = vmatprep.mubr.bf16.mxu1 %v14368_v21  ;;  %v16630_v21 = vpop.permute.xlu1 %7945 }
 0x703   : > { %8991 = vmatmul.mubr.bf16.gmra.mrb[240].mxu0 %v14370_v9 }
 0x704   : > { %9697 = vmatmul.mubr.bf16.gmra.mrb[240].mxu1 %v14370_v9  ;;  %9000 = vmatprep.mubr.bf16.mxu0 %v14371_v23  ;;  %v14443_v9 = vld [vmem:[#allocation8 + $0x2ac] ss:$16 sps:$4 sm:$0xff]  }
 0x705   : > { %9706 = vmatprep.mubr.bf16.mxu1 %v14371_v23  ;;  %v16632_v23 = vpop.permute.xlu0 %7950 }
 0x70b   : > { %9001 = vmatmul.mubr.bf16.gmra.mrb[244].mxu0 %v14373_v38 }
 0x70c   : > { %9707 = vmatmul.mubr.bf16.gmra.mrb[244].mxu1 %v14373_v38  ;;  %9010 = vmatprep.mubr.bf16.mxu0 %v14374_v18  ;;  %v16634_v38 = vpop.permute.xlu1 %7955 }
 0x70d   : > { %9716 = vmatprep.mubr.bf16.mxu1 %v14374_v18  ;;  %v14445_v18 = vld [vmem:[#allocation8 + $0x2a8] ss:$16 sps:$4 sm:$0xff]  }
 0x713   : > { %9011 = vmatmul.mubr.bf16.gmra.mrb[248].mxu0 %v14376_v16 }
 0x714   : > { %9717 = vmatmul.mubr.bf16.gmra.mrb[248].mxu1 %v14376_v16  ;;  %9020 = vmatprep.mubr.bf16.mxu0 %v14377_v55  ;;  %v14446_v16 = vld [vmem:[#allocation8 + $0x2cc] ss:$16 sps:$4 sm:$0xff]  }
 0x715   : > { %9726 = vmatprep.mubr.bf16.mxu1 %v14377_v55  ;;  %v16636_v55 = vpop.permute.xlu0 %7960 }
 0x71b   : > { %9021 = vmatmul.mubr.bf16.gmra.mrb[252].mxu0 %v14379_v62 }
 0x71c   : > { %9727 = vmatmul.mubr.bf16.gmra.mrb[252].mxu1 %v14379_v62  ;;  %9063 = vmatprep.mubr.bf16.mxu0 %v14382_v32  ;;  %v16638_v62 = vpop.permute.xlu1 %7965 }
 0x71d   : > { %9769 = vmatprep.mubr.bf16.mxu1 %v14382_v32  ;;  %v14448_v32 = vld [vmem:[#allocation8 + $0x2c8] ss:$16 sps:$4 sm:$0xff]  }
 0x723   : > { %9064 = vmatmul.mubr.bf16.vlgmr.msra.gmra.mrb[128].mxu0 %v14380_v12 }
 0x724   : > { %9770 = vmatmul.mubr.bf16.vlgmr.msra.gmra.mrb[128].mxu1 %v14380_v12  ;;  %9073 = vmatprep.mubr.bf16.mxu0 %v14383_v61  ;;  %v14449_v12 = vld [vmem:[#allocation8 + $0x2ec] ss:$16 sps:$4 sm:$0xff]  }
 0x725   : > { %9779 = vmatprep.mubr.bf16.mxu1 %v14383_v61  ;;  %v16640_v61 = vpop.permute.xlu0 %7970 }
 0x72b   : > { %9074 = vmatmul.mubr.bf16.gmra.mrb[132].mxu0 %v14385_v13 }
 0x72c   : > { %9780 = vmatmul.mubr.bf16.gmra.mrb[132].mxu1 %v14385_v13  ;;  %9083 = vmatprep.mubr.bf16.mxu0 %v14386_v57  ;;  %v16642_v13 = vpop.permute.xlu1 %7975 }
 0x72d   : > { %9789 = vmatprep.mubr.bf16.mxu1 %v14386_v57  ;;  %v16644_v57 = vpop.permute.xlu0 %7980 }
 0x733   : > { %9084 = vmatmul.mubr.bf16.gmra.mrb[136].mxu0 %v14388_v17 }
 0x734   : > { %9790 = vmatmul.mubr.bf16.gmra.mrb[136].mxu1 %v14388_v17  ;;  %9093 = vmatprep.mubr.bf16.mxu0 %v14389_v34  ;;  %v14451_v17 = vld [vmem:[#allocation8 + $0x2e8] ss:$16 sps:$4 sm:$0xff]  }
 0x735   : > { %9799 = vmatprep.mubr.bf16.mxu1 %v14389_v34  ;;  %v16646_v34 = vpop.permute.xlu1 %7985 }
 0x73b   : > { %9094 = vmatmul.mubr.bf16.gmra.mrb[140].mxu0 %v14391_v0 }
 0x73c   : > { %9800 = vmatmul.mubr.bf16.gmra.mrb[140].mxu1 %v14391_v0  ;;  %9103 = vmatprep.mubr.bf16.mxu0 %v14392_v36  ;;  %v14452_v0 = vld [vmem:[#allocation8 + $0x30c] ss:$16 sps:$4 sm:$0xff]  }
 0x73d   : > { %9809 = vmatprep.mubr.bf16.mxu1 %v14392_v36  ;;  %v16648_v36 = vpop.permute.xlu0 %7990 }
 0x743   : > { %9104 = vmatmul.mubr.bf16.gmra.mrb[144].mxu0 %v14394_v58 }
 0x744   : > { %9810 = vmatmul.mubr.bf16.gmra.mrb[144].mxu1 %v14394_v58  ;;  %9113 = vmatprep.mubr.bf16.mxu0 %v14395_v19  ;;  %v16650_v58 = vpop.permute.xlu1 %7995 }
 0x745   : > { %9819 = vmatprep.mubr.bf16.mxu1 %v14395_v19  ;;  %v14454_v19 = vld [vmem:[#allocation8 + $0x308] ss:$16 sps:$4 sm:$0xff]  }
 0x74b   : > { %9114 = vmatmul.mubr.bf16.gmra.mrb[148].mxu0 %v14397_v43 }
 0x74c   : > { %9820 = vmatmul.mubr.bf16.gmra.mrb[148].mxu1 %v14397_v43  ;;  %9123 = vmatprep.mubr.bf16.mxu0 %v14398_v39  ;;  %v14455_v43 = vld [vmem:[#allocation8 + $0x32c] ss:$16 sps:$4 sm:$0xff]  }
 0x74d   : > { %9829 = vmatprep.mubr.bf16.mxu1 %v14398_v39  ;;  %v16652_v39 = vpop.permute.xlu0 %8000 }
 0x753   : > { %9124 = vmatmul.mubr.bf16.gmra.mrb[152].mxu0 %v14400_v10 }
 0x754   : > { %9830 = vmatmul.mubr.bf16.gmra.mrb[152].mxu1 %v14400_v10  ;;  %9133 = vmatprep.mubr.bf16.mxu0 %v14401_v48  ;;  %v16654_v10 = vpop.permute.xlu1 %8005 }
 0x755   : > { %9839 = vmatprep.mubr.bf16.mxu1 %v14401_v48  ;;  %v14457_v48 = vld [vmem:[#allocation8 + $0x328] ss:$16 sps:$4 sm:$0xff]  }
 0x75b   : > { %9134 = vmatmul.mubr.bf16.gmra.mrb[156].mxu0 %v14403_v60 }
 0x75c   : > { %9840 = vmatmul.mubr.bf16.gmra.mrb[156].mxu1 %v14403_v60  ;;  %9143 = vmatprep.mubr.bf16.mxu0 %v14404_v33  ;;  %v14458_v60 = vld [vmem:[#allocation8 + $0x34c] ss:$16 sps:$4 sm:$0xff]  }
 0x75d   : > { %9849 = vmatprep.mubr.bf16.mxu1 %v14404_v33  ;;  %v16656_v33 = vpop.permute.xlu0 %8010 }
 0x763   : > { %9144 = vmatmul.mubr.bf16.gmra.mrb[160].mxu0 %v14406_v63 }
 0x764   : > { %9850 = vmatmul.mubr.bf16.gmra.mrb[160].mxu1 %v14406_v63  ;;  %9153 = vmatprep.mubr.bf16.mxu0 %v14407_v51  ;;  %v16658_v63 = vpop.permute.xlu1 %8015 }
 0x765   : > { %9859 = vmatprep.mubr.bf16.mxu1 %v14407_v51  ;;  %v16660_v51 = vpop.permute.xlu0 %8020 }
 0x76b   : > { %9154 = vmatmul.mubr.bf16.gmra.mrb[164].mxu0 %v14409_v11 }
 0x76c   : > { %9860 = vmatmul.mubr.bf16.gmra.mrb[164].mxu1 %v14409_v11  ;;  %9163 = vmatprep.mubr.bf16.mxu0 %v14410_v52  ;;  %v14460_v11 = vld [vmem:[#allocation8 + $0x348] ss:$16 sps:$4 sm:$0xff]  }
 0x76d   : > { %9869 = vmatprep.mubr.bf16.mxu1 %v14410_v52  ;;  %v16662_v52 = vpop.permute.xlu1 %8025 }
 0x76e   : > { %17159 = vst [vmem:[#allocation20_spill] sm:$0xff] %v16662_v52 }
 0x773   : > { %9164 = vmatmul.mubr.bf16.gmra.mrb[168].mxu0 %v14412_v30 }
 0x774   : > { %9870 = vmatmul.mubr.bf16.gmra.mrb[168].mxu1 %v14412_v30  ;;  %9173 = vmatprep.mubr.bf16.mxu0 %v14413_v41  ;;  %v14461_v30 = vld [vmem:[#allocation8 + $0x36c] ss:$16 sps:$4 sm:$0xff]  }
 0x775   : > { %9879 = vmatprep.mubr.bf16.mxu1 %v14413_v41  ;;  %v16664_v41 = vpop.permute.xlu0 %8030 }
 0x776   : > { %17160 = vst [vmem:[#allocation17_spill] sm:$0xff] %v16664_v41  ;;  %v17166_v41 = vld [vmem:[#allocation42_spill] sm:$0xff] }
 0x77b   : > { %9174 = vmatmul.mubr.bf16.gmra.mrb[172].mxu0 %v14415_v14 }
 0x77c   : > { %9880 = vmatmul.mubr.bf16.gmra.mrb[172].mxu1 %v14415_v14  ;;  %9183 = vmatprep.mubr.bf16.mxu0 %v14416_v49  ;;  %v16666_v14 = vpop.permute.xlu1 %8035 }
 0x77d   : > { %9889 = vmatprep.mubr.bf16.mxu1 %v14416_v49  ;;  %17161 = vst [vmem:[#allocation22_spill] sm:$0xff] %v16666_v14 }
 0x783   : > { %9184 = vmatmul.mubr.bf16.gmra.mrb[176].mxu0 %v14418_v31 }
 0x784   : > { %9890 = vmatmul.mubr.bf16.gmra.mrb[176].mxu1 %v14418_v31  ;;  %9193 = vmatprep.mubr.bf16.mxu0 %v14419_v26  ;;  %v17162_v31 = vld [vmem:[#allocation38_spill] sm:$0xff] }
 0x785   : > { %9899 = vmatprep.mubr.bf16.mxu1 %v14419_v26 }
 0x78b   : > { %9194 = vmatmul.mubr.bf16.gmra.mrb[180].mxu0 %v14421_v6 }
 0x78c   : > { %9900 = vmatmul.mubr.bf16.gmra.mrb[180].mxu1 %v14421_v6  ;;  %9203 = vmatprep.mubr.bf16.mxu0 %v14422_v7 }
 0x78d   : > { %9909 = vmatprep.mubr.bf16.mxu1 %v14422_v7 }
 0x793   : > { %9204 = vmatmul.mubr.bf16.gmra.mrb[184].mxu0 %v14424_v50 }
 0x794   : > { %9910 = vmatmul.mubr.bf16.gmra.mrb[184].mxu1 %v14424_v50  ;;  %9213 = vmatprep.mubr.bf16.mxu0 %v14425_v1  ;;  %v14463_v50 = vld [vmem:[#allocation8 + $0x368] ss:$16 sps:$4 sm:$0xff]  }
 0x795   : > { %9919 = vmatprep.mubr.bf16.mxu1 %v14425_v1 }
 0x79b   : > { %9214 = vmatmul.mubr.bf16.gmra.mrb[188].mxu0 %v14427_v47 }
 0x79c   : > { %9920 = vmatmul.mubr.bf16.gmra.mrb[188].mxu1 %v14427_v47  ;;  %9223 = vmatprep.mubr.bf16.mxu0 %v14428_v56 }
 0x79d   : > { %9929 = vmatprep.mubr.bf16.mxu1 %v14428_v56 }
 0x7a3   : > { %9224 = vmatmul.mubr.bf16.gmra.mrb[192].mxu0 %v14430_v28 }
 0x7a4   : > { %9930 = vmatmul.mubr.bf16.gmra.mrb[192].mxu1 %v14430_v28  ;;  %9233 = vmatprep.mubr.bf16.mxu0 %v14431_v37 }
 0x7a5   : > { %9939 = vmatprep.mubr.bf16.mxu1 %v14431_v37  ;;  %v14464_v37 = vld [vmem:[#allocation8 + $0x38c] ss:$16 sps:$4 sm:$0xff]  }
 0x7ab   : > { %9234 = vmatmul.mubr.bf16.gmra.mrb[196].mxu0 %v14433_v45 }
 0x7ac   : > { %9940 = vmatmul.mubr.bf16.gmra.mrb[196].mxu1 %v14433_v45  ;;  %9243 = vmatprep.mubr.bf16.mxu0 %v14434_v46 }
 0x7ad   : > { %9949 = vmatprep.mubr.bf16.mxu1 %v14434_v46 }
 0x7b3   : > { %9244 = vmatmul.mubr.bf16.gmra.mrb[200].mxu0 %v14436_v22 }
 0x7b4   : > { %9950 = vmatmul.mubr.bf16.gmra.mrb[200].mxu1 %v14436_v22  ;;  %9253 = vmatprep.mubr.bf16.mxu0 %v14437_v29  ;;  %v17163_v22 = vld [vmem:[#allocation45_spill] sm:$0xff] }
 0x7b5   : > { %9959 = vmatprep.mubr.bf16.mxu1 %v14437_v29 }
 0x7bb   : > { %9254 = vmatmul.mubr.bf16.gmra.mrb[204].mxu0 %v14439_v5 }
 0x7bc   : > { %9960 = vmatmul.mubr.bf16.gmra.mrb[204].mxu1 %v14439_v5  ;;  %9263 = vmatprep.mubr.bf16.mxu0 %v14440_v2 }
 0x7bd   : > { %9969 = vmatprep.mubr.bf16.mxu1 %v14440_v2 }
 0x7c3   : > { %9264 = vmatmul.mubr.bf16.gmra.mrb[208].mxu0 %v14442_v44 }
 0x7c4   : > { %9970 = vmatmul.mubr.bf16.gmra.mrb[208].mxu1 %v14442_v44  ;;  %9273 = vmatprep.mubr.bf16.mxu0 %v14443_v9 }
 0x7c5   : > { %9979 = vmatprep.mubr.bf16.mxu1 %v14443_v9 }
 0x7cb   : > { %9274 = vmatmul.mubr.bf16.gmra.mrb[212].mxu0 %v14445_v18 }
 0x7cc   : > { %9980 = vmatmul.mubr.bf16.gmra.mrb[212].mxu1 %v14445_v18  ;;  %9283 = vmatprep.mubr.bf16.mxu0 %v14446_v16 }
 0x7cd   : > { %9989 = vmatprep.mubr.bf16.mxu1 %v14446_v16 }
 0x7d3   : > { %9284 = vmatmul.mubr.bf16.gmra.mrb[216].mxu0 %v14448_v32 }
 0x7d4   : > { %9990 = vmatmul.mubr.bf16.gmra.mrb[216].mxu1 %v14448_v32  ;;  %9293 = vmatprep.mubr.bf16.mxu0 %v14449_v12 }
 0x7d5   : > { %9999 = vmatprep.mubr.bf16.mxu1 %v14449_v12 }
 0x7db   : > { %9294 = vmatmul.mubr.bf16.gmra.mrb[220].mxu0 %v14451_v17 }
 0x7dc   : > { %10000 = vmatmul.mubr.bf16.gmra.mrb[220].mxu1 %v14451_v17  ;;  %9303 = vmatprep.mubr.bf16.mxu0 %v14452_v0 }
 0x7dd   : > { %10009 = vmatprep.mubr.bf16.mxu1 %v14452_v0 }
 0x7e3   : > { %9304 = vmatmul.mubr.bf16.gmra.mrb[224].mxu0 %v14454_v19 }
 0x7e4   : > { %10010 = vmatmul.mubr.bf16.gmra.mrb[224].mxu1 %v14454_v19  ;;  %9313 = vmatprep.mubr.bf16.mxu0 %v14455_v43  ;;  %v10413_v19 = vpop.permute.xlu0 %10412 }
 0x7e5   : > { %10019 = vmatprep.mubr.bf16.mxu1 %v14455_v43  ;;  %v10418_v43 = vpop.permute.xlu1 %10417 }
 0x7eb   : > { %9314 = vmatmul.mubr.bf16.gmra.mrb[228].mxu0 %v14457_v48 }
 0x7ec   : > { %10020 = vmatmul.mubr.bf16.gmra.mrb[228].mxu1 %v14457_v48  ;;  %9323 = vmatprep.mubr.bf16.mxu0 %v14458_v60 }
 0x7ed   : > { %10029 = vmatprep.mubr.bf16.mxu1 %v14458_v60 }
 0x7f3   : > { %9324 = vmatmul.mubr.bf16.gmra.mrb[232].mxu0 %v14460_v11 }
 0x7f4   : > { %10030 = vmatmul.mubr.bf16.gmra.mrb[232].mxu1 %v14460_v11  ;;  %9333 = vmatprep.mubr.bf16.mxu0 %v14461_v30 }
 0x7f5   : > { %10039 = vmatprep.mubr.bf16.mxu1 %v14461_v30 }
 0x7f6   : > { %v9065_v49 = vpop.f32.mrb[128].mxu0 }
 0x7f7   : > { %v12155_v26 = vadd.f32 %v9065_v49, %v17162_v31  ;;  %v9771_v6 = vpop.f32.mrb[128].mxu1  ;;  %v9067_v7 = vpop.f32.mrb[129].mxu0 }
 0x7f8   : > { %v12283_v1 = vadd.f32 %v9771_v6, %v17162_v31  ;;  %v12156_v47 = vadd.f32 %v9067_v7, %v17162_v31  ;;  %v9773_v56 = vpop.f32.mrb[129].mxu1  ;;  %v9069_v28 = vpop.f32.mrb[130].mxu0 }
 0x7f9   : > { %v10090_v45 = vmax.f32 %v12155_v26, 0.0  ;;  %v12284_v46 = vadd.f32 %v9773_v56, %v17162_v31  ;;  %v12157_v29 = vadd.f32 %v9069_v28, %v17163_v22  ;;  %v9775_v5 = vpop.f32.mrb[130].mxu1  ;;  %v9071_v2 = vpop.f32.mrb[131].mxu0 }
 0x7fa   : > { %v10092_v44 = vmax.f32 %v12283_v1, 0.0  ;;  %v10091_v9 = vmax.f32 %v12156_v47, 0.0  ;;  %v12285_v18 = vadd.f32 %v9775_v5, %v17163_v22  ;;  %v12158_v16 = vadd.f32 %v9071_v2, %v17163_v22  ;;  %v9777_v32 = vpop.f32.mrb[131].mxu1  ;;  %v14466_v2 = vld [vmem:[#allocation8 + $0x388] ss:$16 sps:$4 sm:$0xff]  }
 0x7fb   : > { %v10093_v12 = vmax.f32 %v12284_v46, 0.0  ;;  %v10094_v17 = vmax.f32 %v12157_v29, 0.0  ;;  %v12286_v0 = vadd.f32 %v9777_v32, %v17163_v22  ;;  %9334 = vmatmul.mubr.bf16.gmra.mrb[236].mxu0 %v14463_v50  ;;  %v10730_v11 = vmul.f32 %v10413_v19, %v10090_v45  ;;  %v17164_v46 = vld [vmem:[#allocation40_spill] sm:$0xff] }
 0x7fc   : > { %v10096_v48 = vmax.f32 %v12285_v18, 0.0  ;;  %v10095_v60 = vmax.f32 %v12158_v16, 0.0  ;;  %10040 = vmatmul.mubr.bf16.gmra.mrb[236].mxu1 %v14463_v50  ;;  %9343 = vmatprep.mubr.bf16.mxu0 %v14464_v37  ;;  %v10732_v31 = vmul.f32 %v10413_v19, %v10092_v44  ;;  %v10731_v26 = vmul.f32 %v10413_v19, %v10091_v9  ;;  %v14467_v9 = vld [vmem:[#allocation8 + $0x3ac] ss:$16 sps:$4 sm:$0xff]  }
 0x7fd   : > { %v10734_v30 = vmul.f32 %v10418_v43, %v10094_v17  ;;  %v10097_v49 = vmax.f32 %v12286_v0, 0.0  ;;  %10049 = vmatprep.mubr.bf16.mxu1 %v14464_v37  ;;  %v10733_v47 = vmul.f32 %v10413_v19, %v10093_v12  ;;  %v17165_v0 = vld [vmem:[#allocation47_spill] sm:$0xff] }
 0x7fe   : > { %v10736_v6 = vmul.f32 %v10418_v43, %v10096_v48  ;;  %v10735_v7 = vmul.f32 %v10418_v43, %v10095_v60  ;;  %v9075_v1 = vpop.f32.mrb[132].mxu0  ;;  %v10423_v60 = vpop.permute.xlu0 %10422 }
 0x7ff   : > { %v10986_v56 = vadd.f32 %v10734_v30, %v10730_v11  ;;  %v10737_v28 = vmul.f32 %v10418_v43, %v10097_v49  ;;  %v12159_v22 = vadd.f32 %v9075_v1, %v17164_v46  ;;  %v9781_v29 = vpop.f32.mrb[132].mxu1  ;;  %v9077_v5 = vpop.f32.mrb[133].mxu0 }
 0x800   : > { %v11124_v18 = vadd.f32 %v10736_v6, %v10732_v31  ;;  %v11055_v50 = vadd.f32 %v10735_v7, %v10731_v26  ;;  %v12287_v45 = vadd.f32 %v9781_v29, %v17164_v46  ;;  %v12160_v16 = vadd.f32 %v9077_v5, %v17164_v46  ;;  %v9783_v37 = vpop.f32.mrb[133].mxu1  ;;  %v9079_v44 = vpop.f32.mrb[134].mxu0 }
 0x801   : > { %v11193_v32 = vadd.f32 %v10737_v28, %v10733_v47  ;;  %v10098_v17 = vmax.f32 %v12159_v22, 0.0  ;;  %v12288_v12 = vadd.f32 %v9783_v37, %v17164_v46  ;;  %v12161_v19 = vadd.f32 %v9079_v44, %v17165_v0  ;;  %v9785_v43 = vpop.f32.mrb[134].mxu1  ;;  %v9081_v48 = vpop.f32.mrb[135].mxu0 }
 0x802   : > { %v10100_v11 = vmax.f32 %v12287_v45, 0.0  ;;  %v10099_v30 = vmax.f32 %v12160_v16, 0.0  ;;  %v12289_v49 = vadd.f32 %v9785_v43, %v17165_v0  ;;  %v12162_v31 = vadd.f32 %v9081_v48, %v17165_v0  ;;  %v9787_v26 = vpop.f32.mrb[135].mxu1  ;;  %v10428_v28 = vpop.permute.xlu1 %10427 }
 0x803   : > { %v10738_v6 = vmul.f32 %v10423_v60, %v10098_v17  ;;  %v10101_v7 = vmax.f32 %v12288_v12, 0.0  ;;  %v10102_v1 = vmax.f32 %v12161_v19, 0.0  ;;  %v12290_v47 = vadd.f32 %v9787_v26, %v17165_v0  ;;  %9344 = vmatmul.mubr.bf16.gmra.mrb[240].mxu0 %v14466_v2 }
 0x804   : > { %v10740_v46 = vmul.f32 %v10423_v60, %v10100_v11  ;;  %v10739_v22 = vmul.f32 %v10423_v60, %v10099_v30  ;;  %v10104_v29 = vmax.f32 %v12289_v49, 0.0  ;;  %v10103_v5 = vmax.f32 %v12162_v31, 0.0  ;;  %10050 = vmatmul.mubr.bf16.gmra.mrb[240].mxu1 %v14466_v2  ;;  %9353 = vmatprep.mubr.bf16.mxu0 %v14467_v9  ;;  %v14469_v31 = vld [vmem:[#allocation8 + $0x3a8] ss:$16 sps:$4 sm:$0xff]  }
 0x805   : > { %v10987_v45 = vadd.f32 %v10986_v56, %v10738_v6  ;;  %v10741_v16 = vmul.f32 %v10423_v60, %v10101_v7  ;;  %v10742_v37 = vmul.f32 %v10428_v28, %v10102_v1  ;;  %v10105_v44 = vmax.f32 %v12290_v47, 0.0  ;;  %10059 = vmatprep.mubr.bf16.mxu1 %v14467_v9  ;;  %v17167_v1 = vld [vmem:[#allocation49_spill] sm:$0xff] }
 0x806   : > { %v11125_v43 = vadd.f32 %v11124_v18, %v10740_v46  ;;  %v11056_v48 = vadd.f32 %v11055_v50, %v10739_v22  ;;  %v10744_v17 = vmul.f32 %v10428_v28, %v10104_v29  ;;  %v10743_v12 = vmul.f32 %v10428_v28, %v10103_v5  ;;  %v9085_v19 = vpop.f32.mrb[136].mxu0  ;;  %v14470_v50 = vld [vmem:[#allocation8 + $0x3cc] ss:$16 sps:$4 sm:$0xff]   ;;  %v10433_v22 = vpop.permute.xlu0 %10432 }
 0x807   : > { %v11194_v14 = vadd.f32 %v11193_v32, %v10741_v16  ;;  %v10988_v0 = vadd.f32 %v10987_v45, %v10742_v37  ;;  %v10745_v26 = vmul.f32 %v10428_v28, %v10105_v44  ;;  %v12163_v11 = vadd.f32 %v9085_v19, %v17166_v41  ;;  %v9791_v30 = vpop.f32.mrb[136].mxu1  ;;  %v9087_v49 = vpop.f32.mrb[137].mxu0 }
 0x808   : > { %v11126_v2 = vadd.f32 %v11125_v43, %v10744_v17  ;;  %v11057_v52 = vadd.f32 %v11056_v48, %v10743_v12  ;;  %v12291_v56 = vadd.f32 %v9791_v30, %v17166_v41  ;;  %v12164_v60 = vadd.f32 %v9087_v49, %v17166_v41  ;;  %v9793_v9 = vpop.f32.mrb[137].mxu1  ;;  %v9089_v18 = vpop.f32.mrb[138].mxu0 }
 0x809   : > { %v11195_v6 = vadd.f32 %v11194_v14, %v10745_v26  ;;  %v10106_v7 = vmax.f32 %v12163_v11, 0.0  ;;  %v12292_v32 = vadd.f32 %v9793_v9, %v17166_v41  ;;  %v12165_v47 = vadd.f32 %v9089_v18, %v17167_v1  ;;  %v9795_v28 = vpop.f32.mrb[138].mxu1  ;;  %v9091_v46 = vpop.f32.mrb[139].mxu0 }
 0x80a   : > { %v10108_v29 = vmax.f32 %v12291_v56, 0.0  ;;  %v10107_v5 = vmax.f32 %v12164_v60, 0.0  ;;  %v12293_v45 = vadd.f32 %v9795_v28, %v17167_v1  ;;  %v12166_v16 = vadd.f32 %v9091_v46, %v17167_v1  ;;  %v9797_v37 = vpop.f32.mrb[139].mxu1  ;;  %v10438_v17 = vpop.permute.xlu1 %10437  ;;  %v17168_v46 = vld [vmem:[#allocation44_spill] sm:$0xff] }
 0x80b   : > { %v10746_v44 = vmul.f32 %v10433_v22, %v10106_v7  ;;  %v10109_v43 = vmax.f32 %v12292_v32, 0.0  ;;  %v10110_v48 = vmax.f32 %v12165_v47, 0.0  ;;  %v12294_v14 = vadd.f32 %v9797_v37, %v17167_v1  ;;  %9354 = vmatmul.mubr.bf16.gmra.mrb[244].mxu0 %v14469_v31 }
 0x80c   : > { %v10748_v41 = vmul.f32 %v10433_v22, %v10108_v29  ;;  %v10747_v12 = vmul.f32 %v10433_v22, %v10107_v5  ;;  %v10112_v19 = vmax.f32 %v12293_v45, 0.0  ;;  %v10111_v26 = vmax.f32 %v12166_v16, 0.0  ;;  %10060 = vmatmul.mubr.bf16.gmra.mrb[244].mxu1 %v14469_v31  ;;  %9363 = vmatprep.mubr.bf16.mxu0 %v14470_v50  ;;  %v14472_v16 = vld [vmem:[#allocation8 + $0x3c8] ss:$16 sps:$4 sm:$0xff]  }
 0x80d   : > { %v10989_v11 = vadd.f32 %v10988_v0, %v10746_v44  ;;  %v10749_v30 = vmul.f32 %v10433_v22, %v10109_v43  ;;  %v10750_v49 = vmul.f32 %v10438_v17, %v10110_v48  ;;  %v10113_v56 = vmax.f32 %v12294_v14, 0.0  ;;  %10069 = vmatprep.mubr.bf16.mxu1 %v14470_v50  ;;  %v17169_v48 = vld [vmem:[#allocation51_spill] sm:$0xff] }
 0x80e   : > { %v11127_v60 = vadd.f32 %v11126_v2, %v10748_v41  ;;  %v11058_v9 = vadd.f32 %v11057_v52, %v10747_v12  ;;  %v10752_v18 = vmul.f32 %v10438_v17, %v10112_v19  ;;  %v10751_v7 = vmul.f32 %v10438_v17, %v10111_v26  ;;  %v9095_v32 = vpop.f32.mrb[140].mxu0  ;;  %v14473_v52 = vld [vmem:[#allocation8 + $0x3ec] ss:$16 sps:$4 sm:$0xff]   ;;  %v10443_v12 = vpop.permute.xlu0 %10442 }
 0x80f   : > { %v11196_v47 = vadd.f32 %v11195_v6, %v10749_v30  ;;  %v10990_v1 = vadd.f32 %v10989_v11, %v10750_v49  ;;  %v10753_v28 = vmul.f32 %v10438_v17, %v10113_v56  ;;  %v12167_v29 = vadd.f32 %v9095_v32, %v17168_v46  ;;  %v9801_v5 = vpop.f32.mrb[140].mxu1  ;;  %v9097_v45 = vpop.f32.mrb[141].mxu0 }
 0x810   : > { %v11128_v31 = vadd.f32 %v11127_v60, %v10752_v18  ;;  %v11059_v37 = vadd.f32 %v11058_v9, %v10751_v7  ;;  %v12295_v0 = vadd.f32 %v9801_v5, %v17168_v46  ;;  %v12168_v22 = vadd.f32 %v9097_v45, %v17168_v46  ;;  %v9803_v50 = vpop.f32.mrb[141].mxu1  ;;  %v9099_v2 = vpop.f32.mrb[142].mxu0 }
 0x811   : > { %v11197_v44 = vadd.f32 %v11196_v47, %v10753_v28  ;;  %v10114_v43 = vmax.f32 %v12167_v29, 0.0  ;;  %v12296_v6 = vadd.f32 %v9803_v50, %v17168_v46  ;;  %v12169_v14 = vadd.f32 %v9099_v2, %v17169_v48  ;;  %v9805_v17 = vpop.f32.mrb[142].mxu1  ;;  %v9101_v41 = vpop.f32.mrb[143].mxu0 }
 0x812   : > { %v10116_v19 = vmax.f32 %v12295_v0, 0.0  ;;  %v10115_v26 = vmax.f32 %v12168_v22, 0.0  ;;  %v12297_v11 = vadd.f32 %v9805_v17, %v17169_v48  ;;  %v12170_v30 = vadd.f32 %v9101_v41, %v17169_v48  ;;  %v9807_v49 = vpop.f32.mrb[143].mxu1  ;;  %v10448_v7 = vpop.permute.xlu1 %10447  ;;  %v17170_v41 = vld [vmem:[#allocation46_spill] sm:$0xff] }
 0x813   : > { %v10754_v56 = vmul.f32 %v10443_v12, %v10114_v43  ;;  %v10117_v60 = vmax.f32 %v12296_v6, 0.0  ;;  %v10118_v9 = vmax.f32 %v12169_v14, 0.0  ;;  %v12298_v18 = vadd.f32 %v9807_v49, %v17169_v48  ;;  %9364 = vmatmul.mubr.bf16.gmra.mrb[248].mxu0 %v14472_v16 }
 0x814   : > { %v10756_v32 = vmul.f32 %v10443_v12, %v10116_v19  ;;  %v10755_v47 = vmul.f32 %v10443_v12, %v10115_v26  ;;  %v10120_v28 = vmax.f32 %v12297_v11, 0.0  ;;  %v10119_v46 = vmax.f32 %v12170_v30, 0.0  ;;  %10070 = vmatmul.mubr.bf16.gmra.mrb[248].mxu1 %v14472_v16  ;;  %9373 = vmatprep.mubr.bf16.mxu0 %v14473_v52  ;;  %v14475_v30 = vld [vmem:[#allocation8 + $0x3e8] ss:$16 sps:$4 sm:$0xff]  }
 0x815   : > { %v10991_v29 = vadd.f32 %v10990_v1, %v10754_v56  ;;  %v10757_v5 = vmul.f32 %v10443_v12, %v10117_v60  ;;  %v10758_v45 = vmul.f32 %v10448_v7, %v10118_v9  ;;  %v10121_v0 = vmax.f32 %v12298_v18, 0.0  ;;  %10079 = vmatprep.mubr.bf16.mxu1 %v14473_v52 }
 0x816   : > { %v11129_v22 = vadd.f32 %v11128_v31, %v10756_v32  ;;  %v11060_v50 = vadd.f32 %v11059_v37, %v10755_v47  ;;  %v10760_v2 = vmul.f32 %v10448_v7, %v10120_v28  ;;  %v10759_v43 = vmul.f32 %v10448_v7, %v10119_v46  ;;  %v9105_v6 = vpop.f32.mrb[144].mxu0  ;;  %v10453_v32 = vpop.permute.xlu0 %10452 }
 0x817   : > { %v11198_v14 = vadd.f32 %v11197_v44, %v10757_v5  ;;  %v10992_v48 = vadd.f32 %v10991_v29, %v10758_v45  ;;  %v10761_v17 = vmul.f32 %v10448_v7, %v10121_v0  ;;  %v12171_v19 = vadd.f32 %v9105_v6, %v17170_v41  ;;  %v9811_v26 = vpop.f32.mrb[144].mxu1  ;;  %v9107_v11 = vpop.f32.mrb[145].mxu0  ;;  %v17171_v44 = vld [vmem:[#allocation53_spill] sm:$0xff] }
 0x818   : > { %v11130_v16 = vadd.f32 %v11129_v22, %v10760_v2  ;;  %v11061_v49 = vadd.f32 %v11060_v50, %v10759_v43  ;;  %v12299_v1 = vadd.f32 %v9811_v26, %v17170_v41  ;;  %v12172_v12 = vadd.f32 %v9107_v11, %v17170_v41  ;;  %v9813_v52 = vpop.f32.mrb[145].mxu1  ;;  %v9109_v31 = vpop.f32.mrb[146].mxu0 }
 0x819   : > { %v11199_v37 = vadd.f32 %v11198_v14, %v10761_v17  ;;  %v10122_v56 = vmax.f32 %v12171_v19, 0.0  ;;  %v12300_v60 = vadd.f32 %v9813_v52, %v17170_v41  ;;  %v12173_v9 = vadd.f32 %v9109_v31, %v17171_v44  ;;  %v9815_v18 = vpop.f32.mrb[146].mxu1  ;;  %v9111_v7 = vpop.f32.mrb[147].mxu0 }
 0x81a   : > { %v10124_v47 = vmax.f32 %v12299_v1, 0.0  ;;  %v10123_v28 = vmax.f32 %v12172_v12, 0.0  ;;  %v12301_v46 = vadd.f32 %v9815_v18, %v17171_v44  ;;  %v12174_v29 = vadd.f32 %v9111_v7, %v17171_v44  ;;  %v9817_v5 = vpop.f32.mrb[147].mxu1  ;;  %v10458_v2 = vpop.permute.xlu1 %10457 }
 0x81b   : > { %v10762_v45 = vmul.f32 %v10453_v32, %v10122_v56  ;;  %v10125_v0 = vmax.f32 %v12300_v60, 0.0  ;;  %v10126_v22 = vmax.f32 %v12173_v9, 0.0  ;;  %v12302_v50 = vadd.f32 %v9817_v5, %v17171_v44  ;;  %9374 = vmatmul.mubr.bf16.gmra.mrb[252].mxu0 %v14475_v30  ;;  %v17172_v44 = vld [vmem:[#allocation48_spill] sm:$0xff] }
 0x81c   : > { %v10764_v43 = vmul.f32 %v10453_v32, %v10124_v47  ;;  %v10763_v6 = vmul.f32 %v10453_v32, %v10123_v28  ;;  %v10128_v14 = vmax.f32 %v12301_v46, 0.0  ;;  %v10127_v17 = vmax.f32 %v12174_v29, 0.0  ;;  %10080 = vmatmul.mubr.bf16.gmra.mrb[252].mxu1 %v14475_v30 }
 0x81d   : > { %v10993_v41 = vadd.f32 %v10992_v48, %v10762_v45  ;;  %v10765_v19 = vmul.f32 %v10453_v32, %v10125_v0  ;;  %v10766_v26 = vmul.f32 %v10458_v2, %v10126_v22  ;;  %v10129_v11 = vmax.f32 %v12302_v50, 0.0  ;;  %v17173_v0 = vld [vmem:[#allocation55_spill] sm:$0xff] }
 0x81e   : > { %v11131_v1 = vadd.f32 %v11130_v16, %v10764_v43  ;;  %v11062_v12 = vadd.f32 %v11061_v49, %v10763_v6  ;;  %v10768_v52 = vmul.f32 %v10458_v2, %v10128_v14  ;;  %v10767_v31 = vmul.f32 %v10458_v2, %v10127_v17  ;;  %v9115_v56 = vpop.f32.mrb[148].mxu0 }
 0x81f   : > { %v11200_v60 = vadd.f32 %v11199_v37, %v10765_v19  ;;  %v10994_v9 = vadd.f32 %v10993_v41, %v10766_v26  ;;  %v10769_v18 = vmul.f32 %v10458_v2, %v10129_v11  ;;  %v12175_v7 = vadd.f32 %v9115_v56, %v17172_v44  ;;  %v9821_v5 = vpop.f32.mrb[148].mxu1  ;;  %v9117_v47 = vpop.f32.mrb[149].mxu0 }
 0x820   : > { %v11132_v28 = vadd.f32 %v11131_v1, %v10768_v52  ;;  %v11063_v46 = vadd.f32 %v11062_v12, %v10767_v31  ;;  %v12303_v30 = vadd.f32 %v9821_v5, %v17172_v44  ;;  %v12176_v48 = vadd.f32 %v9117_v47, %v17172_v44  ;;  %v9823_v32 = vpop.f32.mrb[149].mxu1  ;;  %v9119_v29 = vpop.f32.mrb[150].mxu0 }
 0x821   : > { %v11201_v16 = vadd.f32 %v11200_v60, %v10769_v18  ;;  %v10130_v49 = vmax.f32 %v12175_v7, 0.0  ;;  %v12304_v45 = vadd.f32 %v9823_v32, %v17172_v44  ;;  %v12177_v37 = vadd.f32 %v9119_v29, %v17173_v0  ;;  %v9825_v22 = vpop.f32.mrb[150].mxu1  ;;  %v9121_v50 = vpop.f32.mrb[151].mxu0 }
 0x822   : > { %v10463_v2 = vpop.permute.xlu0 %10462  ;;  %v10132_v43 = vmax.f32 %v12303_v30, 0.0  ;;  %v10131_v6 = vmax.f32 %v12176_v48, 0.0  ;;  %v12305_v14 = vadd.f32 %v9825_v22, %v17173_v0  ;;  %v12178_v17 = vadd.f32 %v9121_v50, %v17173_v0  ;;  %v9827_v41 = vpop.f32.mrb[151].mxu1 }
 0x823   : > { %v10770_v19 = vmul.f32 %v10463_v2, %v10130_v49  ;;  %v10133_v26 = vmax.f32 %v12304_v45, 0.0  ;;  %v10134_v11 = vmax.f32 %v12177_v37, 0.0  ;;  %v12306_v1 = vadd.f32 %v9827_v41, %v17173_v0  ;;  %v10468_v12 = vpop.permute.xlu1 %10467  ;;  %v17174_v37 = vld [vmem:[#allocation50_spill] sm:$0xff] }
 0x824   : > { %v10772_v52 = vmul.f32 %v10463_v2, %v10132_v43  ;;  %v10771_v31 = vmul.f32 %v10463_v2, %v10131_v6  ;;  %v10136_v56 = vmax.f32 %v12305_v14, 0.0  ;;  %v10135_v60 = vmax.f32 %v12178_v17, 0.0 }
 0x825   : > { %v10995_v18 = vadd.f32 %v10994_v9, %v10770_v19  ;;  %v10773_v44 = vmul.f32 %v10463_v2, %v10133_v26  ;;  %v10774_v7 = vmul.f32 %v10468_v12, %v10134_v11  ;;  %v10137_v5 = vmax.f32 %v12306_v1, 0.0  ;;  %v17175_v26 = vld [vmem:[#allocation57_spill] sm:$0xff] }
 0x826   : > { %v11133_v47 = vadd.f32 %v11132_v28, %v10772_v52  ;;  %v11064_v30 = vadd.f32 %v11063_v46, %v10771_v31  ;;  %v10776_v48 = vmul.f32 %v10468_v12, %v10136_v56  ;;  %v10775_v32 = vmul.f32 %v10468_v12, %v10135_v60  ;;  %v9125_v29 = vpop.f32.mrb[152].mxu0 }
 0x827   : > { %v11202_v22 = vadd.f32 %v11201_v16, %v10773_v44  ;;  %v10996_v49 = vadd.f32 %v10995_v18, %v10774_v7  ;;  %v10777_v45 = vmul.f32 %v10468_v12, %v10137_v5  ;;  %v12179_v50 = vadd.f32 %v9125_v29, %v17174_v37  ;;  %v9831_v0 = vpop.f32.mrb[152].mxu1  ;;  %v9127_v41 = vpop.f32.mrb[153].mxu0 }
 0x828   : > { %v11134_v43 = vadd.f32 %v11133_v47, %v10776_v48  ;;  %v11065_v6 = vadd.f32 %v11064_v30, %v10775_v32  ;;  %v12307_v14 = vadd.f32 %v9831_v0, %v17174_v37  ;;  %v12180_v9 = vadd.f32 %v9127_v41, %v17174_v37  ;;  %v9833_v2 = vpop.f32.mrb[153].mxu1  ;;  %v9129_v17 = vpop.f32.mrb[154].mxu0 }
 0x829   : > { %v11203_v28 = vadd.f32 %v11202_v22, %v10777_v45  ;;  %v10138_v46 = vmax.f32 %v12179_v50, 0.0  ;;  %v12308_v19 = vadd.f32 %v9833_v2, %v17174_v37  ;;  %v12181_v16 = vadd.f32 %v9129_v17, %v17175_v26  ;;  %v9835_v11 = vpop.f32.mrb[154].mxu1  ;;  %v9131_v1 = vpop.f32.mrb[155].mxu0 }
 0x82a   : > { %v10473_v12 = vpop.permute.xlu0 %10472  ;;  %v10140_v52 = vmax.f32 %v12307_v14, 0.0  ;;  %v10139_v31 = vmax.f32 %v12180_v9, 0.0  ;;  %v12309_v56 = vadd.f32 %v9835_v11, %v17175_v26  ;;  %v12182_v60 = vadd.f32 %v9131_v1, %v17175_v26  ;;  %v9837_v18 = vpop.f32.mrb[155].mxu1 }
 0x82b   : > { %v10778_v44 = vmul.f32 %v10473_v12, %v10138_v46  ;;  %v10141_v7 = vmax.f32 %v12308_v19, 0.0  ;;  %v10142_v5 = vmax.f32 %v12181_v16, 0.0  ;;  %v12310_v47 = vadd.f32 %v9837_v18, %v17175_v26  ;;  %v10478_v30 = vpop.permute.xlu1 %10477  ;;  %v17176_v16 = vld [vmem:[#allocation52_spill] sm:$0xff] }
 0x82c   : > { %v10780_v48 = vmul.f32 %v10473_v12, %v10140_v52  ;;  %v10779_v32 = vmul.f32 %v10473_v12, %v10139_v31  ;;  %v10144_v29 = vmax.f32 %v12309_v56, 0.0  ;;  %v10143_v22 = vmax.f32 %v12182_v60, 0.0 }
 0x82d   : > { %v10997_v45 = vadd.f32 %v10996_v49, %v10778_v44  ;;  %v10781_v37 = vmul.f32 %v10473_v12, %v10141_v7  ;;  %v10782_v50 = vmul.f32 %v10478_v30, %v10142_v5  ;;  %v10145_v0 = vmax.f32 %v12310_v47, 0.0  ;;  %v17177_v7 = vld [vmem:[#allocation59_spill] sm:$0xff] }
 0x82e   : > { %v11135_v41 = vadd.f32 %v11134_v43, %v10780_v48  ;;  %v11066_v14 = vadd.f32 %v11065_v6, %v10779_v32  ;;  %v10784_v9 = vmul.f32 %v10478_v30, %v10144_v29  ;;  %v10783_v2 = vmul.f32 %v10478_v30, %v10143_v22  ;;  %v9135_v17 = vpop.f32.mrb[156].mxu0 }
 0x82f   : > { %v11204_v11 = vadd.f32 %v11203_v28, %v10781_v37  ;;  %v10998_v46 = vadd.f32 %v10997_v45, %v10782_v50  ;;  %v10785_v19 = vmul.f32 %v10478_v30, %v10145_v0  ;;  %v12183_v1 = vadd.f32 %v9135_v17, %v17176_v16  ;;  %v9841_v26 = vpop.f32.mrb[156].mxu1  ;;  %v9137_v18 = vpop.f32.mrb[157].mxu0 }
 0x830   : > { %v11136_v52 = vadd.f32 %v11135_v41, %v10784_v9  ;;  %v11067_v31 = vadd.f32 %v11066_v14, %v10783_v2  ;;  %v12311_v56 = vadd.f32 %v9841_v26, %v17176_v16  ;;  %v12184_v49 = vadd.f32 %v9137_v18, %v17176_v16  ;;  %v9843_v12 = vpop.f32.mrb[157].mxu1  ;;  %v9139_v60 = vpop.f32.mrb[158].mxu0 }
 0x831   : > { %v11205_v43 = vadd.f32 %v11204_v11, %v10785_v19  ;;  %v10146_v6 = vmax.f32 %v12183_v1, 0.0  ;;  %v12312_v44 = vadd.f32 %v9843_v12, %v17176_v16  ;;  %v12185_v28 = vadd.f32 %v9139_v60, %v17177_v7  ;;  %v9845_v5 = vpop.f32.mrb[158].mxu1  ;;  %v9141_v47 = vpop.f32.mrb[159].mxu0 }
 0x832   : > { %v10483_v30 = vpop.permute.xlu0 %10482  ;;  %v10148_v48 = vmax.f32 %v12311_v56, 0.0  ;;  %v10147_v32 = vmax.f32 %v12184_v49, 0.0  ;;  %v12313_v29 = vadd.f32 %v9845_v5, %v17177_v7  ;;  %v12186_v22 = vadd.f32 %v9141_v47, %v17177_v7  ;;  %v9847_v45 = vpop.f32.mrb[159].mxu1 }
 0x833   : > { %v10786_v37 = vmul.f32 %v10483_v30, %v10146_v6  ;;  %v10149_v50 = vmax.f32 %v12312_v44, 0.0  ;;  %v10150_v0 = vmax.f32 %v12185_v28, 0.0  ;;  %v12314_v41 = vadd.f32 %v9847_v45, %v17177_v7  ;;  %v10488_v14 = vpop.permute.xlu1 %10487  ;;  %v17178_v28 = vld [vmem:[#allocation54_spill] sm:$0xff] }
 0x834   : > { %v10788_v9 = vmul.f32 %v10483_v30, %v10148_v48  ;;  %v10787_v2 = vmul.f32 %v10483_v30, %v10147_v32  ;;  %v10152_v17 = vmax.f32 %v12313_v29, 0.0  ;;  %v10151_v11 = vmax.f32 %v12186_v22, 0.0 }
 0x835   : > { %v10999_v19 = vadd.f32 %v10998_v46, %v10786_v37  ;;  %v10789_v16 = vmul.f32 %v10483_v30, %v10149_v50  ;;  %v10790_v1 = vmul.f32 %v10488_v14, %v10150_v0  ;;  %v10153_v26 = vmax.f32 %v12314_v41, 0.0  ;;  %v17179_v50 = vld [vmem:[#allocation61_spill] sm:$0xff] }
 0x836   : > { %v11137_v18 = vadd.f32 %v11136_v52, %v10788_v9  ;;  %v11068_v56 = vadd.f32 %v11067_v31, %v10787_v2  ;;  %v10792_v49 = vmul.f32 %v10488_v14, %v10152_v17  ;;  %v10791_v12 = vmul.f32 %v10488_v14, %v10151_v11  ;;  %v9145_v60 = vpop.f32.mrb[160].mxu0 }
 0x837   : > { %v11206_v5 = vadd.f32 %v11205_v43, %v10789_v16  ;;  %v11000_v6 = vadd.f32 %v10999_v19, %v10790_v1  ;;  %v10793_v44 = vmul.f32 %v10488_v14, %v10153_v26  ;;  %v12187_v47 = vadd.f32 %v9145_v60, %v17178_v28  ;;  %v9851_v7 = vpop.f32.mrb[160].mxu1  ;;  %v9147_v45 = vpop.f32.mrb[161].mxu0 }
 0x838   : > { %v11138_v48 = vadd.f32 %v11137_v18, %v10792_v49  ;;  %v11069_v32 = vadd.f32 %v11068_v56, %v10791_v12  ;;  %v12315_v29 = vadd.f32 %v9851_v7, %v17178_v28  ;;  %v12188_v46 = vadd.f32 %v9147_v45, %v17178_v28  ;;  %v9853_v30 = vpop.f32.mrb[161].mxu1  ;;  %v9149_v22 = vpop.f32.mrb[162].mxu0 }
 0x839   : > { %v11207_v52 = vadd.f32 %v11206_v5, %v10793_v44  ;;  %v10154_v31 = vmax.f32 %v12187_v47, 0.0  ;;  %v12316_v37 = vadd.f32 %v9853_v30, %v17178_v28  ;;  %v12189_v43 = vadd.f32 %v9149_v22, %v17179_v50  ;;  %v9855_v0 = vpop.f32.mrb[162].mxu1  ;;  %v9151_v41 = vpop.f32.mrb[163].mxu0 }
 0x83a   : > { %v10493_v14 = vpop.permute.xlu0 %10492  ;;  %v10156_v9 = vmax.f32 %v12315_v29, 0.0  ;;  %v10155_v2 = vmax.f32 %v12188_v46, 0.0  ;;  %v12317_v17 = vadd.f32 %v9855_v0, %v17179_v50  ;;  %v12190_v11 = vadd.f32 %v9151_v41, %v17179_v50  ;;  %v9857_v19 = vpop.f32.mrb[163].mxu1 }
 0x83b   : > { %v10794_v16 = vmul.f32 %v10493_v14, %v10154_v31  ;;  %v10157_v1 = vmax.f32 %v12316_v37, 0.0  ;;  %v10158_v26 = vmax.f32 %v12189_v43, 0.0  ;;  %v12318_v18 = vadd.f32 %v9857_v19, %v17179_v50  ;;  %v10498_v56 = vpop.permute.xlu1 %10497  ;;  %v17180_v43 = vld [vmem:[#allocation56_spill] sm:$0xff] }
 0x83c   : > { %v10796_v49 = vmul.f32 %v10493_v14, %v10156_v9  ;;  %v10795_v12 = vmul.f32 %v10493_v14, %v10155_v2  ;;  %v10160_v60 = vmax.f32 %v12317_v17, 0.0  ;;  %v10159_v5 = vmax.f32 %v12190_v11, 0.0 }
 0x83d   : > { %v11001_v44 = vadd.f32 %v11000_v6, %v10794_v16  ;;  %v10797_v28 = vmul.f32 %v10493_v14, %v10157_v1  ;;  %v10798_v47 = vmul.f32 %v10498_v56, %v10158_v26  ;;  %v10161_v7 = vmax.f32 %v12318_v18, 0.0  ;;  %v17181_v1 = vld [vmem:[#allocation63_spill] sm:$0xff] }
 0x83e   : > { %v11139_v45 = vadd.f32 %v11138_v48, %v10796_v49  ;;  %v11070_v29 = vadd.f32 %v11069_v32, %v10795_v12  ;;  %v10800_v46 = vmul.f32 %v10498_v56, %v10160_v60  ;;  %v10799_v30 = vmul.f32 %v10498_v56, %v10159_v5  ;;  %v9155_v22 = vpop.f32.mrb[164].mxu0 }
 0x83f   : > { %v11208_v0 = vadd.f32 %v11207_v52, %v10797_v28  ;;  %v11002_v31 = vadd.f32 %v11001_v44, %v10798_v47  ;;  %v10801_v37 = vmul.f32 %v10498_v56, %v10161_v7  ;;  %v12191_v41 = vadd.f32 %v9155_v22, %v17180_v43  ;;  %v9861_v50 = vpop.f32.mrb[164].mxu1  ;;  %v9157_v19 = vpop.f32.mrb[165].mxu0 }
 0x840   : > { %v11140_v9 = vadd.f32 %v11139_v45, %v10800_v46  ;;  %v11071_v2 = vadd.f32 %v11070_v29, %v10799_v30  ;;  %v12319_v17 = vadd.f32 %v9861_v50, %v17180_v43  ;;  %v12192_v6 = vadd.f32 %v9157_v19, %v17180_v43  ;;  %v9863_v14 = vpop.f32.mrb[165].mxu1  ;;  %v9159_v11 = vpop.f32.mrb[166].mxu0 }
 0x841   : > { %v11209_v48 = vadd.f32 %v11208_v0, %v10801_v37  ;;  %v10162_v32 = vmax.f32 %v12191_v41, 0.0  ;;  %v12320_v16 = vadd.f32 %v9863_v14, %v17180_v43  ;;  %v12193_v52 = vadd.f32 %v9159_v11, %v17181_v1  ;;  %v9865_v26 = vpop.f32.mrb[166].mxu1  ;;  %v9161_v18 = vpop.f32.mrb[167].mxu0 }
 0x842   : > { %v10503_v56 = vpop.permute.xlu0 %10502  ;;  %v10164_v49 = vmax.f32 %v12319_v17, 0.0  ;;  %v10163_v12 = vmax.f32 %v12192_v6, 0.0  ;;  %v12321_v60 = vadd.f32 %v9865_v26, %v17181_v1  ;;  %v12194_v5 = vadd.f32 %v9161_v18, %v17181_v1  ;;  %v9867_v44 = vpop.f32.mrb[167].mxu1 }
 0x843   : > { %v10802_v28 = vmul.f32 %v10503_v56, %v10162_v32  ;;  %v10165_v47 = vmax.f32 %v12320_v16, 0.0  ;;  %v10166_v7 = vmax.f32 %v12193_v52, 0.0  ;;  %v12322_v45 = vadd.f32 %v9867_v44, %v17181_v1  ;;  %v10508_v29 = vpop.permute.xlu1 %10507  ;;  %v17182_v52 = vld [vmem:[#allocation58_spill] sm:$0xff] }
 0x844   : > { %v10804_v46 = vmul.f32 %v10503_v56, %v10164_v49  ;;  %v10803_v30 = vmul.f32 %v10503_v56, %v10163_v12  ;;  %v10168_v22 = vmax.f32 %v12321_v60, 0.0  ;;  %v10167_v0 = vmax.f32 %v12194_v5, 0.0 }
 0x845   : > { %v11003_v37 = vadd.f32 %v11002_v31, %v10802_v28  ;;  %v10805_v43 = vmul.f32 %v10503_v56, %v10165_v47  ;;  %v10806_v41 = vmul.f32 %v10508_v29, %v10166_v7  ;;  %v10169_v50 = vmax.f32 %v12322_v45, 0.0  ;;  %v17183_v47 = vld [vmem:[#allocation65_spill] sm:$0xff] }
 0x846   : > { %v11141_v19 = vadd.f32 %v11140_v9, %v10804_v46  ;;  %v11072_v17 = vadd.f32 %v11071_v2, %v10803_v30  ;;  %v10808_v6 = vmul.f32 %v10508_v29, %v10168_v22  ;;  %v10807_v14 = vmul.f32 %v10508_v29, %v10167_v0  ;;  %v9165_v11 = vpop.f32.mrb[168].mxu0 }
 0x847   : > { %v11210_v26 = vadd.f32 %v11209_v48, %v10805_v43  ;;  %v11004_v32 = vadd.f32 %v11003_v37, %v10806_v41  ;;  %v10809_v16 = vmul.f32 %v10508_v29, %v10169_v50  ;;  %v12195_v18 = vadd.f32 %v9165_v11, %v17182_v52  ;;  %v9871_v1 = vpop.f32.mrb[168].mxu1  ;;  %v9167_v44 = vpop.f32.mrb[169].mxu0 }
 0x848   : > { %v11142_v49 = vadd.f32 %v11141_v19, %v10808_v6  ;;  %v11073_v12 = vadd.f32 %v11072_v17, %v10807_v14  ;;  %v12323_v60 = vadd.f32 %v9871_v1, %v17182_v52  ;;  %v12196_v31 = vadd.f32 %v9167_v44, %v17182_v52  ;;  %v9873_v56 = vpop.f32.mrb[169].mxu1  ;;  %v9169_v5 = vpop.f32.mrb[170].mxu0 }
 0x849   : > { %v11211_v9 = vadd.f32 %v11210_v26, %v10809_v16  ;;  %v10170_v2 = vmax.f32 %v12195_v18, 0.0  ;;  %v12324_v28 = vadd.f32 %v9873_v56, %v17182_v52  ;;  %v12197_v48 = vadd.f32 %v9169_v5, %v17183_v47  ;;  %v9875_v7 = vpop.f32.mrb[170].mxu1  ;;  %v9171_v45 = vpop.f32.mrb[171].mxu0 }
 0x84a   : > { %v10513_v29 = vpop.permute.xlu0 %10512  ;;  %v10172_v46 = vmax.f32 %v12323_v60, 0.0  ;;  %v10171_v30 = vmax.f32 %v12196_v31, 0.0  ;;  %v12325_v22 = vadd.f32 %v9875_v7, %v17183_v47  ;;  %v12198_v0 = vadd.f32 %v9171_v45, %v17183_v47  ;;  %v9877_v37 = vpop.f32.mrb[171].mxu1 }
 0x84b   : > { %v10810_v43 = vmul.f32 %v10513_v29, %v10170_v2  ;;  %v10173_v41 = vmax.f32 %v12324_v28, 0.0  ;;  %v10174_v50 = vmax.f32 %v12197_v48, 0.0  ;;  %v12326_v19 = vadd.f32 %v9877_v37, %v17183_v47  ;;  %v10518_v17 = vpop.permute.xlu1 %10517  ;;  %v17184_v48 = vld [vmem:[#allocation60_spill] sm:$0xff] }
 0x84c   : > { %v10812_v6 = vmul.f32 %v10513_v29, %v10172_v46  ;;  %v10811_v14 = vmul.f32 %v10513_v29, %v10171_v30  ;;  %v10176_v11 = vmax.f32 %v12325_v22, 0.0  ;;  %v10175_v26 = vmax.f32 %v12198_v0, 0.0 }
 0x84d   : > { %v11005_v16 = vadd.f32 %v11004_v32, %v10810_v43  ;;  %v10813_v52 = vmul.f32 %v10513_v29, %v10173_v41  ;;  %v10814_v18 = vmul.f32 %v10518_v17, %v10174_v50  ;;  %v10177_v1 = vmax.f32 %v12326_v19, 0.0  ;;  %v17185_v41 = vld [vmem:[#allocation67_spill] sm:$0xff] }
 0x84e   : > { %v11143_v44 = vadd.f32 %v11142_v49, %v10812_v6  ;;  %v11074_v60 = vadd.f32 %v11073_v12, %v10811_v14  ;;  %v10816_v31 = vmul.f32 %v10518_v17, %v10176_v11  ;;  %v10815_v56 = vmul.f32 %v10518_v17, %v10175_v26  ;;  %v9175_v5 = vpop.f32.mrb[172].mxu0 }
 0x84f   : > { %v11212_v7 = vadd.f32 %v11211_v9, %v10813_v52  ;;  %v11006_v2 = vadd.f32 %v11005_v16, %v10814_v18  ;;  %v10817_v28 = vmul.f32 %v10518_v17, %v10177_v1  ;;  %v12199_v45 = vadd.f32 %v9175_v5, %v17184_v48  ;;  %v9881_v47 = vpop.f32.mrb[172].mxu1  ;;  %v9177_v37 = vpop.f32.mrb[173].mxu0 }
 0x850   : > { %v11144_v46 = vadd.f32 %v11143_v44, %v10816_v31  ;;  %v11075_v30 = vadd.f32 %v11074_v60, %v10815_v56  ;;  %v12327_v22 = vadd.f32 %v9881_v47, %v17184_v48  ;;  %v12200_v32 = vadd.f32 %v9177_v37, %v17184_v48  ;;  %v9883_v29 = vpop.f32.mrb[173].mxu1  ;;  %v9179_v0 = vpop.f32.mrb[174].mxu0 }
 0x851   : > { %v11213_v49 = vadd.f32 %v11212_v7, %v10817_v28  ;;  %v10178_v12 = vmax.f32 %v12199_v45, 0.0  ;;  %v12328_v43 = vadd.f32 %v9883_v29, %v17184_v48  ;;  %v12201_v9 = vadd.f32 %v9179_v0, %v17185_v41  ;;  %v9885_v50 = vpop.f32.mrb[174].mxu1  ;;  %v9181_v19 = vpop.f32.mrb[175].mxu0 }
 0x852   : > { %v10523_v17 = vpop.permute.xlu0 %10522  ;;  %v10180_v6 = vmax.f32 %v12327_v22, 0.0  ;;  %v10179_v14 = vmax.f32 %v12200_v32, 0.0  ;;  %v12329_v11 = vadd.f32 %v9885_v50, %v17185_v41  ;;  %v12202_v26 = vadd.f32 %v9181_v19, %v17185_v41  ;;  %v9887_v16 = vpop.f32.mrb[175].mxu1 }
 0x853   : > { %v10818_v52 = vmul.f32 %v10523_v17, %v10178_v12  ;;  %v10181_v18 = vmax.f32 %v12328_v43, 0.0  ;;  %v10182_v1 = vmax.f32 %v12201_v9, 0.0  ;;  %v12330_v44 = vadd.f32 %v9887_v16, %v17185_v41  ;;  %v10528_v60 = vpop.permute.xlu1 %10527  ;;  %v17186_v9 = vld [vmem:[#allocation62_spill] sm:$0xff] }
 0x854   : > { %v10820_v31 = vmul.f32 %v10523_v17, %v10180_v6  ;;  %v10819_v56 = vmul.f32 %v10523_v17, %v10179_v14  ;;  %v10184_v5 = vmax.f32 %v12329_v11, 0.0  ;;  %v10183_v7 = vmax.f32 %v12202_v26, 0.0 }
 0x855   : > { %v11007_v28 = vadd.f32 %v11006_v2, %v10818_v52  ;;  %v10821_v48 = vmul.f32 %v10523_v17, %v10181_v18  ;;  %v10822_v45 = vmul.f32 %v10528_v60, %v10182_v1  ;;  %v10185_v47 = vmax.f32 %v12330_v44, 0.0  ;;  %v17187_v18 = vld [vmem:[#allocation69_spill] sm:$0xff] }
 0x856   : > { %v11145_v37 = vadd.f32 %v11144_v46, %v10820_v31  ;;  %v11076_v22 = vadd.f32 %v11075_v30, %v10819_v56  ;;  %v10824_v32 = vmul.f32 %v10528_v60, %v10184_v5  ;;  %v10823_v29 = vmul.f32 %v10528_v60, %v10183_v7  ;;  %v9185_v0 = vpop.f32.mrb[176].mxu0 }
 0x857   : > { %v11214_v50 = vadd.f32 %v11213_v49, %v10821_v48  ;;  %v11008_v12 = vadd.f32 %v11007_v28, %v10822_v45  ;;  %v10825_v43 = vmul.f32 %v10528_v60, %v10185_v47  ;;  %v12203_v19 = vadd.f32 %v9185_v0, %v17186_v9  ;;  %v9891_v41 = vpop.f32.mrb[176].mxu1  ;;  %v9187_v16 = vpop.f32.mrb[177].mxu0 }
 0x858   : > { %v11146_v6 = vadd.f32 %v11145_v37, %v10824_v32  ;;  %v11077_v14 = vadd.f32 %v11076_v22, %v10823_v29  ;;  %v12331_v11 = vadd.f32 %v9891_v41, %v17186_v9  ;;  %v12204_v2 = vadd.f32 %v9187_v16, %v17186_v9  ;;  %v9893_v17 = vpop.f32.mrb[177].mxu1  ;;  %v9189_v26 = vpop.f32.mrb[178].mxu0 }
 0x859   : > { %v11215_v46 = vadd.f32 %v11214_v50, %v10825_v43  ;;  %v10186_v30 = vmax.f32 %v12203_v19, 0.0  ;;  %v12332_v52 = vadd.f32 %v9893_v17, %v17186_v9  ;;  %v12205_v49 = vadd.f32 %v9189_v26, %v17187_v18  ;;  %v9895_v1 = vpop.f32.mrb[178].mxu1  ;;  %v9191_v44 = vpop.f32.mrb[179].mxu0 }
 0x85a   : > { %v10533_v60 = vpop.permute.xlu0 %10532  ;;  %v10188_v31 = vmax.f32 %v12331_v11, 0.0  ;;  %v10187_v56 = vmax.f32 %v12204_v2, 0.0  ;;  %v12333_v5 = vadd.f32 %v9895_v1, %v17187_v18  ;;  %v12206_v7 = vadd.f32 %v9191_v44, %v17187_v18  ;;  %v9897_v28 = vpop.f32.mrb[179].mxu1 }
 0x85b   : > { %v10826_v48 = vmul.f32 %v10533_v60, %v10186_v30  ;;  %v10189_v45 = vmax.f32 %v12332_v52, 0.0  ;;  %v10190_v47 = vmax.f32 %v12205_v49, 0.0  ;;  %v12334_v37 = vadd.f32 %v9897_v28, %v17187_v18  ;;  %v10538_v22 = vpop.permute.xlu1 %10537  ;;  %v17188_v49 = vld [vmem:[#allocation64_spill] sm:$0xff] }
 0x85c   : > { %v10828_v32 = vmul.f32 %v10533_v60, %v10188_v31  ;;  %v10827_v29 = vmul.f32 %v10533_v60, %v10187_v56  ;;  %v10192_v0 = vmax.f32 %v12333_v5, 0.0  ;;  %v10191_v50 = vmax.f32 %v12206_v7, 0.0 }
 0x85d   : > { %v11009_v43 = vadd.f32 %v11008_v12, %v10826_v48  ;;  %v10829_v9 = vmul.f32 %v10533_v60, %v10189_v45  ;;  %v10830_v19 = vmul.f32 %v10538_v22, %v10190_v47  ;;  %v10193_v41 = vmax.f32 %v12334_v37, 0.0  ;;  %v17189_v45 = vld [vmem:[#allocation70_spill] sm:$0xff] }
 0x85e   : > { %v11147_v16 = vadd.f32 %v11146_v6, %v10828_v32  ;;  %v11078_v11 = vadd.f32 %v11077_v14, %v10827_v29  ;;  %v10832_v2 = vmul.f32 %v10538_v22, %v10192_v0  ;;  %v10831_v17 = vmul.f32 %v10538_v22, %v10191_v50  ;;  %v9195_v26 = vpop.f32.mrb[180].mxu0 }
 0x85f   : > { %v11216_v1 = vadd.f32 %v11215_v46, %v10829_v9  ;;  %v11010_v30 = vadd.f32 %v11009_v43, %v10830_v19  ;;  %v10833_v52 = vmul.f32 %v10538_v22, %v10193_v41  ;;  %v12207_v44 = vadd.f32 %v9195_v26, %v17188_v49  ;;  %v9901_v18 = vpop.f32.mrb[180].mxu1  ;;  %v9197_v28 = vpop.f32.mrb[181].mxu0 }
 0x860   : > { %v11148_v31 = vadd.f32 %v11147_v16, %v10832_v2  ;;  %v11079_v56 = vadd.f32 %v11078_v11, %v10831_v17  ;;  %v12335_v5 = vadd.f32 %v9901_v18, %v17188_v49  ;;  %v12208_v12 = vadd.f32 %v9197_v28, %v17188_v49  ;;  %v9903_v60 = vpop.f32.mrb[181].mxu1  ;;  %v9199_v7 = vpop.f32.mrb[182].mxu0 }
 0x861   : > { %v11217_v6 = vadd.f32 %v11216_v1, %v10833_v52  ;;  %v10194_v14 = vmax.f32 %v12207_v44, 0.0  ;;  %v12336_v48 = vadd.f32 %v9903_v60, %v17188_v49  ;;  %v12209_v46 = vadd.f32 %v9199_v7, %v17189_v45  ;;  %v9905_v47 = vpop.f32.mrb[182].mxu1  ;;  %v9201_v37 = vpop.f32.mrb[183].mxu0 }
 0x862   : > { %v10543_v22 = vpop.permute.xlu0 %10542  ;;  %v10196_v32 = vmax.f32 %v12335_v5, 0.0  ;;  %v10195_v29 = vmax.f32 %v12208_v12, 0.0  ;;  %v12337_v0 = vadd.f32 %v9905_v47, %v17189_v45  ;;  %v12210_v50 = vadd.f32 %v9201_v37, %v17189_v45  ;;  %v9907_v43 = vpop.f32.mrb[183].mxu1 }
 0x863   : > { %v10834_v9 = vmul.f32 %v10543_v22, %v10194_v14  ;;  %v10197_v19 = vmax.f32 %v12336_v48, 0.0  ;;  %v10198_v41 = vmax.f32 %v12209_v46, 0.0  ;;  %v12338_v16 = vadd.f32 %v9907_v43, %v17189_v45  ;;  %v10548_v11 = vpop.permute.xlu1 %10547  ;;  %v17190_v46 = vld [vmem:[#allocation66_spill] sm:$0xff] }
 0x864   : > { %v10836_v2 = vmul.f32 %v10543_v22, %v10196_v32  ;;  %v10835_v17 = vmul.f32 %v10543_v22, %v10195_v29  ;;  %v10200_v26 = vmax.f32 %v12337_v0, 0.0  ;;  %v10199_v1 = vmax.f32 %v12210_v50, 0.0 }
 0x865   : > { %v11011_v52 = vadd.f32 %v11010_v30, %v10834_v9  ;;  %v10837_v49 = vmul.f32 %v10543_v22, %v10197_v19  ;;  %v10838_v44 = vmul.f32 %v10548_v11, %v10198_v41  ;;  %v10201_v18 = vmax.f32 %v12338_v16, 0.0  ;;  %v17191_v19 = vld [vmem:[#allocation71_spill] sm:$0xff] }
 0x866   : > { %v11149_v28 = vadd.f32 %v11148_v31, %v10836_v2  ;;  %v11080_v5 = vadd.f32 %v11079_v56, %v10835_v17  ;;  %v10840_v12 = vmul.f32 %v10548_v11, %v10200_v26  ;;  %v10839_v60 = vmul.f32 %v10548_v11, %v10199_v1  ;;  %v9205_v7 = vpop.f32.mrb[184].mxu0 }
 0x867   : > { %v11218_v47 = vadd.f32 %v11217_v6, %v10837_v49  ;;  %v11012_v14 = vadd.f32 %v11011_v52, %v10838_v44  ;;  %v10841_v48 = vmul.f32 %v10548_v11, %v10201_v18  ;;  %v12211_v37 = vadd.f32 %v9205_v7, %v17190_v46  ;;  %v9911_v45 = vpop.f32.mrb[184].mxu1  ;;  %v9207_v43 = vpop.f32.mrb[185].mxu0 }
 0x868   : > { %v11150_v32 = vadd.f32 %v11149_v28, %v10840_v12  ;;  %v11081_v29 = vadd.f32 %v11080_v5, %v10839_v60  ;;  %v12339_v0 = vadd.f32 %v9911_v45, %v17190_v46  ;;  %v12212_v30 = vadd.f32 %v9207_v43, %v17190_v46  ;;  %v9913_v22 = vpop.f32.mrb[185].mxu1  ;;  %v9209_v50 = vpop.f32.mrb[186].mxu0 }
 0x869   : > { %v11219_v31 = vadd.f32 %v11218_v47, %v10841_v48  ;;  %v10202_v56 = vmax.f32 %v12211_v37, 0.0  ;;  %v12340_v9 = vadd.f32 %v9913_v22, %v17190_v46  ;;  %v12213_v6 = vadd.f32 %v9209_v50, %v17191_v19  ;;  %v9915_v41 = vpop.f32.mrb[186].mxu1  ;;  %v9211_v16 = vpop.f32.mrb[187].mxu0 }
 0x86a   : > { %v10553_v11 = vpop.permute.xlu0 %10552  ;;  %v10204_v2 = vmax.f32 %v12339_v0, 0.0  ;;  %v10203_v17 = vmax.f32 %v12212_v30, 0.0  ;;  %v12341_v26 = vadd.f32 %v9915_v41, %v17191_v19  ;;  %v12214_v1 = vadd.f32 %v9211_v16, %v17191_v19  ;;  %v9917_v52 = vpop.f32.mrb[187].mxu1 }
 0x86b   : > { %v10842_v49 = vmul.f32 %v10553_v11, %v10202_v56  ;;  %v10205_v44 = vmax.f32 %v12340_v9, 0.0  ;;  %v10206_v18 = vmax.f32 %v12213_v6, 0.0  ;;  %v12342_v28 = vadd.f32 %v9917_v52, %v17191_v19  ;;  %v10558_v5 = vpop.permute.xlu1 %10557  ;;  %v17192_v6 = vld [vmem:[#allocation68_spill] sm:$0xff] }
 0x86c   : > { %v10844_v12 = vmul.f32 %v10553_v11, %v10204_v2  ;;  %v10843_v60 = vmul.f32 %v10553_v11, %v10203_v17  ;;  %v10208_v7 = vmax.f32 %v12341_v26, 0.0  ;;  %v10207_v47 = vmax.f32 %v12214_v1, 0.0 }
 0x86d   : > { %v11013_v48 = vadd.f32 %v11012_v14, %v10842_v49  ;;  %v10845_v46 = vmul.f32 %v10553_v11, %v10205_v44  ;;  %v10846_v37 = vmul.f32 %v10558_v5, %v10206_v18  ;;  %v10209_v45 = vmax.f32 %v12342_v28, 0.0 }
 0x86e   : > { %v11151_v43 = vadd.f32 %v11150_v32, %v10844_v12  ;;  %v11082_v0 = vadd.f32 %v11081_v29, %v10843_v60  ;;  %v10848_v30 = vmul.f32 %v10558_v5, %v10208_v7  ;;  %v10847_v22 = vmul.f32 %v10558_v5, %v10207_v47  ;;  %v9215_v50 = vpop.f32.mrb[188].mxu0  ;;  %v10563_v28 = vpop.permute.xlu0 %10562 }
 0x86f   : > { %v11220_v41 = vadd.f32 %v11219_v31, %v10845_v46  ;;  %v11014_v56 = vadd.f32 %v11013_v48, %v10846_v37  ;;  %v10849_v9 = vmul.f32 %v10558_v5, %v10209_v45  ;;  %v12215_v16 = vadd.f32 %v9215_v50, %v17192_v6  ;;  %v9921_v19 = vpop.f32.mrb[188].mxu1  ;;  %v9217_v52 = vpop.f32.mrb[189].mxu0 }
 0x870   : > { %v11152_v2 = vadd.f32 %v11151_v43, %v10848_v30  ;;  %v11083_v17 = vadd.f32 %v11082_v0, %v10847_v22  ;;  %v12343_v26 = vadd.f32 %v9921_v19, %v17192_v6  ;;  %v12216_v14 = vadd.f32 %v9217_v52, %v17192_v6  ;;  %v9923_v11 = vpop.f32.mrb[189].mxu1  ;;  %v9219_v1 = vpop.f32.mrb[190].mxu0 }
 0x871   : > { %v11221_v32 = vadd.f32 %v11220_v41, %v10849_v9  ;;  %v10210_v29 = vmax.f32 %v12215_v16, 0.0  ;;  %v12344_v49 = vadd.f32 %v9923_v11, %v17192_v6  ;;  %v12217_v31 = vadd.f32 %v9219_v1, %v16602_v59  ;;  %v9925_v44 = vpop.f32.mrb[190].mxu1  ;;  %v9221_v18 = vpop.f32.mrb[191].mxu0 }
 0x872   : > { %v10212_v5 = vmax.f32 %v12343_v26, 0.0  ;;  %v10211_v12 = vmax.f32 %v12216_v14, 0.0  ;;  %v12345_v60 = vadd.f32 %v9925_v44, %v16602_v59  ;;  %v12218_v7 = vadd.f32 %v9221_v18, %v16602_v59  ;;  %v9927_v47 = vpop.f32.mrb[191].mxu1  ;;  %v10568_v43 = vpop.permute.xlu1 %10567 }
 0x873   : > { %v10850_v48 = vmul.f32 %v10563_v28, %v10210_v29  ;;  %v10213_v46 = vmax.f32 %v12344_v49, 0.0  ;;  %v10214_v37 = vmax.f32 %v12217_v31, 0.0  ;;  %v12346_v45 = vadd.f32 %v9927_v47, %v16602_v59 }
 0x874   : > { %v10852_v0 = vmul.f32 %v10563_v28, %v10212_v5  ;;  %v10851_v30 = vmul.f32 %v10563_v28, %v10211_v12  ;;  %v10216_v22 = vmax.f32 %v12345_v60, 0.0  ;;  %v10215_v50 = vmax.f32 %v12218_v7, 0.0 }
 0x875   : > { %v11015_v41 = vadd.f32 %v11014_v56, %v10850_v48  ;;  %v10853_v9 = vmul.f32 %v10563_v28, %v10213_v46  ;;  %v10854_v6 = vmul.f32 %v10568_v43, %v10214_v37  ;;  %v10217_v16 = vmax.f32 %v12346_v45, 0.0  ;;  %v10573_v46 = vpop.permute.xlu0 %10572 }
 0x876   : > { %v11153_v19 = vadd.f32 %v11152_v2, %v10852_v0  ;;  %v11084_v52 = vadd.f32 %v11083_v17, %v10851_v30  ;;  %v10856_v26 = vmul.f32 %v10568_v43, %v10216_v22  ;;  %v10855_v14 = vmul.f32 %v10568_v43, %v10215_v50  ;;  %v9225_v11 = vpop.f32.mrb[192].mxu0 }
 0x877   : > { %v11222_v1 = vadd.f32 %v11221_v32, %v10853_v9  ;;  %v11016_v29 = vadd.f32 %v11015_v41, %v10854_v6  ;;  %v10857_v49 = vmul.f32 %v10568_v43, %v10217_v16  ;;  %v12219_v31 = vadd.f32 %v9225_v11, %v16604_v27  ;;  %v9931_v59 = vpop.f32.mrb[192].mxu1  ;;  %v9227_v44 = vpop.f32.mrb[193].mxu0 }
 0x878   : > { %v11154_v18 = vadd.f32 %v11153_v19, %v10856_v26  ;;  %v11085_v5 = vadd.f32 %v11084_v52, %v10855_v14  ;;  %v12347_v12 = vadd.f32 %v9931_v59, %v16604_v27  ;;  %v12220_v56 = vadd.f32 %v9227_v44, %v16604_v27  ;;  %v9933_v28 = vpop.f32.mrb[193].mxu1  ;;  %v9229_v60 = vpop.f32.mrb[194].mxu0 }
 0x879   : > { %v11223_v2 = vadd.f32 %v11222_v1, %v10857_v49  ;;  %v10218_v17 = vmax.f32 %v12219_v31, 0.0  ;;  %v12348_v7 = vadd.f32 %v9933_v28, %v16604_v27  ;;  %v12221_v32 = vadd.f32 %v9229_v60, %v16606_v35  ;;  %v9935_v47 = vpop.f32.mrb[194].mxu1  ;;  %v9231_v48 = vpop.f32.mrb[195].mxu0 }
 0x87a   : > { %v10220_v37 = vmax.f32 %v12347_v12, 0.0  ;;  %v10219_v45 = vmax.f32 %v12220_v56, 0.0  ;;  %v12349_v43 = vadd.f32 %v9935_v47, %v16606_v35  ;;  %v12222_v0 = vadd.f32 %v9231_v48, %v16606_v35  ;;  %v9937_v30 = vpop.f32.mrb[195].mxu1  ;;  %v10578_v6 = vpop.permute.xlu1 %10577 }
 0x87b   : > { %v10858_v22 = vmul.f32 %v10573_v46, %v10218_v17  ;;  %v10221_v50 = vmax.f32 %v12348_v7, 0.0  ;;  %v10222_v41 = vmax.f32 %v12221_v32, 0.0  ;;  %v12350_v9 = vadd.f32 %v9937_v30, %v16606_v35  ;;  %v10583_v30 = vpop.permute.xlu0 %10582 }
 0x87c   : > { %v10860_v16 = vmul.f32 %v10573_v46, %v10220_v37  ;;  %v10859_v27 = vmul.f32 %v10573_v46, %v10219_v45  ;;  %v10224_v19 = vmax.f32 %v12349_v43, 0.0  ;;  %v10223_v52 = vmax.f32 %v12222_v0, 0.0 }
 0x87d   : > { %v11017_v26 = vadd.f32 %v11016_v29, %v10858_v22  ;;  %v10861_v14 = vmul.f32 %v10573_v46, %v10221_v50  ;;  %v10862_v11 = vmul.f32 %v10578_v6, %v10222_v41  ;;  %v10225_v1 = vmax.f32 %v12350_v9, 0.0 }
 0x87e   : > { %v11155_v49 = vadd.f32 %v11154_v18, %v10860_v16  ;;  %v11086_v31 = vadd.f32 %v11085_v5, %v10859_v27  ;;  %v10864_v59 = vmul.f32 %v10578_v6, %v10224_v19  ;;  %v10863_v44 = vmul.f32 %v10578_v6, %v10223_v52  ;;  %v9235_v12 = vpop.f32.mrb[196].mxu0 }
 0x87f   : > { %v11224_v56 = vadd.f32 %v11223_v2, %v10861_v14  ;;  %v11018_v28 = vadd.f32 %v11017_v26, %v10862_v11  ;;  %v10865_v60 = vmul.f32 %v10578_v6, %v10225_v1  ;;  %v12223_v17 = vadd.f32 %v9235_v12, %v16608_v24  ;;  %v9941_v35 = vpop.f32.mrb[196].mxu1  ;;  %v9237_v7 = vpop.f32.mrb[197].mxu0 }
 0x880   : > { %v11156_v32 = vadd.f32 %v11155_v49, %v10864_v59  ;;  %v11087_v47 = vadd.f32 %v11086_v31, %v10863_v44  ;;  %v12351_v48 = vadd.f32 %v9941_v35, %v16608_v24  ;;  %v12224_v29 = vadd.f32 %v9237_v7, %v16608_v24  ;;  %v9943_v46 = vpop.f32.mrb[197].mxu1  ;;  %v9239_v37 = vpop.f32.mrb[198].mxu0 }
 0x881   : > { %v11225_v18 = vadd.f32 %v11224_v56, %v10865_v60  ;;  %v10226_v5 = vmax.f32 %v12223_v17, 0.0  ;;  %v12352_v45 = vadd.f32 %v9943_v46, %v16608_v24  ;;  %v12225_v2 = vadd.f32 %v9239_v37, %v16610_v8  ;;  %v9945_v43 = vpop.f32.mrb[198].mxu1  ;;  %v9241_v0 = vpop.f32.mrb[199].mxu0 }
 0x882   : > { %v10228_v22 = vmax.f32 %v12351_v48, 0.0  ;;  %v10227_v50 = vmax.f32 %v12224_v29, 0.0  ;;  %v12353_v41 = vadd.f32 %v9945_v43, %v16610_v8  ;;  %v12226_v9 = vadd.f32 %v9241_v0, %v16610_v8  ;;  %v9947_v6 = vpop.f32.mrb[199].mxu1  ;;  %v10588_v26 = vpop.permute.xlu1 %10587 }
 0x883   : > { %v10866_v16 = vmul.f32 %v10583_v30, %v10226_v5  ;;  %v10229_v27 = vmax.f32 %v12352_v45, 0.0  ;;  %v10230_v19 = vmax.f32 %v12225_v2, 0.0  ;;  %v12354_v52 = vadd.f32 %v9947_v6, %v16610_v8 }
 0x884   : > { %v10868_v14 = vmul.f32 %v10583_v30, %v10228_v22  ;;  %v10867_v24 = vmul.f32 %v10583_v30, %v10227_v50  ;;  %v10232_v11 = vmax.f32 %v12353_v41, 0.0  ;;  %v10231_v1 = vmax.f32 %v12226_v9, 0.0  ;;  %v10593_v41 = vpop.permute.xlu0 %10592 }
 0x885   : > { %v11019_v49 = vadd.f32 %v11018_v28, %v10866_v16  ;;  %v10869_v31 = vmul.f32 %v10583_v30, %v10229_v27  ;;  %v10870_v59 = vmul.f32 %v10588_v26, %v10230_v19  ;;  %v10233_v44 = vmax.f32 %v12354_v52, 0.0 }
 0x886   : > { %v11157_v12 = vadd.f32 %v11156_v32, %v10868_v14  ;;  %v11088_v56 = vadd.f32 %v11087_v47, %v10867_v24  ;;  %v10872_v60 = vmul.f32 %v10588_v26, %v10232_v11  ;;  %v10871_v17 = vmul.f32 %v10588_v26, %v10231_v1  ;;  %v9245_v35 = vpop.f32.mrb[200].mxu0  ;;  %v10598_v11 = vpop.permute.xlu1 %10597 }
 0x887   : > { %v11226_v7 = vadd.f32 %v11225_v18, %v10869_v31  ;;  %v11020_v48 = vadd.f32 %v11019_v49, %v10870_v59  ;;  %v10873_v29 = vmul.f32 %v10588_v26, %v10233_v44  ;;  %v12227_v46 = vadd.f32 %v9245_v35, %v16612_v15  ;;  %v9951_v8 = vpop.f32.mrb[200].mxu1  ;;  %v9247_v37 = vpop.f32.mrb[201].mxu0 }
 0x888   : > { %v11158_v5 = vadd.f32 %v11157_v12, %v10872_v60  ;;  %v11089_v45 = vadd.f32 %v11088_v56, %v10871_v17  ;;  %v12355_v2 = vadd.f32 %v9951_v8, %v16612_v15  ;;  %v12228_v28 = vadd.f32 %v9247_v37, %v16612_v15  ;;  %v9953_v43 = vpop.f32.mrb[201].mxu1  ;;  %v9249_v0 = vpop.f32.mrb[202].mxu0 }
 0x889   : > { %v11227_v32 = vadd.f32 %v11226_v7, %v10873_v29  ;;  %v10234_v47 = vmax.f32 %v12227_v46, 0.0  ;;  %v12356_v30 = vadd.f32 %v9953_v43, %v16612_v15  ;;  %v12229_v18 = vadd.f32 %v9249_v0, %v16614_v40  ;;  %v9955_v22 = vpop.f32.mrb[202].mxu1  ;;  %v9251_v50 = vpop.f32.mrb[203].mxu0 }
 0x88a   : > { %v10236_v9 = vmax.f32 %v12355_v2, 0.0  ;;  %v10235_v6 = vmax.f32 %v12228_v28, 0.0  ;;  %v12357_v16 = vadd.f32 %v9955_v22, %v16614_v40  ;;  %v12230_v27 = vadd.f32 %v9251_v50, %v16614_v40  ;;  %v9957_v19 = vpop.f32.mrb[203].mxu1 }
 0x88b   : > { %v10874_v52 = vmul.f32 %v10593_v41, %v10234_v47  ;;  %v10237_v26 = vmax.f32 %v12356_v30, 0.0  ;;  %v10238_v14 = vmax.f32 %v12229_v18, 0.0  ;;  %v12358_v24 = vadd.f32 %v9957_v19, %v16614_v40 }
 0x88c   : > { %v10876_v1 = vmul.f32 %v10593_v41, %v10236_v9  ;;  %v10875_v15 = vmul.f32 %v10593_v41, %v10235_v6  ;;  %v10240_v49 = vmax.f32 %v12357_v16, 0.0  ;;  %v10239_v31 = vmax.f32 %v12230_v27, 0.0  ;;  %v10603_v9 = vpop.permute.xlu0 %10602 }
 0x88d   : > { %v11021_v59 = vadd.f32 %v11020_v48, %v10874_v52  ;;  %v10877_v44 = vmul.f32 %v10593_v41, %v10237_v26  ;;  %v10878_v12 = vmul.f32 %v10598_v11, %v10238_v14  ;;  %v10241_v56 = vmax.f32 %v12358_v24, 0.0 }
 0x88e   : > { %v11159_v60 = vadd.f32 %v11158_v5, %v10876_v1  ;;  %v11090_v17 = vadd.f32 %v11089_v45, %v10875_v15  ;;  %v10880_v35 = vmul.f32 %v10598_v11, %v10240_v49  ;;  %v10879_v7 = vmul.f32 %v10598_v11, %v10239_v31  ;;  %v9255_v29 = vpop.f32.mrb[204].mxu0  ;;  %v10608_v1 = vpop.permute.xlu1 %10607 }
 0x88f   : > { %v11228_v46 = vadd.f32 %v11227_v32, %v10877_v44  ;;  %v11022_v8 = vadd.f32 %v11021_v59, %v10878_v12  ;;  %v10881_v37 = vmul.f32 %v10598_v11, %v10241_v56  ;;  %v12231_v2 = vadd.f32 %v9255_v29, %v16616_v4  ;;  %v9961_v40 = vpop.f32.mrb[204].mxu1  ;;  %v9257_v28 = vpop.f32.mrb[205].mxu0 }
 0x890   : > { %v11160_v43 = vadd.f32 %v11159_v60, %v10880_v35  ;;  %v11091_v0 = vadd.f32 %v11090_v17, %v10879_v7  ;;  %v12359_v47 = vadd.f32 %v9961_v40, %v16616_v4  ;;  %v12232_v48 = vadd.f32 %v9257_v28, %v16616_v4  ;;  %v9963_v30 = vpop.f32.mrb[205].mxu1  ;;  %v9259_v18 = vpop.f32.mrb[206].mxu0 }
 0x891   : > { %v11229_v5 = vadd.f32 %v11228_v46, %v10881_v37  ;;  %v10242_v45 = vmax.f32 %v12231_v2, 0.0  ;;  %v12360_v22 = vadd.f32 %v9963_v30, %v16616_v4  ;;  %v12233_v32 = vadd.f32 %v9259_v18, %v16618_v20  ;;  %v9965_v50 = vpop.f32.mrb[206].mxu1  ;;  %v9261_v41 = vpop.f32.mrb[207].mxu0 }
 0x892   : > { %v10244_v6 = vmax.f32 %v12359_v47, 0.0  ;;  %v10243_v16 = vmax.f32 %v12232_v48, 0.0  ;;  %v12361_v27 = vadd.f32 %v9965_v50, %v16618_v20  ;;  %v12234_v19 = vadd.f32 %v9261_v41, %v16618_v20  ;;  %v9967_v52 = vpop.f32.mrb[207].mxu1  ;;  %v10613_v41 = vpop.permute.xlu0 %10612 }
 0x893   : > { %v10882_v26 = vmul.f32 %v10603_v9, %v10242_v45  ;;  %v10245_v14 = vmax.f32 %v12360_v22, 0.0  ;;  %v10246_v24 = vmax.f32 %v12233_v32, 0.0  ;;  %v12362_v11 = vadd.f32 %v9967_v52, %v16618_v20 }
 0x894   : > { %v10884_v15 = vmul.f32 %v10603_v9, %v10244_v6  ;;  %v10883_v4 = vmul.f32 %v10603_v9, %v10243_v16  ;;  %v10248_v49 = vmax.f32 %v12361_v27, 0.0  ;;  %v10247_v31 = vmax.f32 %v12234_v19, 0.0 }
 0x895   : > { %v11023_v59 = vadd.f32 %v11022_v8, %v10882_v26  ;;  %v10885_v44 = vmul.f32 %v10603_v9, %v10245_v14  ;;  %v10886_v12 = vmul.f32 %v10608_v1, %v10246_v24  ;;  %v10249_v56 = vmax.f32 %v12362_v11, 0.0  ;;  %v10618_v11 = vpop.permute.xlu1 %10617 }
 0x896   : > { %v11161_v60 = vadd.f32 %v11160_v43, %v10884_v15  ;;  %v11092_v17 = vadd.f32 %v11091_v0, %v10883_v4  ;;  %v10888_v35 = vmul.f32 %v10608_v1, %v10248_v49  ;;  %v10887_v7 = vmul.f32 %v10608_v1, %v10247_v31  ;;  %v9265_v29 = vpop.f32.mrb[208].mxu0 }
 0x897   : > { %v11230_v46 = vadd.f32 %v11229_v5, %v10885_v44  ;;  %v11024_v37 = vadd.f32 %v11023_v59, %v10886_v12  ;;  %v10889_v2 = vmul.f32 %v10608_v1, %v10249_v56  ;;  %v12235_v40 = vadd.f32 %v9265_v29, %v16620_v53  ;;  %v9971_v20 = vpop.f32.mrb[208].mxu1  ;;  %v9267_v28 = vpop.f32.mrb[209].mxu0 }
 0x898   : > { %v11162_v47 = vadd.f32 %v11161_v60, %v10888_v35  ;;  %v11093_v48 = vadd.f32 %v11092_v17, %v10887_v7  ;;  %v12363_v30 = vadd.f32 %v9971_v20, %v16620_v53  ;;  %v12236_v8 = vadd.f32 %v9267_v28, %v16620_v53  ;;  %v9973_v18 = vpop.f32.mrb[209].mxu1  ;;  %v9269_v45 = vpop.f32.mrb[210].mxu0 }
 0x899   : > { %v11231_v43 = vadd.f32 %v11230_v46, %v10889_v2  ;;  %v10250_v0 = vmax.f32 %v12235_v40, 0.0  ;;  %v12364_v22 = vadd.f32 %v9973_v18, %v16620_v53  ;;  %v12237_v5 = vadd.f32 %v9269_v45, %v16622_v54  ;;  %v9975_v32 = vpop.f32.mrb[210].mxu1  ;;  %v9271_v50 = vpop.f32.mrb[211].mxu0 }
 0x89a   : > { %v10252_v9 = vmax.f32 %v12363_v30, 0.0  ;;  %v10251_v6 = vmax.f32 %v12236_v8, 0.0  ;;  %v12365_v16 = vadd.f32 %v9975_v32, %v16622_v54  ;;  %v12238_v27 = vadd.f32 %v9271_v50, %v16622_v54  ;;  %v9977_v19 = vpop.f32.mrb[211].mxu1 }
 0x89b   : > { %v10890_v52 = vmul.f32 %v10613_v41, %v10250_v0  ;;  %v10253_v26 = vmax.f32 %v12364_v22, 0.0  ;;  %v10254_v14 = vmax.f32 %v12237_v5, 0.0  ;;  %v12366_v24 = vadd.f32 %v9977_v19, %v16622_v54  ;;  %v10623_v5 = vpop.permute.xlu0 %10622 }
 0x89c   : > { %v10892_v1 = vmul.f32 %v10613_v41, %v10252_v9  ;;  %v10891_v53 = vmul.f32 %v10613_v41, %v10251_v6  ;;  %v10256_v15 = vmax.f32 %v12365_v16, 0.0  ;;  %v10255_v4 = vmax.f32 %v12238_v27, 0.0 }
 0x89d   : > { %v11025_v49 = vadd.f32 %v11024_v37, %v10890_v52  ;;  %v10893_v31 = vmul.f32 %v10613_v41, %v10253_v26  ;;  %v10894_v59 = vmul.f32 %v10618_v11, %v10254_v14  ;;  %v10257_v44 = vmax.f32 %v12366_v24, 0.0  ;;  %v10628_v26 = vpop.permute.xlu1 %10627 }
 0x89e   : > { %v11163_v12 = vadd.f32 %v11162_v47, %v10892_v1  ;;  %v11094_v56 = vadd.f32 %v11093_v48, %v10891_v53  ;;  %v10896_v60 = vmul.f32 %v10618_v11, %v10256_v15  ;;  %v10895_v17 = vmul.f32 %v10618_v11, %v10255_v4  ;;  %v9275_v35 = vpop.f32.mrb[212].mxu0 }
 0x89f   : > { %v11232_v7 = vadd.f32 %v11231_v43, %v10893_v31  ;;  %v11026_v29 = vadd.f32 %v11025_v49, %v10894_v59  ;;  %v10897_v46 = vmul.f32 %v10618_v11, %v10257_v44  ;;  %v12239_v2 = vadd.f32 %v9275_v35, %v16624_v25  ;;  %v9981_v54 = vpop.f32.mrb[212].mxu1  ;;  %v9277_v40 = vpop.f32.mrb[213].mxu0 }
 0x8a0   : > { %v11164_v20 = vadd.f32 %v11163_v12, %v10896_v60  ;;  %v11095_v28 = vadd.f32 %v11094_v56, %v10895_v17  ;;  %v12367_v30 = vadd.f32 %v9981_v54, %v16624_v25  ;;  %v12240_v37 = vadd.f32 %v9277_v40, %v16624_v25  ;;  %v9983_v8 = vpop.f32.mrb[213].mxu1  ;;  %v9279_v18 = vpop.f32.mrb[214].mxu0 }
 0x8a1   : > { %v11233_v47 = vadd.f32 %v11232_v7, %v10897_v46  ;;  %v10258_v48 = vmax.f32 %v12239_v2, 0.0  ;;  %v12368_v45 = vadd.f32 %v9983_v8, %v16624_v25  ;;  %v12241_v43 = vadd.f32 %v9279_v18, %v16626_v3  ;;  %v9985_v0 = vpop.f32.mrb[214].mxu1  ;;  %v9281_v22 = vpop.f32.mrb[215].mxu0 }
 0x8a2   : > { %v10260_v32 = vmax.f32 %v12367_v30, 0.0  ;;  %v10259_v50 = vmax.f32 %v12240_v37, 0.0  ;;  %v12369_v41 = vadd.f32 %v9985_v0, %v16626_v3  ;;  %v12242_v9 = vadd.f32 %v9281_v22, %v16626_v3  ;;  %v9987_v6 = vpop.f32.mrb[215].mxu1 }
 0x8a3   : > { %v10898_v16 = vmul.f32 %v10623_v5, %v10258_v48  ;;  %v10261_v27 = vmax.f32 %v12368_v45, 0.0  ;;  %v10262_v19 = vmax.f32 %v12241_v43, 0.0  ;;  %v12370_v52 = vadd.f32 %v9987_v6, %v16626_v3  ;;  %v10633_v48 = vpop.permute.xlu0 %10632  ;;  %v10638_v6 = vpop.permute.xlu1 %10637 }
 0x8a4   : > { %v10900_v14 = vmul.f32 %v10623_v5, %v10260_v32  ;;  %v10899_v25 = vmul.f32 %v10623_v5, %v10259_v50  ;;  %v10264_v24 = vmax.f32 %v12369_v41, 0.0  ;;  %v10263_v11 = vmax.f32 %v12242_v9, 0.0 }
 0x8a5   : > { %v11027_v1 = vadd.f32 %v11026_v29, %v10898_v16  ;;  %v10901_v53 = vmul.f32 %v10623_v5, %v10261_v27  ;;  %v10902_v15 = vmul.f32 %v10628_v26, %v10262_v19  ;;  %v10265_v4 = vmax.f32 %v12370_v52, 0.0 }
 0x8a6   : > { %v11165_v49 = vadd.f32 %v11164_v20, %v10900_v14  ;;  %v11096_v31 = vadd.f32 %v11095_v28, %v10899_v25  ;;  %v10904_v59 = vmul.f32 %v10628_v26, %v10264_v24  ;;  %v10903_v44 = vmul.f32 %v10628_v26, %v10263_v11  ;;  %v9285_v12 = vpop.f32.mrb[216].mxu0 }
 0x8a7   : > { %v11234_v56 = vadd.f32 %v11233_v47, %v10901_v53  ;;  %v11028_v60 = vadd.f32 %v11027_v1, %v10902_v15  ;;  %v10905_v17 = vmul.f32 %v10628_v26, %v10265_v4  ;;  %v12243_v35 = vadd.f32 %v9285_v12, %v16628_v42  ;;  %v9991_v3 = vpop.f32.mrb[216].mxu1  ;;  %v9287_v7 = vpop.f32.mrb[217].mxu0 }
 0x8a8   : > { %v11166_v46 = vadd.f32 %v11165_v49, %v10904_v59  ;;  %v11097_v2 = vadd.f32 %v11096_v31, %v10903_v44  ;;  %v12371_v54 = vadd.f32 %v9991_v3, %v16628_v42  ;;  %v12244_v29 = vadd.f32 %v9287_v7, %v16628_v42  ;;  %v9993_v40 = vpop.f32.mrb[217].mxu1  ;;  %v9289_v30 = vpop.f32.mrb[218].mxu0 }
 0x8a9   : > { %v11235_v20 = vadd.f32 %v11234_v56, %v10905_v17  ;;  %v10266_v28 = vmax.f32 %v12243_v35, 0.0  ;;  %v12372_v37 = vadd.f32 %v9993_v40, %v16628_v42  ;;  %v12245_v8 = vadd.f32 %v9289_v30, %v16630_v21  ;;  %v9995_v18 = vpop.f32.mrb[218].mxu1  ;;  %v9291_v47 = vpop.f32.mrb[219].mxu0 }
 0x8aa   : > { %v10268_v45 = vmax.f32 %v12371_v54, 0.0  ;;  %v10267_v43 = vmax.f32 %v12244_v29, 0.0  ;;  %v12373_v0 = vadd.f32 %v9995_v18, %v16630_v21  ;;  %v12246_v22 = vadd.f32 %v9291_v47, %v16630_v21  ;;  %v9997_v5 = vpop.f32.mrb[219].mxu1  ;;  %v10643_v30 = vpop.permute.xlu0 %10642 }
 0x8ab   : > { %v10906_v32 = vmul.f32 %v10633_v48, %v10266_v28  ;;  %v10269_v50 = vmax.f32 %v12372_v37, 0.0  ;;  %v10270_v41 = vmax.f32 %v12245_v8, 0.0  ;;  %v12374_v9 = vadd.f32 %v9997_v5, %v16630_v21 }
 0x8ac   : > { %v10908_v16 = vmul.f32 %v10633_v48, %v10268_v45  ;;  %v10907_v42 = vmul.f32 %v10633_v48, %v10267_v43  ;;  %v10272_v27 = vmax.f32 %v12373_v0, 0.0  ;;  %v10271_v19 = vmax.f32 %v12246_v22, 0.0  ;;  %v10648_v0 = vpop.permute.xlu1 %10647 }
 0x8ad   : > { %v11029_v52 = vadd.f32 %v11028_v60, %v10906_v32  ;;  %v10909_v26 = vmul.f32 %v10633_v48, %v10269_v50  ;;  %v10910_v14 = vmul.f32 %v10638_v6, %v10270_v41  ;;  %v10273_v25 = vmax.f32 %v12374_v9, 0.0 }
 0x8ae   : > { %v11167_v24 = vadd.f32 %v11166_v46, %v10908_v16  ;;  %v11098_v11 = vadd.f32 %v11097_v2, %v10907_v42  ;;  %v10912_v1 = vmul.f32 %v10638_v6, %v10272_v27  ;;  %v10911_v53 = vmul.f32 %v10638_v6, %v10271_v19  ;;  %v9295_v15 = vpop.f32.mrb[220].mxu0 }
 0x8af   : > { %v11236_v4 = vadd.f32 %v11235_v20, %v10909_v26  ;;  %v11030_v49 = vadd.f32 %v11029_v52, %v10910_v14  ;;  %v10913_v31 = vmul.f32 %v10638_v6, %v10273_v25  ;;  %v12247_v59 = vadd.f32 %v9295_v15, %v16632_v23  ;;  %v10001_v21 = vpop.f32.mrb[220].mxu1  ;;  %v9297_v44 = vpop.f32.mrb[221].mxu0 }
 0x8b0   : > { %v11168_v12 = vadd.f32 %v11167_v24, %v10912_v1  ;;  %v11099_v56 = vadd.f32 %v11098_v11, %v10911_v53  ;;  %v12375_v17 = vadd.f32 %v10001_v21, %v16632_v23  ;;  %v12248_v60 = vadd.f32 %v9297_v44, %v16632_v23  ;;  %v10003_v35 = vpop.f32.mrb[221].mxu1  ;;  %v9299_v3 = vpop.f32.mrb[222].mxu0 }
 0x8b1   : > { %v11237_v7 = vadd.f32 %v11236_v4, %v10913_v31  ;;  %v10274_v46 = vmax.f32 %v12247_v59, 0.0  ;;  %v12376_v2 = vadd.f32 %v10003_v35, %v16632_v23  ;;  %v12249_v54 = vadd.f32 %v9299_v3, %v16634_v38  ;;  %v10005_v29 = vpop.f32.mrb[222].mxu1  ;;  %v9301_v40 = vpop.f32.mrb[223].mxu0 }
 0x8b2   : > { %v10276_v20 = vmax.f32 %v12375_v17, 0.0  ;;  %v10275_v28 = vmax.f32 %v12248_v60, 0.0  ;;  %v12377_v37 = vadd.f32 %v10005_v29, %v16634_v38  ;;  %v12250_v8 = vadd.f32 %v9301_v40, %v16634_v38  ;;  %v10007_v18 = vpop.f32.mrb[223].mxu1  ;;  %v10653_v60 = vpop.permute.xlu0 %10652 }
 0x8b3   : > { %v10914_v47 = vmul.f32 %v10643_v30, %v10274_v46  ;;  %v10277_v48 = vmax.f32 %v12376_v2, 0.0  ;;  %v10278_v45 = vmax.f32 %v12249_v54, 0.0  ;;  %v12378_v43 = vadd.f32 %v10007_v18, %v16634_v38 }
 0x8b4   : > { %v10916_v22 = vmul.f32 %v10643_v30, %v10276_v20  ;;  %v10915_v23 = vmul.f32 %v10643_v30, %v10275_v28  ;;  %v10280_v5 = vmax.f32 %v12377_v37, 0.0  ;;  %v10279_v32 = vmax.f32 %v12250_v8, 0.0  ;;  %v10658_v20 = vpop.permute.xlu1 %10657 }
 0x8b5   : > { %v11031_v50 = vadd.f32 %v11030_v49, %v10914_v47  ;;  %v10917_v41 = vmul.f32 %v10643_v30, %v10277_v48  ;;  %v10918_v9 = vmul.f32 %v10648_v0, %v10278_v45  ;;  %v10281_v6 = vmax.f32 %v12378_v43, 0.0 }
 0x8b6   : > { %v11169_v16 = vadd.f32 %v11168_v12, %v10916_v22  ;;  %v11100_v42 = vadd.f32 %v11099_v56, %v10915_v23  ;;  %v10920_v27 = vmul.f32 %v10648_v0, %v10280_v5  ;;  %v10919_v19 = vmul.f32 %v10648_v0, %v10279_v32  ;;  %v9305_v52 = vpop.f32.mrb[224].mxu0 }
 0x8b7   : > { %v11238_v26 = vadd.f32 %v11237_v7, %v10917_v41  ;;  %v11032_v14 = vadd.f32 %v11031_v50, %v10918_v9  ;;  %v10921_v25 = vmul.f32 %v10648_v0, %v10281_v6  ;;  %v12251_v24 = vadd.f32 %v9305_v52, %v16636_v55  ;;  %v10011_v38 = vpop.f32.mrb[224].mxu1  ;;  %v9307_v11 = vpop.f32.mrb[225].mxu0 }
 0x8b8   : > { %v11170_v1 = vadd.f32 %v11169_v16, %v10920_v27  ;;  %v11101_v53 = vadd.f32 %v11100_v42, %v10919_v19  ;;  %v12379_v15 = vadd.f32 %v10011_v38, %v16636_v55  ;;  %v12252_v4 = vadd.f32 %v9307_v11, %v16636_v55  ;;  %v10013_v49 = vpop.f32.mrb[225].mxu1  ;;  %v9309_v31 = vpop.f32.mrb[226].mxu0 }
 0x8b9   : > { %v11239_v59 = vadd.f32 %v11238_v26, %v10921_v25  ;;  %v10282_v21 = vmax.f32 %v12251_v24, 0.0  ;;  %v12380_v44 = vadd.f32 %v10013_v49, %v16636_v55  ;;  %v12253_v12 = vadd.f32 %v9309_v31, %v16638_v62  ;;  %v10015_v56 = vpop.f32.mrb[226].mxu1  ;;  %v9311_v17 = vpop.f32.mrb[227].mxu0 }
 0x8ba   : > { %v10284_v35 = vmax.f32 %v12379_v15, 0.0  ;;  %v10283_v3 = vmax.f32 %v12252_v4, 0.0  ;;  %v12381_v7 = vadd.f32 %v10015_v56, %v16638_v62  ;;  %v12254_v46 = vadd.f32 %v9311_v17, %v16638_v62  ;;  %v10017_v2 = vpop.f32.mrb[227].mxu1  ;;  %v10668_v17 = vpop.permute.xlu1 %10667 }
 0x8bb   : > { %v10922_v54 = vmul.f32 %v10653_v60, %v10282_v21  ;;  %v10285_v29 = vmax.f32 %v12380_v44, 0.0  ;;  %v10286_v40 = vmax.f32 %v12253_v12, 0.0  ;;  %v12382_v30 = vadd.f32 %v10017_v2, %v16638_v62 }
 0x8bc   : > { %v10924_v28 = vmul.f32 %v10653_v60, %v10284_v35  ;;  %v10923_v55 = vmul.f32 %v10653_v60, %v10283_v3  ;;  %v10288_v37 = vmax.f32 %v12381_v7, 0.0  ;;  %v10287_v8 = vmax.f32 %v12254_v46, 0.0 }
 0x8bd   : > { %v11033_v18 = vadd.f32 %v11032_v14, %v10922_v54  ;;  %v10925_v47 = vmul.f32 %v10653_v60, %v10285_v29  ;;  %v10926_v48 = vmul.f32 %v10658_v20, %v10286_v40  ;;  %v10289_v45 = vmax.f32 %v12382_v30, 0.0 }
 0x8be   : > { %v11171_v43 = vadd.f32 %v11170_v1, %v10924_v28  ;;  %v11102_v0 = vadd.f32 %v11101_v53, %v10923_v55  ;;  %v10928_v22 = vmul.f32 %v10658_v20, %v10288_v37  ;;  %v10927_v23 = vmul.f32 %v10658_v20, %v10287_v8  ;;  %v9315_v5 = vpop.f32.mrb[228].mxu0  ;;  %v10663_v53 = vpop.permute.xlu0 %10662 }
 0x8bf   : > { %v11240_v32 = vadd.f32 %v11239_v59, %v10925_v47  ;;  %v11034_v50 = vadd.f32 %v11033_v18, %v10926_v48  ;;  %v10929_v41 = vmul.f32 %v10658_v20, %v10289_v45  ;;  %v12255_v9 = vadd.f32 %v9315_v5, %v16640_v61  ;;  %v10021_v62 = vpop.f32.mrb[228].mxu1  ;;  %v9317_v6 = vpop.f32.mrb[229].mxu0 }
 0x8c0   : > { %v11172_v16 = vadd.f32 %v11171_v43, %v10928_v22  ;;  %v11103_v42 = vadd.f32 %v11102_v0, %v10927_v23  ;;  %v12383_v27 = vadd.f32 %v10021_v62, %v16640_v61  ;;  %v12256_v19 = vadd.f32 %v9317_v6, %v16640_v61  ;;  %v10023_v52 = vpop.f32.mrb[229].mxu1  ;;  %v9319_v26 = vpop.f32.mrb[230].mxu0 }
 0x8c1   : > { %v11241_v14 = vadd.f32 %v11240_v32, %v10929_v41  ;;  %v10290_v25 = vmax.f32 %v12255_v9, 0.0  ;;  %v12384_v24 = vadd.f32 %v10023_v52, %v16640_v61  ;;  %v12257_v38 = vadd.f32 %v9319_v26, %v16642_v13  ;;  %v10025_v11 = vpop.f32.mrb[230].mxu1  ;;  %v9321_v1 = vpop.f32.mrb[231].mxu0 }
 0x8c2   : > { %v10292_v15 = vmax.f32 %v12383_v27, 0.0  ;;  %v10291_v4 = vmax.f32 %v12256_v19, 0.0  ;;  %v12385_v49 = vadd.f32 %v10025_v11, %v16642_v13  ;;  %v12258_v31 = vadd.f32 %v9321_v1, %v16642_v13  ;;  %v10027_v59 = vpop.f32.mrb[231].mxu1  ;;  %v10673_v6 = vpop.permute.xlu0 %10672 }
 0x8c3   : > { %v10930_v21 = vmul.f32 %v10663_v53, %v10290_v25  ;;  %v10293_v44 = vmax.f32 %v12384_v24, 0.0  ;;  %v10294_v12 = vmax.f32 %v12257_v38, 0.0  ;;  %v12386_v56 = vadd.f32 %v10027_v59, %v16642_v13  ;;  %v10678_v38 = vpop.permute.xlu1 %10677 }
 0x8c4   : > { %v10932_v60 = vmul.f32 %v10663_v53, %v10292_v15  ;;  %v10931_v61 = vmul.f32 %v10663_v53, %v10291_v4  ;;  %v10296_v35 = vmax.f32 %v12385_v49, 0.0  ;;  %v10295_v3 = vmax.f32 %v12258_v31, 0.0 }
 0x8c5   : > { %v11035_v7 = vadd.f32 %v11034_v50, %v10930_v21  ;;  %v10933_v46 = vmul.f32 %v10663_v53, %v10293_v44  ;;  %v10934_v2 = vmul.f32 %v10668_v17, %v10294_v12  ;;  %v10297_v54 = vmax.f32 %v12386_v56, 0.0 }
 0x8c6   : > { %v11173_v29 = vadd.f32 %v11172_v16, %v10932_v60  ;;  %v11104_v40 = vadd.f32 %v11103_v42, %v10931_v61  ;;  %v10936_v30 = vmul.f32 %v10668_v17, %v10296_v35  ;;  %v10935_v20 = vmul.f32 %v10668_v17, %v10295_v3  ;;  %v9325_v28 = vpop.f32.mrb[232].mxu0 }
 0x8c7   : > { %v11242_v55 = vadd.f32 %v11241_v14, %v10933_v46  ;;  %v11036_v37 = vadd.f32 %v11035_v7, %v10934_v2  ;;  %v10937_v8 = vmul.f32 %v10668_v17, %v10297_v54  ;;  %v12259_v18 = vadd.f32 %v9325_v28, %v16644_v57  ;;  %v10031_v13 = vpop.f32.mrb[232].mxu1  ;;  %v9327_v47 = vpop.f32.mrb[233].mxu0 }
 0x8c8   : > { %v11174_v48 = vadd.f32 %v11173_v29, %v10936_v30  ;;  %v11105_v45 = vadd.f32 %v11104_v40, %v10935_v20  ;;  %v12387_v43 = vadd.f32 %v10031_v13, %v16644_v57  ;;  %v12260_v0 = vadd.f32 %v9327_v47, %v16644_v57  ;;  %v10033_v22 = vpop.f32.mrb[233].mxu1  ;;  %v9329_v23 = vpop.f32.mrb[234].mxu0 }
 0x8c9   : > { %v11243_v5 = vadd.f32 %v11242_v55, %v10937_v8  ;;  %v10298_v32 = vmax.f32 %v12259_v18, 0.0  ;;  %v12388_v50 = vadd.f32 %v10033_v22, %v16644_v57  ;;  %v12261_v41 = vadd.f32 %v9329_v23, %v16646_v34  ;;  %v10035_v9 = vpop.f32.mrb[234].mxu1  ;;  %v9331_v62 = vpop.f32.mrb[235].mxu0 }
 0x8ca   : > { %v10300_v16 = vmax.f32 %v12387_v43, 0.0  ;;  %v10299_v42 = vmax.f32 %v12260_v0, 0.0  ;;  %v12389_v27 = vadd.f32 %v10035_v9, %v16646_v34  ;;  %v12262_v19 = vadd.f32 %v9331_v62, %v16646_v34  ;;  %v10037_v52 = vpop.f32.mrb[235].mxu1  ;;  %v10683_v18 = vpop.permute.xlu0 %10682 }
 0x8cb   : > { %v10938_v26 = vmul.f32 %v10673_v6, %v10298_v32  ;;  %v10301_v14 = vmax.f32 %v12388_v50, 0.0  ;;  %v10302_v25 = vmax.f32 %v12261_v41, 0.0  ;;  %v12390_v24 = vadd.f32 %v10037_v52, %v16646_v34  ;;  %v10688_v32 = vpop.permute.xlu1 %10687 }
 0x8cc   : > { %v10940_v11 = vmul.f32 %v10673_v6, %v10300_v16  ;;  %v10939_v57 = vmul.f32 %v10673_v6, %v10299_v42  ;;  %v10304_v1 = vmax.f32 %v12389_v27, 0.0  ;;  %v10303_v53 = vmax.f32 %v12262_v19, 0.0 }
 0x8cd   : > { %v11037_v15 = vadd.f32 %v11036_v37, %v10938_v26  ;;  %v10941_v4 = vmul.f32 %v10673_v6, %v10301_v14  ;;  %v10942_v49 = vmul.f32 %v10678_v38, %v10302_v25  ;;  %v10305_v31 = vmax.f32 %v12390_v24, 0.0 }
 0x8ce   : > { %v11175_v59 = vadd.f32 %v11174_v48, %v10940_v11  ;;  %v11106_v21 = vadd.f32 %v11105_v45, %v10939_v57  ;;  %v10944_v44 = vmul.f32 %v10678_v38, %v10304_v1  ;;  %v10943_v12 = vmul.f32 %v10678_v38, %v10303_v53  ;;  %v9335_v56 = vpop.f32.mrb[236].mxu0 }
 0x8cf   : > { %v11244_v17 = vadd.f32 %v11243_v5, %v10941_v4  ;;  %v11038_v60 = vadd.f32 %v11037_v15, %v10942_v49  ;;  %v10945_v61 = vmul.f32 %v10678_v38, %v10305_v31  ;;  %v12263_v35 = vadd.f32 %v9335_v56, %v16648_v36  ;;  %v10041_v34 = vpop.f32.mrb[236].mxu1  ;;  %v9337_v3 = vpop.f32.mrb[237].mxu0 }
 0x8d0   : > { %v11176_v7 = vadd.f32 %v11175_v59, %v10944_v44  ;;  %v11107_v46 = vadd.f32 %v11106_v21, %v10943_v12  ;;  %v12391_v2 = vadd.f32 %v10041_v34, %v16648_v36  ;;  %v12264_v54 = vadd.f32 %v9337_v3, %v16648_v36  ;;  %v10043_v29 = vpop.f32.mrb[237].mxu1  ;;  %v9339_v40 = vpop.f32.mrb[238].mxu0 }
 0x8d1   : > { %v11245_v30 = vadd.f32 %v11244_v17, %v10945_v61  ;;  %v10306_v20 = vmax.f32 %v12263_v35, 0.0  ;;  %v12392_v28 = vadd.f32 %v10043_v29, %v16648_v36  ;;  %v12265_v55 = vadd.f32 %v9339_v40, %v16650_v58  ;;  %v10045_v37 = vpop.f32.mrb[238].mxu1  ;;  %v9341_v8 = vpop.f32.mrb[239].mxu0 }
 0x8d2   : > { %v10308_v13 = vmax.f32 %v12391_v2, 0.0  ;;  %v10307_v47 = vmax.f32 %v12264_v54, 0.0  ;;  %v12393_v48 = vadd.f32 %v10045_v37, %v16650_v58  ;;  %v12266_v45 = vadd.f32 %v9341_v8, %v16650_v58  ;;  %v10047_v43 = vpop.f32.mrb[239].mxu1  ;;  %v10698_v40 = vpop.permute.xlu1 %10697 }
 0x8d3   : > { %v10946_v0 = vmul.f32 %v10683_v18, %v10306_v20  ;;  %v10309_v22 = vmax.f32 %v12392_v28, 0.0  ;;  %v10310_v23 = vmax.f32 %v12265_v55, 0.0  ;;  %v12394_v5 = vadd.f32 %v10047_v43, %v16650_v58 }
 0x8d4   : > { %v10948_v50 = vmul.f32 %v10683_v18, %v10308_v13  ;;  %v10947_v36 = vmul.f32 %v10683_v18, %v10307_v47  ;;  %v10312_v41 = vmax.f32 %v12393_v48, 0.0  ;;  %v10311_v9 = vmax.f32 %v12266_v45, 0.0 }
 0x8d5   : > { %v11039_v62 = vadd.f32 %v11038_v60, %v10946_v0  ;;  %v10949_v6 = vmul.f32 %v10683_v18, %v10309_v22  ;;  %v10950_v16 = vmul.f32 %v10688_v32, %v10310_v23  ;;  %v10313_v42 = vmax.f32 %v12394_v5, 0.0  ;;  %v10693_v60 = vpop.permute.xlu0 %10692 }
 0x8d6   : > { %v11177_v27 = vadd.f32 %v11176_v7, %v10948_v50  ;;  %v11108_v19 = vadd.f32 %v11107_v46, %v10947_v36  ;;  %v10952_v52 = vmul.f32 %v10688_v32, %v10312_v41  ;;  %v10951_v26 = vmul.f32 %v10688_v32, %v10311_v9  ;;  %v9345_v14 = vpop.f32.mrb[240].mxu0 }
 0x8d7   : > { %v11246_v25 = vadd.f32 %v11245_v30, %v10949_v6  ;;  %v11040_v24 = vadd.f32 %v11039_v62, %v10950_v16  ;;  %v10953_v38 = vmul.f32 %v10688_v32, %v10313_v42  ;;  %v12267_v11 = vadd.f32 %v9345_v14, %v16652_v39  ;;  %v10051_v58 = vpop.f32.mrb[240].mxu1  ;;  %v9347_v57 = vpop.f32.mrb[241].mxu0 }
 0x8d8   : > { %v11178_v1 = vadd.f32 %v11177_v27, %v10952_v52  ;;  %v11109_v53 = vadd.f32 %v11108_v19, %v10951_v26  ;;  %v12395_v15 = vadd.f32 %v10051_v58, %v16652_v39  ;;  %v12268_v4 = vadd.f32 %v9347_v57, %v16652_v39  ;;  %v10053_v49 = vpop.f32.mrb[241].mxu1  ;;  %v9349_v31 = vpop.f32.mrb[242].mxu0 }
 0x8d9   : > { %v11247_v59 = vadd.f32 %v11246_v25, %v10953_v38  ;;  %v10314_v21 = vmax.f32 %v12267_v11, 0.0  ;;  %v12396_v44 = vadd.f32 %v10053_v49, %v16652_v39  ;;  %v12269_v12 = vadd.f32 %v9349_v31, %v16654_v10  ;;  %v10055_v56 = vpop.f32.mrb[242].mxu1  ;;  %v9351_v17 = vpop.f32.mrb[243].mxu0 }
 0x8da   : > { %v10316_v61 = vmax.f32 %v12395_v15, 0.0  ;;  %v10315_v35 = vmax.f32 %v12268_v4, 0.0  ;;  %v12397_v34 = vadd.f32 %v10055_v56, %v16654_v10  ;;  %v12270_v3 = vadd.f32 %v9351_v17, %v16654_v10  ;;  %v10057_v7 = vpop.f32.mrb[243].mxu1  ;;  %v10703_v14 = vpop.permute.xlu0 %10702 }
 0x8db   : > { %v10954_v46 = vmul.f32 %v10693_v60, %v10314_v21  ;;  %v10317_v2 = vmax.f32 %v12396_v44, 0.0  ;;  %v10318_v54 = vmax.f32 %v12269_v12, 0.0  ;;  %v12398_v29 = vadd.f32 %v10057_v7, %v16654_v10  ;;  %v10708_v4 = vpop.permute.xlu1 %10707 }
 0x8dc   : > { %v10956_v30 = vmul.f32 %v10693_v60, %v10316_v61  ;;  %v10955_v39 = vmul.f32 %v10693_v60, %v10315_v35  ;;  %v10320_v20 = vmax.f32 %v12397_v34, 0.0  ;;  %v10319_v28 = vmax.f32 %v12270_v3, 0.0 }
 0x8dd   : > { %v11041_v55 = vadd.f32 %v11040_v24, %v10954_v46  ;;  %v10957_v37 = vmul.f32 %v10693_v60, %v10317_v2  ;;  %v10958_v8 = vmul.f32 %v10698_v40, %v10318_v54  ;;  %v10321_v18 = vmax.f32 %v12398_v29, 0.0 }
 0x8de   : > { %v11179_v13 = vadd.f32 %v11178_v1, %v10956_v30  ;;  %v11110_v47 = vadd.f32 %v11109_v53, %v10955_v39  ;;  %v10960_v48 = vmul.f32 %v10698_v40, %v10320_v20  ;;  %v10959_v45 = vmul.f32 %v10698_v40, %v10319_v28  ;;  %v9355_v43 = vpop.f32.mrb[244].mxu0 }
 0x8df   : > { %v11248_v0 = vadd.f32 %v11247_v59, %v10957_v37  ;;  %v11042_v22 = vadd.f32 %v11041_v55, %v10958_v8  ;;  %v10961_v23 = vmul.f32 %v10698_v40, %v10321_v18  ;;  %v12271_v5 = vadd.f32 %v9355_v43, %v16656_v33  ;;  %v10061_v10 = vpop.f32.mrb[244].mxu1  ;;  %v9357_v32 = vpop.f32.mrb[245].mxu0  ;;  %v17193_v18 = vld [vmem:[#allocation20_spill] sm:$0xff] }
 0x8e0   : > { %v11180_v50 = vadd.f32 %v11179_v13, %v10960_v48  ;;  %v11111_v36 = vadd.f32 %v11110_v47, %v10959_v45  ;;  %v12399_v41 = vadd.f32 %v10061_v10, %v16656_v33  ;;  %v12272_v9 = vadd.f32 %v9357_v32, %v16656_v33  ;;  %v10063_v62 = vpop.f32.mrb[245].mxu1  ;;  %v9359_v6 = vpop.f32.mrb[246].mxu0 }
 0x8e1   : > { %v11249_v16 = vadd.f32 %v11248_v0, %v10961_v23  ;;  %v10322_v42 = vmax.f32 %v12271_v5, 0.0  ;;  %v12400_v27 = vadd.f32 %v10063_v62, %v16656_v33  ;;  %v12273_v19 = vadd.f32 %v9359_v6, %v16658_v63  ;;  %v10065_v52 = vpop.f32.mrb[246].mxu1  ;;  %v9361_v26 = vpop.f32.mrb[247].mxu0 }
 0x8e2   : > { %v10324_v25 = vmax.f32 %v12399_v41, 0.0  ;;  %v10323_v24 = vmax.f32 %v12272_v9, 0.0  ;;  %v12401_v38 = vadd.f32 %v10065_v52, %v16658_v63  ;;  %v12274_v11 = vadd.f32 %v9361_v26, %v16658_v63  ;;  %v10067_v58 = vpop.f32.mrb[247].mxu1  ;;  %v10713_v45 = vpop.permute.xlu0 %10712 }
 0x8e3   : > { %v10962_v57 = vmul.f32 %v10703_v14, %v10322_v42  ;;  %v10325_v1 = vmax.f32 %v12400_v27, 0.0  ;;  %v10326_v53 = vmax.f32 %v12273_v19, 0.0  ;;  %v12402_v15 = vadd.f32 %v10067_v58, %v16658_v63  ;;  %v10718_v41 = vpop.permute.xlu1 %10717 }
 0x8e4   : > { %v10964_v49 = vmul.f32 %v10703_v14, %v10324_v25  ;;  %v10963_v33 = vmul.f32 %v10703_v14, %v10323_v24  ;;  %v10328_v31 = vmax.f32 %v12401_v38, 0.0  ;;  %v10327_v59 = vmax.f32 %v12274_v11, 0.0 }
 0x8e5   : > { %v11043_v21 = vadd.f32 %v11042_v22, %v10962_v57  ;;  %v10965_v44 = vmul.f32 %v10703_v14, %v10325_v1  ;;  %v10966_v12 = vmul.f32 %v10708_v4, %v10326_v53  ;;  %v10329_v56 = vmax.f32 %v12402_v15, 0.0  ;;  %v17194_v57 = vld [vmem:[#allocation17_spill] sm:$0xff] }
 0x8e6   : > { %v11181_v17 = vadd.f32 %v11180_v50, %v10964_v49  ;;  %v11112_v60 = vadd.f32 %v11111_v36, %v10963_v33  ;;  %v10968_v61 = vmul.f32 %v10708_v4, %v10328_v31  ;;  %v10967_v35 = vmul.f32 %v10708_v4, %v10327_v59  ;;  %v9365_v34 = vpop.f32.mrb[248].mxu0 }
 0x8e7   : > { %v11250_v3 = vadd.f32 %v11249_v16, %v10965_v44  ;;  %v11044_v7 = vadd.f32 %v11043_v21, %v10966_v12  ;;  %v10969_v46 = vmul.f32 %v10708_v4, %v10329_v56  ;;  %v12275_v2 = vadd.f32 %v9365_v34, %v16660_v51  ;;  %v10071_v63 = vpop.f32.mrb[248].mxu1  ;;  %v9367_v54 = vpop.f32.mrb[249].mxu0 }
 0x8e8   : > { %v11182_v29 = vadd.f32 %v11181_v17, %v10968_v61  ;;  %v11113_v40 = vadd.f32 %v11112_v60, %v10967_v35  ;;  %v12403_v30 = vadd.f32 %v10071_v63, %v16660_v51  ;;  %v12276_v39 = vadd.f32 %v9367_v54, %v16660_v51  ;;  %v10073_v20 = vpop.f32.mrb[249].mxu1  ;;  %v9369_v28 = vpop.f32.mrb[250].mxu0  ;;  %v17195_v17 = vld [vmem:[#allocation22_spill] sm:$0xff] }
 0x8e9   : > { %v11251_v55 = vadd.f32 %v11250_v3, %v10969_v46  ;;  %v10330_v37 = vmax.f32 %v12275_v2, 0.0  ;;  %v12404_v8 = vadd.f32 %v10073_v20, %v16660_v51  ;;  %v12277_v13 = vadd.f32 %v9369_v28, %v17193_v18  ;;  %v10075_v47 = vpop.f32.mrb[250].mxu1  ;;  %v9371_v48 = vpop.f32.mrb[251].mxu0 }
 0x8ea   : > { %v10332_v43 = vmax.f32 %v12403_v30, 0.0  ;;  %v10331_v0 = vmax.f32 %v12276_v39, 0.0  ;;  %v12405_v22 = vadd.f32 %v10075_v47, %v17193_v18  ;;  %v12278_v23 = vadd.f32 %v9371_v48, %v17193_v18  ;;  %v10077_v5 = vpop.f32.mrb[251].mxu1  ;;  %v10723_v34 = vpop.permute.xlu0 %10722 }
 0x8eb   : > { %v10970_v10 = vmul.f32 %v10713_v45, %v10330_v37  ;;  %v10333_v32 = vmax.f32 %v12404_v8, 0.0  ;;  %v10334_v50 = vmax.f32 %v12277_v13, 0.0  ;;  %v12406_v36 = vadd.f32 %v10077_v5, %v17193_v18  ;;  %v10728_v39 = vpop.permute.xlu1 %10727 }
 0x8ec   : > { %v10972_v9 = vmul.f32 %v10713_v45, %v10332_v43  ;;  %v10971_v51 = vmul.f32 %v10713_v45, %v10331_v0  ;;  %v10336_v62 = vmax.f32 %v12405_v22, 0.0  ;;  %v10335_v6 = vmax.f32 %v12278_v23, 0.0 }
 0x8ed   : > { %v11045_v16 = vadd.f32 %v11044_v7, %v10970_v10  ;;  %v10973_v42 = vmul.f32 %v10713_v45, %v10333_v32  ;;  %v10974_v27 = vmul.f32 %v10718_v41, %v10334_v50  ;;  %v10337_v19 = vmax.f32 %v12406_v36, 0.0 }
 0x8ee   : > { %v11183_v52 = vadd.f32 %v11182_v29, %v10972_v9  ;;  %v11114_v26 = vadd.f32 %v11113_v40, %v10971_v51  ;;  %v10976_v14 = vmul.f32 %v10718_v41, %v10336_v62  ;;  %v10975_v25 = vmul.f32 %v10718_v41, %v10335_v6  ;;  %v9375_v24 = vpop.f32.mrb[252].mxu0 }
 0x8ef   : > { %v11252_v38 = vadd.f32 %v11251_v55, %v10973_v42  ;;  %v11046_v11 = vadd.f32 %v11045_v16, %v10974_v27  ;;  %v10977_v58 = vmul.f32 %v10718_v41, %v10337_v19  ;;  %v12279_v1 = vadd.f32 %v9375_v24, %v17194_v57  ;;  %v10081_v53 = vpop.f32.mrb[252].mxu1  ;;  %v9377_v15 = vpop.f32.mrb[253].mxu0 }
 0x8f0   : > { %v11184_v4 = vadd.f32 %v11183_v52, %v10976_v14  ;;  %v11115_v49 = vadd.f32 %v11114_v26, %v10975_v25  ;;  %v12407_v33 = vadd.f32 %v10081_v53, %v17194_v57  ;;  %v12280_v31 = vadd.f32 %v9377_v15, %v17194_v57  ;;  %v10083_v59 = vpop.f32.mrb[253].mxu1  ;;  %v9379_v21 = vpop.f32.mrb[254].mxu0 }
 0x8f1   : > { %v11253_v44 = vadd.f32 %v11252_v38, %v10977_v58  ;;  %v10338_v12 = vmax.f32 %v12279_v1, 0.0  ;;  %v12408_v56 = vadd.f32 %v10083_v59, %v17194_v57  ;;  %v12281_v60 = vadd.f32 %v9379_v21, %v17195_v17  ;;  %v10085_v61 = vpop.f32.mrb[254].mxu1  ;;  %v9381_v35 = vpop.f32.mrb[255].mxu0 }
 0x8f2   : > { %v10340_v3 = vmax.f32 %v12407_v33, 0.0  ;;  %v10339_v7 = vmax.f32 %v12280_v31, 0.0  ;;  %v12409_v46 = vadd.f32 %v10085_v61, %v17195_v17  ;;  %v12282_v2 = vadd.f32 %v9381_v35, %v17195_v17  ;;  %v10087_v63 = vpop.f32.mrb[255].mxu1  ;;  %v11266_v57 = vpop.permute.xlu0 %11265 }
 0x8f3   : > { %v10978_v54 = vmul.f32 %v10723_v34, %v10338_v12  ;;  %v10341_v29 = vmax.f32 %v12408_v56, 0.0  ;;  %v10342_v40 = vmax.f32 %v12281_v60, 0.0  ;;  %v12410_v30 = vadd.f32 %v10087_v63, %v17195_v17 }
 0x8f4   : > { %v10980_v20 = vmul.f32 %v10723_v34, %v10340_v3  ;;  %v10979_v28 = vmul.f32 %v10723_v34, %v10339_v7  ;;  %v10344_v55 = vmax.f32 %v12409_v46, 0.0  ;;  %v10343_v37 = vmax.f32 %v12282_v2, 0.0 }
 0x8f5   : > { %v11047_v8 = vadd.f32 %v11046_v11, %v10978_v54  ;;  %v10981_v18 = vmul.f32 %v10723_v34, %v10341_v29  ;;  %v10982_v13 = vmul.f32 %v10728_v39, %v10342_v40  ;;  %v10345_v47 = vmax.f32 %v12410_v30, 0.0 }
 0x8f6   : > { %v11185_v48 = vadd.f32 %v11184_v4, %v10980_v20  ;;  %v11116_v45 = vadd.f32 %v11115_v49, %v10979_v28  ;;  %v10984_v43 = vmul.f32 %v10728_v39, %v10344_v55  ;;  %v10983_v0 = vmul.f32 %v10728_v39, %v10343_v37 }
 0x8f7   : > { %v11268_v22 = vlaneseq  ;;  %v11254_v23 = vadd.f32 %v11253_v44, %v10981_v18  ;;  %v11048_v5 = vadd.f32 %v11047_v8, %v10982_v13  ;;  %v10985_v10 = vmul.f32 %v10728_v39, %v10345_v47 }
 0x8f8   : > { %v11186_v32 = vadd.f32 %v11185_v48, %v10984_v43  ;;  %v11117_v50 = vadd.f32 %v11116_v45, %v10983_v0  ;;  %v14677_v26 = vmov 1966171168  }
 0x8f9   : > { %v11049_v36 = vrot.slane %v11048_v5, 4  ;;  %v11255_v41 = vadd.f32 %v11254_v23, %v10985_v10  ;;  %v11269_v62 = vshrl.u32 %v11268_v22, 7  ;;  %v11283_v14 = vunpack.c.l.s4 %v14677_v26 }
 0x8fa   : > { %v11187_v9 = vrot.slane %v11186_v32, 4  ;;  %v11118_v51 = vrot.slane %v11117_v50, 4  ;;  %vm11307_vm0 = vcmp.lt.s32.totalorder %v11268_v22, 512 }
 0x8fb   : > { %v11050_v6 = vadd.f32 %v11049_v36, %v11048_v5  ;;  %v11256_v16 = vrot.slane %v11255_v41, 4  ;;  %v11270_v38 = vsub.s32 0, %v11269_v62  ;;  %v11284_v49 = vunpack.c.0.s8 %v11283_v14 }
 0x8fc   : > { %v11188_v42 = vadd.f32 %v11187_v9, %v11186_v32  ;;  %v11119_v27 = vadd.f32 %v11118_v51, %v11117_v50 }
 0x8fd   : > { %v11051_v19 = vrot.slane %v11050_v6, 2  ;;  %v11257_v52 = vadd.f32 %v11256_v16, %v11255_v41  ;;  %v11271_v59 = vrot.slane %v11266_v57, %v11270_v38  ;;  %v11287_v61 = vsub.s32 %v11284_v49, %v11269_v62 }
 0x8fe   : > { %v11189_v25 = vrot.slane %v11188_v42, 2  ;;  %v11120_v24 = vrot.slane %v11119_v27, 2 }
 0x8ff   : > { %v11052_v11 = vadd.f32 %v11051_v19, %v11050_v6  ;;  %v11258_v58 = vrot.slane %v11257_v52, 2 }
 0x900   : > { %v11190_v1 = vadd.f32 %v11189_v25, %v11188_v42  ;;  %v11121_v53 = vadd.f32 %v11120_v24, %v11119_v27 }
 0x901   : > { %v11053_v15 = vrot.slane %v11052_v11, 1  ;;  %v11259_v4 = vadd.f32 %v11258_v58, %v11257_v52 }
 0x902   : > { %v11191_v33 = vrot.slane %v11190_v1, 1  ;;  %v11122_v31 = vrot.slane %v11121_v53, 1 }
 0x903   : > { %v11054_v21 = vadd.f32 %v11053_v15, %v11052_v11  ;;  %v11260_v44 = vrot.slane %v11259_v4, 1 }
 0x904   : > { %v11192_v12 = vadd.f32 %v11191_v33, %v11190_v1  ;;  %v11123_v56 = vadd.f32 %v11122_v31, %v11121_v53 }
 0x905   : > { %v11272_v17 = vadd.f32 %v11271_v59, %v11054_v21  ;;  %v11261_v60 = vadd.f32 %v11260_v44, %v11259_v4 }
 0x906   : > { %v11274_v35 = vadd.f32 %v11271_v59, %v11192_v12  ;;  %v11273_v34 = vadd.f32 %v11271_v59, %v11123_v56 }
 0x907   : > { %v11275_v3 = vadd.f32 %v11271_v59, %v11261_v60 }
 0x908   : > { %v11280_v7 = vcombine.low %v11272_v17, %v11273_v34 }
 0x909   : > { %v11281_v46 = vcombine.low %v11274_v35, %v11275_v3 }
 0x90a   : > { %v11288_v2 = vrot.slane %v11280_v7, %v11287_v61 }
 0x90b   : > { %v11295_v63 = vrot.slane %v11281_v46, %v11287_v61 }
 0x90d   : > { %v11296_v54 = vcombine.low %v11288_v2, %v11295_v63 }
 0x90f   : > { %v11303_v29 = vrot.slane %v11296_v54, %v11287_v61 }
 0x911   : > { %11309 = vst.msk [vmem:[%s345_s20] sm:$0xf] %vm11307_vm0, %v11303_v29 }
 0x912   : > { %14575 = shalt.err (!%p14572_p9)
}
 0x913   : > { %s14576_s14 = scalar_lea.hbm %s16930_s7, 64  ;;  %s14580_s6 = scalar_lea.hbm %s17196_s18, 256 }
 0x914   : > { %p14577_p5 = scmp.ne.s32.totalorder %s16930_s7, %s14576_s14  ;;  %p14581_p10 = scmp.lt.u32.totalorder %s16930_s7, %s17196_s18 }
 0x915   : > { %p14582_p11 = scmp.lt.u32.totalorder %s14580_s6, %s14576_s14  ;;  %p14584_p12 = scmp.lt.u32.totalorder %s14576_s14, %s16930_s7 }
 0x916   : > { %p14578_p0 = pnand %p14577_p5, %p17197_p13 }
 0x917   : > { %p14583_p2 = por %p14582_p11, %p14581_p10 }
 0x918   : > { %p14579_p4 = pneg %p14578_p0 }
 0x919   : > { %p14585_p3 = por %p14584_p12, %p14583_p2 }
 0x91b   : > { %p14586_p7 = pnand %p14585_p3, %p14579_p4 }
 0x91d   : > { %14589 = shalt.err (!%p14586_p7)
}
 0x91e   : > { %13704 = dma.vmem_to_hbm [thread:$0]  (%p17197_p13), %s16932_s3, 64, %s16930_s7, %s11311_s29  }
 0x91f PF: > { %s17198_s22 = sld [smem:[#allocation14_spill]]  ;;  %s17199_s1 = sld [smem:[#allocation13_spill]] }
 0x920   : > { %s17200_s21 = sld [smem:[#allocation15_spill]] }
 0x925   : > { %p13726_p6 = scmp.ge.s32.totalorder %s17198_s22, 2  ;;  %s11339_s20 = sand.u32 1, %s17199_s1  }
 0x926   : > { %p17201_p8 = scmp.ne.s32.totalorder %s17200_s21, 0  ;;  %s11340_s13 = scalar_lea.sflag [#allocation5], %s11339_s20 }
 0x928   : > { %p13718_p1 = pnand %p13726_p6, %p17201_p8 }
 0x92a   : > { %14631 = dma.done.wait (!%p13718_p1), %s11340_s13, 64  }
 0x92b   : > { %14633 = vsyncadd (!%p13718_p1), %s11340_s13, 4294967232  ;;  %s26_s6 = sadd.s32 1, %s17198_s22   ;;  %s17202_s16 = sld [smem:[#allocation16_spill]] }
 0x92c   : > { %p23_p9 = scmp.ge.s32.totalorder %s26_s6, 6   ;;  %s17203_s26 = smov %s14640_s27 }
 0x92d   : > { %s17204_s27 = smov %s14644_s28  ;;  %s17205_s28 = smov %s14893_s25 }
 0x92e   : > { %s17206_s29 = smov %s14656_s8  ;;  %s17207_s30 = smov %s14660_s9 }
 0x92f   : > { %s17209_s9 = smov %s17215_s10  ;;  %25 = sbr.rel (!%p23_p9) target bundleno = 12 (0xc), region = 101 }
 0x931   : > { %s17208_s8 = smov %s17202_s16 }
 0x936   :  { %11345 = vsyncpa [#allocation4], 1 }
 0x937   :  { %11347 = vsyncpa [#allocation4 + $0x1], 1 }
 0x938   :  { %11348 = vsyncpa [#allocation7], 1 }
 0x939   :  { %11349 = vsyncpa [#allocation5], 1 }
 0x93a   :  { %11351 = vsyncpa [#allocation5 + $0x1], 1 }

</bundles_post_ra>
